<compile_context>
chip_gen: v7x
topology: tpu7x:2x2x1
jax: 0.10.0
libtpu: 0.0.40
codegen_flags: <defaults>
</compile_context>

<pallas_src>
import functools

import jax
import jax.numpy as jnp
from jax.experimental import pallas as pl
from jax.experimental.pallas import tpu as pltpu

F32 = jnp.float32
VMEM = pltpu.MemorySpace.VMEM
SMEM = pltpu.MemorySpace.SMEM

# SAM hyper-parameters (module defaults)
L, D, D_DOWN, BOTTLE, EMB = 196, 512, 16, 8, 10


# --------------------------- Pallas kernels ---------------------------------

def _sam_mlp_kernel(coords_ref, vgg_ref, w_se_ref, b_se_ref, w_pre_ref,
                    b_pre_ref, w_m1f_ref, w_m1c_ref, b_m1_ref, w_m2_ref,
                    b_m2_ref, out_ref):
    """SAM MLP:  attn_h[p] = relu(relu([fp | ce_p] @ W1 + b1) @ W2 + b2).

    fp = vgg @ w_pre (+bias) and its W1 contribution are computed once for all
    pedestrians (exactly equivalent to the PyTorch `vgg.repeat(npeds, ...)`
    formulation, which recomputes identical rows npeds times).
    """
    npeds = out_ref.shape[0]

    # spatial embedding of last-step coords and its W1 contribution: (V, 512)
    ce = jnp.dot(coords_ref[...], w_se_ref[...],
                 preferred_element_type=jnp.float32) + b_se_ref[...]
    ce_m1 = jnp.dot(ce, w_m1c_ref[...], preferred_element_type=jnp.float32)

    # scene features, projected once (de-broadcast): (L, 16) -> (L, 512)
    fp = jnp.dot(vgg_ref[...], w_pre_ref[...],
                 preferred_element_type=jnp.float32) + b_pre_ref[...]
    base = jnp.dot(fp, w_m1f_ref[...],
                   preferred_element_type=jnp.float32) + b_m1_ref[...]

    w_m2 = w_m2_ref[...]
    b_m2 = b_m2_ref[...]
    for p in range(npeds):                              # static unroll, npeds small
        h1 = jnp.maximum(base + ce_m1[p:p + 1, :], 0.0)               # (L, 512)
        h2 = jnp.dot(h1, w_m2, preferred_element_type=jnp.float32) + b_m2
        out_ref[p] = jnp.maximum(h2, 0.0)                             # (L, 8)


def _tail_kernel(flat_t_ref, h3_ref, w_attn_ref, b_attn_ref, x2d_ref, bd_ref,
                 tile_v_ref, w_emb_x_ref, w_emb_s_ref, b_emb_ref, w_gconv_ref,
                 b_gconv_ref, bn1_g_ref, bn1_b_ref, w_t_ref, b_t_ref,
                 bn2_g_ref, bn2_b_ref, w_r_ref, b_r_ref, bnr_g_ref, bnr_b_ref,
                 a_ref, o_ref, ypad_ref, *, t, v, k_t, pad, front):
    """SAM attention tail + GCN + TCN + residual + output PReLU, fused."""
    eps = 1e-5
    npeds = h3_ref.shape[0]

    # ---- attention: logits in (L, npeds) orientation (peds on lanes) --------
    logits_t = jnp.dot(w_attn_ref[...], flat_t_ref[...],
                       preferred_element_type=jnp.float32) + b_attn_ref[...]
    m = jnp.max(logits_t, axis=0, keepdims=True)
    e = jnp.exp(logits_t - m)
    denom = jnp.sum(e, axis=0, keepdims=True)
    aw_t = e * pl.reciprocal(denom, approx=True)                      # (L, V)

    # weighted sum over L on the VPU (column x tile broadcast + sublane reduce)
    h3 = h3_ref[...]                                                  # (V, L, 8)
    rows = []
    for p in range(npeds):                                            # static
        wcol = aw_t[:, p:p + 1]                                       # (L, 1)
        rows.append(jnp.sum(wcol * h3[p], axis=0, keepdims=True))     # (1, 8)
    ssa = jnp.concatenate(rows, axis=0)                               # (V, 8)

    # ---- GCN: embedding Linear(10,5) + 1x1 conv + graph contraction ---------
    x2d = x2d_ref[...]                                                # (T*V, C_in)
    # broadcast ssa over T exactly (tile of eye(V) @ ssa, built in the wrapper)
    ssa_b = jnp.dot(tile_v_ref[...], ssa, preferred_element_type=jnp.float32)
    u = (jnp.dot(x2d, w_emb_x_ref[...], preferred_element_type=jnp.float32)
         + jnp.dot(ssa_b, w_emb_s_ref[...], preferred_element_type=jnp.float32)
         + b_emb_ref[...])                                            # (T*V, 5)
    g = jnp.dot(u, w_gconv_ref[...],
                preferred_element_type=jnp.float32) + b_gconv_ref[...]
    # einsum('nctv,tvw->nctw') as one block-diagonal matmul (bd[t] = A[t]^T)
    y = jnp.dot(bd_ref[...], g, preferred_element_type=jnp.float32)   # (T*V, C)

    def bn(z, gamma, beta):
        mu = jnp.mean(z, axis=0, keepdims=True)
        var = jnp.mean((z - mu) ** 2, axis=0, keepdims=True)
        return (z - mu) * jax.lax.rsqrt(var + eps) * gamma + beta

    # ---- TCN: BN -> PReLU -> Conv2d((k_t,1), pad (pad,0)) -> BN -------------
    yb = bn(y, bn1_g_ref[...], bn1_b_ref[...])
    a1 = a_ref[0]
    yb = jnp.where(yb >= 0, yb, a1 * yb)

    # zero-padded temporal window via VMEM scratch (no jnp.concatenate padding)
    ypad_ref[...] = jnp.zeros_like(ypad_ref)
    ypad_ref[pl.ds(front, t * v), :] = yb            # aligned store (front % 8 == 0)
    ypad = ypad_ref[...]
    acc = None
    for dt in range(k_t):                            # static unroll over taps
        off = front + (dt - pad) * v                 # static offset
        tap = jnp.dot(ypad[off:off + t * v, :], w_t_ref[dt],
                      preferred_element_type=jnp.float32)
        acc = tap if acc is None else acc + tap
    z = bn(acc + b_t_ref[...], bn2_g_ref[...], bn2_b_ref[...])   # Dropout(0) == id

    # ---- residual branch: 1x1 conv + BN -------------------------------------
    r = jnp.dot(x2d, w_r_ref[...],
                preferred_element_type=jnp.float32) + b_r_ref[...]
    r = bn(r, bnr_g_ref[...], bnr_b_ref[...])

    out = z + r
    a2 = a_ref[1]
    o_ref[...] = jnp.where(out >= 0, out, a2 * out)               # final PReLU


# --------------------------- parameter init ---------------------------------

def init_params(key, in_channels, out_channels, k_t):
    ks = jax.random.split(key, 26)

    def w(k, shape, scale=0.1):
        return scale * jax.random.normal(k, shape, F32)

    p = {}
    # SAM (scene_att).  Linear weights stored (in, out); w_m1 pre-split into its
    # scene-feature (first D_DOWN) and coord-embedding (last EMB) row blocks so
    # the scene half can be computed once for all pedestrians.
    p['w_se'] = w(ks[0], (2, EMB));               p['b_se'] = w(ks[1], (1, EMB))
    p['w_pre'] = w(ks[2], (D, D_DOWN));           p['b_pre'] = w(ks[3], (1, D_DOWN))
    p['w_m1_fp'] = w(ks[4], (D_DOWN, 512))
    p['w_m1_ce'] = w(ks[5], (EMB, 512));          p['b_m1'] = w(ks[6], (1, 512))
    p['w_m2'] = w(ks[7], (512, BOTTLE));          p['b_m2'] = w(ks[8], (1, BOTTLE))
    # attention Linear stored in PyTorch (out, in) layout for the transposed matmul
    p['w_attn_t'] = w(ks[9], (L, L * BOTTLE));    p['b_attn'] = w(ks[10], (L, 1))
    # GCN: embedding Linear(10,5) split into x / scene-attention halves, 1x1 conv
    p['w_emb_x'] = w(ks[11], (in_channels, 5))
    p['w_emb_s'] = w(ks[12], (BOTTLE, 5));        p['b_emb'] = w(ks[13], (1, 5))
    p['w_gconv'] = w(ks[14], (5, out_channels));  p['b_gconv'] = w(ks[15], (1, out_channels))
    # TCN
    p['bn1_g'] = 1.0 + w(ks[16], (1, out_channels)); p['bn1_b'] = w(ks[17], (1, out_channels))
    p['w_t'] = w(ks[18], (k_t, out_channels, out_channels)); p['b_t'] = w(ks[19], (1, out_channels))
    p['bn2_g'] = 1.0 + w(ks[20], (1, out_channels)); p['bn2_b'] = w(ks[21], (1, out_channels))
    # residual branch (in_channels != out_channels -> conv1x1 + BN)
    p['w_r'] = w(ks[22], (in_channels, out_channels)); p['b_r'] = w(ks[23], (1, out_channels))
    p['bnr_g'] = 1.0 + w(ks[24], (1, out_channels)); p['bnr_b'] = w(ks[25], (1, out_channels))
    # PReLU slopes (PyTorch default 0.25): [tcn-internal, output]
    p['prelu'] = jnp.array([0.25, 0.25], F32)
    return p


# --------------------------- forward wrapper ---------------------------------

def sam_conv_forward(params, x, A, vgg, k_t):
    """SAM_conv.forward.  x: (1, C_in, T, V), A: (T, V, V), vgg: (1, L, D)."""
    n, c_in, t, v = x.shape
    assert n == 1 and A.shape[0] == t and A.shape[1] == v
    npeds = v
    p = params

    # ---- Kernel 1: SAM MLP (heavy matmuls, de-broadcast over pedestrians) ----
    coords = jnp.transpose(x[0, :, -1, :], (1, 0)).astype(F32)         # (V, 2)
    vgg2d = vgg.reshape(L, D).astype(F32)                              # (L, D)
    attn_h = pl.pallas_call(
        _sam_mlp_kernel,
        out_shape=jax.ShapeDtypeStruct((npeds, L, BOTTLE), F32),
        in_specs=[pl.BlockSpec(memory_space=VMEM)] * 11,
        out_specs=pl.BlockSpec(memory_space=VMEM),
    )(coords, vgg2d, p['w_se'], p['b_se'], p['w_pre'], p['b_pre'],
      p['w_m1_fp'], p['w_m1_ce'], p['b_m1'], p['w_m2'], p['b_m2'])

    # ---- tiny XLA glue between the two kernels (all < 30 KB) ----------------
    flat_t = attn_h.reshape(npeds, L * BOTTLE).T                       # (L*B, V)
    x2d = jnp.transpose(x[0], (1, 2, 0)).reshape(t * v, c_in).astype(F32)
    a_t = jnp.swapaxes(A, 1, 2).astype(F32)                            # a_t[t] = A[t]^T
    bd = jnp.einsum('ts,twv->twsv', jnp.eye(t, dtype=F32),
                    a_t).reshape(t * v, t * v)                         # block-diag A^T
    tile_v = jnp.tile(jnp.eye(v, dtype=F32), (t, 1))                   # (T*V, V)

    c_out = p['w_gconv'].shape[1]
    pad = (k_t - 1) // 2
    front = ((pad * v + 7) // 8) * 8                                   # aligned front pad

    # ---- Kernel 2: attention tail + GCN + TCN + residual + PReLU ------------
    out2d = pl.pallas_call(
        functools.partial(_tail_kernel, t=t, v=v, k_t=k_t, pad=pad, front=front),
        out_shape=jax.ShapeDtypeStruct((t * v, c_out), F32),
        in_specs=[pl.BlockSpec(memory_space=VMEM)] * 22
                 + [pl.BlockSpec(memory_space=SMEM)],
        out_specs=pl.BlockSpec(memory_space=VMEM),
        scratch_shapes=[pltpu.VMEM((2 * front + t * v, c_out), F32)],
    )(flat_t, attn_h, p['w_attn_t'], p['b_attn'], x2d, bd, tile_v,
      p['w_emb_x'], p['w_emb_s'], p['b_emb'], p['w_gconv'], p['b_gconv'],
      p['bn1_g'], p['bn1_b'], p['w_t'], p['b_t'], p['bn2_g'], p['bn2_b'],
      p['w_r'], p['b_r'], p['bnr_g'], p['bnr_b'], p['prelu'])

    out = jnp.transpose(out2d.reshape(t, v, c_out), (2, 0, 1))[None]   # (1,C,T,V)
    return out, A


# --------------------------------- main ---------------------------------------

if __name__ == "__main__":
    # module config: SAM_conv(in_channels=2, out_channels=5, kernel_size=(3, T))
    IN_CH, OUT_CH = 2, 5
    T, V = 8, 4                       # V == npeds (required by the forward pass)
    K_T = 3                           # temporal kernel (odd); kernel_size=(3, T)

    key = jax.random.PRNGKey(0)
    kx, ka, kv, kp = jax.random.split(key, 4)

    x = jax.random.normal(kx, (1, IN_CH, T, V), F32)        # NCHW
    A = jax.random.normal(ka, (T, V, V), F32)               # kernel_size[1] == T
    vgg = jax.random.normal(kv, (1, L, D), F32)

    params = init_params(kp, IN_CH, OUT_CH, K_T)

    fwd = jax.jit(functools.partial(sam_conv_forward, k_t=K_T))
    out, A_out = fwd(params, x, A, vgg)
    out = jax.block_until_ready(out)
    assert out.shape == (1, OUT_CH, T, V)
    print("KERNEL_OK")
</pallas_src>

<mosaic_0001>
module attributes {stable_mosaic.version = 11 : i64} {
  func.func @_sam_mlp_kernel(%arg0: memref<4x2xf32, #tpu.memory_space<vmem>>, %arg1: memref<196x512xf32, #tpu.memory_space<vmem>>, %arg2: memref<2x10xf32, #tpu.memory_space<vmem>>, %arg3: memref<1x10xf32, #tpu.memory_space<vmem>>, %arg4: memref<512x16xf32, #tpu.memory_space<vmem>>, %arg5: memref<1x16xf32, #tpu.memory_space<vmem>>, %arg6: memref<16x512xf32, #tpu.memory_space<vmem>>, %arg7: memref<10x512xf32, #tpu.memory_space<vmem>>, %arg8: memref<1x512xf32, #tpu.memory_space<vmem>>, %arg9: memref<512x8xf32, #tpu.memory_space<vmem>>, %arg10: memref<1x8xf32, #tpu.memory_space<vmem>>, %arg11: memref<4x196x8xf32, #tpu.memory_space<vmem>>) attributes {dimension_semantics = [], scalar_prefetch = 0 : i64, scratch_operands = 0 : i64, tpu.core_type = #tpu.core_type<tc>} {
    %c0 = arith.constant 0 : index
    %c0_0 = arith.constant 0 : index
    %0 = vector.load %arg0[%c0, %c0_0] : memref<4x2xf32, #tpu.memory_space<vmem>>, vector<4x2xf32>
    %c0_1 = arith.constant 0 : index
    %c0_2 = arith.constant 0 : index
    %1 = vector.load %arg2[%c0_1, %c0_2] : memref<2x10xf32, #tpu.memory_space<vmem>>, vector<2x10xf32>
    %cst = arith.constant dense<0.000000e+00> : vector<4x10xf32>
    %2 = tpu.matmul %0, %1, %cst {dimension_numbers = #tpu.dot_dimension_numbers<[1], [0], [0], [1], [0, 0, 1, 1], [], []>} : vector<4x2xf32>, vector<2x10xf32>, vector<4x10xf32> -> vector<4x10xf32>
    %c0_3 = arith.constant 0 : index
    %c0_4 = arith.constant 0 : index
    %3 = vector.load %arg3[%c0_3, %c0_4] : memref<1x10xf32, #tpu.memory_space<vmem>>, vector<1x10xf32>
    %4 = vector.broadcast %3 : vector<1x10xf32> to vector<4x10xf32>
    %5 = arith.addf %2, %4 : vector<4x10xf32>
    %c0_5 = arith.constant 0 : index
    %c0_6 = arith.constant 0 : index
    %6 = vector.load %arg7[%c0_5, %c0_6] : memref<10x512xf32, #tpu.memory_space<vmem>>, vector<10x512xf32>
    %cst_7 = arith.constant dense<0.000000e+00> : vector<4x512xf32>
    %7 = tpu.matmul %5, %6, %cst_7 {dimension_numbers = #tpu.dot_dimension_numbers<[1], [0], [0], [1], [0, 0, 1, 1], [], []>} : vector<4x10xf32>, vector<10x512xf32>, vector<4x512xf32> -> vector<4x512xf32>
    %c0_8 = arith.constant 0 : index
    %c0_9 = arith.constant 0 : index
    %8 = vector.load %arg1[%c0_8, %c0_9] : memref<196x512xf32, #tpu.memory_space<vmem>>, vector<196x512xf32>
    %c0_10 = arith.constant 0 : index
    %c0_11 = arith.constant 0 : index
    %9 = vector.load %arg4[%c0_10, %c0_11] : memref<512x16xf32, #tpu.memory_space<vmem>>, vector<512x16xf32>
    %cst_12 = arith.constant dense<0.000000e+00> : vector<196x16xf32>
    %10 = tpu.matmul %8, %9, %cst_12 {dimension_numbers = #tpu.dot_dimension_numbers<[1], [0], [0], [1], [0, 0, 1, 1], [], []>} : vector<196x512xf32>, vector<512x16xf32>, vector<196x16xf32> -> vector<196x16xf32>
    %c0_13 = arith.constant 0 : index
    %c0_14 = arith.constant 0 : index
    %11 = vector.load %arg5[%c0_13, %c0_14] : memref<1x16xf32, #tpu.memory_space<vmem>>, vector<1x16xf32>
    %12 = vector.broadcast %11 : vector<1x16xf32> to vector<196x16xf32>
    %13 = arith.addf %10, %12 : vector<196x16xf32>
    %c0_15 = arith.constant 0 : index
    %c0_16 = arith.constant 0 : index
    %14 = vector.load %arg6[%c0_15, %c0_16] : memref<16x512xf32, #tpu.memory_space<vmem>>, vector<16x512xf32>
    %cst_17 = arith.constant dense<0.000000e+00> : vector<196x512xf32>
    %15 = tpu.matmul %13, %14, %cst_17 {dimension_numbers = #tpu.dot_dimension_numbers<[1], [0], [0], [1], [0, 0, 1, 1], [], []>} : vector<196x16xf32>, vector<16x512xf32>, vector<196x512xf32> -> vector<196x512xf32>
    %c0_18 = arith.constant 0 : index
    %c0_19 = arith.constant 0 : index
    %16 = vector.load %arg8[%c0_18, %c0_19] : memref<1x512xf32, #tpu.memory_space<vmem>>, vector<1x512xf32>
    %17 = vector.broadcast %16 : vector<1x512xf32> to vector<196x512xf32>
    %18 = arith.addf %15, %17 : vector<196x512xf32>
    %c0_20 = arith.constant 0 : index
    %c0_21 = arith.constant 0 : index
    %19 = vector.load %arg9[%c0_20, %c0_21] : memref<512x8xf32, #tpu.memory_space<vmem>>, vector<512x8xf32>
    %c0_22 = arith.constant 0 : index
    %c0_23 = arith.constant 0 : index
    %20 = vector.load %arg10[%c0_22, %c0_23] : memref<1x8xf32, #tpu.memory_space<vmem>>, vector<1x8xf32>
    %21 = vector.extract_strided_slice %7 {offsets = [0, 0], sizes = [1, 512], strides = [1, 1]} : vector<4x512xf32> to vector<1x512xf32>
    %22 = vector.broadcast %21 : vector<1x512xf32> to vector<196x512xf32>
    %23 = arith.addf %18, %22 : vector<196x512xf32>
    %cst_24 = arith.constant 0.000000e+00 : f32
    %24 = vector.broadcast %cst_24 : f32 to vector<196x512xf32>
    %25 = arith.maximumf %23, %24 : vector<196x512xf32>
    %cst_25 = arith.constant dense<0.000000e+00> : vector<196x8xf32>
    %26 = tpu.matmul %25, %19, %cst_25 {dimension_numbers = #tpu.dot_dimension_numbers<[1], [0], [0], [1], [0, 0, 1, 1], [], []>} : vector<196x512xf32>, vector<512x8xf32>, vector<196x8xf32> -> vector<196x8xf32>
    %27 = vector.broadcast %20 : vector<1x8xf32> to vector<196x8xf32>
    %28 = arith.addf %26, %27 : vector<196x8xf32>
    %cst_26 = arith.constant 0.000000e+00 : f32
    %29 = vector.broadcast %cst_26 : f32 to vector<196x8xf32>
    %30 = arith.maximumf %28, %29 : vector<196x8xf32>
    %c0_27 = arith.constant 0 : index
    %c0_28 = arith.constant 0 : index
    %c0_29 = arith.constant 0 : index
    %31 = vector.load %arg11[%c0_27, %c0_28, %c0_29] : memref<4x196x8xf32, #tpu.memory_space<vmem>>, vector<1x196x8xf32>
    %32 = vector.shape_cast %31 : vector<1x196x8xf32> to vector<196x8xf32>
    %33 = vector.shape_cast %30 : vector<196x8xf32> to vector<1x196x8xf32>
    tpu.vector_store %arg11[%c0_27, %c0_28, %c0_29], %33 {strides = array<i32>} : memref<4x196x8xf32, #tpu.memory_space<vmem>>, vector<1x196x8xf32>,
    %34 = vector.extract_strided_slice %7 {offsets = [1, 0], sizes = [1, 512], strides = [1, 1]} : vector<4x512xf32> to vector<1x512xf32>
    %35 = vector.broadcast %34 : vector<1x512xf32> to vector<196x512xf32>
    %36 = arith.addf %18, %35 : vector<196x512xf32>
    %cst_30 = arith.constant 0.000000e+00 : f32
    %37 = vector.broadcast %cst_30 : f32 to vector<196x512xf32>
    %38 = arith.maximumf %36, %37 : vector<196x512xf32>
    %cst_31 = arith.constant dense<0.000000e+00> : vector<196x8xf32>
    %39 = tpu.matmul %38, %19, %cst_31 {dimension_numbers = #tpu.dot_dimension_numbers<[1], [0], [0], [1], [0, 0, 1, 1], [], []>} : vector<196x512xf32>, vector<512x8xf32>, vector<196x8xf32> -> vector<196x8xf32>
    %40 = vector.broadcast %20 : vector<1x8xf32> to vector<196x8xf32>
    %41 = arith.addf %39, %40 : vector<196x8xf32>
    %cst_32 = arith.constant 0.000000e+00 : f32
    %42 = vector.broadcast %cst_32 : f32 to vector<196x8xf32>
    %43 = arith.maximumf %41, %42 : vector<196x8xf32>
    %c1 = arith.constant 1 : index
    %c0_33 = arith.constant 0 : index
    %c0_34 = arith.constant 0 : index
    %44 = vector.load %arg11[%c1, %c0_33, %c0_34] : memref<4x196x8xf32, #tpu.memory_space<vmem>>, vector<1x196x8xf32>
    %45 = vector.shape_cast %44 : vector<1x196x8xf32> to vector<196x8xf32>
    %46 = vector.shape_cast %43 : vector<196x8xf32> to vector<1x196x8xf32>
    tpu.vector_store %arg11[%c1, %c0_33, %c0_34], %46 {strides = array<i32>} : memref<4x196x8xf32, #tpu.memory_space<vmem>>, vector<1x196x8xf32>,
    %47 = vector.extract_strided_slice %7 {offsets = [2, 0], sizes = [1, 512], strides = [1, 1]} : vector<4x512xf32> to vector<1x512xf32>
    %48 = vector.broadcast %47 : vector<1x512xf32> to vector<196x512xf32>
    %49 = arith.addf %18, %48 : vector<196x512xf32>
    %cst_35 = arith.constant 0.000000e+00 : f32
    %50 = vector.broadcast %cst_35 : f32 to vector<196x512xf32>
    %51 = arith.maximumf %49, %50 : vector<196x512xf32>
    %cst_36 = arith.constant dense<0.000000e+00> : vector<196x8xf32>
    %52 = tpu.matmul %51, %19, %cst_36 {dimension_numbers = #tpu.dot_dimension_numbers<[1], [0], [0], [1], [0, 0, 1, 1], [], []>} : vector<196x512xf32>, vector<512x8xf32>, vector<196x8xf32> -> vector<196x8xf32>
    %53 = vector.broadcast %20 : vector<1x8xf32> to vector<196x8xf32>
    %54 = arith.addf %52, %53 : vector<196x8xf32>
    %cst_37 = arith.constant 0.000000e+00 : f32
    %55 = vector.broadcast %cst_37 : f32 to vector<196x8xf32>
    %56 = arith.maximumf %54, %55 : vector<196x8xf32>
    %c2 = arith.constant 2 : index
    %c0_38 = arith.constant 0 : index
    %c0_39 = arith.constant 0 : index
    %57 = vector.load %arg11[%c2, %c0_38, %c0_39] : memref<4x196x8xf32, #tpu.memory_space<vmem>>, vector<1x196x8xf32>
    %58 = vector.shape_cast %57 : vector<1x196x8xf32> to vector<196x8xf32>
    %59 = vector.shape_cast %56 : vector<196x8xf32> to vector<1x196x8xf32>
    tpu.vector_store %arg11[%c2, %c0_38, %c0_39], %59 {strides = array<i32>} : memref<4x196x8xf32, #tpu.memory_space<vmem>>, vector<1x196x8xf32>,
    %60 = vector.extract_strided_slice %7 {offsets = [3, 0], sizes = [1, 512], strides = [1, 1]} : vector<4x512xf32> to vector<1x512xf32>
    %61 = vector.broadcast %60 : vector<1x512xf32> to vector<196x512xf32>
    %62 = arith.addf %18, %61 : vector<196x512xf32>
    %cst_40 = arith.constant 0.000000e+00 : f32
    %63 = vector.broadcast %cst_40 : f32 to vector<196x512xf32>
    %64 = arith.maximumf %62, %63 : vector<196x512xf32>
    %cst_41 = arith.constant dense<0.000000e+00> : vector<196x8xf32>
    %65 = tpu.matmul %64, %19, %cst_41 {dimension_numbers = #tpu.dot_dimension_numbers<[1], [0], [0], [1], [0, 0, 1, 1], [], []>} : vector<196x512xf32>, vector<512x8xf32>, vector<196x8xf32> -> vector<196x8xf32>
    %66 = vector.broadcast %20 : vector<1x8xf32> to vector<196x8xf32>
    %67 = arith.addf %65, %66 : vector<196x8xf32>
    %cst_42 = arith.constant 0.000000e+00 : f32
    %68 = vector.broadcast %cst_42 : f32 to vector<196x8xf32>
    %69 = arith.maximumf %67, %68 : vector<196x8xf32>
    %c3 = arith.constant 3 : index
    %c0_43 = arith.constant 0 : index
    %c0_44 = arith.constant 0 : index
    %70 = vector.load %arg11[%c3, %c0_43, %c0_44] : memref<4x196x8xf32, #tpu.memory_space<vmem>>, vector<1x196x8xf32>
    %71 = vector.shape_cast %70 : vector<1x196x8xf32> to vector<196x8xf32>
    %72 = vector.shape_cast %69 : vector<196x8xf32> to vector<1x196x8xf32>
    tpu.vector_store %arg11[%c3, %c0_43, %c0_44], %72 {strides = array<i32>} : memref<4x196x8xf32, #tpu.memory_space<vmem>>, vector<1x196x8xf32>,
    return
  }
}

module attributes {stable_mosaic.version = 11 : i64} {
  func.func @_tail_kernel(%arg0: memref<1568x4xf32, #tpu.memory_space<vmem>>, %arg1: memref<4x196x8xf32, #tpu.memory_space<vmem>>, %arg2: memref<196x1568xf32, #tpu.memory_space<vmem>>, %arg3: memref<196x1xf32, #tpu.memory_space<vmem>>, %arg4: memref<32x2xf32, #tpu.memory_space<vmem>>, %arg5: memref<32x32xf32, #tpu.memory_space<vmem>>, %arg6: memref<32x4xf32, #tpu.memory_space<vmem>>, %arg7: memref<2x5xf32, #tpu.memory_space<vmem>>, %arg8: memref<8x5xf32, #tpu.memory_space<vmem>>, %arg9: memref<1x5xf32, #tpu.memory_space<vmem>>, %arg10: memref<5x5xf32, #tpu.memory_space<vmem>>, %arg11: memref<1x5xf32, #tpu.memory_space<vmem>>, %arg12: memref<1x5xf32, #tpu.memory_space<vmem>>, %arg13: memref<1x5xf32, #tpu.memory_space<vmem>>, %arg14: memref<3x5x5xf32, #tpu.memory_space<vmem>>, %arg15: memref<1x5xf32, #tpu.memory_space<vmem>>, %arg16: memref<1x5xf32, #tpu.memory_space<vmem>>, %arg17: memref<1x5xf32, #tpu.memory_space<vmem>>, %arg18: memref<2x5xf32, #tpu.memory_space<vmem>>, %arg19: memref<1x5xf32, #tpu.memory_space<vmem>>, %arg20: memref<1x5xf32, #tpu.memory_space<vmem>>, %arg21: memref<1x5xf32, #tpu.memory_space<vmem>>, %arg22: memref<2xf32, #tpu.memory_space<smem>>, %arg23: memref<32x5xf32, #tpu.memory_space<vmem>>, %arg24: memref<48x5xf32, #tpu.memory_space<vmem>>) attributes {dimension_semantics = [], scalar_prefetch = 0 : i64, scratch_operands = 1 : i64, tpu.core_type = #tpu.core_type<tc>} {
    %c0 = arith.constant 0 : index
    %c0_0 = arith.constant 0 : index
    %0 = vector.load %arg2[%c0, %c0_0] : memref<196x1568xf32, #tpu.memory_space<vmem>>, vector<196x1568xf32>
    %c0_1 = arith.constant 0 : index
    %c0_2 = arith.constant 0 : index
    %1 = vector.load %arg0[%c0_1, %c0_2] : memref<1568x4xf32, #tpu.memory_space<vmem>>, vector<1568x4xf32>
    %cst = arith.constant dense<0.000000e+00> : vector<196x4xf32>
    %2 = tpu.matmul %0, %1, %cst {dimension_numbers = #tpu.dot_dimension_numbers<[1], [0], [0], [1], [0, 0, 1, 1], [], []>} : vector<196x1568xf32>, vector<1568x4xf32>, vector<196x4xf32> -> vector<196x4xf32>
    %c0_3 = arith.constant 0 : index
    %c0_4 = arith.constant 0 : index
    %3 = vector.load %arg3[%c0_3, %c0_4] : memref<196x1xf32, #tpu.memory_space<vmem>>, vector<196x1xf32>
    %4 = vector.broadcast %3 : vector<196x1xf32> to vector<196x4xf32>
    %5 = arith.addf %2, %4 : vector<196x4xf32>
    %cst_5 = arith.constant dense<0xFF800000> : vector<4xf32>
    %6 = vector.multi_reduction <maximumf>, %5, %cst_5 [0] : vector<196x4xf32> to vector<4xf32>
    %7 = vector.shape_cast %6 : vector<4xf32> to vector<1x4xf32>
    %8 = vector.broadcast %7 : vector<1x4xf32> to vector<196x4xf32>
    %9 = arith.subf %5, %8 : vector<196x4xf32>
    %10 = math.exp %9 : vector<196x4xf32>
    %cst_6 = arith.constant dense<0.000000e+00> : vector<4xf32>
    %11 = vector.multi_reduction <add>, %10, %cst_6 [0] : vector<196x4xf32> to vector<4xf32>
    %12 = vector.shape_cast %11 : vector<4xf32> to vector<1x4xf32>
    %13 = tpu.reciprocal %12 {approx = true} : vector<1x4xf32> -> vector<1x4xf32>
    %14 = vector.broadcast %13 : vector<1x4xf32> to vector<196x4xf32>
    %15 = arith.mulf %10, %14 : vector<196x4xf32>
    %c0_7 = arith.constant 0 : index
    %c0_8 = arith.constant 0 : index
    %c0_9 = arith.constant 0 : index
    %16 = vector.load %arg1[%c0_7, %c0_8, %c0_9] : memref<4x196x8xf32, #tpu.memory_space<vmem>>, vector<4x196x8xf32>
    %17 = vector.extract_strided_slice %15 {offsets = [0, 0], sizes = [196, 1], strides = [1, 1]} : vector<196x4xf32> to vector<196x1xf32>
    %18 = vector.extract_strided_slice %16 {offsets = [0, 0, 0], sizes = [1, 196, 8], strides = [1, 1, 1]} : vector<4x196x8xf32> to vector<1x196x8xf32>
    %19 = vector.shape_cast %18 : vector<1x196x8xf32> to vector<196x8xf32>
    %20 = vector.broadcast %17 : vector<196x1xf32> to vector<196x8xf32>
    %21 = arith.mulf %20, %19 : vector<196x8xf32>
    %cst_10 = arith.constant dense<0.000000e+00> : vector<8xf32>
    %22 = vector.multi_reduction <add>, %21, %cst_10 [0] : vector<196x8xf32> to vector<8xf32>
    %23 = vector.shape_cast %22 : vector<8xf32> to vector<1x8xf32>
    %24 = vector.extract_strided_slice %15 {offsets = [0, 1], sizes = [196, 1], strides = [1, 1]} : vector<196x4xf32> to vector<196x1xf32>
    %25 = vector.extract_strided_slice %16 {offsets = [1, 0, 0], sizes = [1, 196, 8], strides = [1, 1, 1]} : vector<4x196x8xf32> to vector<1x196x8xf32>
    %26 = vector.shape_cast %25 : vector<1x196x8xf32> to vector<196x8xf32>
    %27 = vector.broadcast %24 : vector<196x1xf32> to vector<196x8xf32>
    %28 = arith.mulf %27, %26 : vector<196x8xf32>
    %cst_11 = arith.constant dense<0.000000e+00> : vector<8xf32>
    %29 = vector.multi_reduction <add>, %28, %cst_11 [0] : vector<196x8xf32> to vector<8xf32>
    %30 = vector.shape_cast %29 : vector<8xf32> to vector<1x8xf32>
    %31 = vector.extract_strided_slice %15 {offsets = [0, 2], sizes = [196, 1], strides = [1, 1]} : vector<196x4xf32> to vector<196x1xf32>
    %32 = vector.extract_strided_slice %16 {offsets = [2, 0, 0], sizes = [1, 196, 8], strides = [1, 1, 1]} : vector<4x196x8xf32> to vector<1x196x8xf32>
    %33 = vector.shape_cast %32 : vector<1x196x8xf32> to vector<196x8xf32>
    %34 = vector.broadcast %31 : vector<196x1xf32> to vector<196x8xf32>
    %35 = arith.mulf %34, %33 : vector<196x8xf32>
    %cst_12 = arith.constant dense<0.000000e+00> : vector<8xf32>
    %36 = vector.multi_reduction <add>, %35, %cst_12 [0] : vector<196x8xf32> to vector<8xf32>
    %37 = vector.shape_cast %36 : vector<8xf32> to vector<1x8xf32>
    %38 = vector.extract_strided_slice %15 {offsets = [0, 3], sizes = [196, 1], strides = [1, 1]} : vector<196x4xf32> to vector<196x1xf32>
    %39 = vector.extract_strided_slice %16 {offsets = [3, 0, 0], sizes = [1, 196, 8], strides = [1, 1, 1]} : vector<4x196x8xf32> to vector<1x196x8xf32>
    %40 = vector.shape_cast %39 : vector<1x196x8xf32> to vector<196x8xf32>
    %41 = vector.broadcast %38 : vector<196x1xf32> to vector<196x8xf32>
    %42 = arith.mulf %41, %40 : vector<196x8xf32>
    %cst_13 = arith.constant dense<0.000000e+00> : vector<8xf32>
    %43 = vector.multi_reduction <add>, %42, %cst_13 [0] : vector<196x8xf32> to vector<8xf32>
    %44 = vector.shape_cast %43 : vector<8xf32> to vector<1x8xf32>
    %45 = tpu.concatenate %23, %30, %37, %44 in 0 : vector<1x8xf32>, vector<1x8xf32>, vector<1x8xf32>, vector<1x8xf32> -> vector<4x8xf32>
    %c0_14 = arith.constant 0 : index
    %c0_15 = arith.constant 0 : index
    %46 = vector.load %arg4[%c0_14, %c0_15] : memref<32x2xf32, #tpu.memory_space<vmem>>, vector<32x2xf32>
    %c0_16 = arith.constant 0 : index
    %c0_17 = arith.constant 0 : index
    %47 = vector.load %arg6[%c0_16, %c0_17] : memref<32x4xf32, #tpu.memory_space<vmem>>, vector<32x4xf32>
    %cst_18 = arith.constant dense<0.000000e+00> : vector<32x8xf32>
    %48 = tpu.matmul %47, %45, %cst_18 {dimension_numbers = #tpu.dot_dimension_numbers<[1], [0], [0], [1], [0, 0, 1, 1], [], []>} : vector<32x4xf32>, vector<4x8xf32>, vector<32x8xf32> -> vector<32x8xf32>
    %c0_19 = arith.constant 0 : index
    %c0_20 = arith.constant 0 : index
    %49 = vector.load %arg7[%c0_19, %c0_20] : memref<2x5xf32, #tpu.memory_space<vmem>>, vector<2x5xf32>
    %cst_21 = arith.constant dense<0.000000e+00> : vector<32x5xf32>
    %50 = tpu.matmul %46, %49, %cst_21 {dimension_numbers = #tpu.dot_dimension_numbers<[1], [0], [0], [1], [0, 0, 1, 1], [], []>} : vector<32x2xf32>, vector<2x5xf32>, vector<32x5xf32> -> vector<32x5xf32>
    %c0_22 = arith.constant 0 : index
    %c0_23 = arith.constant 0 : index
    %51 = vector.load %arg8[%c0_22, %c0_23] : memref<8x5xf32, #tpu.memory_space<vmem>>, vector<8x5xf32>
    %cst_24 = arith.constant dense<0.000000e+00> : vector<32x5xf32>
    %52 = tpu.matmul %48, %51, %cst_24 {dimension_numbers = #tpu.dot_dimension_numbers<[1], [0], [0], [1], [0, 0, 1, 1], [], []>} : vector<32x8xf32>, vector<8x5xf32>, vector<32x5xf32> -> vector<32x5xf32>
    %53 = arith.addf %50, %52 : vector<32x5xf32>
    %c0_25 = arith.constant 0 : index
    %c0_26 = arith.constant 0 : index
    %54 = vector.load %arg9[%c0_25, %c0_26] : memref<1x5xf32, #tpu.memory_space<vmem>>, vector<1x5xf32>
    %55 = vector.broadcast %54 : vector<1x5xf32> to vector<32x5xf32>
    %56 = arith.addf %53, %55 : vector<32x5xf32>
    %c0_27 = arith.constant 0 : index
    %c0_28 = arith.constant 0 : index
    %57 = vector.load %arg10[%c0_27, %c0_28] : memref<5x5xf32, #tpu.memory_space<vmem>>, vector<5x5xf32>
    %cst_29 = arith.constant dense<0.000000e+00> : vector<32x5xf32>
    %58 = tpu.matmul %56, %57, %cst_29 {dimension_numbers = #tpu.dot_dimension_numbers<[1], [0], [0], [1], [0, 0, 1, 1], [], []>} : vector<32x5xf32>, vector<5x5xf32>, vector<32x5xf32> -> vector<32x5xf32>
    %c0_30 = arith.constant 0 : index
    %c0_31 = arith.constant 0 : index
    %59 = vector.load %arg11[%c0_30, %c0_31] : memref<1x5xf32, #tpu.memory_space<vmem>>, vector<1x5xf32>
    %60 = vector.broadcast %59 : vector<1x5xf32> to vector<32x5xf32>
    %61 = arith.addf %58, %60 : vector<32x5xf32>
    %c0_32 = arith.constant 0 : index
    %c0_33 = arith.constant 0 : index
    %62 = vector.load %arg5[%c0_32, %c0_33] : memref<32x32xf32, #tpu.memory_space<vmem>>, vector<32x32xf32>
    %cst_34 = arith.constant dense<0.000000e+00> : vector<32x5xf32>
    %63 = tpu.matmul %62, %61, %cst_34 {dimension_numbers = #tpu.dot_dimension_numbers<[1], [0], [0], [1], [0, 0, 1, 1], [], []>} : vector<32x32xf32>, vector<32x5xf32>, vector<32x5xf32> -> vector<32x5xf32>
    %c0_35 = arith.constant 0 : index
    %c0_36 = arith.constant 0 : index
    %64 = vector.load %arg12[%c0_35, %c0_36] : memref<1x5xf32, #tpu.memory_space<vmem>>, vector<1x5xf32>
    %c0_37 = arith.constant 0 : index
    %c0_38 = arith.constant 0 : index
    %65 = vector.load %arg13[%c0_37, %c0_38] : memref<1x5xf32, #tpu.memory_space<vmem>>, vector<1x5xf32>
    %cst_39 = arith.constant dense<0.000000e+00> : vector<5xf32>
    %66 = vector.multi_reduction <add>, %63, %cst_39 [0] : vector<32x5xf32> to vector<5xf32>
    %67 = vector.shape_cast %66 : vector<5xf32> to vector<1x5xf32>
    %cst_40 = arith.constant 3.200000e+01 : f32
    %68 = vector.broadcast %cst_40 : f32 to vector<1x5xf32>
    %69 = arith.divf %67, %68 : vector<1x5xf32>
    %70 = vector.broadcast %69 : vector<1x5xf32> to vector<32x5xf32>
    %71 = arith.subf %63, %70 : vector<32x5xf32>
    %72 = arith.mulf %71, %71 : vector<32x5xf32>
    %cst_41 = arith.constant dense<0.000000e+00> : vector<5xf32>
    %73 = vector.multi_reduction <add>, %72, %cst_41 [0] : vector<32x5xf32> to vector<5xf32>
    %74 = vector.shape_cast %73 : vector<5xf32> to vector<1x5xf32>
    %cst_42 = arith.constant 3.200000e+01 : f32
    %75 = vector.broadcast %cst_42 : f32 to vector<1x5xf32>
    %76 = arith.divf %74, %75 : vector<1x5xf32>
    %77 = vector.broadcast %69 : vector<1x5xf32> to vector<32x5xf32>
    %78 = arith.subf %63, %77 : vector<32x5xf32>
    %cst_43 = arith.constant 9.99999974E-6 : f32
    %79 = vector.broadcast %cst_43 : f32 to vector<1x5xf32>
    %80 = arith.addf %76, %79 : vector<1x5xf32>
    %81 = math.rsqrt %80 : vector<1x5xf32>
    %82 = vector.broadcast %81 : vector<1x5xf32> to vector<32x5xf32>
    %83 = arith.mulf %78, %82 : vector<32x5xf32>
    %84 = vector.broadcast %64 : vector<1x5xf32> to vector<32x5xf32>
    %85 = arith.mulf %83, %84 : vector<32x5xf32>
    %86 = vector.broadcast %65 : vector<1x5xf32> to vector<32x5xf32>
    %87 = arith.addf %85, %86 : vector<32x5xf32>
    %c0_44 = arith.constant 0 : index
    %88 = memref.load %arg22[%c0_44] : memref<2xf32, #tpu.memory_space<smem>>
    %cst_45 = arith.constant 0.000000e+00 : f32
    %89 = vector.broadcast %cst_45 : f32 to vector<32x5xf32>
    %90 = arith.cmpf oge, %87, %89 : vector<32x5xf32>
    %91 = vector.broadcast %88 : f32 to vector<32x5xf32>
    %92 = arith.mulf %91, %87 : vector<32x5xf32>
    %93 = arith.select %90, %87, %92 : vector<32x5xi1>, vector<32x5xf32>
    %cst_46 = arith.constant 0.000000e+00 : f32
    %94 = vector.broadcast %cst_46 : f32 to vector<48x5xf32>
    %c0_47 = arith.constant 0 : index
    %c0_48 = arith.constant 0 : index
    %95 = vector.load %arg24[%c0_47, %c0_48] : memref<48x5xf32, #tpu.memory_space<vmem>>, vector<48x5xf32>
    tpu.vector_store %arg24[%c0_47, %c0_48], %94 {strides = array<i32>} : memref<48x5xf32, #tpu.memory_space<vmem>>, vector<48x5xf32>,
    %c8 = arith.constant 8 : index
    %c0_49 = arith.constant 0 : index
    %96 = vector.load %arg24[%c8, %c0_49] : memref<48x5xf32, #tpu.memory_space<vmem>>, vector<32x5xf32>
    tpu.vector_store %arg24[%c8, %c0_49], %93 {strides = array<i32>} : memref<48x5xf32, #tpu.memory_space<vmem>>, vector<32x5xf32>,
    %c0_50 = arith.constant 0 : index
    %c0_51 = arith.constant 0 : index
    %97 = vector.load %arg24[%c0_50, %c0_51] : memref<48x5xf32, #tpu.memory_space<vmem>>, vector<48x5xf32>
    %98 = vector.extract_strided_slice %97 {offsets = [4, 0], sizes = [32, 5], strides = [1, 1]} : vector<48x5xf32> to vector<32x5xf32>
    %c0_52 = arith.constant 0 : index
    %c0_53 = arith.constant 0 : index
    %c0_54 = arith.constant 0 : index
    %99 = vector.load %arg14[%c0_52, %c0_53, %c0_54] : memref<3x5x5xf32, #tpu.memory_space<vmem>>, vector<1x5x5xf32>
    %100 = vector.shape_cast %99 : vector<1x5x5xf32> to vector<5x5xf32>
    %cst_55 = arith.constant dense<0.000000e+00> : vector<32x5xf32>
    %101 = tpu.matmul %98, %100, %cst_55 {dimension_numbers = #tpu.dot_dimension_numbers<[1], [0], [0], [1], [0, 0, 1, 1], [], []>} : vector<32x5xf32>, vector<5x5xf32>, vector<32x5xf32> -> vector<32x5xf32>
    %102 = vector.extract_strided_slice %97 {offsets = [8, 0], sizes = [32, 5], strides = [1, 1]} : vector<48x5xf32> to vector<32x5xf32>
    %c1 = arith.constant 1 : index
    %c0_56 = arith.constant 0 : index
    %c0_57 = arith.constant 0 : index
    %103 = vector.load %arg14[%c1, %c0_56, %c0_57] : memref<3x5x5xf32, #tpu.memory_space<vmem>>, vector<1x5x5xf32>
    %104 = vector.shape_cast %103 : vector<1x5x5xf32> to vector<5x5xf32>
    %cst_58 = arith.constant dense<0.000000e+00> : vector<32x5xf32>
    %105 = tpu.matmul %102, %104, %cst_58 {dimension_numbers = #tpu.dot_dimension_numbers<[1], [0], [0], [1], [0, 0, 1, 1], [], []>} : vector<32x5xf32>, vector<5x5xf32>, vector<32x5xf32> -> vector<32x5xf32>
    %106 = arith.addf %101, %105 : vector<32x5xf32>
    %107 = vector.extract_strided_slice %97 {offsets = [12, 0], sizes = [32, 5], strides = [1, 1]} : vector<48x5xf32> to vector<32x5xf32>
    %c2 = arith.constant 2 : index
    %c0_59 = arith.constant 0 : index
    %c0_60 = arith.constant 0 : index
    %108 = vector.load %arg14[%c2, %c0_59, %c0_60] : memref<3x5x5xf32, #tpu.memory_space<vmem>>, vector<1x5x5xf32>
    %109 = vector.shape_cast %108 : vector<1x5x5xf32> to vector<5x5xf32>
    %cst_61 = arith.constant dense<0.000000e+00> : vector<32x5xf32>
    %110 = tpu.matmul %107, %109, %cst_61 {dimension_numbers = #tpu.dot_dimension_numbers<[1], [0], [0], [1], [0, 0, 1, 1], [], []>} : vector<32x5xf32>, vector<5x5xf32>, vector<32x5xf32> -> vector<32x5xf32>
    %111 = arith.addf %106, %110 : vector<32x5xf32>
    %c0_62 = arith.constant 0 : index
    %c0_63 = arith.constant 0 : index
    %112 = vector.load %arg15[%c0_62, %c0_63] : memref<1x5xf32, #tpu.memory_space<vmem>>, vector<1x5xf32>
    %113 = vector.broadcast %112 : vector<1x5xf32> to vector<32x5xf32>
    %114 = arith.addf %111, %113 : vector<32x5xf32>
    %c0_64 = arith.constant 0 : index
    %c0_65 = arith.constant 0 : index
    %115 = vector.load %arg16[%c0_64, %c0_65] : memref<1x5xf32, #tpu.memory_space<vmem>>, vector<1x5xf32>
    %c0_66 = arith.constant 0 : index
    %c0_67 = arith.constant 0 : index
    %116 = vector.load %arg17[%c0_66, %c0_67] : memref<1x5xf32, #tpu.memory_space<vmem>>, vector<1x5xf32>
    %cst_68 = arith.constant dense<0.000000e+00> : vector<5xf32>
    %117 = vector.multi_reduction <add>, %114, %cst_68 [0] : vector<32x5xf32> to vector<5xf32>
    %118 = vector.shape_cast %117 : vector<5xf32> to vector<1x5xf32>
    %cst_69 = arith.constant 3.200000e+01 : f32
    %119 = vector.broadcast %cst_69 : f32 to vector<1x5xf32>
    %120 = arith.divf %118, %119 : vector<1x5xf32>
    %121 = vector.broadcast %120 : vector<1x5xf32> to vector<32x5xf32>
    %122 = arith.subf %114, %121 : vector<32x5xf32>
    %123 = arith.mulf %122, %122 : vector<32x5xf32>
    %cst_70 = arith.constant dense<0.000000e+00> : vector<5xf32>
    %124 = vector.multi_reduction <add>, %123, %cst_70 [0] : vector<32x5xf32> to vector<5xf32>
    %125 = vector.shape_cast %124 : vector<5xf32> to vector<1x5xf32>
    %cst_71 = arith.constant 3.200000e+01 : f32
    %126 = vector.broadcast %cst_71 : f32 to vector<1x5xf32>
    %127 = arith.divf %125, %126 : vector<1x5xf32>
    %128 = vector.broadcast %120 : vector<1x5xf32> to vector<32x5xf32>
    %129 = arith.subf %114, %128 : vector<32x5xf32>
    %cst_72 = arith.constant 9.99999974E-6 : f32
    %130 = vector.broadcast %cst_72 : f32 to vector<1x5xf32>
    %131 = arith.addf %127, %130 : vector<1x5xf32>
    %132 = math.rsqrt %131 : vector<1x5xf32>
    %133 = vector.broadcast %132 : vector<1x5xf32> to vector<32x5xf32>
    %134 = arith.mulf %129, %133 : vector<32x5xf32>
    %135 = vector.broadcast %115 : vector<1x5xf32> to vector<32x5xf32>
    %136 = arith.mulf %134, %135 : vector<32x5xf32>
    %137 = vector.broadcast %116 : vector<1x5xf32> to vector<32x5xf32>
    %138 = arith.addf %136, %137 : vector<32x5xf32>
    %c0_73 = arith.constant 0 : index
    %c0_74 = arith.constant 0 : index
    %139 = vector.load %arg18[%c0_73, %c0_74] : memref<2x5xf32, #tpu.memory_space<vmem>>, vector<2x5xf32>
    %cst_75 = arith.constant dense<0.000000e+00> : vector<32x5xf32>
    %140 = tpu.matmul %46, %139, %cst_75 {dimension_numbers = #tpu.dot_dimension_numbers<[1], [0], [0], [1], [0, 0, 1, 1], [], []>} : vector<32x2xf32>, vector<2x5xf32>, vector<32x5xf32> -> vector<32x5xf32>
    %c0_76 = arith.constant 0 : index
    %c0_77 = arith.constant 0 : index
    %141 = vector.load %arg19[%c0_76, %c0_77] : memref<1x5xf32, #tpu.memory_space<vmem>>, vector<1x5xf32>
    %142 = vector.broadcast %141 : vector<1x5xf32> to vector<32x5xf32>
    %143 = arith.addf %140, %142 : vector<32x5xf32>
    %c0_78 = arith.constant 0 : index
    %c0_79 = arith.constant 0 : index
    %144 = vector.load %arg20[%c0_78, %c0_79] : memref<1x5xf32, #tpu.memory_space<vmem>>, vector<1x5xf32>
    %c0_80 = arith.constant 0 : index
    %c0_81 = arith.constant 0 : index
    %145 = vector.load %arg21[%c0_80, %c0_81] : memref<1x5xf32, #tpu.memory_space<vmem>>, vector<1x5xf32>
    %cst_82 = arith.constant dense<0.000000e+00> : vector<5xf32>
    %146 = vector.multi_reduction <add>, %143, %cst_82 [0] : vector<32x5xf32> to vector<5xf32>
    %147 = vector.shape_cast %146 : vector<5xf32> to vector<1x5xf32>
    %cst_83 = arith.constant 3.200000e+01 : f32
    %148 = vector.broadcast %cst_83 : f32 to vector<1x5xf32>
    %149 = arith.divf %147, %148 : vector<1x5xf32>
    %150 = vector.broadcast %149 : vector<1x5xf32> to vector<32x5xf32>
    %151 = arith.subf %143, %150 : vector<32x5xf32>
    %152 = arith.mulf %151, %151 : vector<32x5xf32>
    %cst_84 = arith.constant dense<0.000000e+00> : vector<5xf32>
    %153 = vector.multi_reduction <add>, %152, %cst_84 [0] : vector<32x5xf32> to vector<5xf32>
    %154 = vector.shape_cast %153 : vector<5xf32> to vector<1x5xf32>
    %cst_85 = arith.constant 3.200000e+01 : f32
    %155 = vector.broadcast %cst_85 : f32 to vector<1x5xf32>
    %156 = arith.divf %154, %155 : vector<1x5xf32>
    %157 = vector.broadcast %149 : vector<1x5xf32> to vector<32x5xf32>
    %158 = arith.subf %143, %157 : vector<32x5xf32>
    %cst_86 = arith.constant 9.99999974E-6 : f32
    %159 = vector.broadcast %cst_86 : f32 to vector<1x5xf32>
    %160 = arith.addf %156, %159 : vector<1x5xf32>
    %161 = math.rsqrt %160 : vector<1x5xf32>
    %162 = vector.broadcast %161 : vector<1x5xf32> to vector<32x5xf32>
    %163 = arith.mulf %158, %162 : vector<32x5xf32>
    %164 = vector.broadcast %144 : vector<1x5xf32> to vector<32x5xf32>
    %165 = arith.mulf %163, %164 : vector<32x5xf32>
    %166 = vector.broadcast %145 : vector<1x5xf32> to vector<32x5xf32>
    %167 = arith.addf %165, %166 : vector<32x5xf32>
    %168 = arith.addf %138, %167 : vector<32x5xf32>
    %c1_87 = arith.constant 1 : index
    %169 = memref.load %arg22[%c1_87] : memref<2xf32, #tpu.memory_space<smem>>
    %cst_88 = arith.constant 0.000000e+00 : f32
    %170 = vector.broadcast %cst_88 : f32 to vector<32x5xf32>
    %171 = arith.cmpf oge, %168, %170 : vector<32x5xf32>
    %172 = vector.broadcast %169 : f32 to vector<32x5xf32>
    %173 = arith.mulf %172, %168 : vector<32x5xf32>
    %174 = arith.select %171, %168, %173 : vector<32x5xi1>, vector<32x5xf32>
    %c0_89 = arith.constant 0 : index
    %c0_90 = arith.constant 0 : index
    %175 = vector.load %arg23[%c0_89, %c0_90] : memref<32x5xf32, #tpu.memory_space<vmem>>, vector<32x5xf32>
    tpu.vector_store %arg23[%c0_89, %c0_90], %174 {strides = array<i32>} : memref<32x5xf32, #tpu.memory_space<vmem>>, vector<32x5xf32>,
    return
  }
}

</mosaic_0001>

<bundles_post_ra>
// kernel: sam_conv_forward.2
= control target key start
LH: loop header
LB: loop body
LE: loop exit
PB: predicated region body
PF: predicated region fallthrough
CT: control target
= control target key end

     0   :  { %vm51_vm0 = vcmask 1041408   ;;  %v5090_v0 = vmov 0.0   ;;  %vm5091_vm1 = vmmov 1   ;;  %vm5092_vm3 = vmmov 0   ;;  %s8293_s2 = inlined_call_operand.vmem [shape: f32[2,10], index: 2, kind: input, shape index: {}]   ;;  %s8294_s0 = inlined_call_operand.vmem [shape: f32[4,2], index: 0, kind: input, shape index: {}]   ;;  %s8295_s7 = inlined_call_operand.vmem [shape: f32[10,512], index: 7, kind: input, shape index: {}]   ;;  %s8296_s4 = inlined_call_operand.vmem [shape: f32[512,16], index: 4, kind: input, shape index: {}]   ;;  %s8297_s3 = inlined_call_operand.vmem [shape: f32[1,10], index: 3, kind: input, shape index: {}]   ;;  %s8298_s1 = inlined_call_operand.vmem [shape: f32[196,512], index: 1, kind: input, shape index: {}]   ;;  %s8299_s6 = inlined_call_operand.vmem [shape: f32[16,512], index: 6, kind: input, shape index: {}]   ;;  %s8300_s5 = inlined_call_operand.vmem [shape: f32[1,16], index: 5, kind: input, shape index: {}]   ;;  %s8301_s9 = inlined_call_operand.vmem [shape: f32[512,8], index: 9, kind: input, shape index: {}]   ;;  %s8302_s8 = inlined_call_operand.vmem [shape: f32[1,512], index: 8, kind: input, shape index: {}]   ;;  %s8303_s10 = inlined_call_operand.vmem [shape: f32[1,8], index: 10, kind: input, shape index: {}]   ;;  %s8304_s11 = inlined_call_operand.vmem [shape: f32[4,196,8], index: 11, kind: output, shape index: {}]  }
   0x1   :  { %4180 = vmatprep.subr.mxu0 %v5090_v0  ;;  %v39_v1 = vld [vmem:[%s8293_s2] sm:$0x3]  ;;  %vm5158_vm2 = vmpackc.low %vm51_vm0, %vm5091_vm1  ;;  %4182 = vmatprep.mubr.msk.f32.mxu0 %vm5092_vm3, %v5090_v0  ;;  %vm47_vm4 = vcmask 15360   ;;  %v126_v4 = vld [vmem:[%s8295_s7 + $0x8] sm:$0xff]  ;;  %v8305_v16 = vmov 0.0|0.0   ;;  %vm133_vm5 = vcmask 80896  }
   0x2   :  { %v38_v3 = vld [vmem:[%s8294_s0] sm:$0xf]  ;;  %4181 = vmatpush3.msk.msra.mxu0 %vm51_vm0, %v39_v1  ;;  %v130_v5 = vld [vmem:[%s8295_s7 + $0x28] sm:$0x3]  ;;  %213 = vmatprep.mubr.f32.mxu1 %v5090_v0  ;;  %v128_v9 = vld [vmem:[%s8295_s7 + $0x18] sm:$0xff]  ;;  %vm872_vm6 = vcmask 130048  }
   0x3   :  { %v125_v6 = vld [vmem:[%s8295_s7] sm:$0xff]  ;;  %4183 = vmatmul.mubr.msk.f32.vlgmr.msra.gmra.mrb[0].mxu0 %vm47_vm4, %v38_v3  ;;  %v4185_v7 = vpack.c.bf16 %v130_v5, %v126_v4  ;;  %v132_v10 = vld [vmem:[%s8295_s7 + $0x38] sm:$0x3]  ;;  %v127_v13 = vld [vmem:[%s8295_s7 + $0x10] sm:$0xff]  ;;  %vm2070_vm7 = vcmask 64512   ;;  %vm2095_vm8 = vcmask 60416  }
   0x4   :  { %v129_v8 = vld [vmem:[%s8295_s7 + $0x20] sm:$0x3]  ;;  %v4191_v12 = vpack.c.bf16 %v132_v10, %v128_v9  ;;  %284 = vmatprep.mubr.f32.mxu0 %v5090_v0  ;;  %v131_v14 = vld [vmem:[%s8295_s7 + $0x30] sm:$0x3]  ;;  %v392_v18 = vld [vmem:[%s8296_s4 + $0x8] sm:$0xff] }
   0x5   :  { %v4188_v11 = vpack.c.bf16 %v129_v8, %v125_v6  ;;  %4187 = vmatprep.subr.msk.bf16.mxu1 %vm5158_vm2, %v4185_v7  ;;  %v4194_v15 = vpack.c.bf16 %v131_v14, %v127_v13  ;;  %v391_v17 = vld [vmem:[%s8296_s4] sm:$0xff]  ;;  %v393_v24 = vld [vmem:[%s8296_s4 + $0x10] sm:$0xff]  ;;  %v394_v25 = vld [vmem:[%s8296_s4 + $0x18] sm:$0xff] }
   0x6   :  { %4193 = vmatprep.subr.msk.bf16.mxu0 %vm5158_vm2, %v4191_v12  ;;  %v4042_v19 = vld [vmem:[%s8297_s3] ss:$0 sm:$0xff]  ;;  %v4198_v21 = vpack.c.bf16 %v392_v18, %v391_v17  ;;  %v292_v26 = vld [vmem:[%s8298_s1 + $0x8] sm:$0xff]  ;;  %v4201_v27 = vpack.c.bf16 %v394_v25, %v393_v24  ;;  %v397_v31 = vld [vmem:[%s8296_s4 + $0x30] sm:$0xff] }
   0x7   :  { %4190 = vmatpush1.bf16.msk.msra.mxu1 %vm5158_vm2, %v4188_v11  ;;  %4196 = vmatpush1.bf16.msk.msra.mxu0 %vm5158_vm2, %v4194_v15  ;;  %v395_v28 = vld [vmem:[%s8296_s4 + $0x20] sm:$0xff]  ;;  %v396_v29 = vld [vmem:[%s8296_s4 + $0x28] sm:$0xff]  ;;  %v398_v32 = vld [vmem:[%s8296_s4 + $0x38] sm:$0xff] }
   0x8   :  { %4197 = vmatprep.subr.bf16.mxu1 %v8305_v16  ;;  %v4204_v30 = vpack.c.bf16 %v396_v29, %v395_v28  ;;  %v4207_v33 = vpack.c.bf16 %v398_v32, %v397_v31  ;;  %v399_v34 = vld [vmem:[%s8296_s4 + $0x40] sm:$0xff]  ;;  %v400_v35 = vld [vmem:[%s8296_s4 + $0x48] sm:$0xff]  ;;  %v401_v37 = vld [vmem:[%s8296_s4 + $0x50] sm:$0xff] }
   0x9   :  { %v4210_v36 = vpack.c.bf16 %v400_v35, %v399_v34  ;;  %v402_v38 = vld [vmem:[%s8296_s4 + $0x58] sm:$0xff]  ;;  %v403_v40 = vld [vmem:[%s8296_s4 + $0x60] sm:$0xff]  ;;  %v404_v41 = vld [vmem:[%s8296_s4 + $0x68] sm:$0xff] }
   0xa   :  { %v4213_v39 = vpack.c.bf16 %v402_v38, %v401_v37  ;;  %v4216_v42 = vpack.c.bf16 %v404_v41, %v403_v40  ;;  %v405_v43 = vld [vmem:[%s8296_s4 + $0x70] sm:$0xff]  ;;  %v406_v44 = vld [vmem:[%s8296_s4 + $0x78] sm:$0xff]  ;;  %v407_v46 = vld [vmem:[%s8296_s4 + $0x80] sm:$0xff] }
   0xb   :  { %v4219_v45 = vpack.c.bf16 %v406_v44, %v405_v43  ;;  %v408_v47 = vld [vmem:[%s8296_s4 + $0x88] sm:$0xff]  ;;  %v409_v49 = vld [vmem:[%s8296_s4 + $0x90] sm:$0xff]  ;;  %v410_v50 = vld [vmem:[%s8296_s4 + $0x98] sm:$0xff] }
   0xc   :  { %v4222_v48 = vpack.c.bf16 %v408_v47, %v407_v46  ;;  %v4225_v51 = vpack.c.bf16 %v410_v50, %v409_v49  ;;  %v411_v52 = vld [vmem:[%s8296_s4 + $0xa0] sm:$0xff]  ;;  %v412_v53 = vld [vmem:[%s8296_s4 + $0xa8] sm:$0xff]  ;;  %v413_v55 = vld [vmem:[%s8296_s4 + $0xb0] sm:$0xff] }
   0xd   :  { %v4228_v54 = vpack.c.bf16 %v412_v53, %v411_v52  ;;  %v414_v56 = vld [vmem:[%s8296_s4 + $0xb8] sm:$0xff]  ;;  %v415_v58 = vld [vmem:[%s8296_s4 + $0xc0] sm:$0xff]  ;;  %v416_v59 = vld [vmem:[%s8296_s4 + $0xc8] sm:$0xff] }
   0xe   :  { %v4231_v57 = vpack.c.bf16 %v414_v56, %v413_v55  ;;  %v4234_v60 = vpack.c.bf16 %v416_v59, %v415_v58  ;;  %v417_v61 = vld [vmem:[%s8296_s4 + $0xd0] sm:$0xff]  ;;  %v418_v62 = vld [vmem:[%s8296_s4 + $0xd8] sm:$0xff]  ;;  %v419_v1 = vld [vmem:[%s8296_s4 + $0xe0] sm:$0xff] }
   0xf   :  { %v4237_v63 = vpack.c.bf16 %v418_v62, %v417_v61  ;;  %v420_v2 = vld [vmem:[%s8296_s4 + $0xe8] sm:$0xff]  ;;  %v421_v4 = vld [vmem:[%s8296_s4 + $0xf0] sm:$0xff]  ;;  %v422_v5 = vld [vmem:[%s8296_s4 + $0xf8] sm:$0xff] }
  0x10   :  { %v4240_v3 = vpack.c.bf16 %v420_v2, %v419_v1  ;;  %v4243_v6 = vpack.c.bf16 %v422_v5, %v421_v4  ;;  %v423_v7 = vld [vmem:[%s8296_s4 + $0x100] sm:$0xff]  ;;  %v424_v8 = vld [vmem:[%s8296_s4 + $0x108] sm:$0xff]  ;;  %v425_v12 = vld [vmem:[%s8296_s4 + $0x110] sm:$0xff] }
  0x11   :  { %v291_v9 = vld [vmem:[%s8298_s1] sm:$0xff]  ;;  %v4246_v10 = vpack.c.bf16 %v424_v8, %v423_v7  ;;  %v296_v11 = vld [vmem:[%s8298_s1 + $0x28] sm:$0xff]  ;;  %v426_v13 = vld [vmem:[%s8296_s4 + $0x118] sm:$0xff] }
  0x12   :  { %v295_v14 = vld [vmem:[%s8298_s1 + $0x20] sm:$0xff]  ;;  %v4249_v15 = vpack.c.bf16 %v426_v13, %v425_v12  ;;  %v300_v17 = vld [vmem:[%s8298_s1 + $0x48] sm:$0xff]  ;;  %v430_v24 = vld [vmem:[%s8296_s4 + $0x138] sm:$0xff] }
  0x13   :  { %v427_v18 = vld [vmem:[%s8296_s4 + $0x120] sm:$0xff]  ;;  %v432_v29 = vld [vmem:[%s8296_s4 + $0x148] sm:$0xff]  ;;  %v434_v34 = vld [vmem:[%s8296_s4 + $0x158] sm:$0xff] }
  0x14   :  { %v303_v25 = vld [vmem:[%s8298_s1 + $0x60] sm:$0xff]  ;;  %v312_v32 = vld [vmem:[%s8298_s1 + $0xa8] sm:$0xff]  ;;  %v437_v43 = vld [vmem:[%s8296_s4 + $0x170] sm:$0xff] }
  0x15   :  { %v431_v28 = vld [vmem:[%s8296_s4 + $0x140] sm:$0xff]  ;;  %v316_v37 = vld [vmem:[%s8298_s1 + $0xc8] sm:$0xff]  ;;  %v438_v44 = vld [vmem:[%s8296_s4 + $0x178] sm:$0xff] }
  0x16   :  { %v4258_v31 = vpack.c.bf16 %v432_v29, %v431_v28  ;;  %v311_v35 = vld [vmem:[%s8298_s1 + $0xa0] sm:$0xff]  ;;  %v4267_v46 = vpack.c.bf16 %v438_v44, %v437_v43  ;;  %v324_v47 = vld [vmem:[%s8298_s1 + $0x108] sm:$0xff]  ;;  %v441_v53 = vld [vmem:[%s8296_s4 + $0x190] sm:$0xff] }
  0x17   :  { %v435_v38 = vld [vmem:[%s8296_s4 + $0x160] sm:$0xff]  ;;  %v440_v49 = vld [vmem:[%s8296_s4 + $0x188] sm:$0xff]  ;;  %v446_v1 = vld [vmem:[%s8296_s4 + $0x1b8] sm:$0xff] }
  0x18   :  { %v315_v40 = vld [vmem:[%s8298_s1 + $0xc0] sm:$0xff]  ;;  %v328_v52 = vld [vmem:[%s8298_s1 + $0x128] sm:$0xff] }
  0x19   :  { %v323_v50 = vld [vmem:[%s8298_s1 + $0x100] sm:$0xff]  ;;  %v444_v59 = vld [vmem:[%s8296_s4 + $0x1a8] sm:$0xff] }
  0x1a   :  { %v327_v55 = vld [vmem:[%s8298_s1 + $0x120] sm:$0xff]  ;;  %v336_v62 = vld [vmem:[%s8298_s1 + $0x168] sm:$0xff] }
  0x1b   :  { %v443_v58 = vld [vmem:[%s8296_s4 + $0x1a0] sm:$0xff]  ;;  %v340_v4 = vld [vmem:[%s8298_s1 + $0x188] sm:$0xff] }
  0x1c   :  { %v4276_v61 = vpack.c.bf16 %v444_v59, %v443_v58  ;;  %v335_v2 = vld [vmem:[%s8298_s1 + $0x160] sm:$0xff]  ;;  %v364_v29 = vld [vmem:[%s8298_s1 + $0x248] sm:$0xff]  ;;  %v318_v58 = vld [vmem:[%s8298_s1 + $0xd8] sm:$0xff] }
  0x1d   :  { %v447_v5 = vld [vmem:[%s8296_s4 + $0x1c0] sm:$0xff]  ;;  %v388_v44 = vld [vmem:[%s8298_s1 + $0x308] sm:$0xf]  ;;  %v317_v59 = vld [vmem:[%s8298_s1 + $0xd0] sm:$0xff] }
  0x1e   :  { %v339_v7 = vld [vmem:[%s8298_s1 + $0x180] sm:$0xff] }
  0x1f   :  { %v343_v12 = vld [vmem:[%s8298_s1 + $0x1a0] sm:$0xff] }
  0x20   :  { %v359_v28 = vld [vmem:[%s8298_s1 + $0x220] sm:$0xff] }
  0x21   :  { %v383_v43 = vld [vmem:[%s8298_s1 + $0x2e0] sm:$0xff] }
  0xd6   :  { %v121_v20 = vpop.f32.mrb[0].mxu0 }
  0xd7   :  { %v122_v22 = vadd.f32 %v4042_v19, %v121_v20  ;;  %v4184_v23 = vpop.f32.mrb[1].mxu0  ;;  %v428_v19 = vld [vmem:[%s8296_s4 + $0x128] sm:$0xff]  ;;  %v299_v20 = vld [vmem:[%s8298_s1 + $0x40] sm:$0xff] }
  0xd8   :  { %v429_v23 = vld [vmem:[%s8296_s4 + $0x130] sm:$0xff] }
  0xd9   :  { %4047 = vmatmul.mubr.msk.f32.vlgmr.msra.gmra.mrb[0].mxu1 %vm133_vm5, %v122_v22  ;;  %4050 = vmatmul.mubr.msk.f32.vlgmr.msra.gmra.mrb[2].mxu0 %vm133_vm5, %v122_v22  ;;  %v304_v22 = vld [vmem:[%s8298_s1 + $0x68] sm:$0xff] }
  0xda   :  { %4199 = vmatpush1.bf16.msra.mxu1 %v4198_v21  ;;  %526 = vmatprep.mubr.f32.mxu1 %v292_v26  ;;  %v4252_v21 = vpack.c.bf16 %v428_v19, %v427_v18  ;;  %v4255_v26 = vpack.c.bf16 %v430_v24, %v429_v23  ;;  %v347_v18 = vld [vmem:[%s8298_s1 + $0x1c0] sm:$0xff] }
  0xdb   :  { %4200 = vmatprep.subr.bf16.mxu1 %v8305_v16  ;;  %1012 = vmatprep.mubr.f32.mxu0 %v5090_v0  ;;  %v351_v23 = vld [vmem:[%s8298_s1 + $0x1e0] sm:$0xff] }
  0xde   :  { %4202 = vmatpush1.bf16.msra.mxu1 %v4201_v27  ;;  %v308_v27 = vld [vmem:[%s8298_s1 + $0x88] sm:$0xff] }
  0xdf   :  { %4203 = vmatprep.subr.bf16.mxu1 %v8305_v16 }
  0xe2   :  { %4205 = vmatpush1.bf16.msra.mxu1 %v4204_v30  ;;  %v307_v30 = vld [vmem:[%s8298_s1 + $0x80] sm:$0xff] }
  0xe3   :  { %4206 = vmatprep.subr.bf16.mxu1 %v8305_v16 }
  0xe6   :  { %4208 = vmatpush1.bf16.msra.mxu1 %v4207_v33  ;;  %v433_v33 = vld [vmem:[%s8296_s4 + $0x150] sm:$0xff] }
  0xe7   :  { %4209 = vmatprep.subr.bf16.mxu1 %v8305_v16 }
  0xea   :  { %4211 = vmatpush1.bf16.msra.mxu1 %v4210_v36  ;;  %v4261_v36 = vpack.c.bf16 %v434_v34, %v433_v33  ;;  %v368_v33 = vld [vmem:[%s8298_s1 + $0x268] sm:$0xff] }
  0xeb   :  { %4212 = vmatprep.subr.bf16.mxu1 %v8305_v16 }
  0xee   :  { %4214 = vmatpush1.bf16.msra.mxu1 %v4213_v39  ;;  %v436_v39 = vld [vmem:[%s8296_s4 + $0x168] sm:$0xff] }
  0xef   :  { %4215 = vmatprep.subr.bf16.mxu1 %v8305_v16  ;;  %v4264_v41 = vpack.c.bf16 %v436_v39, %v435_v38  ;;  %v376_v38 = vld [vmem:[%s8298_s1 + $0x2a8] sm:$0xff]  ;;  %v375_v39 = vld [vmem:[%s8298_s1 + $0x2a0] sm:$0xff] }
  0xf2   :  { %4217 = vmatpush1.bf16.msra.mxu1 %v4216_v42  ;;  %v320_v42 = vld [vmem:[%s8298_s1 + $0xe8] sm:$0xff] }
  0xf3   :  { %4218 = vmatprep.subr.bf16.mxu1 %v8305_v16 }
  0xf6   :  { %4220 = vmatpush1.bf16.msra.mxu1 %v4219_v45  ;;  %v319_v45 = vld [vmem:[%s8298_s1 + $0xe0] sm:$0xff] }
  0xf7   :  { %4221 = vmatprep.subr.bf16.mxu1 %v8305_v16 }
  0xfa   :  { %4223 = vmatpush1.bf16.msra.mxu1 %v4222_v48  ;;  %v439_v48 = vld [vmem:[%s8296_s4 + $0x180] sm:$0xff] }
  0xfb   :  { %4224 = vmatprep.subr.bf16.mxu1 %v8305_v16 }
  0xfe   :  { %4226 = vmatpush1.bf16.msra.mxu1 %v4225_v51  ;;  %v4270_v51 = vpack.c.bf16 %v440_v49, %v439_v48  ;;  %v298_v48 = vld [vmem:[%s8298_s1 + $0x38] sm:$0xff]  ;;  %v297_v49 = vld [vmem:[%s8298_s1 + $0x30] sm:$0xff] }
  0xff   :  { %4227 = vmatprep.subr.bf16.mxu1 %v8305_v16 }
 0x102   :  { %4229 = vmatpush1.bf16.msra.mxu1 %v4228_v54  ;;  %v442_v54 = vld [vmem:[%s8296_s4 + $0x198] sm:$0xff] }
 0x103   :  { %4230 = vmatprep.subr.bf16.mxu1 %v8305_v16  ;;  %v4273_v56 = vpack.c.bf16 %v442_v54, %v441_v53  ;;  %v305_v53 = vld [vmem:[%s8298_s1 + $0x70] sm:$0xff]  ;;  %v310_v54 = vld [vmem:[%s8298_s1 + $0x98] sm:$0xff] }
 0x106   :  { %4232 = vmatpush1.bf16.msra.mxu1 %v4231_v57  ;;  %v332_v57 = vld [vmem:[%s8298_s1 + $0x148] sm:$0xff] }
 0x107   :  { %4233 = vmatprep.subr.bf16.mxu1 %v8305_v16 }
 0x10a   :  { %4235 = vmatpush1.bf16.msra.mxu1 %v4234_v60  ;;  %v331_v60 = vld [vmem:[%s8298_s1 + $0x140] sm:$0xff] }
 0x10b   :  { %4236 = vmatprep.subr.bf16.mxu1 %v8305_v16 }
 0x10e   :  { %4238 = vmatpush1.bf16.msra.mxu1 %v4237_v63  ;;  %v445_v63 = vld [vmem:[%s8296_s4 + $0x1b0] sm:$0xff] }
 0x10f   :  { %4239 = vmatprep.subr.bf16.mxu1 %v8305_v16 }
 0x112   :  { %4241 = vmatpush1.bf16.msra.mxu1 %v4240_v3  ;;  %v4279_v3 = vpack.c.bf16 %v446_v1, %v445_v63  ;;  %v325_v63 = vld [vmem:[%s8298_s1 + $0x110] sm:$0xff]  ;;  %v330_v1 = vld [vmem:[%s8298_s1 + $0x138] sm:$0xff] }
 0x113   :  { %4242 = vmatprep.subr.bf16.mxu1 %v8305_v16 }
 0x116   :  { %4244 = vmatpush1.bf16.msra.mxu1 %v4243_v6  ;;  %v448_v6 = vld [vmem:[%s8296_s4 + $0x1c8] sm:$0xff] }
 0x117   :  { %4245 = vmatprep.subr.bf16.mxu1 %v8305_v16  ;;  %v4282_v8 = vpack.c.bf16 %v448_v6, %v447_v5  ;;  %v338_v5 = vld [vmem:[%s8298_s1 + $0x178] sm:$0xff]  ;;  %v337_v6 = vld [vmem:[%s8298_s1 + $0x170] sm:$0xff] }
 0x119   :  { %527 = vmatmul.mubr.f32.vlgmr.msra.gmra.mrb[2].mxu1 %v291_v9  ;;  %v344_v9 = vld [vmem:[%s8298_s1 + $0x1a8] sm:$0xff] }
 0x11a   :  { %4247 = vmatpush1.bf16.msra.mxu1 %v4246_v10  ;;  %531 = vmatprep.mubr.f32.mxu1 %v296_v11  ;;  %v449_v10 = vld [vmem:[%s8296_s4 + $0x1d0] sm:$0xff]  ;;  %v450_v11 = vld [vmem:[%s8296_s4 + $0x1d8] sm:$0xff] }
 0x11b   :  { %4248 = vmatprep.subr.bf16.mxu1 %v8305_v16  ;;  %v4285_v13 = vpack.c.bf16 %v450_v11, %v449_v10 }
 0x11d   :  { %532 = vmatmul.mubr.f32.gmra.mrb[4].mxu1 %v295_v14  ;;  %v348_v14 = vld [vmem:[%s8298_s1 + $0x1c8] sm:$0xff] }
 0x11e   :  { %536 = vmatprep.mubr.f32.mxu1 %v300_v17  ;;  %4250 = vmatpush1.bf16.msra.mxu1 %v4249_v15  ;;  %v451_v15 = vld [vmem:[%s8296_s4 + $0x1e0] sm:$0xff]  ;;  %v452_v17 = vld [vmem:[%s8296_s4 + $0x1e8] sm:$0xff] }
 0x11f   :  { %4251 = vmatprep.subr.bf16.mxu1 %v8305_v16  ;;  %v4288_v19 = vpack.c.bf16 %v452_v17, %v451_v15  ;;  %v350_v15 = vld [vmem:[%s8298_s1 + $0x1d8] sm:$0xff]  ;;  %v349_v17 = vld [vmem:[%s8298_s1 + $0x1d0] sm:$0xff] }
 0x121   :  { %537 = vmatmul.mubr.f32.gmra.mrb[6].mxu1 %v299_v20  ;;  %v352_v20 = vld [vmem:[%s8298_s1 + $0x1e8] sm:$0xff] }
 0x122   :  { %541 = vmatprep.mubr.f32.mxu1 %v304_v22  ;;  %4253 = vmatpush1.bf16.msra.mxu1 %v4252_v21  ;;  %v453_v21 = vld [vmem:[%s8296_s4 + $0x1f0] sm:$0xff]  ;;  %v454_v22 = vld [vmem:[%s8296_s4 + $0x1f8] sm:$0xff] }
 0x123   :  { %4254 = vmatprep.subr.bf16.mxu1 %v8305_v16  ;;  %v4291_v24 = vpack.c.bf16 %v454_v22, %v453_v21  ;;  %v357_v21 = vld [vmem:[%s8298_s1 + $0x210] sm:$0xff]  ;;  %v362_v22 = vld [vmem:[%s8298_s1 + $0x238] sm:$0xff] }
 0x125   :  { %542 = vmatmul.mubr.f32.gmra.mrb[8].mxu1 %v303_v25  ;;  %v356_v25 = vld [vmem:[%s8298_s1 + $0x208] sm:$0xff] }
 0x126   :  { %546 = vmatprep.mubr.f32.mxu1 %v308_v27  ;;  %4256 = vmatpush1.bf16.msra.mxu1 %v4255_v26  ;;  %v355_v26 = vld [vmem:[%s8298_s1 + $0x200] sm:$0xff]  ;;  %v360_v27 = vld [vmem:[%s8298_s1 + $0x228] sm:$0xff] }
 0x127   :  { %4257 = vmatprep.subr.bf16.mxu1 %v8305_v16 }
 0x129   :  { %547 = vmatmul.mubr.f32.gmra.mrb[10].mxu1 %v307_v30  ;;  %v363_v30 = vld [vmem:[%s8298_s1 + $0x240] sm:$0xff] }
 0x12a   :  { %551 = vmatprep.mubr.f32.mxu1 %v312_v32  ;;  %4259 = vmatpush1.bf16.msra.mxu1 %v4258_v31  ;;  %v843_v31 = vld [vmem:[%s8299_s6 + $0x8] sm:$0xff] }
 0x12b   :  { %4260 = vmatprep.subr.bf16.mxu1 %v8305_v16  ;;  %v847_v32 = vld [vmem:[%s8299_s6 + $0x28] sm:$0xff] }
 0x12c   :  { %v4293_v34 = vpack.c.bf16 %v847_v32, %v843_v31  ;;  %v377_v31 = vld [vmem:[%s8298_s1 + $0x2b0] sm:$0xff]  ;;  %v842_v32 = vld [vmem:[%s8299_s6] sm:$0xff] }
 0x12d   :  { %552 = vmatmul.mubr.f32.gmra.mrb[12].mxu1 %v311_v35  ;;  %v367_v35 = vld [vmem:[%s8298_s1 + $0x260] sm:$0xff] }
 0x12e   :  { %556 = vmatprep.mubr.f32.mxu1 %v316_v37  ;;  %4262 = vmatpush1.bf16.msra.mxu1 %v4261_v36  ;;  %v372_v36 = vld [vmem:[%s8298_s1 + $0x288] sm:$0xff]  ;;  %v371_v37 = vld [vmem:[%s8298_s1 + $0x280] sm:$0xff] }
 0x12f   :  { %4263 = vmatprep.subr.bf16.mxu1 %v8305_v16  ;;  %4294 = vmatprep.subr.bf16.mxu0 %v4293_v34  ;;  %v382_v34 = vld [vmem:[%s8298_s1 + $0x2d8] sm:$0xff] }
 0x131   :  { %557 = vmatmul.mubr.f32.gmra.mrb[14].mxu1 %v315_v40  ;;  %v380_v40 = vld [vmem:[%s8298_s1 + $0x2c8] sm:$0xff] }
 0x132   :  { %561 = vmatprep.mubr.f32.mxu1 %v320_v42  ;;  %4265 = vmatpush1.bf16.msra.mxu1 %v4264_v41  ;;  %v379_v41 = vld [vmem:[%s8298_s1 + $0x2c0] sm:$0xff]  ;;  %v384_v42 = vld [vmem:[%s8298_s1 + $0x2e8] sm:$0xff] }
 0x133   :  { %4266 = vmatprep.subr.bf16.mxu1 %v8305_v16 }
 0x135   :  { %562 = vmatmul.mubr.f32.gmra.mrb[16].mxu1 %v319_v45  ;;  %v387_v45 = vld [vmem:[%s8298_s1 + $0x300] sm:$0xf] }
 0x136   :  { %566 = vmatprep.mubr.f32.mxu1 %v324_v47  ;;  %4268 = vmatpush1.bf16.msra.mxu1 %v4267_v46  ;;  %v294_v46 = vld [vmem:[%s8298_s1 + $0x18] sm:$0xff]  ;;  %v293_v47 = vld [vmem:[%s8298_s1 + $0x10] sm:$0xff] }
 0x137   :  { %4269 = vmatprep.subr.bf16.mxu1 %v8305_v16 }
 0x139   :  { %567 = vmatmul.mubr.f32.gmra.mrb[18].mxu1 %v323_v50  ;;  %v302_v50 = vld [vmem:[%s8298_s1 + $0x58] sm:$0xff] }
 0x13a   :  { %571 = vmatprep.mubr.f32.mxu1 %v328_v52  ;;  %4271 = vmatpush1.bf16.msra.mxu1 %v4270_v51  ;;  %v301_v51 = vld [vmem:[%s8298_s1 + $0x50] sm:$0xff]  ;;  %v306_v52 = vld [vmem:[%s8298_s1 + $0x78] sm:$0xff] }
 0x13b   :  { %4272 = vmatprep.subr.bf16.mxu1 %v8305_v16 }
 0x13d   :  { %572 = vmatmul.mubr.f32.gmra.mrb[20].mxu1 %v327_v55  ;;  %v309_v55 = vld [vmem:[%s8298_s1 + $0x90] sm:$0xff] }
 0x13e   :  { %576 = vmatprep.mubr.f32.mxu1 %v332_v57  ;;  %4274 = vmatpush1.bf16.msra.mxu1 %v4273_v56  ;;  %v314_v56 = vld [vmem:[%s8298_s1 + $0xb8] sm:$0xff]  ;;  %v313_v57 = vld [vmem:[%s8298_s1 + $0xb0] sm:$0xff] }
 0x13f   :  { %4275 = vmatprep.subr.bf16.mxu1 %v8305_v16 }
 0x141   :  { %577 = vmatmul.mubr.f32.gmra.mrb[22].mxu1 %v331_v60  ;;  %v322_v60 = vld [vmem:[%s8298_s1 + $0xf8] sm:$0xff] }
 0x142   :  { %581 = vmatprep.mubr.f32.mxu1 %v336_v62  ;;  %4277 = vmatpush1.bf16.msra.mxu1 %v4276_v61  ;;  %v321_v61 = vld [vmem:[%s8298_s1 + $0xf0] sm:$0xff]  ;;  %v326_v62 = vld [vmem:[%s8298_s1 + $0x118] sm:$0xff] }
 0x143   :  { %4278 = vmatprep.subr.bf16.mxu1 %v8305_v16 }
 0x145   :  { %582 = vmatmul.mubr.f32.gmra.mrb[24].mxu1 %v335_v2  ;;  %v329_v2 = vld [vmem:[%s8298_s1 + $0x130] sm:$0xff] }
 0x146   :  { %586 = vmatprep.mubr.f32.mxu1 %v340_v4  ;;  %4280 = vmatpush1.bf16.msra.mxu1 %v4279_v3  ;;  %v334_v3 = vld [vmem:[%s8298_s1 + $0x158] sm:$0xff]  ;;  %v333_v4 = vld [vmem:[%s8298_s1 + $0x150] sm:$0xff] }
 0x147   :  { %4281 = vmatprep.subr.bf16.mxu1 %v8305_v16 }
 0x149   :  { %587 = vmatmul.mubr.f32.gmra.mrb[26].mxu1 %v339_v7  ;;  %v342_v7 = vld [vmem:[%s8298_s1 + $0x198] sm:$0xff] }
 0x14a   :  { %591 = vmatprep.mubr.f32.mxu1 %v344_v9  ;;  %4283 = vmatpush1.bf16.msra.mxu1 %v4282_v8  ;;  %v341_v8 = vld [vmem:[%s8298_s1 + $0x190] sm:$0xff]  ;;  %v346_v9 = vld [vmem:[%s8298_s1 + $0x1b8] sm:$0xff] }
 0x14b   :  { %4284 = vmatprep.subr.bf16.mxu1 %v8305_v16 }
 0x14d   :  { %592 = vmatmul.mubr.f32.gmra.mrb[28].mxu1 %v343_v12 }
 0x14e   :  { %596 = vmatprep.mubr.f32.mxu1 %v348_v14  ;;  %4286 = vmatpush1.bf16.msra.mxu1 %v4285_v13  ;;  %v345_v14 = vld [vmem:[%s8298_s1 + $0x1b0] sm:$0xff] }
 0x14f   :  { %4287 = vmatprep.subr.bf16.mxu1 %v8305_v16 }
 0x151   :  { %597 = vmatmul.mubr.f32.gmra.mrb[30].mxu1 %v347_v18  ;;  %v354_v18 = vld [vmem:[%s8298_s1 + $0x1f8] sm:$0xff] }
 0x152   :  { %601 = vmatprep.mubr.f32.mxu1 %v352_v20  ;;  %4289 = vmatpush1.bf16.msra.mxu1 %v4288_v19  ;;  %v353_v19 = vld [vmem:[%s8298_s1 + $0x1f0] sm:$0xff]  ;;  %v358_v20 = vld [vmem:[%s8298_s1 + $0x218] sm:$0xff] }
 0x153   :  { %4290 = vmatprep.subr.bf16.mxu1 %v8305_v16 }
 0x155   :  { %602 = vmatmul.mubr.f32.gmra.mrb[32].mxu1 %v351_v23  ;;  %v361_v23 = vld [vmem:[%s8298_s1 + $0x230] sm:$0xff] }
 0x156   :  { %606 = vmatprep.mubr.f32.mxu1 %v356_v25  ;;  %4292 = vmatpush1.bf16.msra.mxu1 %v4291_v24  ;;  %v366_v24 = vld [vmem:[%s8298_s1 + $0x258] sm:$0xff]  ;;  %v365_v25 = vld [vmem:[%s8298_s1 + $0x250] sm:$0xff] }
 0x157   :  { %4397 = vmatprep.subr.bf16.mxu1 %v8305_v16 }
 0x159   :  { %607 = vmatmul.mubr.f32.gmra.mrb[34].mxu1 %v355_v26  ;;  %v370_v26 = vld [vmem:[%s8298_s1 + $0x278] sm:$0xff] }
 0x15a   :  { %611 = vmatprep.mubr.f32.mxu1 %v360_v27  ;;  %v369_v27 = vld [vmem:[%s8298_s1 + $0x270] sm:$0xff] }
 0x15d   :  { %612 = vmatmul.mubr.f32.gmra.mrb[36].mxu1 %v359_v28  ;;  %v374_v28 = vld [vmem:[%s8298_s1 + $0x298] sm:$0xff] }
 0x15e   :  { %616 = vmatprep.mubr.f32.mxu1 %v364_v29  ;;  %v373_v29 = vld [vmem:[%s8298_s1 + $0x290] sm:$0xff] }
 0x161   :  { %617 = vmatmul.mubr.f32.gmra.mrb[38].mxu1 %v363_v30  ;;  %v378_v30 = vld [vmem:[%s8298_s1 + $0x2b8] sm:$0xff] }
 0x162   :  { %621 = vmatprep.mubr.f32.mxu1 %v368_v33  ;;  %v846_v33 = vld [vmem:[%s8299_s6 + $0x20] sm:$0xff] }
 0x165   :  { %622 = vmatmul.mubr.f32.gmra.mrb[40].mxu1 %v367_v35  ;;  %v4295_v35 = vpack.c.bf16 %v846_v33, %v842_v32  ;;  %v1390_v33 = vld [vmem:[%s8301_s9 + $0x60] sm:$0xff] }
 0x166   :  { %626 = vmatprep.mubr.f32.mxu1 %v372_v36  ;;  %v381_v36 = vld [vmem:[%s8298_s1 + $0x2d0] sm:$0xff] }
 0x167   :  { %4296 = vmatpush1.bf16.msra.mxu0 %v4295_v35 }
 0x169   :  { %627 = vmatmul.mubr.f32.gmra.mrb[42].mxu1 %v371_v37  ;;  %v386_v37 = vld [vmem:[%s8298_s1 + $0x2f8] sm:$0xff] }
 0x16a   :  { %631 = vmatprep.mubr.f32.mxu1 %v376_v38  ;;  %v845_v38 = vld [vmem:[%s8299_s6 + $0x18] sm:$0xff] }
 0x16d   :  { %632 = vmatmul.mubr.f32.gmra.mrb[44].mxu1 %v375_v39  ;;  %v849_v39 = vld [vmem:[%s8299_s6 + $0x38] sm:$0xff] }
 0x16e   :  { %636 = vmatprep.mubr.f32.mxu1 %v380_v40  ;;  %v4297_v40 = vpack.c.bf16 %v849_v39, %v845_v38 }
 0x170   :  { %4298 = vmatprep.subr.bf16.mxu0 %v4297_v40 }
 0x171   :  { %637 = vmatmul.mubr.f32.gmra.mrb[46].mxu1 %v379_v41  ;;  %v385_v41 = vld [vmem:[%s8298_s1 + $0x2f0] sm:$0xff] }
 0x172   :  { %641 = vmatprep.mubr.f32.mxu1 %v384_v42  ;;  %v390_v42 = vld [vmem:[%s8298_s1 + $0x318] sm:$0xf] }
 0x175   :  { %642 = vmatmul.mubr.f32.gmra.mrb[48].mxu1 %v383_v43  ;;  %v389_v43 = vld [vmem:[%s8298_s1 + $0x310] sm:$0xf] }
 0x176   :  { %646 = vmatprep.mubr.f32.mxu1 %v388_v44  ;;  %v1378_v44 = vld [vmem:[%s8301_s9] sm:$0xff] }
 0x179   :  { %647 = vmatmul.mubr.f32.gmra.mrb[50].mxu1 %v387_v45  ;;  %v1379_v45 = vld [vmem:[%s8301_s9 + $0x8] sm:$0xff] }
 0x17a   :  { %716 = vmatprep.mubr.f32.mxu1 %v294_v46  ;;  %v844_v46 = vld [vmem:[%s8299_s6 + $0x10] sm:$0xff] }
 0x17d   :  { %717 = vmatmul.mubr.f32.vlgmr.msra.gmra.mrb[2].mxu1 %v293_v47  ;;  %v848_v47 = vld [vmem:[%s8299_s6 + $0x30] sm:$0xff] }
 0x17e   :  { %721 = vmatprep.mubr.f32.mxu1 %v298_v48  ;;  %v5767_v48 = vpack.c.bf16 %v1379_v45, %v1378_v44 }
 0x180   :  { %8492 = vst [vmem:[#allocation2_spill] sm:$0xff] %v5767_v48  ;;  %4399 = vmatpush1.bf16.msra.mxu1 %v5767_v48 }
 0x181   :  { %722 = vmatmul.mubr.f32.gmra.mrb[4].mxu1 %v297_v49  ;;  %v5772_v49 = vld [vmem:[%s8300_s5] ss:$0 sm:$0xff]  ;;  %4400 = vmatprep.subr.bf16.mxu1 %v8305_v16 }
 0x182   :  { %726 = vmatprep.mubr.f32.mxu1 %v302_v50 }
 0x185   :  { %727 = vmatmul.mubr.f32.gmra.mrb[6].mxu1 %v301_v51  ;;  %v4299_v51 = vpack.c.bf16 %v848_v47, %v844_v46 }
 0x186   :  { %731 = vmatprep.mubr.f32.mxu1 %v306_v52 }
 0x189   :  { %732 = vmatmul.mubr.f32.gmra.mrb[8].mxu1 %v305_v53 }
 0x18a   :  { %736 = vmatprep.mubr.f32.mxu1 %v310_v54  ;;  %v1380_v54 = vld [vmem:[%s8301_s9 + $0x10] sm:$0xff] }
 0x18d   :  { %737 = vmatmul.mubr.f32.gmra.mrb[10].mxu1 %v309_v55  ;;  %v1381_v55 = vld [vmem:[%s8301_s9 + $0x18] sm:$0xff] }
 0x18e   :  { %741 = vmatprep.mubr.f32.mxu1 %v314_v56 }
 0x191   :  { %742 = vmatmul.mubr.f32.gmra.mrb[12].mxu1 %v313_v57  ;;  %v5788_v57 = vpack.c.bf16 %v1381_v55, %v1380_v54 }
 0x192   :  { %746 = vmatprep.mubr.f32.mxu1 %v318_v58 }
 0x193   :  { %8493 = vst [vmem:[#allocation3_spill] sm:$0xff] %v5788_v57  ;;  %4402 = vmatpush1.bf16.msra.mxu1 %v5788_v57 }
 0x194   :  { %4403 = vmatprep.subr.bf16.mxu1 %v8305_v16 }
 0x195   :  { %747 = vmatmul.mubr.f32.gmra.mrb[14].mxu1 %v317_v59 }
 0x196   :  { %751 = vmatprep.mubr.f32.mxu1 %v322_v60  ;;  %v1382_v60 = vld [vmem:[%s8301_s9 + $0x20] sm:$0xff] }
 0x199   :  { %752 = vmatmul.mubr.f32.gmra.mrb[16].mxu1 %v321_v61  ;;  %v1383_v61 = vld [vmem:[%s8301_s9 + $0x28] sm:$0xff] }
 0x19a   :  { %756 = vmatprep.mubr.f32.mxu1 %v326_v62 }
 0x19d   :  { %757 = vmatmul.mubr.f32.gmra.mrb[18].mxu1 %v325_v63  ;;  %v5805_v63 = vpack.c.bf16 %v1383_v61, %v1382_v60  ;;  %v1396_v61 = vld [vmem:[%s8301_s9 + $0x90] sm:$0xff] }
 0x19e   :  { %761 = vmatprep.mubr.f32.mxu1 %v330_v1 }
 0x19f   :  { %8494 = vst [vmem:[#allocation4_spill] sm:$0xff] %v5805_v63  ;;  %4405 = vmatpush1.bf16.msra.mxu1 %v5805_v63 }
 0x1a0   :  { %4406 = vmatprep.subr.bf16.mxu1 %v8305_v16 }
 0x1a1   :  { %762 = vmatmul.mubr.f32.gmra.mrb[20].mxu1 %v329_v2 }
 0x1a2   :  { %766 = vmatprep.mubr.f32.mxu1 %v334_v3 }
 0x1a5   :  { %767 = vmatmul.mubr.f32.gmra.mrb[22].mxu1 %v333_v4 }
 0x1a6   :  { %771 = vmatprep.mubr.f32.mxu1 %v338_v5 }
 0x1a9   :  { %772 = vmatmul.mubr.f32.gmra.mrb[24].mxu1 %v337_v6  ;;  %v1384_v6 = vld [vmem:[%s8301_s9 + $0x30] sm:$0xff] }
 0x1aa   :  { %776 = vmatprep.mubr.f32.mxu1 %v342_v7  ;;  %v1385_v7 = vld [vmem:[%s8301_s9 + $0x38] sm:$0xff] }
 0x1ac   :  { %v5666_v10 = vpop.f32.mrb[0].mxu1  ;;  %v5668_v11 = vpop.f32.mrb[2].mxu0 }
 0x1ad   :  { %777 = vmatmul.mubr.f32.gmra.mrb[26].mxu1 %v341_v8  ;;  %v5670_v12 = vpop.f32.mrb[1].mxu1  ;;  %v5672_v13 = vpop.f32.mrb[3].mxu0 }
 0x1ae   :  { %781 = vmatprep.mubr.f32.mxu1 %v346_v9  ;;  %v5827_v9 = vpack.c.bf16 %v1385_v7, %v1384_v6 }
 0x1b0   :  { %8495 = vst [vmem:[#allocation5_spill] sm:$0xff] %v5827_v9  ;;  %4408 = vmatpush1.bf16.msra.mxu1 %v5827_v9 }
 0x1b1   :  { %782 = vmatmul.mubr.f32.gmra.mrb[28].mxu1 %v345_v14  ;;  %4409 = vmatprep.subr.bf16.mxu1 %v8305_v16 }
 0x1b2   :  { %786 = vmatprep.mubr.f32.mxu1 %v350_v15 }
 0x1b5   :  { %787 = vmatmul.mubr.f32.gmra.mrb[30].mxu1 %v349_v17  ;;  %v1386_v17 = vld [vmem:[%s8301_s9 + $0x40] sm:$0xff] }
 0x1b6   :  { %791 = vmatprep.mubr.f32.mxu1 %v354_v18  ;;  %v1387_v18 = vld [vmem:[%s8301_s9 + $0x48] sm:$0xff] }
 0x1b9   :  { %792 = vmatmul.mubr.f32.gmra.mrb[32].mxu1 %v353_v19 }
 0x1ba   :  { %796 = vmatprep.mubr.f32.mxu1 %v358_v20  ;;  %v5843_v20 = vpack.c.bf16 %v1387_v18, %v1386_v17  ;;  %v1398_v17 = vld [vmem:[%s8301_s9 + $0xa0] sm:$0xff]  ;;  %v1399_v18 = vld [vmem:[%s8301_s9 + $0xa8] sm:$0xff] }
 0x1bc   :  { %8496 = vst [vmem:[#allocation6_spill] sm:$0xff] %v5843_v20  ;;  %4411 = vmatpush1.bf16.msra.mxu1 %v5843_v20 }
 0x1bd   :  { %797 = vmatmul.mubr.f32.gmra.mrb[34].mxu1 %v357_v21  ;;  %4412 = vmatprep.subr.bf16.mxu1 %v8305_v16 }
 0x1be   :  { %801 = vmatprep.mubr.f32.mxu1 %v362_v22 }
 0x1c1   :  { %802 = vmatmul.mubr.f32.gmra.mrb[36].mxu1 %v361_v23 }
 0x1c2   :  { %806 = vmatprep.mubr.f32.mxu1 %v366_v24 }
 0x1c5   :  { %807 = vmatmul.mubr.f32.gmra.mrb[38].mxu1 %v365_v25 }
 0x1c6   :  { %811 = vmatprep.mubr.f32.mxu1 %v370_v26  ;;  %v1388_v26 = vld [vmem:[%s8301_s9 + $0x50] sm:$0xff] }
 0x1c9   :  { %812 = vmatmul.mubr.f32.gmra.mrb[40].mxu1 %v369_v27  ;;  %v1389_v27 = vld [vmem:[%s8301_s9 + $0x58] sm:$0xff] }
 0x1ca   :  { %816 = vmatprep.mubr.f32.mxu1 %v374_v28 }
 0x1cd   :  { %817 = vmatmul.mubr.f32.gmra.mrb[42].mxu1 %v373_v29  ;;  %v5865_v29 = vpack.c.bf16 %v1389_v27, %v1388_v26  ;;  %v1400_v26 = vld [vmem:[%s8301_s9 + $0xb0] sm:$0xff]  ;;  %v1401_v27 = vld [vmem:[%s8301_s9 + $0xb8] sm:$0xff] }
 0x1ce   :  { %821 = vmatprep.mubr.f32.mxu1 %v378_v30 }
 0x1cf   :  { %8497 = vst [vmem:[#allocation7_spill] sm:$0xff] %v5865_v29  ;;  %4414 = vmatpush1.bf16.msra.mxu1 %v5865_v29 }
 0x1d0   :  { %4415 = vmatprep.subr.bf16.mxu1 %v8305_v16 }
 0x1d1   :  { %822 = vmatmul.mubr.f32.gmra.mrb[44].mxu1 %v377_v31 }
 0x1d2   :  { %826 = vmatprep.mubr.f32.mxu1 %v382_v34  ;;  %v1391_v34 = vld [vmem:[%s8301_s9 + $0x68] sm:$0xff] }
 0x1d5   :  { %827 = vmatmul.mubr.f32.gmra.mrb[46].mxu1 %v381_v36 }
 0x1d6   :  { %831 = vmatprep.mubr.f32.mxu1 %v386_v37  ;;  %v5884_v37 = vpack.c.bf16 %v1391_v34, %v1390_v33 }
 0x1d8   :  { %8498 = vst [vmem:[#allocation8_spill] sm:$0xff] %v5884_v37  ;;  %4417 = vmatpush1.bf16.msra.mxu1 %v5884_v37 }
 0x1d9   :  { %832 = vmatmul.mubr.f32.gmra.mrb[48].mxu1 %v385_v41  ;;  %4418 = vmatprep.subr.bf16.mxu1 %v8305_v16  ;;  %v1392_v41 = vld [vmem:[%s8301_s9 + $0x70] sm:$0xff] }
 0x1da   :  { %836 = vmatprep.mubr.f32.mxu1 %v390_v42  ;;  %v1393_v42 = vld [vmem:[%s8301_s9 + $0x78] sm:$0xff] }
 0x1db   :  { %v5903_v44 = vpack.c.bf16 %v1393_v42, %v1392_v41  ;;  %v1403_v41 = vld [vmem:[%s8301_s9 + $0xc8] sm:$0xff]  ;;  %v1404_v42 = vld [vmem:[%s8301_s9 + $0xd0] sm:$0xff] }
 0x1dd   :  { %837 = vmatmul.mubr.f32.gmra.mrb[50].mxu1 %v389_v43  ;;  %8499 = vst [vmem:[#allocation9_spill] sm:$0xff] %v5903_v44 }
 0x1de   :  { %4420 = vmatpush1.bf16.msra.mxu1 %v5903_v44 }
 0x1df   :  { %4421 = vmatprep.subr.bf16.mxu1 %v8305_v16 }
 0x250   :  { %v718_v50 = vpop.f32.mrb[2].mxu1 }
 0x251   :  { %v5777_v52 = vadd.f32 %v5772_v49, %v718_v50  ;;  %v720_v53 = vpop.f32.mrb[3].mxu1  ;;  %v1394_v50 = vld [vmem:[%s8301_s9 + $0x80] sm:$0xff] }
 0x253   :  { %4052 = vmatmul.mubr.msk.f32.vlgmr.msra.gmra.mrb[4].mxu0 %vm872_vm6, %v5777_v52 }
 0x254   :  { %v723_v56 = vpop.f32.mrb[4].mxu1  ;;  %4300 = vmatpush1.bf16.msra.mxu0 %v4299_v51  ;;  %1018 = vmatprep.mubr.f32.mxu0 %v5090_v0  ;;  %v1395_v51 = vld [vmem:[%s8301_s9 + $0x88] sm:$0xff] }
 0x255   :  { %v5791_v58 = vadd.f32 %v5772_v49, %v723_v56  ;;  %v725_v59 = vpop.f32.mrb[5].mxu1  ;;  %4301 = vmatprep.subr.bf16.mxu0 %v8305_v16  ;;  %v5922_v55 = vpack.c.bf16 %v1395_v51, %v1394_v50 }
 0x257   :  { %4053 = vmatmul.mubr.msk.f32.gmra.mrb[6].mxu0 %vm872_vm6, %v5791_v58  ;;  %8500 = vst [vmem:[#allocation10_spill] sm:$0xff] %v5922_v55  ;;  %4423 = vmatpush1.bf16.msra.mxu1 %v5922_v55 }
 0x258   :  { %v728_v62 = vpop.f32.mrb[6].mxu1  ;;  %1024 = vmatprep.mubr.f32.mxu0 %v5090_v0  ;;  %4424 = vmatprep.subr.bf16.mxu1 %v8305_v16 }
 0x259   :  { %v5808_v1 = vadd.f32 %v5772_v49, %v728_v62  ;;  %v730_v2 = vpop.f32.mrb[7].mxu1  ;;  %v1397_v62 = vld [vmem:[%s8301_s9 + $0x98] sm:$0xff] }
 0x25b   :  { %4054 = vmatmul.mubr.msk.f32.gmra.mrb[8].mxu0 %vm872_vm6, %v5808_v1 }
 0x25c   :  { %v733_v3 = vpop.f32.mrb[8].mxu1  ;;  %1030 = vmatprep.mubr.f32.mxu0 %v5090_v0 }
 0x25d   :  { %v5816_v4 = vadd.f32 %v5772_v49, %v733_v3  ;;  %v735_v5 = vpop.f32.mrb[9].mxu1  ;;  %v5941_v3 = vpack.c.bf16 %v1397_v62, %v1396_v61 }
 0x25f   :  { %4055 = vmatmul.mubr.msk.f32.gmra.mrb[10].mxu0 %vm872_vm6, %v5816_v4  ;;  %8501 = vst [vmem:[#allocation11_spill] sm:$0xff] %v5941_v3  ;;  %4426 = vmatpush1.bf16.msra.mxu1 %v5941_v3 }
 0x260   :  { %v738_v8 = vpop.f32.mrb[10].mxu1  ;;  %1036 = vmatprep.mubr.f32.mxu0 %v5090_v0  ;;  %4427 = vmatprep.subr.bf16.mxu1 %v8305_v16 }
 0x261   :  { %v5830_v14 = vadd.f32 %v5772_v49, %v738_v8  ;;  %v740_v15 = vpop.f32.mrb[11].mxu1 }
 0x263   :  { %4056 = vmatmul.mubr.msk.f32.gmra.mrb[12].mxu0 %vm872_vm6, %v5830_v14 }
 0x264   :  { %v743_v19 = vpop.f32.mrb[12].mxu1  ;;  %1042 = vmatprep.mubr.f32.mxu0 %v5090_v0 }
 0x265   :  { %v5846_v21 = vadd.f32 %v5772_v49, %v743_v19  ;;  %v745_v22 = vpop.f32.mrb[13].mxu1 }
 0x266   :  { %v5963_v22 = vpack.c.bf16 %v1399_v18, %v1398_v17 }
 0x267   :  { %4057 = vmatmul.mubr.msk.f32.gmra.mrb[14].mxu0 %vm872_vm6, %v5846_v21 }
 0x268   :  { %v748_v23 = vpop.f32.mrb[14].mxu1  ;;  %1048 = vmatprep.mubr.f32.mxu0 %v5090_v0  ;;  %8502 = vst [vmem:[#allocation12_spill] sm:$0xff] %v5963_v22  ;;  %4429 = vmatpush1.bf16.msra.mxu1 %v5963_v22 }
 0x269   :  { %v5854_v24 = vadd.f32 %v5772_v49, %v748_v23  ;;  %v750_v25 = vpop.f32.mrb[15].mxu1  ;;  %4430 = vmatprep.subr.bf16.mxu1 %v8305_v16 }
 0x26b   :  { %4058 = vmatmul.mubr.msk.f32.gmra.mrb[16].mxu0 %vm872_vm6, %v5854_v24 }
 0x26c   :  { %v753_v28 = vpop.f32.mrb[16].mxu1  ;;  %1054 = vmatprep.mubr.f32.mxu0 %v5090_v0 }
 0x26d   :  { %v5868_v30 = vadd.f32 %v5772_v49, %v753_v28  ;;  %v755_v31 = vpop.f32.mrb[17].mxu1 }
 0x26e   :  { %v5979_v31 = vpack.c.bf16 %v1401_v27, %v1400_v26 }
 0x26f   :  { %4059 = vmatmul.mubr.msk.f32.gmra.mrb[18].mxu0 %vm872_vm6, %v5868_v30 }
 0x270   :  { %v758_v32 = vpop.f32.mrb[18].mxu1  ;;  %1060 = vmatprep.mubr.f32.mxu0 %v5090_v0  ;;  %8503 = vst [vmem:[#allocation13_spill] sm:$0xff] %v5979_v31  ;;  %4432 = vmatpush1.bf16.msra.mxu1 %v5979_v31 }
 0x271   :  { %v5882_v35 = vadd.f32 %v5772_v49, %v758_v32  ;;  %v760_v36 = vpop.f32.mrb[19].mxu1  ;;  %4433 = vmatprep.subr.bf16.mxu1 %v8305_v16 }
 0x273   :  { %4060 = vmatmul.mubr.msk.f32.gmra.mrb[20].mxu0 %vm872_vm6, %v5882_v35 }
 0x274   :  { %v763_v38 = vpop.f32.mrb[20].mxu1  ;;  %1066 = vmatprep.mubr.f32.mxu0 %v5090_v0 }
 0x275   :  { %v5892_v39 = vadd.f32 %v5772_v49, %v763_v38  ;;  %v765_v40 = vpop.f32.mrb[21].mxu1 }
 0x276   :  { %v1402_v40 = vld [vmem:[%s8301_s9 + $0xc0] sm:$0xff] }
 0x277   :  { %4061 = vmatmul.mubr.msk.f32.gmra.mrb[22].mxu0 %vm872_vm6, %v5892_v39 }
 0x278   :  { %v768_v43 = vpop.f32.mrb[22].mxu1  ;;  %1072 = vmatprep.mubr.f32.mxu0 %v5090_v0 }
 0x279   :  { %v5906_v45 = vadd.f32 %v5772_v49, %v768_v43  ;;  %v770_v46 = vpop.f32.mrb[23].mxu1 }
 0x27a   :  { %v6004_v46 = vpack.c.bf16 %v1403_v41, %v1402_v40 }
 0x27b   :  { %4062 = vmatmul.mubr.msk.f32.gmra.mrb[24].mxu0 %vm872_vm6, %v5906_v45 }
 0x27c   :  { %v773_v47 = vpop.f32.mrb[24].mxu1  ;;  %1078 = vmatprep.mubr.f32.mxu0 %v5090_v0  ;;  %8504 = vst [vmem:[#allocation14_spill] sm:$0xff] %v6004_v46  ;;  %4435 = vmatpush1.bf16.msra.mxu1 %v6004_v46 }
 0x27d   :  { %v5920_v53 = vadd.f32 %v5772_v49, %v773_v47  ;;  %v775_v54 = vpop.f32.mrb[25].mxu1  ;;  %v1405_v47 = vld [vmem:[%s8301_s9 + $0xd8] sm:$0xff]  ;;  %4436 = vmatprep.subr.bf16.mxu1 %v8305_v16 }
 0x27e   :  { %v6012_v54 = vpack.c.bf16 %v1405_v47, %v1404_v42 }
 0x27f   :  { %4063 = vmatmul.mubr.msk.f32.gmra.mrb[26].mxu0 %vm872_vm6, %v5920_v53 }
 0x280   :  { %v778_v56 = vpop.f32.mrb[26].mxu1  ;;  %1084 = vmatprep.mubr.f32.mxu0 %v5090_v0  ;;  %8505 = vst [vmem:[#allocation15_spill] sm:$0xff] %v6012_v54  ;;  %4438 = vmatpush1.bf16.msra.mxu1 %v6012_v54 }
 0x281   :  { %v5930_v59 = vadd.f32 %v5772_v49, %v778_v56  ;;  %v780_v60 = vpop.f32.mrb[27].mxu1  ;;  %v1406_v56 = vld [vmem:[%s8301_s9 + $0xe0] sm:$0xff]  ;;  %4439 = vmatprep.subr.bf16.mxu1 %v8305_v16 }
 0x282   :  { %v1407_v60 = vld [vmem:[%s8301_s9 + $0xe8] sm:$0xff] }
 0x283   :  { %4064 = vmatmul.mubr.msk.f32.gmra.mrb[28].mxu0 %vm872_vm6, %v5930_v59 }
 0x284   :  { %v783_v2 = vpop.f32.mrb[28].mxu1  ;;  %1090 = vmatprep.mubr.f32.mxu0 %v5090_v0 }
 0x285   :  { %v5944_v5 = vadd.f32 %v5772_v49, %v783_v2  ;;  %v785_v6 = vpop.f32.mrb[29].mxu1 }
 0x286   :  { %v6028_v6 = vpack.c.bf16 %v1407_v60, %v1406_v56 }
 0x287   :  { %4065 = vmatmul.mubr.msk.f32.gmra.mrb[30].mxu0 %vm872_vm6, %v5944_v5 }
 0x288   :  { %v788_v7 = vpop.f32.mrb[30].mxu1  ;;  %1096 = vmatprep.mubr.f32.mxu0 %v5090_v0  ;;  %8506 = vst [vmem:[#allocation16_spill] sm:$0xff] %v6028_v6  ;;  %4441 = vmatpush1.bf16.msra.mxu1 %v6028_v6 }
 0x289   :  { %v5952_v8 = vadd.f32 %v5772_v49, %v788_v7  ;;  %v790_v15 = vpop.f32.mrb[31].mxu1  ;;  %4442 = vmatprep.subr.bf16.mxu1 %v8305_v16 }
 0x28b   :  { %4066 = vmatmul.mubr.msk.f32.gmra.mrb[32].mxu0 %vm872_vm6, %v5952_v8 }
 0x28c   :  { %v793_v19 = vpop.f32.mrb[32].mxu1  ;;  %1102 = vmatprep.mubr.f32.mxu0 %v5090_v0 }
 0x28d   :  { %v5966_v23 = vadd.f32 %v5772_v49, %v793_v19  ;;  %v795_v25 = vpop.f32.mrb[33].mxu1 }
 0x28f   :  { %4067 = vmatmul.mubr.msk.f32.gmra.mrb[34].mxu0 %vm872_vm6, %v5966_v23 }
 0x290   :  { %v798_v28 = vpop.f32.mrb[34].mxu1  ;;  %1108 = vmatprep.mubr.f32.mxu0 %v5090_v0 }
 0x291   :  { %v5982_v32 = vadd.f32 %v5772_v49, %v798_v28  ;;  %v800_v33 = vpop.f32.mrb[35].mxu1 }
 0x292   :  { %v1408_v33 = vld [vmem:[%s8301_s9 + $0xf0] sm:$0xff] }
 0x293   :  { %4068 = vmatmul.mubr.msk.f32.gmra.mrb[36].mxu0 %vm872_vm6, %v5982_v32 }
 0x294   :  { %v803_v34 = vpop.f32.mrb[36].mxu1  ;;  %1114 = vmatprep.mubr.f32.mxu0 %v5090_v0 }
 0x295   :  { %v5990_v36 = vadd.f32 %v5772_v49, %v803_v34  ;;  %v805_v38 = vpop.f32.mrb[37].mxu1  ;;  %v1409_v34 = vld [vmem:[%s8301_s9 + $0xf8] sm:$0xff] }
 0x296   :  { %v6060_v38 = vpack.c.bf16 %v1409_v34, %v1408_v33 }
 0x297   :  { %4069 = vmatmul.mubr.msk.f32.gmra.mrb[38].mxu0 %vm872_vm6, %v5990_v36 }
 0x298   :  { %v808_v43 = vpop.f32.mrb[38].mxu1  ;;  %1120 = vmatprep.mubr.f32.mxu0 %v5090_v0  ;;  %8507 = vst [vmem:[#allocation17_spill] sm:$0xff] %v6060_v38  ;;  %4444 = vmatpush1.bf16.msra.mxu1 %v6060_v38 }
 0x299   :  { %v6010_v50 = vadd.f32 %v5772_v49, %v808_v43  ;;  %v810_v51 = vpop.f32.mrb[39].mxu1  ;;  %4445 = vmatprep.subr.bf16.mxu1 %v8305_v16 }
 0x29b   :  { %4070 = vmatmul.mubr.msk.f32.gmra.mrb[40].mxu0 %vm872_vm6, %v6010_v50 }
 0x29c   :  { %v813_v61 = vpop.f32.mrb[40].mxu1  ;;  %1126 = vmatprep.mubr.f32.mxu0 %v5090_v0 }
 0x29d   :  { %v6026_v62 = vadd.f32 %v5772_v49, %v813_v61  ;;  %v815_v2 = vpop.f32.mrb[41].mxu1 }
 0x29f   :  { %4071 = vmatmul.mubr.msk.f32.gmra.mrb[42].mxu0 %vm872_vm6, %v6026_v62 }
 0x2a0   :  { %v818_v7 = vpop.f32.mrb[42].mxu1  ;;  %1132 = vmatprep.mubr.f32.mxu0 %v5090_v0 }
 0x2a1   :  { %v6036_v15 = vadd.f32 %v5772_v49, %v818_v7  ;;  %v820_v17 = vpop.f32.mrb[43].mxu1 }
 0x2a3   :  { %4072 = vmatmul.mubr.msk.f32.gmra.mrb[44].mxu0 %vm872_vm6, %v6036_v15 }
 0x2a4   :  { %v823_v18 = vpop.f32.mrb[44].mxu1  ;;  %1138 = vmatprep.mubr.f32.mxu0 %v5090_v0 }
 0x2a5   :  { %v6044_v19 = vadd.f32 %v5772_v49, %v823_v18  ;;  %v825_v25 = vpop.f32.mrb[45].mxu1 }
 0x2a6   :  { %v1413_v25 = vld [vmem:[%s8301_s9 + $0x118] sm:$0xff] }
 0x2a7   :  { %4073 = vmatmul.mubr.msk.f32.gmra.mrb[46].mxu0 %vm872_vm6, %v6044_v19 }
 0x2a8   :  { %v828_v26 = vpop.f32.mrb[46].mxu1  ;;  %1144 = vmatprep.mubr.f32.mxu0 %v5090_v0 }
 0x2a9   :  { %v6050_v27 = vadd.f32 %v5772_v49, %v828_v26  ;;  %v830_v28 = vpop.f32.mrb[47].mxu1 }
 0x2ab   :  { %4074 = vmatmul.mubr.msk.f32.gmra.mrb[48].mxu0 %vm872_vm6, %v6050_v27 }
 0x2ac   :  { %v833_v40 = vpop.f32.mrb[48].mxu1  ;;  %1150 = vmatprep.mubr.f32.mxu0 %v5090_v0 }
 0x2ad   :  { %v6064_v41 = vadd.f32 %v5772_v49, %v833_v40  ;;  %v835_v42 = vpop.f32.mrb[49].mxu1 }
 0x2af   :  { %4075 = vmatmul.mubr.msk.f32.gmra.mrb[50].mxu0 %vm872_vm6, %v6064_v41 }
 0x2b0   :  { %v838_v43 = vpop.f32.mrb[50].mxu1  ;;  %1156 = vmatprep.mubr.f32.mxu0 %v5090_v0 }
 0x2b1   :  { %v6072_v47 = vadd.f32 %v5772_v49, %v838_v43  ;;  %v840_v51 = vpop.f32.mrb[51].mxu1  ;;  %v852_v49 = vlaneseq }
 0x2b3   :  { %4076 = vmatmul.mubr.msk.f32.gmra.mrb[52].mxu0 %vm872_vm6, %v6072_v47 }
 0x2b4   :  { %1227 = vmatprep.mubr.f32.mxu0 %v5090_v0 }
 0x2b7   :  { %4077 = vmatmul.mubr.msk.f32.vlgmr.msra.gmra.mrb[54].mxu0 %vm872_vm6, %v5777_v52  ;;  %v6183_v52 = vshrl.u32 %v852_v49, 7 }
 0x2b8   :  { %1233 = vmatprep.mubr.f32.mxu0 %v5090_v0  ;;  %4303 = vmatpush1.bf16.msra.mxu0 %v5767_v48 }
 0x2b9   :  { %4304 = vmatprep.subr.bf16.mxu0 %v8305_v16 }
 0x2bb   :  { %4078 = vmatmul.mubr.msk.f32.gmra.mrb[56].mxu0 %vm872_vm6, %v5791_v58  ;;  %v6188_v58 = vld [vmem:[%s8302_s8] sm:$0xf] }
 0x2bc   :  { %1239 = vmatprep.mubr.f32.mxu0 %v5090_v0  ;;  %4306 = vmatpush1.bf16.msra.mxu0 %v5788_v57 }
 0x2bd   :  { %4307 = vmatprep.subr.bf16.mxu0 %v8305_v16 }
 0x2bf   :  { %4079 = vmatmul.mubr.msk.f32.gmra.mrb[58].mxu0 %vm872_vm6, %v5808_v1  ;;  %v6191_v1 = vsub.s32 0, %v6183_v52 }
 0x2c0   :  { %1245 = vmatprep.mubr.f32.mxu0 %v5090_v0  ;;  %4309 = vmatpush1.bf16.msra.mxu0 %v5805_v63 }
 0x2c1   :  { %4310 = vmatprep.subr.bf16.mxu0 %v8305_v16 }
 0x2c3   :  { %4080 = vmatmul.mubr.msk.f32.gmra.mrb[60].mxu0 %vm872_vm6, %v5816_v4  ;;  %v6194_v4 = vsub.s32 1, %v6183_v52 }
 0x2c4   :  { %1251 = vmatprep.mubr.f32.mxu0 %v5090_v0  ;;  %4312 = vmatpush1.bf16.msra.mxu0 %v5827_v9 }
 0x2c5   :  { %4313 = vmatprep.subr.bf16.mxu0 %v8305_v16 }
 0x2c7   :  { %4081 = vmatmul.mubr.msk.f32.gmra.mrb[62].mxu0 %vm872_vm6, %v5830_v14  ;;  %v6202_v14 = vrot.slane %v6188_v58, %v6194_v4 }
 0x2c8   :  { %1257 = vmatprep.mubr.f32.mxu0 %v5090_v0  ;;  %4315 = vmatpush1.bf16.msra.mxu0 %v5843_v20 }
 0x2c9   :  { %4316 = vmatprep.subr.bf16.mxu0 %v8305_v16 }
 0x2cb   :  { %4082 = vmatmul.mubr.msk.f32.gmra.mrb[64].mxu0 %vm872_vm6, %v5846_v21 }
 0x2cc   :  { %1263 = vmatprep.mubr.f32.mxu0 %v5090_v0  ;;  %4318 = vmatpush1.bf16.msra.mxu0 %v5865_v29 }
 0x2cd   :  { %4319 = vmatprep.subr.bf16.mxu0 %v8305_v16 }
 0x2cf   :  { %4083 = vmatmul.mubr.msk.f32.gmra.mrb[66].mxu0 %vm872_vm6, %v5854_v24  ;;  %v6206_v24 = vrot.slane %v5666_v10, %v6191_v1 }
 0x2d0   :  { %1269 = vmatprep.mubr.f32.mxu0 %v5090_v0  ;;  %4321 = vmatpush1.bf16.msra.mxu0 %v5884_v37 }
 0x2d1   :  { %4322 = vmatprep.subr.bf16.mxu0 %v8305_v16 }
 0x2d3   :  { %4084 = vmatmul.mubr.msk.f32.gmra.mrb[68].mxu0 %vm872_vm6, %v5868_v30  ;;  %v6210_v30 = vrot.slane %v5666_v10, %v6194_v4 }
 0x2d4   :  { %1275 = vmatprep.mubr.f32.mxu0 %v5090_v0  ;;  %4324 = vmatpush1.bf16.msra.mxu0 %v5903_v44 }
 0x2d5   :  { %4325 = vmatprep.subr.bf16.mxu0 %v8305_v16 }
 0x2d7   :  { %4085 = vmatmul.mubr.msk.f32.gmra.mrb[70].mxu0 %vm872_vm6, %v5882_v35 }
 0x2d8   :  { %1281 = vmatprep.mubr.f32.mxu0 %v5090_v0  ;;  %4327 = vmatpush1.bf16.msra.mxu0 %v5922_v55 }
 0x2d9   :  { %4328 = vmatprep.subr.bf16.mxu0 %v8305_v16 }
 0x2db   :  { %4086 = vmatmul.mubr.msk.f32.gmra.mrb[72].mxu0 %vm872_vm6, %v5892_v39 }
 0x2dc   :  { %1287 = vmatprep.mubr.f32.mxu0 %v5090_v0  ;;  %4330 = vmatpush1.bf16.msra.mxu0 %v5941_v3 }
 0x2dd   :  { %4331 = vmatprep.subr.bf16.mxu0 %v8305_v16 }
 0x2df   :  { %4087 = vmatmul.mubr.msk.f32.gmra.mrb[74].mxu0 %vm872_vm6, %v5906_v45  ;;  %v6217_v45 = vrot.slane %v5670_v12, %v6191_v1 }
 0x2e0   :  { %1293 = vmatprep.mubr.f32.mxu0 %v5090_v0  ;;  %4333 = vmatpush1.bf16.msra.mxu0 %v5963_v22 }
 0x2e1   :  { %4334 = vmatprep.subr.bf16.mxu0 %v8305_v16 }
 0x2e3   :  { %4088 = vmatmul.mubr.msk.f32.gmra.mrb[76].mxu0 %vm872_vm6, %v5920_v53  ;;  %v6221_v53 = vrot.slane %v5670_v12, %v6194_v4 }
 0x2e4   :  { %1299 = vmatprep.mubr.f32.mxu0 %v5090_v0  ;;  %4336 = vmatpush1.bf16.msra.mxu0 %v5979_v31 }
 0x2e5   :  { %4337 = vmatprep.subr.bf16.mxu0 %v8305_v16 }
 0x2e7   :  { %4089 = vmatmul.mubr.msk.f32.gmra.mrb[78].mxu0 %vm872_vm6, %v5930_v59 }
 0x2e8   :  { %1305 = vmatprep.mubr.f32.mxu0 %v5090_v0  ;;  %4339 = vmatpush1.bf16.msra.mxu0 %v6004_v46 }
 0x2e9   :  { %4340 = vmatprep.subr.bf16.mxu0 %v8305_v16 }
 0x2eb   :  { %4090 = vmatmul.mubr.msk.f32.gmra.mrb[80].mxu0 %vm872_vm6, %v5944_v5  ;;  %v1410_v5 = vld [vmem:[%s8301_s9 + $0x100] sm:$0xff] }
 0x2ec   :  { %1311 = vmatprep.mubr.f32.mxu0 %v5090_v0  ;;  %4342 = vmatpush1.bf16.msra.mxu0 %v6012_v54 }
 0x2ed   :  { %4343 = vmatprep.subr.bf16.mxu0 %v8305_v16 }
 0x2ef   :  { %4091 = vmatmul.mubr.msk.f32.gmra.mrb[82].mxu0 %vm872_vm6, %v5952_v8  ;;  %v1411_v8 = vld [vmem:[%s8301_s9 + $0x108] sm:$0xff] }
 0x2f0   :  { %1317 = vmatprep.mubr.f32.mxu0 %v5090_v0  ;;  %4345 = vmatpush1.bf16.msra.mxu0 %v6028_v6  ;;  %v6240_v61 = vpack.c.bf16 %v1411_v8, %v1410_v5  ;;  %v1414_v8 = vld [vmem:[%s8301_s9 + $0x120] sm:$0xff] }
 0x2f1   :  { %4346 = vmatprep.subr.bf16.mxu0 %v8305_v16 }
 0x2f3   :  { %4092 = vmatmul.mubr.msk.f32.gmra.mrb[84].mxu0 %vm872_vm6, %v5966_v23 }
 0x2f4   :  { %1323 = vmatprep.mubr.f32.mxu0 %v5090_v0  ;;  %4348 = vmatpush1.bf16.msra.mxu0 %v6060_v38 }
 0x2f5   :  { %4349 = vmatprep.subr.bf16.mxu0 %v8305_v16 }
 0x2f7   :  { %4093 = vmatmul.mubr.msk.f32.gmra.mrb[86].mxu0 %vm872_vm6, %v5982_v32 }
 0x2f8   :  { %1329 = vmatprep.mubr.f32.mxu0 %v5090_v0 }
 0x2fb   :  { %4094 = vmatmul.mubr.msk.f32.gmra.mrb[88].mxu0 %vm872_vm6, %v5990_v36 }
 0x2fc   :  { %1335 = vmatprep.mubr.f32.mxu0 %v5090_v0 }
 0x2ff   :  { %4095 = vmatmul.mubr.msk.f32.gmra.mrb[90].mxu0 %vm872_vm6, %v6010_v50 }
 0x300   :  { %1341 = vmatprep.mubr.f32.mxu0 %v5090_v0 }
 0x303   :  { %4096 = vmatmul.mubr.msk.f32.gmra.mrb[92].mxu0 %vm872_vm6, %v6026_v62 }
 0x304   :  { %1347 = vmatprep.mubr.f32.mxu0 %v5090_v0 }
 0x307   :  { %4097 = vmatmul.mubr.msk.f32.gmra.mrb[94].mxu0 %vm872_vm6, %v6036_v15 }
 0x308   :  { %1353 = vmatprep.mubr.f32.mxu0 %v5090_v0 }
 0x30b   :  { %4098 = vmatmul.mubr.msk.f32.gmra.mrb[96].mxu0 %vm872_vm6, %v6044_v19  ;;  %v1412_v19 = vld [vmem:[%s8301_s9 + $0x110] sm:$0xff] }
 0x30c   :  { %1359 = vmatprep.mubr.f32.mxu0 %v5090_v0  ;;  %v6269_v51 = vpack.c.bf16 %v1413_v25, %v1412_v19 }
 0x30e   :  { %8514 = vst [vmem:[#allocation24_spill] sm:$0xff] %v6269_v51 }
 0x30f   :  { %4099 = vmatmul.mubr.msk.f32.gmra.mrb[98].mxu0 %vm872_vm6, %v6050_v27 }
 0x310   :  { %1365 = vmatprep.mubr.f32.mxu0 %v5090_v0 }
 0x313   :  { %4100 = vmatmul.mubr.msk.f32.gmra.mrb[100].mxu0 %vm872_vm6, %v6064_v41 }
 0x314   :  { %1371 = vmatprep.mubr.f32.mxu0 %v5090_v0  ;;  %v6198_v0 = vrot.slane %v6188_v58, %v6191_v1 }
 0x317   :  { %4101 = vmatmul.mubr.msk.f32.gmra.mrb[102].mxu0 %vm872_vm6, %v6072_v47 }
 0x326   :  { %v1014_v21 = vpop.f32.mrb[4].mxu0 }
 0x327   :  { %v6213_v35 = vadd.f32 %v1014_v21, %v6198_v0  ;;  %v1016_v39 = vpop.f32.mrb[5].mxu0 }
 0x328   :  { %v6224_v59 = vadd.f32 %v1016_v39, %v6202_v14 }
 0x329   :  { %8508 = vst [vmem:[#allocation18_spill] sm:$0xff] %v6213_v35  ;;  %v1459_v23 = vadd.f32 %v6206_v24, %v6213_v35  ;;  %v2113_v32 = vadd.f32 %v6210_v30, %v6213_v35 }
 0x32a   :  { %8509 = vst [vmem:[#allocation19_spill] sm:$0xff] %v6224_v59  ;;  %v1020_v36 = vpop.f32.mrb[6].mxu0  ;;  %v1460_v50 = vadd.f32 %v6217_v45, %v6224_v59  ;;  %v2114_v56 = vadd.f32 %v6221_v53, %v6224_v59 }
 0x32b   :  { %v1022_v60 = vpop.f32.mrb[7].mxu0  ;;  %v6243_v62 = vadd.f32 %v1020_v36, %v6198_v0  ;;  %v1559_v17 = vmax.f32 %v1459_v23, 0.0  ;;  %v2213_v18 = vmax.f32 %v2113_v32, 0.0  ;;  %v1415_v23 = vld [vmem:[%s8301_s9 + $0x128] sm:$0xff] }
 0x32c   :  { %v6246_v2 = vadd.f32 %v1022_v60, %v6202_v14  ;;  %v1560_v7 = vmax.f32 %v1460_v50, 0.0  ;;  %v2214_v15 = vmax.f32 %v2114_v56, 0.0 }
 0x32d   :  { %8510 = vst [vmem:[#allocation20_spill] sm:$0xff] %v6243_v62  ;;  %v1463_v33 = vadd.f32 %v6206_v24, %v6243_v62  ;;  %v2117_v41 = vadd.f32 %v6210_v30, %v6243_v62 }
 0x32e   :  { %8511 = vst [vmem:[#allocation21_spill] sm:$0xff] %v6246_v2  ;;  %v1026_v26 = vpop.f32.mrb[8].mxu0  ;;  %1729 = vmatprep.mubr.f32.mxu0 %v1560_v7  ;;  %2377 = vmatprep.mubr.f32.mxu1 %v2214_v15  ;;  %v1464_v27 = vadd.f32 %v6217_v45, %v6246_v2  ;;  %v2118_v28 = vadd.f32 %v6221_v53, %v6246_v2 }
 0x32f   :  { %v6261_v34 = vadd.f32 %v1026_v26, %v6198_v0  ;;  %v1028_v40 = vpop.f32.mrb[9].mxu0  ;;  %1730 = vmatmul.mubr.f32.vlgmr.msra.gmra.mrb[104].mxu0 %v1559_v17  ;;  %2378 = vmatmul.mubr.f32.vlgmr.msra.gmra.mrb[52].mxu1 %v2213_v18  ;;  %v1563_v49 = vmax.f32 %v1463_v33, 0.0  ;;  %v2217_v21 = vmax.f32 %v2117_v41, 0.0  ;;  %v6295_v18 = vpack.c.bf16 %v1415_v23, %v1414_v8  ;;  %v1417_v33 = vld [vmem:[%s8301_s9 + $0x138] sm:$0xff] }
 0x330   :  { %v6266_v42 = vadd.f32 %v1028_v40, %v6202_v14  ;;  %4351 = vmatpush1.bf16.msra.mxu0 %v6240_v61  ;;  %v1564_v43 = vmax.f32 %v1464_v27, 0.0  ;;  %v2218_v47 = vmax.f32 %v2118_v28, 0.0  ;;  %4447 = vmatpush1.bf16.msra.mxu1 %v6240_v61  ;;  %v1416_v28 = vld [vmem:[%s8301_s9 + $0x130] sm:$0xff] }
 0x331   :  { %8512 = vst [vmem:[#allocation22_spill] sm:$0xff] %v6261_v34  ;;  %4352 = vmatprep.subr.bf16.mxu0 %v8305_v16  ;;  %v1467_v39 = vadd.f32 %v6206_v24, %v6261_v34  ;;  %v2121_v5 = vadd.f32 %v6210_v30, %v6261_v34  ;;  %4448 = vmatprep.subr.bf16.mxu1 %v8305_v16  ;;  %8517 = vst [vmem:[#allocation27_spill] sm:$0xff] %v6295_v18 }
 0x332   :  { %8513 = vst [vmem:[#allocation23_spill] sm:$0xff] %v6266_v42  ;;  %v1032_v32 = vpop.f32.mrb[10].mxu0  ;;  %1734 = vmatprep.mubr.f32.mxu0 %v1564_v43  ;;  %2382 = vmatprep.mubr.f32.mxu1 %v2218_v47  ;;  %v1468_v36 = vadd.f32 %v6217_v45, %v6266_v42  ;;  %v2122_v50 = vadd.f32 %v6221_v53, %v6266_v42 }
 0x333   :  { %v6289_v56 = vadd.f32 %v1032_v32, %v6198_v0  ;;  %v1034_v60 = vpop.f32.mrb[11].mxu0  ;;  %1735 = vmatmul.mubr.f32.gmra.mrb[106].mxu0 %v1563_v49  ;;  %2383 = vmatmul.mubr.f32.gmra.mrb[54].mxu1 %v2217_v21  ;;  %v1567_v19 = vmax.f32 %v1467_v39, 0.0  ;;  %v2221_v25 = vmax.f32 %v2121_v5, 0.0  ;;  %v6321_v8 = vpack.c.bf16 %v1417_v33, %v1416_v28 }
 0x334   :  { %v6292_v7 = vadd.f32 %v1034_v60, %v6202_v14  ;;  %v1568_v15 = vmax.f32 %v1468_v36, 0.0  ;;  %v2222_v17 = vmax.f32 %v2122_v50, 0.0  ;;  %4354 = vmatpush1.bf16.msra.mxu0 %v6269_v51  ;;  %4450 = vmatpush1.bf16.msra.mxu1 %v6269_v51  ;;  %v1418_v60 = vld [vmem:[%s8301_s9 + $0x140] sm:$0xff] }
 0x335   :  { %8515 = vst [vmem:[#allocation25_spill] sm:$0xff] %v6289_v56  ;;  %v1471_v26 = vadd.f32 %v6206_v24, %v6289_v56  ;;  %v2125_v27 = vadd.f32 %v6210_v30, %v6289_v56  ;;  %4355 = vmatprep.subr.bf16.mxu0 %v8305_v16  ;;  %4451 = vmatprep.subr.bf16.mxu1 %v8305_v16  ;;  %8520 = vst [vmem:[#allocation30_spill] sm:$0xff] %v6321_v8 }
 0x336   :  { %8516 = vst [vmem:[#allocation26_spill] sm:$0xff] %v6292_v7  ;;  %v1038_v40 = vpop.f32.mrb[12].mxu0  ;;  %1739 = vmatprep.mubr.f32.mxu0 %v1568_v15  ;;  %2387 = vmatprep.mubr.f32.mxu1 %v2222_v17  ;;  %v1472_v41 = vadd.f32 %v6217_v45, %v6292_v7  ;;  %v2126_v43 = vadd.f32 %v6221_v53, %v6292_v7  ;;  %v1419_v15 = vld [vmem:[%s8301_s9 + $0x148] sm:$0xff] }
 0x337   :  { %v6315_v47 = vadd.f32 %v1038_v40, %v6198_v0  ;;  %v1040_v49 = vpop.f32.mrb[13].mxu0  ;;  %1740 = vmatmul.mubr.f32.gmra.mrb[108].mxu0 %v1567_v19  ;;  %2388 = vmatmul.mubr.f32.gmra.mrb[56].mxu1 %v2221_v25  ;;  %v1571_v23 = vmax.f32 %v1471_v26, 0.0  ;;  %v2225_v32 = vmax.f32 %v2125_v27, 0.0 }
 0x338   :  { %v6318_v21 = vadd.f32 %v1040_v49, %v6202_v14  ;;  %v1572_v39 = vmax.f32 %v1472_v41, 0.0  ;;  %v2226_v5 = vmax.f32 %v2126_v43, 0.0  ;;  %4357 = vmatpush1.bf16.msra.mxu0 %v6295_v18  ;;  %4453 = vmatpush1.bf16.msra.mxu1 %v6295_v18  ;;  %v6347_v41 = vpack.c.bf16 %v1419_v15, %v1418_v60 }
 0x339   :  { %8518 = vst [vmem:[#allocation28_spill] sm:$0xff] %v6315_v47  ;;  %v1475_v36 = vadd.f32 %v6206_v24, %v6315_v47  ;;  %v2129_v50 = vadd.f32 %v6210_v30, %v6315_v47  ;;  %4358 = vmatprep.subr.bf16.mxu0 %v8305_v16  ;;  %4454 = vmatprep.subr.bf16.mxu1 %v8305_v16 }
 0x33a   :  { %8519 = vst [vmem:[#allocation29_spill] sm:$0xff] %v6318_v21  ;;  %v1044_v17 = vpop.f32.mrb[14].mxu0  ;;  %1744 = vmatprep.mubr.f32.mxu0 %v1572_v39  ;;  %2392 = vmatprep.mubr.f32.mxu1 %v2226_v5  ;;  %v1476_v19 = vadd.f32 %v6217_v45, %v6318_v21  ;;  %v2130_v25 = vadd.f32 %v6221_v53, %v6318_v21  ;;  %8523 = vst [vmem:[#allocation33_spill] sm:$0xff] %v6347_v41 }
 0x33b   :  { %v6341_v26 = vadd.f32 %v1044_v17, %v6198_v0  ;;  %v1046_v27 = vpop.f32.mrb[15].mxu0  ;;  %1745 = vmatmul.mubr.f32.gmra.mrb[110].mxu0 %v1571_v23  ;;  %2393 = vmatmul.mubr.f32.gmra.mrb[58].mxu1 %v2225_v32  ;;  %v1575_v43 = vmax.f32 %v1475_v36, 0.0  ;;  %v2229_v49 = vmax.f32 %v2129_v50, 0.0  ;;  %v1420_v23 = vld [vmem:[%s8301_s9 + $0x150] sm:$0xff]  ;;  %v1421_v32 = vld [vmem:[%s8301_s9 + $0x158] sm:$0xff] }
 0x33c   :  { %v6344_v28 = vadd.f32 %v1046_v27, %v6202_v14  ;;  %v1576_v33 = vmax.f32 %v1476_v19, 0.0  ;;  %v2230_v40 = vmax.f32 %v2130_v25, 0.0  ;;  %4360 = vmatpush1.bf16.msra.mxu0 %v6321_v8  ;;  %4456 = vmatpush1.bf16.msra.mxu1 %v6321_v8 }
 0x33d   :  { %8521 = vst [vmem:[#allocation31_spill] sm:$0xff] %v6341_v26  ;;  %v1479_v39 = vadd.f32 %v6206_v24, %v6341_v26  ;;  %v2133_v5 = vadd.f32 %v6210_v30, %v6341_v26  ;;  %4361 = vmatprep.subr.bf16.mxu0 %v8305_v16  ;;  %4457 = vmatprep.subr.bf16.mxu1 %v8305_v16 }
 0x33e   :  { %8522 = vst [vmem:[#allocation32_spill] sm:$0xff] %v6344_v28  ;;  %v1050_v36 = vpop.f32.mrb[16].mxu0  ;;  %1749 = vmatprep.mubr.f32.mxu0 %v1576_v33  ;;  %2397 = vmatprep.mubr.f32.mxu1 %v2230_v40  ;;  %v1480_v50 = vadd.f32 %v6217_v45, %v6344_v28  ;;  %v2134_v60 = vadd.f32 %v6221_v53, %v6344_v28 }
 0x33f   :  { %v6367_v15 = vadd.f32 %v1050_v36, %v6198_v0  ;;  %v1052_v17 = vpop.f32.mrb[17].mxu0  ;;  %1750 = vmatmul.mubr.f32.gmra.mrb[112].mxu0 %v1575_v43  ;;  %2398 = vmatmul.mubr.f32.gmra.mrb[60].mxu1 %v2229_v49  ;;  %v6373_v33 = vpack.c.bf16 %v1421_v32, %v1420_v23  ;;  %v1579_v40 = vmax.f32 %v1479_v39, 0.0  ;;  %v2233_v16 = vmax.f32 %v2133_v5, 0.0  ;;  %v1423_v23 = vld [vmem:[%s8301_s9 + $0x168] sm:$0xff] }
 0x340   :  { %v6370_v19 = vadd.f32 %v1052_v17, %v6202_v14  ;;  %v1580_v25 = vmax.f32 %v1480_v50, 0.0  ;;  %v2234_v27 = vmax.f32 %v2134_v60, 0.0  ;;  %4363 = vmatpush1.bf16.msra.mxu0 %v6347_v41  ;;  %4459 = vmatpush1.bf16.msra.mxu1 %v6347_v41  ;;  %v8527_v49 = vmov 0.0|0.0   ;;  %v1422_v50 = vld [vmem:[%s8301_s9 + $0x160] sm:$0xff] }
 0x341   :  { %8524 = vst [vmem:[#allocation34_spill] sm:$0xff] %v6367_v15  ;;  %8526 = vst [vmem:[#allocation36_spill] sm:$0xff] %v6373_v33  ;;  %v1483_v36 = vadd.f32 %v6206_v24, %v6367_v15  ;;  %v2137_v43 = vadd.f32 %v6210_v30, %v6367_v15  ;;  %4364 = vmatprep.subr.bf16.mxu0 %v8527_v49  ;;  %4460 = vmatprep.subr.bf16.mxu1 %v8527_v49 }
 0x342   :  { %8525 = vst [vmem:[#allocation35_spill] sm:$0xff] %v6370_v19  ;;  %v1056_v39 = vpop.f32.mrb[18].mxu0  ;;  %1754 = vmatprep.mubr.f32.mxu0 %v1580_v25  ;;  %2402 = vmatprep.mubr.f32.mxu1 %v2234_v27  ;;  %v1484_v5 = vadd.f32 %v6217_v45, %v6370_v19  ;;  %v2138_v32 = vadd.f32 %v6221_v53, %v6370_v19 }
 0x343   :  { %v6393_v60 = vadd.f32 %v1056_v39, %v6198_v0  ;;  %v1058_v17 = vpop.f32.mrb[19].mxu0  ;;  %1755 = vmatmul.mubr.f32.gmra.mrb[114].mxu0 %v1579_v40  ;;  %2403 = vmatmul.mubr.f32.gmra.mrb[62].mxu1 %v2233_v16  ;;  %v6399_v25 = vpack.c.bf16 %v1423_v23, %v1422_v50  ;;  %v1583_v27 = vmax.f32 %v1483_v36, 0.0  ;;  %v2237_v26 = vmax.f32 %v2137_v43, 0.0  ;;  %v1424_v16 = vld [vmem:[%s8301_s9 + $0x170] sm:$0xff]  ;;  %v1425_v50 = vld [vmem:[%s8301_s9 + $0x178] sm:$0xff] }
 0x344   :  { %v6396_v41 = vadd.f32 %v1058_v17, %v6202_v14  ;;  %v1584_v15 = vmax.f32 %v1484_v5, 0.0  ;;  %v2238_v8 = vmax.f32 %v2138_v32, 0.0  ;;  %4366 = vmatpush1.bf16.msra.mxu0 %v6373_v33  ;;  %4462 = vmatpush1.bf16.msra.mxu1 %v6373_v33 }
 0x345   :  { %8528 = vst [vmem:[#allocation37_spill] sm:$0xff] %v6399_v25  ;;  %v1487_v39 = vadd.f32 %v6206_v24, %v6393_v60  ;;  %v2141_v40 = vadd.f32 %v6210_v30, %v6393_v60  ;;  %4367 = vmatprep.subr.bf16.mxu0 %v8527_v49  ;;  %4463 = vmatprep.subr.bf16.mxu1 %v8527_v49 }
 0x346   :  { %v1062_v36 = vpop.f32.mrb[20].mxu0  ;;  %1759 = vmatprep.mubr.f32.mxu0 %v1584_v15  ;;  %2407 = vmatprep.mubr.f32.mxu1 %v2238_v8  ;;  %v1488_v43 = vadd.f32 %v6217_v45, %v6396_v41  ;;  %v2142_v23 = vadd.f32 %v6221_v53, %v6396_v41  ;;  %v6425_v8 = vpack.c.bf16 %v1425_v50, %v1424_v16  ;;  %v1427_v16 = vld [vmem:[%s8301_s9 + $0x188] sm:$0xff] }
 0x347   :  { %v6419_v5 = vadd.f32 %v1062_v36, %v6198_v0  ;;  %v1064_v32 = vpop.f32.mrb[21].mxu0  ;;  %1760 = vmatmul.mubr.f32.gmra.mrb[116].mxu0 %v1583_v27  ;;  %2408 = vmatmul.mubr.f32.gmra.mrb[64].mxu1 %v2237_v26  ;;  %v1587_v15 = vmax.f32 %v1487_v39, 0.0  ;;  %v2241_v28 = vmax.f32 %v2141_v40, 0.0  ;;  %v1426_v26 = vld [vmem:[%s8301_s9 + $0x180] sm:$0xff] }
 0x348   :  { %v6422_v17 = vadd.f32 %v1064_v32, %v6202_v14  ;;  %v1588_v33 = vmax.f32 %v1488_v43, 0.0  ;;  %v2242_v19 = vmax.f32 %v2142_v23, 0.0  ;;  %4369 = vmatpush1.bf16.msra.mxu0 %v6399_v25  ;;  %8529 = vst [vmem:[#allocation38_spill] sm:$0xff] %v6425_v8  ;;  %4465 = vmatpush1.bf16.msra.mxu1 %v6399_v25 }
 0x349   :  { %v1491_v36 = vadd.f32 %v6206_v24, %v6419_v5  ;;  %v2145_v27 = vadd.f32 %v6210_v30, %v6419_v5  ;;  %4370 = vmatprep.subr.bf16.mxu0 %v8527_v49  ;;  %4466 = vmatprep.subr.bf16.mxu1 %v8527_v49 }
 0x34a   :  { %v1068_v39 = vpop.f32.mrb[22].mxu0  ;;  %1764 = vmatprep.mubr.f32.mxu0 %v1588_v33  ;;  %2412 = vmatprep.mubr.f32.mxu1 %v2242_v19  ;;  %v1492_v40 = vadd.f32 %v6217_v45, %v6422_v17  ;;  %v2146_v50 = vadd.f32 %v6221_v53, %v6422_v17  ;;  %v6451_v19 = vpack.c.bf16 %v1427_v16, %v1426_v26  ;;  %v1429_v26 = vld [vmem:[%s8301_s9 + $0x198] sm:$0xff] }
 0x34b   :  { %v6445_v43 = vadd.f32 %v1068_v39, %v6198_v0  ;;  %v1070_v23 = vpop.f32.mrb[23].mxu0  ;;  %1765 = vmatmul.mubr.f32.gmra.mrb[118].mxu0 %v1587_v15  ;;  %2413 = vmatmul.mubr.f32.gmra.mrb[66].mxu1 %v2241_v28  ;;  %v1591_v33 = vmax.f32 %v1491_v36, 0.0  ;;  %v2245_v18 = vmax.f32 %v2145_v27, 0.0  ;;  %v1428_v28 = vld [vmem:[%s8301_s9 + $0x190] sm:$0xff] }
 0x34c   :  { %v6448_v32 = vadd.f32 %v1070_v23, %v6202_v14  ;;  %v1592_v25 = vmax.f32 %v1492_v40, 0.0  ;;  %v2246_v47 = vmax.f32 %v2146_v50, 0.0  ;;  %4372 = vmatpush1.bf16.msra.mxu0 %v6425_v8  ;;  %8530 = vst [vmem:[#allocation39_spill] sm:$0xff] %v6451_v19  ;;  %4468 = vmatpush1.bf16.msra.mxu1 %v6425_v8 }
 0x34d   :  { %v1495_v39 = vadd.f32 %v6206_v24, %v6445_v43  ;;  %v2149_v15 = vadd.f32 %v6210_v30, %v6445_v43  ;;  %4373 = vmatprep.subr.bf16.mxu0 %v8527_v49  ;;  %4469 = vmatprep.subr.bf16.mxu1 %v8527_v49 }
 0x34e   :  { %v1074_v36 = vpop.f32.mrb[24].mxu0  ;;  %1769 = vmatprep.mubr.f32.mxu0 %v1592_v25  ;;  %2417 = vmatprep.mubr.f32.mxu1 %v2246_v47  ;;  %v1496_v27 = vadd.f32 %v6217_v45, %v6448_v32  ;;  %v2150_v16 = vadd.f32 %v6221_v53, %v6448_v32  ;;  %v6477_v47 = vpack.c.bf16 %v1429_v26, %v1428_v28  ;;  %v1431_v28 = vld [vmem:[%s8301_s9 + $0x1a8] sm:$0xff] }
 0x34f   :  { %v6471_v40 = vadd.f32 %v1074_v36, %v6198_v0  ;;  %v1076_v50 = vpop.f32.mrb[25].mxu0  ;;  %1770 = vmatmul.mubr.f32.gmra.mrb[120].mxu0 %v1591_v33  ;;  %2418 = vmatmul.mubr.f32.gmra.mrb[68].mxu1 %v2245_v18  ;;  %v1595_v25 = vmax.f32 %v1495_v39, 0.0  ;;  %v2249_v56 = vmax.f32 %v2149_v15, 0.0  ;;  %v1430_v18 = vld [vmem:[%s8301_s9 + $0x1a0] sm:$0xff] }
 0x350   :  { %v6474_v23 = vadd.f32 %v1076_v50, %v6202_v14  ;;  %v1596_v8 = vmax.f32 %v1496_v27, 0.0  ;;  %v2250_v21 = vmax.f32 %v2150_v16, 0.0  ;;  %4375 = vmatpush1.bf16.msra.mxu0 %v6451_v19  ;;  %8533 = vst [vmem:[#allocation42_spill] sm:$0xff] %v6477_v47  ;;  %4471 = vmatpush1.bf16.msra.mxu1 %v6451_v19 }
 0x351   :  { %8531 = vst [vmem:[#allocation40_spill] sm:$0xff] %v6471_v40  ;;  %v1499_v36 = vadd.f32 %v6206_v24, %v6471_v40  ;;  %v2153_v33 = vadd.f32 %v6210_v30, %v6471_v40  ;;  %4376 = vmatprep.subr.bf16.mxu0 %v8527_v49  ;;  %4472 = vmatprep.subr.bf16.mxu1 %v8527_v49 }
 0x352   :  { %8532 = vst [vmem:[#allocation41_spill] sm:$0xff] %v6474_v23  ;;  %v1080_v39 = vpop.f32.mrb[26].mxu0  ;;  %1774 = vmatprep.mubr.f32.mxu0 %v1596_v8  ;;  %2422 = vmatprep.mubr.f32.mxu1 %v2250_v21  ;;  %v1500_v15 = vadd.f32 %v6217_v45, %v6474_v23  ;;  %v2154_v26 = vadd.f32 %v6221_v53, %v6474_v23 }
 0x353   :  { %v6497_v27 = vadd.f32 %v1080_v39, %v6198_v0  ;;  %v1082_v16 = vpop.f32.mrb[27].mxu0  ;;  %1775 = vmatmul.mubr.f32.gmra.mrb[122].mxu0 %v1595_v25  ;;  %2423 = vmatmul.mubr.f32.gmra.mrb[70].mxu1 %v2249_v56  ;;  %v6503_v21 = vpack.c.bf16 %v1431_v28, %v1430_v18  ;;  %v1599_v8 = vmax.f32 %v1499_v36, 0.0  ;;  %v2253_v51 = vmax.f32 %v2153_v33, 0.0  ;;  %v1432_v56 = vld [vmem:[%s8301_s9 + $0x1b0] sm:$0xff]  ;;  %v1433_v18 = vld [vmem:[%s8301_s9 + $0x1b8] sm:$0xff] }
 0x354   :  { %v6500_v50 = vadd.f32 %v1082_v16, %v6202_v14  ;;  %v1600_v19 = vmax.f32 %v1500_v15, 0.0  ;;  %v2254_v40 = vmax.f32 %v2154_v26, 0.0  ;;  %4378 = vmatpush1.bf16.msra.mxu0 %v6477_v47  ;;  %4474 = vmatpush1.bf16.msra.mxu1 %v6477_v47 }
 0x355   :  { %8534 = vst [vmem:[#allocation43_spill] sm:$0xff] %v6497_v27  ;;  %8536 = vst [vmem:[#allocation45_spill] sm:$0xff] %v6503_v21  ;;  %v1503_v39 = vadd.f32 %v6206_v24, %v6497_v27  ;;  %v2157_v25 = vadd.f32 %v6210_v30, %v6497_v27  ;;  %4379 = vmatprep.subr.bf16.mxu0 %v8527_v49  ;;  %4475 = vmatprep.subr.bf16.mxu1 %v8527_v49 }
 0x356   :  { %8535 = vst [vmem:[#allocation44_spill] sm:$0xff] %v6500_v50  ;;  %v1086_v36 = vpop.f32.mrb[28].mxu0  ;;  %1779 = vmatprep.mubr.f32.mxu0 %v1600_v19  ;;  %2427 = vmatprep.mubr.f32.mxu1 %v2254_v40  ;;  %v1504_v33 = vadd.f32 %v6217_v45, %v6500_v50  ;;  %v2158_v28 = vadd.f32 %v6221_v53, %v6500_v50 }
 0x357   :  { %v6523_v15 = vadd.f32 %v1086_v36, %v6198_v0  ;;  %v1088_v26 = vpop.f32.mrb[29].mxu0  ;;  %1780 = vmatmul.mubr.f32.gmra.mrb[124].mxu0 %v1599_v8  ;;  %2428 = vmatmul.mubr.f32.gmra.mrb[72].mxu1 %v2253_v51  ;;  %v6529_v19 = vpack.c.bf16 %v1433_v18, %v1432_v56  ;;  %v1603_v40 = vmax.f32 %v1503_v39, 0.0  ;;  %v2257_v23 = vmax.f32 %v2157_v25, 0.0  ;;  %v1434_v51 = vld [vmem:[%s8301_s9 + $0x1c0] sm:$0xff]  ;;  %v1435_v56 = vld [vmem:[%s8301_s9 + $0x1c8] sm:$0xff] }
 0x358   :  { %v6526_v16 = vadd.f32 %v1088_v26, %v6202_v14  ;;  %v1604_v47 = vmax.f32 %v1504_v33, 0.0  ;;  %v2258_v27 = vmax.f32 %v2158_v28, 0.0  ;;  %4381 = vmatpush1.bf16.msra.mxu0 %v6503_v21  ;;  %4477 = vmatpush1.bf16.msra.mxu1 %v6503_v21 }
 0x359   :  { %8537 = vst [vmem:[#allocation46_spill] sm:$0xff] %v6523_v15  ;;  %8539 = vst [vmem:[#allocation48_spill] sm:$0xff] %v6529_v19  ;;  %v1507_v36 = vadd.f32 %v6206_v24, %v6523_v15  ;;  %v2161_v8 = vadd.f32 %v6210_v30, %v6523_v15  ;;  %4382 = vmatprep.subr.bf16.mxu0 %v8527_v49  ;;  %4478 = vmatprep.subr.bf16.mxu1 %v8527_v49 }
 0x35a   :  { %8538 = vst [vmem:[#allocation47_spill] sm:$0xff] %v6526_v16  ;;  %v1092_v39 = vpop.f32.mrb[30].mxu0  ;;  %1784 = vmatprep.mubr.f32.mxu0 %v1604_v47  ;;  %2432 = vmatprep.mubr.f32.mxu1 %v2258_v27  ;;  %v1508_v25 = vadd.f32 %v6217_v45, %v6526_v16  ;;  %v2162_v18 = vadd.f32 %v6221_v53, %v6526_v16 }
 0x35b   :  { %v6549_v33 = vadd.f32 %v1092_v39, %v6198_v0  ;;  %v1094_v28 = vpop.f32.mrb[31].mxu0  ;;  %1785 = vmatmul.mubr.f32.gmra.mrb[126].mxu0 %v1603_v40  ;;  %2433 = vmatmul.mubr.f32.gmra.mrb[74].mxu1 %v2257_v23  ;;  %v6555_v47 = vpack.c.bf16 %v1435_v56, %v1434_v51  ;;  %v1607_v27 = vmax.f32 %v1507_v36, 0.0  ;;  %v2261_v50 = vmax.f32 %v2161_v8, 0.0  ;;  %v1436_v23 = vld [vmem:[%s8301_s9 + $0x1d0] sm:$0xff]  ;;  %v1437_v51 = vld [vmem:[%s8301_s9 + $0x1d8] sm:$0xff] }
 0x35c   :  { %v6552_v26 = vadd.f32 %v1094_v28, %v6202_v14  ;;  %v1608_v21 = vmax.f32 %v1508_v25, 0.0  ;;  %v2262_v15 = vmax.f32 %v2162_v18, 0.0  ;;  %4384 = vmatpush1.bf16.msra.mxu0 %v6529_v19  ;;  %4480 = vmatpush1.bf16.msra.mxu1 %v6529_v19 }
 0x35d   :  { %8540 = vst [vmem:[#allocation49_spill] sm:$0xff] %v6549_v33  ;;  %8542 = vst [vmem:[#allocation51_spill] sm:$0xff] %v6555_v47  ;;  %v1511_v39 = vadd.f32 %v6206_v24, %v6549_v33  ;;  %v2165_v40 = vadd.f32 %v6210_v30, %v6549_v33  ;;  %4385 = vmatprep.subr.bf16.mxu0 %v8527_v49  ;;  %4481 = vmatprep.subr.bf16.mxu1 %v8527_v49 }
 0x35e   :  { %8541 = vst [vmem:[#allocation50_spill] sm:$0xff] %v6552_v26  ;;  %v1098_v36 = vpop.f32.mrb[32].mxu0  ;;  %1789 = vmatprep.mubr.f32.mxu0 %v1608_v21  ;;  %2437 = vmatprep.mubr.f32.mxu1 %v2262_v15  ;;  %v1512_v8 = vadd.f32 %v6217_v45, %v6552_v26  ;;  %v2166_v56 = vadd.f32 %v6221_v53, %v6552_v26 }
 0x35f   :  { %v6575_v25 = vadd.f32 %v1098_v36, %v6198_v0  ;;  %v1100_v18 = vpop.f32.mrb[33].mxu0  ;;  %1790 = vmatmul.mubr.f32.gmra.mrb[128].mxu0 %v1607_v27  ;;  %2438 = vmatmul.mubr.f32.gmra.mrb[76].mxu1 %v2261_v50  ;;  %v6581_v21 = vpack.c.bf16 %v1437_v51, %v1436_v23  ;;  %v1611_v15 = vmax.f32 %v1511_v39, 0.0  ;;  %v2265_v16 = vmax.f32 %v2165_v40, 0.0  ;;  %v1438_v50 = vld [vmem:[%s8301_s9 + $0x1e0] sm:$0xff]  ;;  %v1439_v23 = vld [vmem:[%s8301_s9 + $0x1e8] sm:$0xff] }
 0x360   :  { %v6578_v28 = vadd.f32 %v1100_v18, %v6202_v14  ;;  %v1612_v19 = vmax.f32 %v1512_v8, 0.0  ;;  %v2266_v33 = vmax.f32 %v2166_v56, 0.0  ;;  %4387 = vmatpush1.bf16.msra.mxu0 %v6555_v47  ;;  %4483 = vmatpush1.bf16.msra.mxu1 %v6555_v47 }
 0x361   :  { %8543 = vst [vmem:[#allocation52_spill] sm:$0xff] %v6575_v25  ;;  %8545 = vst [vmem:[#allocation54_spill] sm:$0xff] %v6581_v21  ;;  %v1515_v36 = vadd.f32 %v6206_v24, %v6575_v25  ;;  %v2169_v27 = vadd.f32 %v6210_v30, %v6575_v25  ;;  %4388 = vmatprep.subr.bf16.mxu0 %v8527_v49  ;;  %4484 = vmatprep.subr.bf16.mxu1 %v8527_v49 }
 0x362   :  { %8544 = vst [vmem:[#allocation53_spill] sm:$0xff] %v6578_v28  ;;  %v1104_v39 = vpop.f32.mrb[34].mxu0  ;;  %1794 = vmatprep.mubr.f32.mxu0 %v1612_v19  ;;  %2442 = vmatprep.mubr.f32.mxu1 %v2266_v33  ;;  %v1516_v40 = vadd.f32 %v6217_v45, %v6578_v28  ;;  %v2170_v51 = vadd.f32 %v6221_v53, %v6578_v28 }
 0x363   :  { %v6601_v8 = vadd.f32 %v1104_v39, %v6198_v0  ;;  %v1106_v56 = vpop.f32.mrb[35].mxu0  ;;  %1795 = vmatmul.mubr.f32.gmra.mrb[130].mxu0 %v1611_v15  ;;  %2443 = vmatmul.mubr.f32.gmra.mrb[78].mxu1 %v2265_v16  ;;  %v6607_v19 = vpack.c.bf16 %v1439_v23, %v1438_v50  ;;  %v1615_v33 = vmax.f32 %v1515_v36, 0.0  ;;  %v2269_v26 = vmax.f32 %v2169_v27, 0.0  ;;  %v1440_v16 = vld [vmem:[%s8301_s9 + $0x1f0] sm:$0xff]  ;;  %v1441_v50 = vld [vmem:[%s8301_s9 + $0x1f8] sm:$0xff] }
 0x364   :  { %v6604_v18 = vadd.f32 %v1106_v56, %v6202_v14  ;;  %v1616_v47 = vmax.f32 %v1516_v40, 0.0  ;;  %v2270_v25 = vmax.f32 %v2170_v51, 0.0  ;;  %4390 = vmatpush1.bf16.msra.mxu0 %v6581_v21  ;;  %4486 = vmatpush1.bf16.msra.mxu1 %v6581_v21 }
 0x365   :  { %8546 = vst [vmem:[#allocation55_spill] sm:$0xff] %v6601_v8  ;;  %8547 = vst [vmem:[#allocation56_spill] sm:$0xff] %v6607_v19  ;;  %v1519_v39 = vadd.f32 %v6206_v24, %v6601_v8  ;;  %v2173_v15 = vadd.f32 %v6210_v30, %v6601_v8  ;;  %4391 = vmatprep.subr.bf16.mxu0 %v8527_v49  ;;  %4487 = vmatprep.subr.bf16.mxu1 %v8527_v49 }
 0x366   :  { %v1110_v36 = vpop.f32.mrb[36].mxu0  ;;  %1799 = vmatprep.mubr.f32.mxu0 %v1616_v47  ;;  %2447 = vmatprep.mubr.f32.mxu1 %v2270_v25  ;;  %v1520_v27 = vadd.f32 %v6217_v45, %v6604_v18  ;;  %v2174_v23 = vadd.f32 %v6221_v53, %v6604_v18  ;;  %v6634_v47 = vpack.c.bf16 %v1441_v50, %v1440_v16 }
 0x367   :  { %v6627_v40 = vadd.f32 %v1110_v36, %v6198_v0  ;;  %v1112_v51 = vpop.f32.mrb[37].mxu0  ;;  %1800 = vmatmul.mubr.f32.gmra.mrb[132].mxu0 %v1615_v33  ;;  %2448 = vmatmul.mubr.f32.gmra.mrb[80].mxu1 %v2269_v26  ;;  %v1619_v25 = vmax.f32 %v1519_v39, 0.0  ;;  %v2273_v28 = vmax.f32 %v2173_v15, 0.0 }
 0x368   :  { %v6630_v56 = vadd.f32 %v1112_v51, %v6202_v14  ;;  %v1620_v21 = vmax.f32 %v1520_v27, 0.0  ;;  %v2274_v8 = vmax.f32 %v2174_v23, 0.0  ;;  %4393 = vmatpush1.bf16.msra.mxu0 %v6607_v19  ;;  %4489 = vmatpush1.bf16.msra.mxu1 %v6607_v19  ;;  %8550 = vst [vmem:[#allocation59_spill] sm:$0xff] %v6634_v47 }
 0x369   :  { %8548 = vst [vmem:[#allocation57_spill] sm:$0xff] %v6627_v40  ;;  %v1523_v36 = vadd.f32 %v6206_v24, %v6627_v40  ;;  %v2177_v33 = vadd.f32 %v6210_v30, %v6627_v40  ;;  %4394 = vmatprep.subr.bf16.mxu0 %v8527_v49  ;;  %4490 = vmatprep.subr.bf16.mxu1 %v8527_v49 }
 0x36a   :  { %8549 = vst [vmem:[#allocation58_spill] sm:$0xff] %v6630_v56  ;;  %v1116_v26 = vpop.f32.mrb[38].mxu0  ;;  %1804 = vmatprep.mubr.f32.mxu0 %v1620_v21  ;;  %2452 = vmatprep.mubr.f32.mxu1 %v2274_v8  ;;  %v1524_v27 = vadd.f32 %v6217_v45, %v6630_v56  ;;  %v2178_v39 = vadd.f32 %v6221_v53, %v6630_v56 }
 0x36b   :  { %v6647_v15 = vadd.f32 %v1116_v26, %v6198_v0  ;;  %v1118_v16 = vpop.f32.mrb[39].mxu0  ;;  %1805 = vmatmul.mubr.f32.gmra.mrb[134].mxu0 %v1619_v25  ;;  %2453 = vmatmul.mubr.f32.gmra.mrb[82].mxu1 %v2273_v28  ;;  %v1623_v21 = vmax.f32 %v1523_v36, 0.0  ;;  %v2277_v8 = vmax.f32 %v2177_v33, 0.0 }
 0x36c   :  { %v6650_v50 = vadd.f32 %v1118_v16, %v6202_v14  ;;  %v1624_v23 = vmax.f32 %v1524_v27, 0.0  ;;  %v2278_v51 = vmax.f32 %v2178_v39, 0.0  ;;  %4396 = vmatpush1.bf16.msra.mxu0 %v6634_v47  ;;  %4492 = vmatpush1.bf16.msra.mxu1 %v6634_v47 }
 0x36d   :  { %8551 = vst [vmem:[#allocation60_spill] sm:$0xff] %v6647_v15  ;;  %v1527_v19 = vadd.f32 %v6206_v24, %v6647_v15  ;;  %v2181_v26 = vadd.f32 %v6210_v30, %v6647_v15  ;;  %4493 = vmatprep.subr.bf16.mxu0 %v8527_v49  ;;  %4685 = vmatprep.subr.bf16.mxu1 %v8527_v49 }
 0x36e   :  { %8552 = vst [vmem:[#allocation61_spill] sm:$0xff] %v6650_v50  ;;  %v1122_v28 = vpop.f32.mrb[40].mxu0  ;;  %1809 = vmatprep.mubr.f32.mxu0 %v1624_v23  ;;  %2457 = vmatprep.mubr.f32.mxu1 %v2278_v51  ;;  %v1528_v25 = vadd.f32 %v6217_v45, %v6650_v50  ;;  %v2182_v36 = vadd.f32 %v6221_v53, %v6650_v50 }
 0x36f   :  { %v6665_v33 = vadd.f32 %v1122_v28, %v6198_v0  ;;  %v1124_v27 = vpop.f32.mrb[41].mxu0  ;;  %1810 = vmatmul.mubr.f32.gmra.mrb[136].mxu0 %v1623_v21  ;;  %2458 = vmatmul.mubr.f32.gmra.mrb[84].mxu1 %v2277_v8  ;;  %v1627_v15 = vmax.f32 %v1527_v19, 0.0  ;;  %v2281_v23 = vmax.f32 %v2181_v26, 0.0 }
 0x370   :  { %v6668_v39 = vadd.f32 %v1124_v27, %v6202_v14  ;;  %v1628_v16 = vmax.f32 %v1528_v25, 0.0  ;;  %v2282_v47 = vmax.f32 %v2182_v36, 0.0 }
 0x371   :  { %8553 = vst [vmem:[#allocation62_spill] sm:$0xff] %v6665_v33  ;;  %v1531_v51 = vadd.f32 %v6206_v24, %v6665_v33  ;;  %v2185_v40 = vadd.f32 %v6210_v30, %v6665_v33 }
 0x372   :  { %8554 = vst [vmem:[#allocation63_spill] sm:$0xff] %v6668_v39  ;;  %v1128_v50 = vpop.f32.mrb[42].mxu0  ;;  %1814 = vmatprep.mubr.f32.mxu0 %v1628_v16  ;;  %2462 = vmatprep.mubr.f32.mxu1 %v2282_v47  ;;  %v1532_v21 = vadd.f32 %v6217_v45, %v6668_v39  ;;  %v2186_v8 = vadd.f32 %v6221_v53, %v6668_v39 }
 0x373   :  { %v6679_v28 = vadd.f32 %v1128_v50, %v6198_v0  ;;  %v1130_v19 = vpop.f32.mrb[43].mxu0  ;;  %1815 = vmatmul.mubr.f32.gmra.mrb[138].mxu0 %v1627_v15  ;;  %2463 = vmatmul.mubr.f32.gmra.mrb[86].mxu1 %v2281_v23  ;;  %v1631_v27 = vmax.f32 %v1531_v51, 0.0  ;;  %v2285_v16 = vmax.f32 %v2185_v40, 0.0 }
 0x374   :  { %v6682_v26 = vadd.f32 %v1130_v19, %v6202_v14  ;;  %v1632_v25 = vmax.f32 %v1532_v21, 0.0  ;;  %v2286_v36 = vmax.f32 %v2186_v8, 0.0 }
 0x375   :  { %8555 = vst [vmem:[#allocation64_spill] sm:$0xff] %v6679_v28  ;;  %v1535_v47 = vadd.f32 %v6206_v24, %v6679_v28  ;;  %v2189_v33 = vadd.f32 %v6210_v30, %v6679_v28 }
 0x376   :  { %8556 = vst [vmem:[#allocation65_spill] sm:$0xff] %v6682_v26  ;;  %v1134_v39 = vpop.f32.mrb[44].mxu0  ;;  %1819 = vmatprep.mubr.f32.mxu0 %v1632_v25  ;;  %2467 = vmatprep.mubr.f32.mxu1 %v2286_v36  ;;  %v1536_v15 = vadd.f32 %v6217_v45, %v6682_v26  ;;  %v2190_v50 = vadd.f32 %v6221_v53, %v6682_v26 }
 0x377   :  { %v6693_v23 = vadd.f32 %v1134_v39, %v6198_v0  ;;  %v1136_v51 = vpop.f32.mrb[45].mxu0  ;;  %1820 = vmatmul.mubr.f32.gmra.mrb[140].mxu0 %v1631_v27  ;;  %2468 = vmatmul.mubr.f32.gmra.mrb[88].mxu1 %v2285_v16  ;;  %v1635_v19 = vmax.f32 %v1535_v47, 0.0  ;;  %v2289_v25 = vmax.f32 %v2189_v33, 0.0 }
 0x378   :  { %v6696_v40 = vadd.f32 %v1136_v51, %v6202_v14  ;;  %v1636_v21 = vmax.f32 %v1536_v15, 0.0  ;;  %v2290_v8 = vmax.f32 %v2190_v50, 0.0 }
 0x379   :  { %8557 = vst [vmem:[#allocation66_spill] sm:$0xff] %v6693_v23  ;;  %v1539_v36 = vadd.f32 %v6206_v24, %v6693_v23  ;;  %v2193_v28 = vadd.f32 %v6210_v30, %v6693_v23 }
 0x37a   :  { %8558 = vst [vmem:[#allocation67_spill] sm:$0xff] %v6696_v40  ;;  %v1140_v26 = vpop.f32.mrb[46].mxu0  ;;  %1824 = vmatprep.mubr.f32.mxu0 %v1636_v21  ;;  %2472 = vmatprep.mubr.f32.mxu1 %v2290_v8  ;;  %v1540_v39 = vadd.f32 %v6217_v45, %v6696_v40  ;;  %v2194_v27 = vadd.f32 %v6221_v53, %v6696_v40 }
 0x37b   :  { %v6707_v16 = vadd.f32 %v1140_v26, %v6198_v0  ;;  %v1142_v47 = vpop.f32.mrb[47].mxu0  ;;  %1825 = vmatmul.mubr.f32.gmra.mrb[142].mxu0 %v1635_v19  ;;  %2473 = vmatmul.mubr.f32.gmra.mrb[90].mxu1 %v2289_v25  ;;  %v1639_v51 = vmax.f32 %v1539_v36, 0.0  ;;  %v2293_v21 = vmax.f32 %v2193_v28, 0.0 }
 0x37c   :  { %v6710_v33 = vadd.f32 %v1142_v47, %v6202_v14  ;;  %v1640_v15 = vmax.f32 %v1540_v39, 0.0  ;;  %v2294_v50 = vmax.f32 %v2194_v27, 0.0 }
 0x37d   :  { %8559 = vst [vmem:[#allocation68_spill] sm:$0xff] %v6707_v16  ;;  %v1543_v8 = vadd.f32 %v6206_v24, %v6707_v16  ;;  %v2197_v23 = vadd.f32 %v6210_v30, %v6707_v16 }
 0x37e   :  { %8560 = vst [vmem:[#allocation69_spill] sm:$0xff] %v6710_v33  ;;  %v1146_v40 = vpop.f32.mrb[48].mxu0  ;;  %1829 = vmatprep.mubr.f32.mxu0 %v1640_v15  ;;  %2477 = vmatprep.mubr.f32.mxu1 %v2294_v50  ;;  %v1544_v26 = vadd.f32 %v6217_v45, %v6710_v33  ;;  %v2198_v19 = vadd.f32 %v6221_v53, %v6710_v33 }
 0x37f   :  { %v6721_v25 = vadd.f32 %v1146_v40, %v6198_v0  ;;  %v1148_v36 = vpop.f32.mrb[49].mxu0  ;;  %1830 = vmatmul.mubr.f32.gmra.mrb[144].mxu0 %v1639_v51  ;;  %2478 = vmatmul.mubr.f32.gmra.mrb[92].mxu1 %v2293_v21  ;;  %v1643_v47 = vmax.f32 %v1543_v8, 0.0  ;;  %v2297_v15 = vmax.f32 %v2197_v23, 0.0  ;;  %v6738_v23 = vsub.s32 2, %v6183_v52 }
 0x380   :  { %v6724_v28 = vadd.f32 %v1148_v36, %v6202_v14  ;;  %v1644_v39 = vmax.f32 %v1544_v26, 0.0  ;;  %v2298_v27 = vmax.f32 %v2198_v19, 0.0 }
 0x381   :  { %8561 = vst [vmem:[#allocation70_spill] sm:$0xff] %v6721_v25  ;;  %v1547_v50 = vadd.f32 %v6206_v24, %v6721_v25  ;;  %v2201_v16 = vadd.f32 %v6210_v30, %v6721_v25 }
 0x382   :  { %8562 = vst [vmem:[#allocation71_spill] sm:$0xff] %v6724_v28  ;;  %v1152_v33 = vpop.f32.mrb[50].mxu0  ;;  %1834 = vmatprep.mubr.f32.mxu0 %v1644_v39  ;;  %2482 = vmatprep.mubr.f32.mxu1 %v2298_v27  ;;  %v1548_v40 = vadd.f32 %v6217_v45, %v6724_v28  ;;  %v2202_v51 = vadd.f32 %v6221_v53, %v6724_v28  ;;  %v6748_v28 = vsub.s32 3, %v6183_v52 }
 0x383   :  { %v6735_v21 = vadd.f32 %v1152_v33, %v6198_v0  ;;  %v1154_v8 = vpop.f32.mrb[51].mxu0  ;;  %1835 = vmatmul.mubr.f32.gmra.mrb[146].mxu0 %v1643_v47  ;;  %2483 = vmatmul.mubr.f32.gmra.mrb[94].mxu1 %v2297_v15  ;;  %v1647_v39 = vmax.f32 %v1547_v50, 0.0  ;;  %v2301_v27 = vmax.f32 %v2201_v16, 0.0  ;;  %v6756_v16 = vrot.slane %v6188_v58, %v6738_v23 }
 0x384   :  { %v6741_v26 = vadd.f32 %v1154_v8, %v6202_v14  ;;  %v1648_v19 = vmax.f32 %v1548_v40, 0.0  ;;  %v2302_v36 = vmax.f32 %v2202_v51, 0.0  ;;  %v6763_v52 = vrot.slane %v6188_v58, %v6748_v28 }
 0x385   :  { %8563 = vst [vmem:[#allocation72_spill] sm:$0xff] %v6735_v21  ;;  %v1551_v25 = vadd.f32 %v6206_v24, %v6735_v21  ;;  %v2205_v33 = vadd.f32 %v6210_v30, %v6735_v21 }
 0x386   :  { %8564 = vst [vmem:[#allocation73_spill] sm:$0xff] %v6741_v26  ;;  %v1158_v47 = vpop.f32.mrb[52].mxu0  ;;  %1839 = vmatprep.mubr.f32.mxu0 %v1648_v19  ;;  %2487 = vmatprep.mubr.f32.mxu1 %v2302_v36  ;;  %v1552_v15 = vadd.f32 %v6217_v45, %v6741_v26  ;;  %v2206_v40 = vadd.f32 %v6221_v53, %v6741_v26 }
 0x387   :  { %v6759_v50 = vadd.f32 %v1158_v47, %v6198_v0  ;;  %v1160_v51 = vpop.f32.mrb[53].mxu0  ;;  %1840 = vmatmul.mubr.f32.gmra.mrb[148].mxu0 %v1647_v39  ;;  %2488 = vmatmul.mubr.f32.gmra.mrb[96].mxu1 %v2301_v27  ;;  %v1651_v21 = vmax.f32 %v1551_v25, 0.0  ;;  %v2305_v26 = vmax.f32 %v2205_v33, 0.0  ;;  %v6774_v39 = vrot.slane %v5668_v11, %v6191_v1 }
 0x388   :  { %v6766_v8 = vadd.f32 %v1160_v51, %v6202_v14  ;;  %v1652_v19 = vmax.f32 %v1552_v15, 0.0  ;;  %v2306_v36 = vmax.f32 %v2206_v40, 0.0  ;;  %v6782_v25 = vrot.slane %v5668_v11, %v6194_v4 }
 0x389   :  { %v1555_v56 = vadd.f32 %v6206_v24, %v6759_v50  ;;  %v2209_v0 = vadd.f32 %v6210_v30, %v6759_v50  ;;  %v6786_v24 = vrot.slane %v5672_v13, %v6191_v1 }
 0x38a   :  { %v1229_v27 = vpop.f32.mrb[54].mxu0  ;;  %1844 = vmatprep.mubr.f32.mxu0 %v1652_v19  ;;  %2492 = vmatprep.mubr.f32.mxu1 %v2306_v36  ;;  %v1556_v58 = vadd.f32 %v6217_v45, %v6766_v8  ;;  %v2210_v14 = vadd.f32 %v6221_v53, %v6766_v8  ;;  %v6793_v45 = vrot.slane %v5672_v13, %v6194_v4 }
 0x38b   :  { %v6789_v30 = vadd.f32 %v1229_v27, %v6756_v16  ;;  %v1231_v33 = vpop.f32.mrb[55].mxu0  ;;  %1845 = vmatmul.mubr.f32.gmra.mrb[150].mxu0 %v1651_v21  ;;  %2493 = vmatmul.mubr.f32.gmra.mrb[98].mxu1 %v2305_v26  ;;  %v1655_v51 = vmax.f32 %v1555_v56, 0.0  ;;  %v2309_v19 = vmax.f32 %v2209_v0, 0.0 }
 0x38c   :  { %v6796_v53 = vadd.f32 %v1231_v33, %v6763_v52  ;;  %v1656_v47 = vmax.f32 %v1556_v58, 0.0  ;;  %v2310_v15 = vmax.f32 %v2210_v14, 0.0 }
 0x38d   :  { %v1461_v40 = vadd.f32 %v6774_v39, %v6789_v30  ;;  %v2115_v1 = vadd.f32 %v6782_v25, %v6789_v30 }
 0x38e   :  { %v1235_v36 = vpop.f32.mrb[56].mxu0  ;;  %1849 = vmatprep.mubr.f32.mxu0 %v1656_v47  ;;  %2497 = vmatprep.mubr.f32.mxu1 %v2310_v15  ;;  %v1462_v4 = vadd.f32 %v6786_v24, %v6796_v53  ;;  %v2116_v21 = vadd.f32 %v6793_v45, %v6796_v53 }
 0x38f   :  { %v1237_v26 = vpop.f32.mrb[57].mxu0  ;;  %1850 = vmatmul.mubr.f32.gmra.mrb[152].mxu0 %v1655_v51  ;;  %2498 = vmatmul.mubr.f32.gmra.mrb[100].mxu1 %v2309_v19  ;;  %v6807_v27 = vadd.f32 %v1235_v36, %v6756_v16  ;;  %v1561_v14 = vmax.f32 %v1461_v40, 0.0  ;;  %v2215_v33 = vmax.f32 %v2115_v1, 0.0 }
 0x390   :  { %v6810_v58 = vadd.f32 %v1237_v26, %v6763_v52  ;;  %v1562_v56 = vmax.f32 %v1462_v4, 0.0  ;;  %v2216_v0 = vmax.f32 %v2116_v21, 0.0 }
 0x391   :  { %v1465_v19 = vadd.f32 %v6774_v39, %v6807_v27  ;;  %v2119_v40 = vadd.f32 %v6782_v25, %v6807_v27 }
 0x392   :  { %v1241_v47 = vpop.f32.mrb[58].mxu0  ;;  %1919 = vmatprep.mubr.f32.mxu0 %v1562_v56  ;;  %2567 = vmatprep.mubr.f32.mxu1 %v2216_v0  ;;  %v1466_v15 = vadd.f32 %v6786_v24, %v6810_v58  ;;  %v2120_v51 = vadd.f32 %v6793_v45, %v6810_v58 }
 0x393   :  { %v6819_v36 = vadd.f32 %v1241_v47, %v6756_v16  ;;  %v1243_v26 = vpop.f32.mrb[59].mxu0  ;;  %1920 = vmatmul.mubr.f32.vlgmr.msra.gmra.mrb[104].mxu0 %v1561_v14  ;;  %2568 = vmatmul.mubr.f32.vlgmr.msra.gmra.mrb[52].mxu1 %v2215_v33  ;;  %v1565_v56 = vmax.f32 %v1465_v19, 0.0  ;;  %v2219_v0 = vmax.f32 %v2119_v40, 0.0 }
 0x394   :  { %v6824_v1 = vadd.f32 %v1243_v26, %v6763_v52  ;;  %4495 = vmatpush1.bf16.msra.mxu0 %v5767_v48  ;;  %v1566_v4 = vmax.f32 %v1466_v15, 0.0  ;;  %v2220_v21 = vmax.f32 %v2120_v51, 0.0  ;;  %4701 = vmatpush1.bf16.msra.mxu1 %v5767_v48 }
 0x395   :  { %8565 = vst [vmem:[#allocation74_spill] sm:$0xff] %v6819_v36  ;;  %4496 = vmatprep.subr.bf16.mxu0 %v8527_v49  ;;  %v1469_v14 = vadd.f32 %v6774_v39, %v6819_v36  ;;  %v2123_v33 = vadd.f32 %v6782_v25, %v6819_v36  ;;  %4686 = vmatprep.subr.bf16.mxu1 %v8527_v49 }
 0x396   :  { %8566 = vst [vmem:[#allocation75_spill] sm:$0xff] %v6824_v1  ;;  %v1247_v47 = vpop.f32.mrb[60].mxu0  ;;  %1924 = vmatprep.mubr.f32.mxu0 %v1566_v4  ;;  %2572 = vmatprep.mubr.f32.mxu1 %v2220_v21  ;;  %v1470_v15 = vadd.f32 %v6786_v24, %v6824_v1  ;;  %v2124_v51 = vadd.f32 %v6793_v45, %v6824_v1 }
 0x397   :  { %v6839_v19 = vadd.f32 %v1247_v47, %v6756_v16  ;;  %v1249_v26 = vpop.f32.mrb[61].mxu0  ;;  %1925 = vmatmul.mubr.f32.gmra.mrb[106].mxu0 %v1565_v56  ;;  %2573 = vmatmul.mubr.f32.gmra.mrb[54].mxu1 %v2219_v0  ;;  %v1569_v4 = vmax.f32 %v1469_v14, 0.0  ;;  %v2223_v21 = vmax.f32 %v2123_v33, 0.0 }
 0x398   :  { %v6842_v40 = vadd.f32 %v1249_v26, %v6763_v52  ;;  %v1570_v48 = vmax.f32 %v1470_v15, 0.0  ;;  %v2224_v36 = vmax.f32 %v2124_v51, 0.0  ;;  %4498 = vmatpush1.bf16.msra.mxu0 %v5788_v57  ;;  %4702 = vmatpush1.bf16.msra.mxu1 %v5788_v57 }
 0x399   :  { %8567 = vst [vmem:[#allocation76_spill] sm:$0xff] %v6839_v19  ;;  %v1473_v1 = vadd.f32 %v6774_v39, %v6839_v19  ;;  %v2127_v47 = vadd.f32 %v6782_v25, %v6839_v19  ;;  %4499 = vmatprep.subr.bf16.mxu0 %v8527_v49  ;;  %4687 = vmatprep.subr.bf16.mxu1 %v8527_v49 }
 0x39a   :  { %v1253_v56 = vpop.f32.mrb[62].mxu0  ;;  %1929 = vmatprep.mubr.f32.mxu0 %v1570_v48  ;;  %2577 = vmatprep.mubr.f32.mxu1 %v2224_v36  ;;  %v1474_v0 = vadd.f32 %v6786_v24, %v6842_v40  ;;  %v2128_v14 = vadd.f32 %v6793_v45, %v6842_v40 }
 0x39b   :  { %v6857_v33 = vadd.f32 %v1253_v56, %v6756_v16  ;;  %v1255_v15 = vpop.f32.mrb[63].mxu0  ;;  %1930 = vmatmul.mubr.f32.gmra.mrb[108].mxu0 %v1569_v4  ;;  %2578 = vmatmul.mubr.f32.gmra.mrb[56].mxu1 %v2223_v21  ;;  %v1573_v48 = vmax.f32 %v1473_v1, 0.0  ;;  %v2227_v36 = vmax.f32 %v2127_v47, 0.0 }
 0x39c   :  { %v6860_v51 = vadd.f32 %v1255_v15, %v6763_v52  ;;  %v1574_v26 = vmax.f32 %v1474_v0, 0.0  ;;  %v2228_v57 = vmax.f32 %v2128_v14, 0.0  ;;  %4501 = vmatpush1.bf16.msra.mxu0 %v5805_v63  ;;  %4703 = vmatpush1.bf16.msra.mxu1 %v5805_v63 }
 0x39d   :  { %8568 = vst [vmem:[#allocation77_spill] sm:$0xff] %v6857_v33  ;;  %v1477_v19 = vadd.f32 %v6774_v39, %v6857_v33  ;;  %v2131_v56 = vadd.f32 %v6782_v25, %v6857_v33  ;;  %4502 = vmatprep.subr.bf16.mxu0 %v8527_v49  ;;  %4688 = vmatprep.subr.bf16.mxu1 %v8527_v49 }
 0x39e   :  { %v1259_v4 = vpop.f32.mrb[64].mxu0  ;;  %1934 = vmatprep.mubr.f32.mxu0 %v1574_v26  ;;  %2582 = vmatprep.mubr.f32.mxu1 %v2228_v57  ;;  %v1478_v21 = vadd.f32 %v6786_v24, %v6860_v51  ;;  %v2132_v1 = vadd.f32 %v6793_v45, %v6860_v51 }
 0x39f   :  { %v6875_v47 = vadd.f32 %v1259_v4, %v6756_v16  ;;  %v1261_v0 = vpop.f32.mrb[65].mxu0  ;;  %1935 = vmatmul.mubr.f32.gmra.mrb[110].mxu0 %v1573_v48  ;;  %2583 = vmatmul.mubr.f32.gmra.mrb[58].mxu1 %v2227_v36  ;;  %v1577_v57 = vmax.f32 %v1477_v19, 0.0  ;;  %v2231_v26 = vmax.f32 %v2131_v56, 0.0 }
 0x3a0   :  { %v6878_v14 = vadd.f32 %v1261_v0, %v6763_v52  ;;  %v1578_v15 = vmax.f32 %v1478_v21, 0.0  ;;  %v2232_v63 = vmax.f32 %v2132_v1, 0.0  ;;  %4504 = vmatpush1.bf16.msra.mxu0 %v5827_v9  ;;  %4704 = vmatpush1.bf16.msra.mxu1 %v5827_v9 }
 0x3a1   :  { %8569 = vst [vmem:[#allocation78_spill] sm:$0xff] %v6875_v47  ;;  %v1481_v33 = vadd.f32 %v6774_v39, %v6875_v47  ;;  %v2135_v4 = vadd.f32 %v6782_v25, %v6875_v47  ;;  %4505 = vmatprep.subr.bf16.mxu0 %v8527_v49  ;;  %4689 = vmatprep.subr.bf16.mxu1 %v8527_v49 }
 0x3a2   :  { %v1265_v48 = vpop.f32.mrb[66].mxu0  ;;  %1939 = vmatprep.mubr.f32.mxu0 %v1578_v15  ;;  %2587 = vmatprep.mubr.f32.mxu1 %v2232_v63  ;;  %v1482_v36 = vadd.f32 %v6786_v24, %v6878_v14  ;;  %v2136_v19 = vadd.f32 %v6793_v45, %v6878_v14 }
 0x3a3   :  { %v6893_v56 = vadd.f32 %v1265_v48, %v6756_v16  ;;  %v1267_v21 = vpop.f32.mrb[67].mxu0  ;;  %1940 = vmatmul.mubr.f32.gmra.mrb[112].mxu0 %v1577_v57  ;;  %2588 = vmatmul.mubr.f32.gmra.mrb[60].mxu1 %v2231_v26  ;;  %v1581_v63 = vmax.f32 %v1481_v33, 0.0  ;;  %v2235_v15 = vmax.f32 %v2135_v4, 0.0 }
 0x3a4   :  { %v6896_v1 = vadd.f32 %v1267_v21, %v6763_v52  ;;  %v1582_v0 = vmax.f32 %v1482_v36, 0.0  ;;  %v2236_v9 = vmax.f32 %v2136_v19, 0.0  ;;  %4507 = vmatpush1.bf16.msra.mxu0 %v5843_v20  ;;  %4705 = vmatpush1.bf16.msra.mxu1 %v5843_v20 }
 0x3a5   :  { %8570 = vst [vmem:[#allocation79_spill] sm:$0xff] %v6893_v56  ;;  %v1485_v47 = vadd.f32 %v6774_v39, %v6893_v56  ;;  %v2139_v48 = vadd.f32 %v6782_v25, %v6893_v56  ;;  %4508 = vmatprep.subr.bf16.mxu0 %v8527_v49  ;;  %4690 = vmatprep.subr.bf16.mxu1 %v8527_v49 }
 0x3a6   :  { %v1271_v57 = vpop.f32.mrb[68].mxu0  ;;  %1944 = vmatprep.mubr.f32.mxu0 %v1582_v0  ;;  %2592 = vmatprep.mubr.f32.mxu1 %v2236_v9  ;;  %v1486_v26 = vadd.f32 %v6786_v24, %v6896_v1  ;;  %v2140_v33 = vadd.f32 %v6793_v45, %v6896_v1 }
 0x3a7   :  { %v6911_v4 = vadd.f32 %v1271_v57, %v6756_v16  ;;  %v1273_v36 = vpop.f32.mrb[69].mxu0  ;;  %1945 = vmatmul.mubr.f32.gmra.mrb[114].mxu0 %v1581_v63  ;;  %2593 = vmatmul.mubr.f32.gmra.mrb[62].mxu1 %v2235_v15  ;;  %v1585_v9 = vmax.f32 %v1485_v47, 0.0  ;;  %v2239_v0 = vmax.f32 %v2139_v48, 0.0 }
 0x3a8   :  { %v6914_v19 = vadd.f32 %v1273_v36, %v6763_v52  ;;  %v1586_v21 = vmax.f32 %v1486_v26, 0.0  ;;  %v2240_v20 = vmax.f32 %v2140_v33, 0.0  ;;  %4510 = vmatpush1.bf16.msra.mxu0 %v5865_v29  ;;  %4706 = vmatpush1.bf16.msra.mxu1 %v5865_v29 }
 0x3a9   :  { %8571 = vst [vmem:[#allocation80_spill] sm:$0xff] %v6911_v4  ;;  %v1489_v56 = vadd.f32 %v6774_v39, %v6911_v4  ;;  %v2143_v57 = vadd.f32 %v6782_v25, %v6911_v4  ;;  %4511 = vmatprep.subr.bf16.mxu0 %v8527_v49  ;;  %4691 = vmatprep.subr.bf16.mxu1 %v8527_v49 }
 0x3aa   :  { %8572 = vst [vmem:[#allocation81_spill] sm:$0xff] %v6914_v19  ;;  %v1277_v63 = vpop.f32.mrb[70].mxu0  ;;  %1949 = vmatprep.mubr.f32.mxu0 %v1586_v21  ;;  %2597 = vmatprep.mubr.f32.mxu1 %v2240_v20  ;;  %v1490_v15 = vadd.f32 %v6786_v24, %v6914_v19  ;;  %v2144_v47 = vadd.f32 %v6793_v45, %v6914_v19 }
 0x3ab   :  { %v6929_v48 = vadd.f32 %v1277_v63, %v6756_v16  ;;  %v1279_v26 = vpop.f32.mrb[71].mxu0  ;;  %1950 = vmatmul.mubr.f32.gmra.mrb[116].mxu0 %v1585_v9  ;;  %2598 = vmatmul.mubr.f32.gmra.mrb[64].mxu1 %v2239_v0  ;;  %v1589_v20 = vmax.f32 %v1489_v56, 0.0  ;;  %v2243_v21 = vmax.f32 %v2143_v57, 0.0 }
 0x3ac   :  { %v6932_v33 = vadd.f32 %v1279_v26, %v6763_v52  ;;  %v1590_v36 = vmax.f32 %v1490_v15, 0.0  ;;  %v2244_v29 = vmax.f32 %v2144_v47, 0.0  ;;  %4513 = vmatpush1.bf16.msra.mxu0 %v5884_v37  ;;  %4707 = vmatpush1.bf16.msra.mxu1 %v5884_v37 }
 0x3ad   :  { %8573 = vst [vmem:[#allocation82_spill] sm:$0xff] %v6929_v48  ;;  %v1493_v4 = vadd.f32 %v6774_v39, %v6929_v48  ;;  %v2147_v63 = vadd.f32 %v6782_v25, %v6929_v48  ;;  %4514 = vmatprep.subr.bf16.mxu0 %v8527_v49  ;;  %4692 = vmatprep.subr.bf16.mxu1 %v8527_v49 }
 0x3ae   :  { %8574 = vst [vmem:[#allocation83_spill] sm:$0xff] %v6932_v33  ;;  %v1283_v9 = vpop.f32.mrb[72].mxu0  ;;  %1954 = vmatprep.mubr.f32.mxu0 %v1590_v36  ;;  %2602 = vmatprep.mubr.f32.mxu1 %v2244_v29  ;;  %v1494_v0 = vadd.f32 %v6786_v24, %v6932_v33  ;;  %v2148_v56 = vadd.f32 %v6793_v45, %v6932_v33 }
 0x3af   :  { %v6947_v57 = vadd.f32 %v1283_v9, %v6756_v16  ;;  %v1285_v15 = vpop.f32.mrb[73].mxu0  ;;  %1955 = vmatmul.mubr.f32.gmra.mrb[118].mxu0 %v1589_v20  ;;  %2603 = vmatmul.mubr.f32.gmra.mrb[66].mxu1 %v2243_v21  ;;  %v1593_v29 = vmax.f32 %v1493_v4, 0.0  ;;  %v2247_v36 = vmax.f32 %v2147_v63, 0.0 }
 0x3b0   :  { %v6950_v47 = vadd.f32 %v1285_v15, %v6763_v52  ;;  %v1594_v26 = vmax.f32 %v1494_v0, 0.0  ;;  %v2248_v37 = vmax.f32 %v2148_v56, 0.0  ;;  %4516 = vmatpush1.bf16.msra.mxu0 %v5903_v44  ;;  %4708 = vmatpush1.bf16.msra.mxu1 %v5903_v44 }
 0x3b1   :  { %8575 = vst [vmem:[#allocation84_spill] sm:$0xff] %v6947_v57  ;;  %v1497_v48 = vadd.f32 %v6774_v39, %v6947_v57  ;;  %v2151_v9 = vadd.f32 %v6782_v25, %v6947_v57  ;;  %4517 = vmatprep.subr.bf16.mxu0 %v8527_v49  ;;  %4693 = vmatprep.subr.bf16.mxu1 %v8527_v49 }
 0x3b2   :  { %8576 = vst [vmem:[#allocation85_spill] sm:$0xff] %v6950_v47  ;;  %v1289_v20 = vpop.f32.mrb[74].mxu0  ;;  %1959 = vmatprep.mubr.f32.mxu0 %v1594_v26  ;;  %2607 = vmatprep.mubr.f32.mxu1 %v2248_v37  ;;  %v1498_v21 = vadd.f32 %v6786_v24, %v6950_v47  ;;  %v2152_v4 = vadd.f32 %v6793_v45, %v6950_v47 }
 0x3b3   :  { %v6965_v63 = vadd.f32 %v1289_v20, %v6756_v16  ;;  %v1291_v0 = vpop.f32.mrb[75].mxu0  ;;  %1960 = vmatmul.mubr.f32.gmra.mrb[120].mxu0 %v1593_v29  ;;  %2608 = vmatmul.mubr.f32.gmra.mrb[68].mxu1 %v2247_v36  ;;  %v1597_v37 = vmax.f32 %v1497_v48, 0.0  ;;  %v2251_v26 = vmax.f32 %v2151_v9, 0.0 }
 0x3b4   :  { %v6968_v56 = vadd.f32 %v1291_v0, %v6763_v52  ;;  %v1598_v15 = vmax.f32 %v1498_v21, 0.0  ;;  %v2252_v44 = vmax.f32 %v2152_v4, 0.0  ;;  %4519 = vmatpush1.bf16.msra.mxu0 %v5922_v55  ;;  %4709 = vmatpush1.bf16.msra.mxu1 %v5922_v55 }
 0x3b5   :  { %8577 = vst [vmem:[#allocation86_spill] sm:$0xff] %v6965_v63  ;;  %v1501_v57 = vadd.f32 %v6774_v39, %v6965_v63  ;;  %v2155_v20 = vadd.f32 %v6782_v25, %v6965_v63  ;;  %4520 = vmatprep.subr.bf16.mxu0 %v8527_v49  ;;  %4694 = vmatprep.subr.bf16.mxu1 %v8527_v49 }
 0x3b6   :  { %8578 = vst [vmem:[#allocation87_spill] sm:$0xff] %v6968_v56  ;;  %v1295_v29 = vpop.f32.mrb[76].mxu0  ;;  %1964 = vmatprep.mubr.f32.mxu0 %v1598_v15  ;;  %2612 = vmatprep.mubr.f32.mxu1 %v2252_v44  ;;  %v1502_v36 = vadd.f32 %v6786_v24, %v6968_v56  ;;  %v2156_v48 = vadd.f32 %v6793_v45, %v6968_v56 }
 0x3b7   :  { %v6983_v9 = vadd.f32 %v1295_v29, %v6756_v16  ;;  %v1297_v21 = vpop.f32.mrb[77].mxu0  ;;  %1965 = vmatmul.mubr.f32.gmra.mrb[122].mxu0 %v1597_v37  ;;  %2613 = vmatmul.mubr.f32.gmra.mrb[70].mxu1 %v2251_v26  ;;  %v1601_v44 = vmax.f32 %v1501_v57, 0.0  ;;  %v2255_v15 = vmax.f32 %v2155_v20, 0.0 }
 0x3b8   :  { %v6986_v4 = vadd.f32 %v1297_v21, %v6763_v52  ;;  %v1602_v0 = vmax.f32 %v1502_v36, 0.0  ;;  %v2256_v55 = vmax.f32 %v2156_v48, 0.0  ;;  %4522 = vmatpush1.bf16.msra.mxu0 %v5941_v3  ;;  %4710 = vmatpush1.bf16.msra.mxu1 %v5941_v3 }
 0x3b9   :  { %8579 = vst [vmem:[#allocation88_spill] sm:$0xff] %v6983_v9  ;;  %v1505_v63 = vadd.f32 %v6774_v39, %v6983_v9  ;;  %v2159_v29 = vadd.f32 %v6782_v25, %v6983_v9  ;;  %4523 = vmatprep.subr.bf16.mxu0 %v8527_v49  ;;  %4695 = vmatprep.subr.bf16.mxu1 %v8527_v49 }
 0x3ba   :  { %8580 = vst [vmem:[#allocation89_spill] sm:$0xff] %v6986_v4  ;;  %v1301_v37 = vpop.f32.mrb[78].mxu0  ;;  %1969 = vmatprep.mubr.f32.mxu0 %v1602_v0  ;;  %2617 = vmatprep.mubr.f32.mxu1 %v2256_v55  ;;  %v1506_v26 = vadd.f32 %v6786_v24, %v6986_v4  ;;  %v2160_v57 = vadd.f32 %v6793_v45, %v6986_v4 }
 0x3bb   :  { %v7001_v20 = vadd.f32 %v1301_v37, %v6756_v16  ;;  %v1303_v36 = vpop.f32.mrb[79].mxu0  ;;  %1970 = vmatmul.mubr.f32.gmra.mrb[124].mxu0 %v1601_v44  ;;  %2618 = vmatmul.mubr.f32.gmra.mrb[72].mxu1 %v2255_v15  ;;  %v1605_v55 = vmax.f32 %v1505_v63, 0.0  ;;  %v2259_v0 = vmax.f32 %v2159_v29, 0.0 }
 0x3bc   :  { %v7004_v48 = vadd.f32 %v1303_v36, %v6763_v52  ;;  %v1606_v21 = vmax.f32 %v1506_v26, 0.0  ;;  %v2260_v3 = vmax.f32 %v2160_v57, 0.0  ;;  %4525 = vmatpush1.bf16.msra.mxu0 %v5963_v22  ;;  %4711 = vmatpush1.bf16.msra.mxu1 %v5963_v22 }
 0x3bd   :  { %8581 = vst [vmem:[#allocation90_spill] sm:$0xff] %v7001_v20  ;;  %v1509_v9 = vadd.f32 %v6774_v39, %v7001_v20  ;;  %v2163_v37 = vadd.f32 %v6782_v25, %v7001_v20  ;;  %4526 = vmatprep.subr.bf16.mxu0 %v8527_v49  ;;  %4696 = vmatprep.subr.bf16.mxu1 %v8527_v49 }
 0x3be   :  { %8582 = vst [vmem:[#allocation91_spill] sm:$0xff] %v7004_v48  ;;  %v1307_v44 = vpop.f32.mrb[80].mxu0  ;;  %1974 = vmatprep.mubr.f32.mxu0 %v1606_v21  ;;  %2622 = vmatprep.mubr.f32.mxu1 %v2260_v3  ;;  %v1510_v15 = vadd.f32 %v6786_v24, %v7004_v48  ;;  %v2164_v63 = vadd.f32 %v6793_v45, %v7004_v48 }
 0x3bf   :  { %v7019_v29 = vadd.f32 %v1307_v44, %v6756_v16  ;;  %v1309_v26 = vpop.f32.mrb[81].mxu0  ;;  %1975 = vmatmul.mubr.f32.gmra.mrb[126].mxu0 %v1605_v55  ;;  %2623 = vmatmul.mubr.f32.gmra.mrb[74].mxu1 %v2259_v0  ;;  %v1609_v3 = vmax.f32 %v1509_v9, 0.0  ;;  %v2263_v21 = vmax.f32 %v2163_v37, 0.0 }
 0x3c0   :  { %v7022_v57 = vadd.f32 %v1309_v26, %v6763_v52  ;;  %v1610_v36 = vmax.f32 %v1510_v15, 0.0  ;;  %v2264_v22 = vmax.f32 %v2164_v63, 0.0  ;;  %4528 = vmatpush1.bf16.msra.mxu0 %v5979_v31  ;;  %4712 = vmatpush1.bf16.msra.mxu1 %v5979_v31 }
 0x3c1   :  { %8583 = vst [vmem:[#allocation92_spill] sm:$0xff] %v7019_v29  ;;  %v1513_v20 = vadd.f32 %v6774_v39, %v7019_v29  ;;  %v2167_v44 = vadd.f32 %v6782_v25, %v7019_v29  ;;  %4529 = vmatprep.subr.bf16.mxu0 %v8527_v49  ;;  %4697 = vmatprep.subr.bf16.mxu1 %v8527_v49 }
 0x3c2   :  { %8584 = vst [vmem:[#allocation93_spill] sm:$0xff] %v7022_v57  ;;  %v1313_v55 = vpop.f32.mrb[82].mxu0  ;;  %1979 = vmatprep.mubr.f32.mxu0 %v1610_v36  ;;  %2627 = vmatprep.mubr.f32.mxu1 %v2264_v22  ;;  %v1514_v0 = vadd.f32 %v6786_v24, %v7022_v57  ;;  %v2168_v9 = vadd.f32 %v6793_v45, %v7022_v57 }
 0x3c3   :  { %v7037_v37 = vadd.f32 %v1313_v55, %v6756_v16  ;;  %v1315_v15 = vpop.f32.mrb[83].mxu0  ;;  %1980 = vmatmul.mubr.f32.gmra.mrb[128].mxu0 %v1609_v3  ;;  %2628 = vmatmul.mubr.f32.gmra.mrb[76].mxu1 %v2263_v21  ;;  %v1613_v22 = vmax.f32 %v1513_v20, 0.0  ;;  %v2267_v36 = vmax.f32 %v2167_v44, 0.0 }
 0x3c4   :  { %v7040_v63 = vadd.f32 %v1315_v15, %v6763_v52  ;;  %v1614_v26 = vmax.f32 %v1514_v0, 0.0  ;;  %v2268_v31 = vmax.f32 %v2168_v9, 0.0  ;;  %4531 = vmatpush1.bf16.msra.mxu0 %v6004_v46  ;;  %4713 = vmatpush1.bf16.msra.mxu1 %v6004_v46 }
 0x3c5   :  { %8585 = vst [vmem:[#allocation94_spill] sm:$0xff] %v7037_v37  ;;  %v1517_v29 = vadd.f32 %v6774_v39, %v7037_v37  ;;  %v2171_v55 = vadd.f32 %v6782_v25, %v7037_v37  ;;  %4532 = vmatprep.subr.bf16.mxu0 %v8527_v49  ;;  %4698 = vmatprep.subr.bf16.mxu1 %v8527_v49 }
 0x3c6   :  { %8586 = vst [vmem:[#allocation95_spill] sm:$0xff] %v7040_v63  ;;  %v1319_v3 = vpop.f32.mrb[84].mxu0  ;;  %1984 = vmatprep.mubr.f32.mxu0 %v1614_v26  ;;  %2632 = vmatprep.mubr.f32.mxu1 %v2268_v31  ;;  %v1518_v21 = vadd.f32 %v6786_v24, %v7040_v63  ;;  %v2172_v20 = vadd.f32 %v6793_v45, %v7040_v63 }
 0x3c7   :  { %v7055_v44 = vadd.f32 %v1319_v3, %v6756_v16  ;;  %v1321_v0 = vpop.f32.mrb[85].mxu0  ;;  %1985 = vmatmul.mubr.f32.gmra.mrb[130].mxu0 %v1613_v22  ;;  %2633 = vmatmul.mubr.f32.gmra.mrb[78].mxu1 %v2267_v36  ;;  %v1617_v31 = vmax.f32 %v1517_v29, 0.0  ;;  %v2271_v26 = vmax.f32 %v2171_v55, 0.0 }
 0x3c8   :  { %v7058_v9 = vadd.f32 %v1321_v0, %v6763_v52  ;;  %v1618_v15 = vmax.f32 %v1518_v21, 0.0  ;;  %v2272_v46 = vmax.f32 %v2172_v20, 0.0  ;;  %4534 = vmatpush1.bf16.msra.mxu0 %v6012_v54  ;;  %4714 = vmatpush1.bf16.msra.mxu1 %v6012_v54 }
 0x3c9   :  { %8587 = vst [vmem:[#allocation96_spill] sm:$0xff] %v7055_v44  ;;  %v1521_v37 = vadd.f32 %v6774_v39, %v7055_v44  ;;  %v2175_v3 = vadd.f32 %v6782_v25, %v7055_v44  ;;  %4535 = vmatprep.subr.bf16.mxu0 %v8527_v49  ;;  %4699 = vmatprep.subr.bf16.mxu1 %v8527_v49 }
 0x3ca   :  { %v1325_v22 = vpop.f32.mrb[86].mxu0  ;;  %1989 = vmatprep.mubr.f32.mxu0 %v1618_v15  ;;  %2637 = vmatprep.mubr.f32.mxu1 %v2272_v46  ;;  %v1522_v36 = vadd.f32 %v6786_v24, %v7058_v9  ;;  %v2176_v29 = vadd.f32 %v6793_v45, %v7058_v9 }
 0x3cb   :  { %v7073_v55 = vadd.f32 %v1325_v22, %v6756_v16  ;;  %v1327_v21 = vpop.f32.mrb[87].mxu0  ;;  %1990 = vmatmul.mubr.f32.gmra.mrb[132].mxu0 %v1617_v31  ;;  %2638 = vmatmul.mubr.f32.gmra.mrb[80].mxu1 %v2271_v26  ;;  %v1621_v46 = vmax.f32 %v1521_v37, 0.0  ;;  %v2275_v15 = vmax.f32 %v2175_v3, 0.0 }
 0x3cc   :  { %v7076_v20 = vadd.f32 %v1327_v21, %v6763_v52  ;;  %v1622_v0 = vmax.f32 %v1522_v36, 0.0  ;;  %v2276_v54 = vmax.f32 %v2176_v29, 0.0  ;;  %4537 = vmatpush1.bf16.msra.mxu0 %v6028_v6  ;;  %4715 = vmatpush1.bf16.msra.mxu1 %v6028_v6 }
 0x3cd   :  { %8588 = vst [vmem:[#allocation97_spill] sm:$0xff] %v7073_v55  ;;  %v1525_v44 = vadd.f32 %v6774_v39, %v7073_v55  ;;  %v2179_v22 = vadd.f32 %v6782_v25, %v7073_v55  ;;  %4538 = vmatprep.subr.bf16.mxu0 %v8527_v49  ;;  %4700 = vmatprep.subr.bf16.mxu1 %v8527_v49 }
 0x3ce   :  { %v1331_v31 = vpop.f32.mrb[88].mxu0  ;;  %1994 = vmatprep.mubr.f32.mxu0 %v1622_v0  ;;  %2642 = vmatprep.mubr.f32.mxu1 %v2276_v54  ;;  %v1526_v26 = vadd.f32 %v6786_v24, %v7076_v20  ;;  %v2180_v37 = vadd.f32 %v6793_v45, %v7076_v20 }
 0x3cf   :  { %v7091_v3 = vadd.f32 %v1331_v31, %v6756_v16  ;;  %v1333_v36 = vpop.f32.mrb[89].mxu0  ;;  %1995 = vmatmul.mubr.f32.gmra.mrb[134].mxu0 %v1621_v46  ;;  %2643 = vmatmul.mubr.f32.gmra.mrb[82].mxu1 %v2275_v15  ;;  %v1625_v54 = vmax.f32 %v1525_v44, 0.0  ;;  %v2279_v0 = vmax.f32 %v2179_v22, 0.0 }
 0x3d0   :  { %v7094_v29 = vadd.f32 %v1333_v36, %v6763_v52  ;;  %v1626_v21 = vmax.f32 %v1526_v26, 0.0  ;;  %v2280_v6 = vmax.f32 %v2180_v37, 0.0  ;;  %4540 = vmatpush1.bf16.msra.mxu0 %v6060_v38  ;;  %4716 = vmatpush1.bf16.msra.mxu1 %v6060_v38 }
 0x3d1   :  { %8589 = vst [vmem:[#allocation98_spill] sm:$0xff] %v7091_v3  ;;  %v1529_v55 = vadd.f32 %v6774_v39, %v7091_v3  ;;  %v2183_v31 = vadd.f32 %v6782_v25, %v7091_v3  ;;  %4541 = vmatprep.subr.bf16.mxu0 %v8527_v49  ;;  %4637 = vmatprep.subr.bf16.mxu1 %v8527_v49 }
 0x3d2   :  { %v1337_v46 = vpop.f32.mrb[90].mxu0  ;;  %1999 = vmatprep.mubr.f32.mxu0 %v1626_v21  ;;  %2647 = vmatprep.mubr.f32.mxu1 %v2280_v6  ;;  %v1530_v15 = vadd.f32 %v6786_v24, %v7094_v29  ;;  %v2184_v44 = vadd.f32 %v6793_v45, %v7094_v29 }
 0x3d3   :  { %v7109_v22 = vadd.f32 %v1337_v46, %v6756_v16  ;;  %v1339_v26 = vpop.f32.mrb[91].mxu0  ;;  %2000 = vmatmul.mubr.f32.gmra.mrb[136].mxu0 %v1625_v54  ;;  %2648 = vmatmul.mubr.f32.gmra.mrb[84].mxu1 %v2279_v0  ;;  %v1629_v3 = vmax.f32 %v1529_v55, 0.0  ;;  %v2283_v21 = vmax.f32 %v2183_v31, 0.0 }
 0x3d4   :  { %v7112_v37 = vadd.f32 %v1339_v26, %v6763_v52  ;;  %v1630_v36 = vmax.f32 %v1530_v15, 0.0  ;;  %v2284_v38 = vmax.f32 %v2184_v44, 0.0 }
 0x3d5   :  { %8590 = vst [vmem:[#allocation99_spill] sm:$0xff] %v7109_v22  ;;  %v1533_v6 = vadd.f32 %v6774_v39, %v7109_v22  ;;  %v2187_v63 = vadd.f32 %v6782_v25, %v7109_v22 }
 0x3d6   :  { %v1343_v57 = vpop.f32.mrb[92].mxu0  ;;  %2004 = vmatprep.mubr.f32.mxu0 %v1630_v36  ;;  %2652 = vmatprep.mubr.f32.mxu1 %v2284_v38  ;;  %v1534_v54 = vadd.f32 %v6786_v24, %v7112_v37  ;;  %v2188_v0 = vadd.f32 %v6793_v45, %v7112_v37 }
 0x3d7   :  { %v7123_v46 = vadd.f32 %v1343_v57, %v6756_v16  ;;  %v1345_v55 = vpop.f32.mrb[93].mxu0  ;;  %2005 = vmatmul.mubr.f32.gmra.mrb[138].mxu0 %v1629_v3  ;;  %2653 = vmatmul.mubr.f32.gmra.mrb[86].mxu1 %v2283_v21  ;;  %v1633_v26 = vmax.f32 %v1533_v6, 0.0  ;;  %v2287_v36 = vmax.f32 %v2187_v63, 0.0 }
 0x3d8   :  { %v7126_v31 = vadd.f32 %v1345_v55, %v6763_v52  ;;  %v1634_v15 = vmax.f32 %v1534_v54, 0.0  ;;  %v2288_v44 = vmax.f32 %v2188_v0, 0.0 }
 0x3d9   :  { %8591 = vst [vmem:[#allocation100_spill] sm:$0xff] %v7123_v46  ;;  %v1537_v38 = vadd.f32 %v6774_v39, %v7123_v46  ;;  %v2191_v22 = vadd.f32 %v6782_v25, %v7123_v46 }
 0x3da   :  { %v1349_v48 = vpop.f32.mrb[94].mxu0  ;;  %2009 = vmatprep.mubr.f32.mxu0 %v1634_v15  ;;  %2657 = vmatprep.mubr.f32.mxu1 %v2288_v44  ;;  %v1538_v57 = vadd.f32 %v6786_v24, %v7126_v31  ;;  %v2192_v3 = vadd.f32 %v6793_v45, %v7126_v31 }
 0x3db   :  { %v7137_v21 = vadd.f32 %v1349_v48, %v6756_v16  ;;  %v1351_v6 = vpop.f32.mrb[95].mxu0  ;;  %2010 = vmatmul.mubr.f32.gmra.mrb[140].mxu0 %v1633_v26  ;;  %2658 = vmatmul.mubr.f32.gmra.mrb[88].mxu1 %v2287_v36  ;;  %v1637_v55 = vmax.f32 %v1537_v38, 0.0  ;;  %v2291_v15 = vmax.f32 %v2191_v22, 0.0 }
 0x3dc   :  { %v7140_v63 = vadd.f32 %v1351_v6, %v6763_v52  ;;  %v1638_v54 = vmax.f32 %v1538_v57, 0.0  ;;  %v2292_v0 = vmax.f32 %v2192_v3, 0.0 }
 0x3dd   :  { %8592 = vst [vmem:[#allocation101_spill] sm:$0xff] %v7137_v21  ;;  %v1541_v44 = vadd.f32 %v6774_v39, %v7137_v21  ;;  %v2195_v46 = vadd.f32 %v6782_v25, %v7137_v21 }
 0x3de   :  { %v1355_v4 = vpop.f32.mrb[96].mxu0  ;;  %2014 = vmatprep.mubr.f32.mxu0 %v1638_v54  ;;  %2662 = vmatprep.mubr.f32.mxu1 %v2292_v0  ;;  %v1542_v48 = vadd.f32 %v6786_v24, %v7140_v63  ;;  %v2196_v26 = vadd.f32 %v6793_v45, %v7140_v63 }
 0x3df   :  { %v7151_v36 = vadd.f32 %v1355_v4, %v6756_v16  ;;  %v1357_v38 = vpop.f32.mrb[97].mxu0  ;;  %2015 = vmatmul.mubr.f32.gmra.mrb[142].mxu0 %v1637_v55  ;;  %2663 = vmatmul.mubr.f32.gmra.mrb[90].mxu1 %v2291_v15  ;;  %v1641_v6 = vmax.f32 %v1541_v44, 0.0  ;;  %v2295_v54 = vmax.f32 %v2195_v46, 0.0 }
 0x3e0   :  { %v7154_v22 = vadd.f32 %v1357_v38, %v6763_v52  ;;  %v1642_v57 = vmax.f32 %v1542_v48, 0.0  ;;  %v2296_v3 = vmax.f32 %v2196_v26, 0.0 }
 0x3e1   :  { %8593 = vst [vmem:[#allocation102_spill] sm:$0xff] %v7151_v36  ;;  %v1545_v0 = vadd.f32 %v6774_v39, %v7151_v36  ;;  %v2199_v21 = vadd.f32 %v6782_v25, %v7151_v36 }
 0x3e2   :  { %v1361_v56 = vpop.f32.mrb[98].mxu0  ;;  %2019 = vmatprep.mubr.f32.mxu0 %v1642_v57  ;;  %2667 = vmatprep.mubr.f32.mxu1 %v2296_v3  ;;  %v1546_v4 = vadd.f32 %v6786_v24, %v7154_v22  ;;  %v2200_v55 = vadd.f32 %v6793_v45, %v7154_v22 }
 0x3e3   :  { %v7165_v15 = vadd.f32 %v1361_v56, %v6756_v16  ;;  %v1363_v44 = vpop.f32.mrb[99].mxu0  ;;  %2020 = vmatmul.mubr.f32.gmra.mrb[144].mxu0 %v1641_v6  ;;  %2668 = vmatmul.mubr.f32.gmra.mrb[92].mxu1 %v2295_v54  ;;  %v1645_v38 = vmax.f32 %v1545_v0, 0.0  ;;  %v2299_v57 = vmax.f32 %v2199_v21, 0.0 }
 0x3e4   :  { %v7168_v46 = vadd.f32 %v1363_v44, %v6763_v52  ;;  %v1646_v48 = vmax.f32 %v1546_v4, 0.0  ;;  %v2300_v26 = vmax.f32 %v2200_v55, 0.0 }
 0x3e5   :  { %8594 = vst [vmem:[#allocation103_spill] sm:$0xff] %v7165_v15  ;;  %v1549_v3 = vadd.f32 %v6774_v39, %v7165_v15  ;;  %v2203_v36 = vadd.f32 %v6782_v25, %v7165_v15 }
 0x3e6   :  { %v1367_v47 = vpop.f32.mrb[100].mxu0  ;;  %2024 = vmatprep.mubr.f32.mxu0 %v1646_v48  ;;  %2672 = vmatprep.mubr.f32.mxu1 %v2300_v26  ;;  %v1550_v56 = vadd.f32 %v6786_v24, %v7168_v46  ;;  %v2204_v6 = vadd.f32 %v6793_v45, %v7168_v46 }
 0x3e7   :  { %v7179_v54 = vadd.f32 %v1367_v47, %v6756_v16  ;;  %v1369_v0 = vpop.f32.mrb[101].mxu0  ;;  %2025 = vmatmul.mubr.f32.gmra.mrb[146].mxu0 %v1645_v38  ;;  %2673 = vmatmul.mubr.f32.gmra.mrb[94].mxu1 %v2299_v57  ;;  %v1649_v44 = vmax.f32 %v1549_v3, 0.0  ;;  %v2303_v48 = vmax.f32 %v2203_v36, 0.0  ;;  %v7190_v47 = vrot.slane %v5670_v12, %v6738_v23 }
 0x3e8   :  { %v7182_v21 = vadd.f32 %v1369_v0, %v6763_v52  ;;  %v1650_v4 = vmax.f32 %v1550_v56, 0.0  ;;  %v2304_v55 = vmax.f32 %v2204_v6, 0.0  ;;  %v7198_v36 = vrot.slane %v5670_v12, %v6748_v28 }
 0x3e9   :  { %8595 = vst [vmem:[#allocation104_spill] sm:$0xff] %v7179_v54  ;;  %v1553_v26 = vadd.f32 %v6774_v39, %v7179_v54  ;;  %v2207_v15 = vadd.f32 %v6782_v25, %v7179_v54 }
 0x3ea   :  { %v1373_v33 = vpop.f32.mrb[102].mxu0  ;;  %2029 = vmatprep.mubr.f32.mxu0 %v1650_v4  ;;  %2677 = vmatprep.mubr.f32.mxu1 %v2304_v55  ;;  %v1554_v38 = vadd.f32 %v6786_v24, %v7182_v21  ;;  %v2208_v57 = vadd.f32 %v6793_v45, %v7182_v21  ;;  %v2761_v55 = vadd.f32 %v7190_v47, %v6224_v59 }
 0x3eb   :  { %v7201_v3 = vadd.f32 %v1373_v33, %v6756_v16  ;;  %v1375_v56 = vpop.f32.mrb[103].mxu0  ;;  %2030 = vmatmul.mubr.f32.gmra.mrb[148].mxu0 %v1649_v44  ;;  %2678 = vmatmul.mubr.f32.gmra.mrb[96].mxu1 %v2303_v48  ;;  %v1653_v54 = vmax.f32 %v1553_v26, 0.0  ;;  %v2307_v19 = vmax.f32 %v2207_v15, 0.0  ;;  %v3436_v44 = vadd.f32 %v7198_v36, %v6396_v41 }
 0x3ec   :  { %v7204_v6 = vadd.f32 %v1375_v56, %v6763_v52  ;;  %v1654_v0 = vmax.f32 %v1554_v38, 0.0  ;;  %v2308_v4 = vmax.f32 %v2208_v57, 0.0  ;;  %v7220_v15 = vrot.slane %v5666_v10, %v6738_v23 }
 0x3ed   :  { %v1557_v12 = vadd.f32 %v6774_v39, %v7201_v3  ;;  %v2211_v16 = vadd.f32 %v6782_v25, %v7201_v3  ;;  %v7224_v39 = vrot.slane %v5666_v10, %v6748_v28  ;;  %v2861_v57 = vmax.f32 %v2761_v55, 0.0 }
 0x3ee   :  { %2034 = vmatprep.mubr.f32.mxu0 %v1654_v0  ;;  %2682 = vmatprep.mubr.f32.mxu1 %v2308_v4  ;;  %v1558_v33 = vadd.f32 %v6786_v24, %v7204_v6  ;;  %v2212_v52 = vadd.f32 %v6793_v45, %v7204_v6  ;;  %v2760_v24 = vadd.f32 %v7220_v15, %v6213_v35  ;;  %v3536_v56 = vmax.f32 %v3436_v44, 0.0  ;;  %v8619_v35 = vld [vmem:[#allocation55_spill] sm:$0xff] }
 0x3ef   :  { %2035 = vmatmul.mubr.f32.gmra.mrb[150].mxu0 %v1653_v54  ;;  %2683 = vmatmul.mubr.f32.gmra.mrb[98].mxu1 %v2307_v19  ;;  %v3435_v45 = vadd.f32 %v7224_v39, %v6393_v60  ;;  %v1657_v26 = vmax.f32 %v1557_v12, 0.0  ;;  %v2311_v38 = vmax.f32 %v2211_v16, 0.0  ;;  %v2765_v10 = vadd.f32 %v7190_v47, %v6246_v2 }
 0x3f0   :  { %v1658_v25 = vmax.f32 %v1558_v33, 0.0  ;;  %v2312_v48 = vmax.f32 %v2212_v52, 0.0  ;;  %v3440_v19 = vadd.f32 %v7198_v36, %v6422_v17  ;;  %v2860_v54 = vmax.f32 %v2760_v24, 0.0 }
 0x3f1   :  { %v3535_v0 = vmax.f32 %v3435_v45, 0.0  ;;  %v2764_v4 = vadd.f32 %v7220_v15, %v6243_v62  ;;  %v3439_v12 = vadd.f32 %v7224_v39, %v6419_v5  ;;  %v2865_v55 = vmax.f32 %v2765_v10, 0.0 }
 0x3f2   :  { %2039 = vmatprep.mubr.f32.mxu0 %v1658_v25  ;;  %2687 = vmatprep.mubr.f32.mxu1 %v2312_v48  ;;  %v2769_v16 = vadd.f32 %v7190_v47, %v6266_v42  ;;  %v3444_v33 = vadd.f32 %v7198_v36, %v6448_v32  ;;  %v3540_v52 = vmax.f32 %v3440_v19, 0.0  ;;  %v2768_v48 = vadd.f32 %v7220_v15, %v6261_v34  ;;  %v8597_v19 = vld [vmem:[#allocation24_spill] sm:$0xff]  ;;  %v8610_v42 = vld [vmem:[#allocation35_spill] sm:$0xff] }
 0x3f3   :  { %2040 = vmatmul.mubr.f32.gmra.mrb[152].mxu0 %v1657_v26  ;;  %2688 = vmatmul.mubr.f32.gmra.mrb[100].mxu1 %v2311_v38  ;;  %v2864_v44 = vmax.f32 %v2764_v4, 0.0  ;;  %v3539_v25 = vmax.f32 %v3439_v12, 0.0  ;;  %v3443_v24 = vadd.f32 %v7224_v39, %v6445_v43  ;;  %v2773_v38 = vadd.f32 %v7190_v47, %v6292_v7  ;;  %v8599_v12 = vld [vmem:[#allocation40_spill] sm:$0xff] }
 0x3f4   :  { %3024 = vmatprep.mubr.f32.mxu0 %v2861_v57  ;;  %3706 = vmatprep.mubr.f32.mxu1 %v3536_v56  ;;  %v2869_v45 = vmax.f32 %v2769_v16, 0.0  ;;  %v3544_v26 = vmax.f32 %v3444_v33, 0.0  ;;  %v8596_v57 = vld [vmem:[#allocation41_spill] sm:$0xff]  ;;  %v2868_v10 = vmax.f32 %v2768_v48, 0.0  ;;  %v8605_v34 = vld [vmem:[#allocation32_spill] sm:$0xff]  ;;  %v3467_v59 = vadd.f32 %v7224_v39, %v8619_v35 }
 0x3f5   :  { %v3448_v56 = vadd.f32 %v7198_v36, %v8596_v57  ;;  %v2873_v16 = vmax.f32 %v2773_v38, 0.0 }
 0x3f7   :  { %3025 = vmatmul.mubr.f32.vlgmr.msra.gmra.mrb[154].mxu0 %v2860_v54  ;;  %3707 = vmatmul.mubr.f32.vlgmr.msra.gmra.mrb[102].mxu1 %v3535_v0  ;;  %v3543_v54 = vmax.f32 %v3443_v24, 0.0  ;;  %v8598_v0 = vld [vmem:[#allocation25_spill] sm:$0xff]  ;;  %v3548_v33 = vmax.f32 %v3448_v56, 0.0  ;;  %v8604_v56 = vld [vmem:[#allocation43_spill] sm:$0xff] }
 0x3f8   :  { %3029 = vmatprep.mubr.f32.mxu0 %v2865_v55  ;;  %4543 = vmatpush1.bf16.msra.mxu0 %v6240_v61  ;;  %v2772_v4 = vadd.f32 %v7220_v15, %v8598_v0  ;;  %v3447_v55 = vadd.f32 %v7224_v39, %v8599_v12 }
 0x3f9   :  { %3711 = vmatprep.mubr.f32.mxu1 %v3540_v52  ;;  %4544 = vmatprep.subr.bf16.mxu0 %v8527_v49  ;;  %v8600_v52 = vld [vmem:[#allocation29_spill] sm:$0xff] }
 0x3fa   :  { %4639 = vmatpush1.bf16.msra.mxu1 %v6240_v61  ;;  %v2777_v61 = vadd.f32 %v7190_v47, %v8600_v52  ;;  %v2872_v48 = vmax.f32 %v2772_v4, 0.0  ;;  %v3547_v24 = vmax.f32 %v3447_v55, 0.0  ;;  %v3451_v52 = vadd.f32 %v7224_v39, %v8604_v56  ;;  %v8607_v4 = vld [vmem:[#allocation31_spill] sm:$0xff] }
 0x3fb   :  { %3030 = vmatmul.mubr.f32.gmra.mrb[156].mxu0 %v2864_v44  ;;  %3712 = vmatmul.mubr.f32.gmra.mrb[104].mxu1 %v3539_v25  ;;  %v8601_v44 = vld [vmem:[#allocation44_spill] sm:$0xff]  ;;  %v2780_v55 = vadd.f32 %v7220_v15, %v8607_v4 }
 0x3fc   :  { %3034 = vmatprep.mubr.f32.mxu0 %v2869_v45  ;;  %3716 = vmatprep.mubr.f32.mxu1 %v3544_v26  ;;  %v3452_v25 = vadd.f32 %v7198_v36, %v8601_v44  ;;  %v8602_v45 = vld [vmem:[#allocation27_spill] sm:$0xff]  ;;  %v8603_v26 = vld [vmem:[#allocation28_spill] sm:$0xff]  ;;  %v2877_v0 = vmax.f32 %v2777_v61, 0.0  ;;  %v8608_v61 = vld [vmem:[#allocation30_spill] sm:$0xff] }
 0x3fd   :  { %4546 = vmatpush1.bf16.msra.mxu0 %v8597_v19  ;;  %4640 = vmatprep.subr.bf16.mxu1 %v8527_v49  ;;  %v2776_v38 = vadd.f32 %v7220_v15, %v8603_v26 }
 0x3fe   :  { %4547 = vmatprep.subr.bf16.mxu0 %v8527_v49  ;;  %4642 = vmatpush1.bf16.msra.mxu1 %v8597_v19  ;;  %v3552_v7 = vmax.f32 %v3452_v25, 0.0  ;;  %v8606_v19 = vld [vmem:[#allocation47_spill] sm:$0xff]  ;;  %v8609_v25 = vld [vmem:[#allocation46_spill] sm:$0xff] }
 0x3ff   :  { %3035 = vmatmul.mubr.f32.gmra.mrb[158].mxu0 %v2868_v10  ;;  %3717 = vmatmul.mubr.f32.gmra.mrb[106].mxu1 %v3543_v54  ;;  %v2781_v10 = vadd.f32 %v7190_v47, %v8605_v34  ;;  %v3456_v54 = vadd.f32 %v7198_v36, %v8606_v19  ;;  %v3455_v34 = vadd.f32 %v7224_v39, %v8609_v25 }
 0x400   :  { %3039 = vmatprep.mubr.f32.mxu0 %v2873_v16  ;;  %3721 = vmatprep.mubr.f32.mxu1 %v3548_v33  ;;  %v2876_v16 = vmax.f32 %v2776_v38, 0.0  ;;  %v3551_v33 = vmax.f32 %v3451_v52, 0.0  ;;  %v2880_v52 = vmax.f32 %v2780_v55, 0.0 }
 0x401   :  { %4549 = vmatpush1.bf16.msra.mxu0 %v8602_v45  ;;  %4643 = vmatprep.subr.bf16.mxu1 %v8527_v49  ;;  %v2881_v26 = vmax.f32 %v2781_v10, 0.0  ;;  %v3555_v38 = vmax.f32 %v3455_v34, 0.0  ;;  %v8612_v10 = vld [vmem:[#allocation34_spill] sm:$0xff]  ;;  %v8615_v34 = vld [vmem:[#allocation53_spill] sm:$0xff] }
 0x402   :  { %4645 = vmatpush1.bf16.msra.mxu1 %v8602_v45  ;;  %4550 = vmatprep.subr.bf16.mxu0 %v8527_v49  ;;  %v3556_v45 = vmax.f32 %v3456_v54, 0.0  ;;  %v2784_v54 = vadd.f32 %v7220_v15, %v8612_v10  ;;  %v3464_v55 = vadd.f32 %v7198_v36, %v8615_v34 }
 0x403   :  { %3040 = vmatmul.mubr.f32.gmra.mrb[160].mxu0 %v2872_v48  ;;  %3722 = vmatmul.mubr.f32.gmra.mrb[108].mxu1 %v3547_v24  ;;  %v2785_v48 = vadd.f32 %v7190_v47, %v8610_v42  ;;  %v8611_v24 = vld [vmem:[#allocation50_spill] sm:$0xff]  ;;  %v8613_v42 = vld [vmem:[#allocation49_spill] sm:$0xff] }
 0x404   :  { %3044 = vmatprep.mubr.f32.mxu0 %v2877_v0  ;;  %3726 = vmatprep.mubr.f32.mxu1 %v3552_v7  ;;  %v3460_v7 = vadd.f32 %v7198_v36, %v8611_v24  ;;  %v7291_v0 = vrot.slane %v5672_v13, %v6738_v23  ;;  %v3459_v4 = vadd.f32 %v7224_v39, %v8613_v42  ;;  %v2884_v10 = vmax.f32 %v2784_v54, 0.0 }
 0x405   :  { %4552 = vmatpush1.bf16.msra.mxu0 %v8608_v61  ;;  %4646 = vmatprep.subr.bf16.mxu1 %v8527_v49 }
 0x406   :  { %4648 = vmatpush1.bf16.msra.mxu1 %v8608_v61  ;;  %4553 = vmatprep.subr.bf16.mxu0 %v8527_v49  ;;  %v8614_v61 = vld [vmem:[#allocation33_spill] sm:$0xff]  ;;  %v7301_v62 = vadd.f32 %v7291_v0, %v7058_v9  ;;  %v3559_v2 = vmax.f32 %v3459_v4, 0.0 }
 0x407   :  { %3045 = vmatmul.mubr.f32.gmra.mrb[162].mxu0 %v2876_v16  ;;  %3727 = vmatmul.mubr.f32.gmra.mrb[110].mxu1 %v3551_v33  ;;  %v2885_v16 = vmax.f32 %v2785_v48, 0.0  ;;  %v3560_v33 = vmax.f32 %v3460_v7, 0.0  ;;  %v2788_v48 = vadd.f32 %v7220_v15, %v6393_v60  ;;  %v8616_v7 = vld [vmem:[#allocation52_spill] sm:$0xff]  ;;  %v3468_v60 = vadd.f32 %v7198_v36, %v6604_v18 }
 0x408   :  { %3049 = vmatprep.mubr.f32.mxu0 %v2881_v26  ;;  %3731 = vmatprep.mubr.f32.mxu1 %v3556_v45  ;;  %v2789_v26 = vadd.f32 %v7190_v47, %v6396_v41  ;;  %v7311_v45 = vadd.f32 %v7291_v0, %v7076_v20  ;;  %v3463_v41 = vadd.f32 %v7224_v39, %v8616_v7 }
 0x409   :  { %4649 = vmatprep.subr.bf16.mxu1 %v8527_v49  ;;  %4555 = vmatpush1.bf16.msra.mxu0 %v8614_v61  ;;  %v2888_v4 = vmax.f32 %v2788_v48, 0.0  ;;  %v3568_v48 = vmax.f32 %v3468_v60, 0.0  ;;  %v2796_v60 = vadd.f32 %v7220_v15, %v6445_v43  ;;  %v8630_v43 = vld [vmem:[#allocation61_spill] sm:$0xff] }
 0x40a   :  { %4651 = vmatpush1.bf16.msra.mxu1 %v8614_v61  ;;  %4556 = vmatprep.subr.bf16.mxu0 %v8527_v49  ;;  %v7323_v61 = vadd.f32 %v7291_v0, %v7094_v29  ;;  %v3563_v54 = vmax.f32 %v3463_v41, 0.0  ;;  %v8623_v41 = vld [vmem:[#allocation58_spill] sm:$0xff] }
 0x40b   :  { %3050 = vmatmul.mubr.f32.gmra.mrb[164].mxu0 %v2880_v52  ;;  %3732 = vmatmul.mubr.f32.gmra.mrb[112].mxu1 %v3555_v38  ;;  %v2793_v52 = vadd.f32 %v7190_v47, %v6422_v17  ;;  %v8617_v38 = vld [vmem:[#allocation36_spill] sm:$0xff]  ;;  %v7331_v17 = vadd.f32 %v7291_v0, %v7112_v37 }
 0x40c   :  { %3054 = vmatprep.mubr.f32.mxu0 %v2885_v16  ;;  %3736 = vmatprep.mubr.f32.mxu1 %v3560_v33  ;;  %v2889_v16 = vmax.f32 %v2789_v26, 0.0  ;;  %v3564_v33 = vmax.f32 %v3464_v55, 0.0  ;;  %v2792_v26 = vadd.f32 %v7220_v15, %v6419_v5  ;;  %v2797_v5 = vadd.f32 %v7190_v47, %v6448_v32 }
 0x40d   :  { %4652 = vmatprep.subr.bf16.mxu1 %v8527_v49  ;;  %4558 = vmatpush1.bf16.msra.mxu0 %v8617_v38  ;;  %8618 = vst [vmem:[#allocation41_spill] sm:$0xff] %v7331_v17  ;;  %v2893_v55 = vmax.f32 %v2793_v52, 0.0  ;;  %v3472_v52 = vadd.f32 %v7198_v36, %v8623_v41  ;;  %v8627_v17 = vld [vmem:[#allocation38_spill] sm:$0xff] }
 0x40e   :  { %4654 = vmatpush1.bf16.msra.mxu1 %v8617_v38  ;;  %4559 = vmatprep.subr.bf16.mxu0 %v8527_v49  ;;  %v8620_v38 = vld [vmem:[#allocation37_spill] sm:$0xff]  ;;  %v2892_v32 = vmax.f32 %v2792_v26, 0.0  ;;  %v2897_v26 = vmax.f32 %v2797_v5, 0.0  ;;  %v2800_v5 = vadd.f32 %v7220_v15, %v8599_v12 }
 0x40f   :  { %3055 = vmatmul.mubr.f32.gmra.mrb[166].mxu0 %v2884_v10  ;;  %3737 = vmatmul.mubr.f32.gmra.mrb[114].mxu1 %v3559_v2  ;;  %v7341_v2 = vadd.f32 %v7291_v0, %v7126_v31  ;;  %v7345_v10 = vadd.f32 %v7291_v0, %v7140_v63 }
 0x410   :  { %3059 = vmatprep.mubr.f32.mxu0 %v2889_v16  ;;  %3741 = vmatprep.mubr.f32.mxu1 %v3564_v33  ;;  %v7355_v16 = vadd.f32 %v7291_v0, %v7154_v22  ;;  %v7359_v33 = vadd.f32 %v7291_v0, %v7168_v46  ;;  %v2900_v12 = vmax.f32 %v2800_v5, 0.0  ;;  %v2808_v5 = vadd.f32 %v7220_v15, %v8609_v25 }
 0x411   :  { %4655 = vmatprep.subr.bf16.mxu1 %v8527_v49  ;;  %4561 = vmatpush1.bf16.msra.mxu0 %v8620_v38  ;;  %8621 = vst [vmem:[#allocation24_spill] sm:$0xff] %v7341_v2  ;;  %8622 = vst [vmem:[#allocation40_spill] sm:$0xff] %v7345_v10  ;;  %v3567_v10 = vmax.f32 %v3467_v59, 0.0  ;;  %v2801_v59 = vadd.f32 %v7190_v47, %v8596_v57  ;;  %v8632_v57 = vld [vmem:[#allocation39_spill] sm:$0xff] }
 0x412   :  { %4657 = vmatpush1.bf16.msra.mxu1 %v8620_v38  ;;  %4562 = vmatprep.subr.bf16.mxu0 %v8527_v49  ;;  %8624 = vst [vmem:[#allocation44_spill] sm:$0xff] %v7355_v16  ;;  %8625 = vst [vmem:[#allocation27_spill] sm:$0xff] %v7359_v33  ;;  %v8626_v38 = vld [vmem:[#allocation57_spill] sm:$0xff]  ;;  %v2908_v25 = vmax.f32 %v2808_v5, 0.0 }
 0x413   :  { %3060 = vmatmul.mubr.f32.gmra.mrb[168].mxu0 %v2888_v4  ;;  %3742 = vmatmul.mubr.f32.gmra.mrb[116].mxu1 %v3563_v54  ;;  %v3471_v2 = vadd.f32 %v7224_v39, %v8626_v38  ;;  %v7369_v4 = vadd.f32 %v7291_v0, %v7182_v21  ;;  %v7373_v54 = vadd.f32 %v7291_v0, %v7204_v6  ;;  %v2901_v16 = vmax.f32 %v2801_v59, 0.0 }
 0x414   :  { %3064 = vmatprep.mubr.f32.mxu0 %v2893_v55  ;;  %3746 = vmatprep.mubr.f32.mxu1 %v3568_v48  ;;  %v3572_v55 = vmax.f32 %v3472_v52, 0.0  ;;  %v3476_v48 = vadd.f32 %v7198_v36, %v8630_v43  ;;  %v8631_v52 = vld [vmem:[#allocation60_spill] sm:$0xff] }
 0x415   :  { %4658 = vmatprep.subr.bf16.mxu1 %v8527_v49  ;;  %4564 = vmatpush1.bf16.msra.mxu0 %v8627_v17  ;;  %8628 = vst [vmem:[#allocation43_spill] sm:$0xff] %v7369_v4  ;;  %8629 = vst [vmem:[#allocation47_spill] sm:$0xff] %v7373_v54  ;;  %v2896_v4 = vmax.f32 %v2796_v60, 0.0  ;;  %v3571_v33 = vmax.f32 %v3471_v2, 0.0  ;;  %v3475_v54 = vadd.f32 %v7224_v39, %v8631_v52 }
 0x416   :  { %4660 = vmatpush1.bf16.msra.mxu1 %v8627_v17  ;;  %4565 = vmatprep.subr.bf16.mxu0 %v8527_v49  ;;  %v3576_v17 = vmax.f32 %v3476_v48, 0.0  ;;  %v2804_v60 = vadd.f32 %v7220_v15, %v8604_v56 }
 0x417   :  { %3065 = vmatmul.mubr.f32.gmra.mrb[170].mxu0 %v2892_v32  ;;  %3747 = vmatmul.mubr.f32.gmra.mrb[118].mxu1 %v3567_v10  ;;  %v2805_v32 = vadd.f32 %v7190_v47, %v8601_v44  ;;  %v8633_v10 = vld [vmem:[#allocation63_spill] sm:$0xff]  ;;  %v3575_v2 = vmax.f32 %v3475_v54, 0.0  ;;  %v8635_v44 = vld [vmem:[#allocation42_spill] sm:$0xff] }
 0x418   :  { %3069 = vmatprep.mubr.f32.mxu0 %v2897_v26  ;;  %3751 = vmatprep.mubr.f32.mxu1 %v3572_v55  ;;  %v3480_v26 = vadd.f32 %v7198_v36, %v8633_v10  ;;  %v8634_v55 = vld [vmem:[#allocation62_spill] sm:$0xff]  ;;  %v2904_v56 = vmax.f32 %v2804_v60, 0.0 }
 0x419   :  { %4661 = vmatprep.subr.bf16.mxu1 %v8527_v49  ;;  %4567 = vmatpush1.bf16.msra.mxu0 %v8632_v57  ;;  %v3479_v59 = vadd.f32 %v7224_v39, %v8634_v55  ;;  %v2905_v48 = vmax.f32 %v2805_v32, 0.0 }
 0x41a   :  { %4663 = vmatpush1.bf16.msra.mxu1 %v8632_v57  ;;  %4568 = vmatprep.subr.bf16.mxu0 %v8527_v49  ;;  %v3580_v57 = vmax.f32 %v3480_v26, 0.0 }
 0x41b   :  { %3070 = vmatmul.mubr.f32.gmra.mrb[172].mxu0 %v2896_v4  ;;  %3752 = vmatmul.mubr.f32.gmra.mrb[120].mxu1 %v3571_v33  ;;  %v2809_v4 = vadd.f32 %v7190_v47, %v8606_v19  ;;  %v8636_v33 = vld [vmem:[#allocation65_spill] sm:$0xff]  ;;  %v3579_v54 = vmax.f32 %v3479_v59, 0.0  ;;  %v2812_v59 = vadd.f32 %v7220_v15, %v8613_v42 }
 0x41c   :  { %3074 = vmatprep.mubr.f32.mxu0 %v2901_v16  ;;  %3756 = vmatprep.mubr.f32.mxu1 %v3576_v17  ;;  %v3484_v16 = vadd.f32 %v7198_v36, %v8636_v33  ;;  %v8637_v17 = vld [vmem:[#allocation64_spill] sm:$0xff]  ;;  %v8638_v19 = vld [vmem:[#allocation45_spill] sm:$0xff] }
 0x41d   :  { %4664 = vmatprep.subr.bf16.mxu1 %v8527_v49  ;;  %4570 = vmatpush1.bf16.msra.mxu0 %v8635_v44  ;;  %v3483_v32 = vadd.f32 %v7224_v39, %v8637_v17  ;;  %v2909_v26 = vmax.f32 %v2809_v4, 0.0  ;;  %v2912_v42 = vmax.f32 %v2812_v59, 0.0 }
 0x41e   :  { %4666 = vmatpush1.bf16.msra.mxu1 %v8635_v44  ;;  %4571 = vmatprep.subr.bf16.mxu0 %v8527_v49  ;;  %v3584_v44 = vmax.f32 %v3484_v16, 0.0 }
 0x41f   :  { %3075 = vmatmul.mubr.f32.gmra.mrb[174].mxu0 %v2900_v12  ;;  %3757 = vmatmul.mubr.f32.gmra.mrb[122].mxu1 %v3575_v2  ;;  %v2813_v12 = vadd.f32 %v7190_v47, %v8611_v24  ;;  %v8639_v2 = vld [vmem:[#allocation67_spill] sm:$0xff]  ;;  %v3583_v60 = vmax.f32 %v3483_v32, 0.0  ;;  %v8641_v24 = vld [vmem:[#allocation48_spill] sm:$0xff]  ;;  %v2816_v32 = vadd.f32 %v7220_v15, %v8616_v7 }
 0x420   :  { %3079 = vmatprep.mubr.f32.mxu0 %v2905_v48  ;;  %3761 = vmatprep.mubr.f32.mxu1 %v3580_v57  ;;  %v3488_v48 = vadd.f32 %v7198_v36, %v8639_v2  ;;  %v8640_v57 = vld [vmem:[#allocation66_spill] sm:$0xff] }
 0x421   :  { %4667 = vmatprep.subr.bf16.mxu1 %v8527_v49  ;;  %4573 = vmatpush1.bf16.msra.mxu0 %v8638_v19  ;;  %v3487_v4 = vadd.f32 %v7224_v39, %v8640_v57  ;;  %v2913_v16 = vmax.f32 %v2813_v12, 0.0  ;;  %v2916_v7 = vmax.f32 %v2816_v32, 0.0 }
 0x422   :  { %4669 = vmatpush1.bf16.msra.mxu1 %v8638_v19  ;;  %4574 = vmatprep.subr.bf16.mxu0 %v8527_v49  ;;  %v3588_v19 = vmax.f32 %v3488_v48, 0.0 }
 0x423   :  { %3080 = vmatmul.mubr.f32.gmra.mrb[176].mxu0 %v2904_v56  ;;  %3762 = vmatmul.mubr.f32.gmra.mrb[124].mxu1 %v3579_v54  ;;  %v2817_v56 = vadd.f32 %v7190_v47, %v8615_v34  ;;  %v8642_v54 = vld [vmem:[#allocation69_spill] sm:$0xff]  ;;  %v3587_v5 = vmax.f32 %v3487_v4, 0.0  ;;  %v8644_v34 = vld [vmem:[#allocation51_spill] sm:$0xff]  ;;  %v2820_v4 = vadd.f32 %v7220_v15, %v8619_v35 }
 0x424   :  { %3084 = vmatprep.mubr.f32.mxu0 %v2909_v26  ;;  %3766 = vmatprep.mubr.f32.mxu1 %v3584_v44  ;;  %v3492_v26 = vadd.f32 %v7198_v36, %v8642_v54  ;;  %v8643_v44 = vld [vmem:[#allocation68_spill] sm:$0xff] }
 0x425   :  { %4670 = vmatprep.subr.bf16.mxu1 %v8527_v49  ;;  %4576 = vmatpush1.bf16.msra.mxu0 %v8641_v24  ;;  %v3491_v12 = vadd.f32 %v7224_v39, %v8643_v44  ;;  %v2917_v48 = vmax.f32 %v2817_v56, 0.0  ;;  %v2920_v35 = vmax.f32 %v2820_v4, 0.0 }
 0x426   :  { %4672 = vmatpush1.bf16.msra.mxu1 %v8641_v24  ;;  %4577 = vmatprep.subr.bf16.mxu0 %v8527_v49  ;;  %v3592_v24 = vmax.f32 %v3492_v26, 0.0 }
 0x427   :  { %3085 = vmatmul.mubr.f32.gmra.mrb[178].mxu0 %v2908_v25  ;;  %3767 = vmatmul.mubr.f32.gmra.mrb[126].mxu1 %v3583_v60  ;;  %v2821_v25 = vadd.f32 %v7190_v47, %v6604_v18  ;;  %v8645_v60 = vld [vmem:[#allocation71_spill] sm:$0xff]  ;;  %v3591_v59 = vmax.f32 %v3491_v12, 0.0  ;;  %v8647_v18 = vld [vmem:[#allocation54_spill] sm:$0xff]  ;;  %v2824_v12 = vadd.f32 %v7220_v15, %v8626_v38  ;;  %v7467_v38 = vrot.slane %v5672_v13, %v6748_v28 }
 0x428   :  { %3089 = vmatprep.mubr.f32.mxu0 %v2913_v16  ;;  %3771 = vmatprep.mubr.f32.mxu1 %v3588_v19  ;;  %v3496_v16 = vadd.f32 %v7198_v36, %v8645_v60  ;;  %v8646_v19 = vld [vmem:[#allocation70_spill] sm:$0xff]  ;;  %v2833_v13 = vadd.f32 %v7190_v47, %v8633_v10 }
 0x429   :  { %4673 = vmatprep.subr.bf16.mxu1 %v8527_v49  ;;  %4579 = vmatpush1.bf16.msra.mxu0 %v8644_v34  ;;  %v3495_v56 = vadd.f32 %v7224_v39, %v8646_v19  ;;  %v2921_v26 = vmax.f32 %v2821_v25, 0.0  ;;  %v2924_v4 = vmax.f32 %v2824_v12, 0.0 }
 0x42a   :  { %4675 = vmatpush1.bf16.msra.mxu1 %v8644_v34  ;;  %4580 = vmatprep.subr.bf16.mxu0 %v8527_v49  ;;  %v3596_v34 = vmax.f32 %v3496_v16, 0.0 }
 0x42b   :  { %3090 = vmatmul.mubr.f32.gmra.mrb[180].mxu0 %v2912_v42  ;;  %3772 = vmatmul.mubr.f32.gmra.mrb[128].mxu1 %v3587_v5  ;;  %v2825_v42 = vadd.f32 %v7190_v47, %v8623_v41  ;;  %v8648_v5 = vld [vmem:[#allocation73_spill] sm:$0xff]  ;;  %v3595_v32 = vmax.f32 %v3495_v56, 0.0  ;;  %v8650_v41 = vld [vmem:[#allocation56_spill] sm:$0xff] }
 0x42c   :  { %3094 = vmatprep.mubr.f32.mxu0 %v2917_v48  ;;  %3776 = vmatprep.mubr.f32.mxu1 %v3592_v24  ;;  %v3500_v48 = vadd.f32 %v7198_v36, %v8648_v5  ;;  %v8649_v24 = vld [vmem:[#allocation72_spill] sm:$0xff] }
 0x42d   :  { %4676 = vmatprep.subr.bf16.mxu1 %v8527_v49  ;;  %4582 = vmatpush1.bf16.msra.mxu0 %v8647_v18  ;;  %v3499_v25 = vadd.f32 %v7224_v39, %v8649_v24  ;;  %v2925_v16 = vmax.f32 %v2825_v42, 0.0 }
 0x42e   :  { %4678 = vmatpush1.bf16.msra.mxu1 %v8647_v18  ;;  %4583 = vmatprep.subr.bf16.mxu0 %v8527_v49  ;;  %v3600_v18 = vmax.f32 %v3500_v48, 0.0 }
 0x42f   :  { %3095 = vmatmul.mubr.f32.gmra.mrb[182].mxu0 %v2916_v7  ;;  %3777 = vmatmul.mubr.f32.gmra.mrb[130].mxu1 %v3591_v59  ;;  %v2829_v7 = vadd.f32 %v7190_v47, %v8630_v43  ;;  %v3504_v59 = vadd.f32 %v7198_v36, %v6766_v8  ;;  %v3599_v56 = vmax.f32 %v3499_v25, 0.0  ;;  %v2828_v43 = vadd.f32 %v7220_v15, %v8631_v52 }
 0x430   :  { %3099 = vmatprep.mubr.f32.mxu0 %v2921_v26  ;;  %3781 = vmatprep.mubr.f32.mxu1 %v3596_v34  ;;  %v3503_v26 = vadd.f32 %v7224_v39, %v6759_v50  ;;  %v8651_v34 = vld [vmem:[#allocation59_spill] sm:$0xff]  ;;  %v7483_v52 = vrot.slane %v5668_v11, %v6748_v28  ;;  %v2832_v25 = vadd.f32 %v7220_v15, %v8634_v55 }
 0x431   :  { %4679 = vmatprep.subr.bf16.mxu1 %v8527_v49  ;;  %4585 = vmatpush1.bf16.msra.mxu0 %v8650_v41  ;;  %v2929_v42 = vmax.f32 %v2829_v7, 0.0  ;;  %v3604_v48 = vmax.f32 %v3504_v59, 0.0  ;;  %v2928_v12 = vmax.f32 %v2828_v43, 0.0  ;;  %v3414_v28 = vadd.f32 %v7467_v38, %v6810_v58 }
 0x432   :  { %4681 = vmatpush1.bf16.msra.mxu1 %v8650_v41  ;;  %4586 = vmatprep.subr.bf16.mxu0 %v8527_v49  ;;  %v3603_v10 = vmax.f32 %v3503_v26, 0.0  ;;  %v2933_v41 = vmax.f32 %v2833_v13, 0.0  ;;  %v2932_v59 = vmax.f32 %v2832_v25, 0.0  ;;  %v3413_v55 = vadd.f32 %v7483_v52, %v6807_v27  ;;  %v8652_v26 = vld [vmem:[#allocation75_spill] sm:$0xff]  ;;  %v8653_v13 = vld [vmem:[#allocation74_spill] sm:$0xff] }
 0x433   :  { %3100 = vmatmul.mubr.f32.gmra.mrb[184].mxu0 %v2920_v35  ;;  %3782 = vmatmul.mubr.f32.gmra.mrb[132].mxu1 %v3595_v32  ;;  %v3410_v35 = vadd.f32 %v7467_v38, %v6796_v53  ;;  %v3409_v32 = vadd.f32 %v7483_v52, %v6789_v30  ;;  %v3514_v43 = vmax.f32 %v3414_v28, 0.0 }
 0x434   :  { %3104 = vmatprep.mubr.f32.mxu0 %v2925_v16  ;;  %3786 = vmatprep.mubr.f32.mxu1 %v3600_v18  ;;  %v2837_v18 = vadd.f32 %v7190_v47, %v8636_v33  ;;  %v2841_v33 = vadd.f32 %v7190_v47, %v8639_v2  ;;  %v2845_v2 = vadd.f32 %v7190_v47, %v8642_v54 }
 0x435   :  { %4682 = vmatprep.subr.bf16.mxu1 %v8527_v49  ;;  %4588 = vmatpush1.bf16.msra.mxu0 %v8651_v34  ;;  %v3510_v16 = vmax.f32 %v3410_v35, 0.0  ;;  %v3509_v7 = vmax.f32 %v3409_v32, 0.0  ;;  %v3417_v35 = vadd.f32 %v7483_v52, %v8653_v13  ;;  %v2849_v54 = vadd.f32 %v7190_v47, %v8645_v60 }
 0x436   :  { %4684 = vmatpush1.bf16.msra.mxu1 %v8651_v34  ;;  %4589 = vmatprep.subr.bf16.mxu0 %v8527_v49  ;;  %v3418_v34 = vadd.f32 %v7467_v38, %v8652_v26  ;;  %v2941_v32 = vmax.f32 %v2841_v33, 0.0  ;;  %v2945_v28 = vmax.f32 %v2845_v2, 0.0  ;;  %v2853_v60 = vadd.f32 %v7190_v47, %v8648_v5 }
 0x437   :  { %3105 = vmatmul.mubr.f32.gmra.mrb[186].mxu0 %v2924_v4  ;;  %3787 = vmatmul.mubr.f32.gmra.mrb[134].mxu1 %v3599_v56  ;;  %v2836_v4 = vadd.f32 %v7220_v15, %v8637_v17  ;;  %v2937_v56 = vmax.f32 %v2837_v18, 0.0  ;;  %v2840_v17 = vadd.f32 %v7220_v15, %v8640_v57  ;;  %v2844_v57 = vadd.f32 %v7220_v15, %v8643_v44 }
 0x438   :  { %3109 = vmatprep.mubr.f32.mxu0 %v2929_v42  ;;  %3791 = vmatprep.mubr.f32.mxu1 %v3604_v48  ;;  %v3513_v48 = vmax.f32 %v3413_v55, 0.0  ;;  %v2848_v44 = vadd.f32 %v7220_v15, %v8646_v19  ;;  %v2949_v33 = vmax.f32 %v2849_v54, 0.0  ;;  %v2852_v19 = vadd.f32 %v7220_v15, %v8649_v24 }
 0x439   :  { %v2936_v42 = vmax.f32 %v2836_v4, 0.0  ;;  %v2940_v25 = vmax.f32 %v2840_v17, 0.0  ;;  %v2944_v4 = vmax.f32 %v2844_v57, 0.0  ;;  %v2857_v5 = vadd.f32 %v7190_v47, %v6766_v8  ;;  %v8657_v57 = vld [vmem:[#allocation79_spill] sm:$0xff]  ;;  %v8658_v47 = vld [vmem:[#allocation81_spill] sm:$0xff] }
 0x43a   :  { %v2856_v24 = vadd.f32 %v7220_v15, %v6759_v50  ;;  %v2763_v8 = vadd.f32 %v7291_v0, %v6796_v53  ;;  %v3438_v54 = vadd.f32 %v7467_v38, %v8658_v47 }
 0x43b   :  { %3110 = vmatmul.mubr.f32.gmra.mrb[188].mxu0 %v2928_v12  ;;  %3792 = vmatmul.mubr.f32.gmra.mrb[136].mxu1 %v3603_v10  ;;  %v3518_v12 = vmax.f32 %v3418_v34, 0.0  ;;  %v3422_v10 = vadd.f32 %v7467_v38, %v6842_v40 }
 0x43c   :  { %3114 = vmatprep.mubr.f32.mxu0 %v2933_v41  ;;  %3861 = vmatprep.mubr.f32.mxu1 %v3510_v16  ;;  %v3517_v41 = vmax.f32 %v3417_v35, 0.0  ;;  %v8654_v16 = vld [vmem:[#allocation76_spill] sm:$0xff]  ;;  %v8656_v35 = vld [vmem:[#allocation78_spill] sm:$0xff]  ;;  %v2956_v15 = vmax.f32 %v2856_v24, 0.0  ;;  %v2863_v53 = vmax.f32 %v2763_v8, 0.0 }
 0x43d   :  { %v3421_v18 = vadd.f32 %v7483_v52, %v8654_v16 }
 0x43f   :  { %3115 = vmatmul.mubr.f32.gmra.mrb[190].mxu0 %v2932_v59  ;;  %3862 = vmatmul.mubr.f32.vlgmr.msra.gmra.mrb[138].mxu1 %v3509_v7  ;;  %v3522_v7 = vmax.f32 %v3422_v10, 0.0  ;;  %v3426_v59 = vadd.f32 %v7467_v38, %v6860_v51  ;;  %v3521_v55 = vmax.f32 %v3421_v18, 0.0  ;;  %v3434_v10 = vadd.f32 %v7467_v38, %v6896_v1 }
 0x440   :  { %3119 = vmatprep.mubr.f32.mxu0 %v2937_v56  ;;  %3866 = vmatprep.mubr.f32.mxu1 %v3514_v43  ;;  %v8655_v56 = vld [vmem:[#allocation77_spill] sm:$0xff]  ;;  %v3433_v18 = vadd.f32 %v7483_v52, %v8657_v57 }
 0x441   :  { %v3425_v43 = vadd.f32 %v7483_v52, %v8655_v56  ;;  %v3526_v34 = vmax.f32 %v3426_v59, 0.0  ;;  %v7543_v59 = vrot.slane %v5668_v11, %v6738_v23  ;;  %v8660_v11 = vld [vmem:[#allocation83_spill] sm:$0xff] }
 0x442   :  { %v3442_v23 = vadd.f32 %v7467_v38, %v8660_v11 }
 0x443   :  { %3120 = vmatmul.mubr.f32.gmra.mrb[192].mxu0 %v2936_v42  ;;  %3867 = vmatmul.mubr.f32.gmra.mrb[140].mxu1 %v3513_v48  ;;  %v3430_v42 = vadd.f32 %v7467_v38, %v6878_v14  ;;  %v2948_v48 = vmax.f32 %v2848_v44, 0.0  ;;  %v3525_v17 = vmax.f32 %v3425_v43, 0.0  ;;  %v2762_v50 = vadd.f32 %v7543_v59, %v6789_v30 }
 0x444   :  { %3124 = vmatprep.mubr.f32.mxu0 %v2941_v32  ;;  %3871 = vmatprep.mubr.f32.mxu1 %v3518_v12  ;;  %v3429_v32 = vadd.f32 %v7483_v52, %v8656_v35  ;;  %v2953_v12 = vmax.f32 %v2853_v60, 0.0  ;;  %v3538_v43 = vmax.f32 %v3438_v54, 0.0  ;;  %v2766_v30 = vadd.f32 %v7543_v59, %v6807_v27  ;;  %v8666_v54 = vld [vmem:[#allocation3_spill] sm:$0xff] }
 0x445   :  { %v3530_v2 = vmax.f32 %v3430_v42, 0.0  ;;  %v8661_v42 = vld [vmem:[#allocation82_spill] sm:$0xff]  ;;  %v2770_v27 = vadd.f32 %v7543_v59, %v8653_v13  ;;  %v2774_v13 = vadd.f32 %v7543_v59, %v8654_v16 }
 0x446   :  { %v7584_v16 = vld [vmem:[%s8303_s10] ss:$0 sm:$0xff] }
 0x447   :  { %3125 = vmatmul.mubr.f32.gmra.mrb[194].mxu0 %v2940_v25  ;;  %3872 = vmatmul.mubr.f32.gmra.mrb[142].mxu1 %v3517_v41  ;;  %v2952_v25 = vmax.f32 %v2852_v19, 0.0  ;;  %v3529_v41 = vmax.f32 %v3429_v32, 0.0  ;;  %v2771_v19 = vadd.f32 %v7291_v0, %v8652_v26  ;;  %v2870_v8 = vmax.f32 %v2770_v27, 0.0 }
 0x448   :  { %3129 = vmatprep.mubr.f32.mxu0 %v2945_v28  ;;  %3876 = vmatprep.mubr.f32.mxu1 %v3522_v7  ;;  %v2957_v28 = vmax.f32 %v2857_v5, 0.0  ;;  %v3534_v7 = vmax.f32 %v3434_v10, 0.0  ;;  %v2866_v5 = vmax.f32 %v2766_v30, 0.0  ;;  %v8670_v30 = vld [vmem:[#allocation88_spill] sm:$0xff] }
 0x44b   :  { %3130 = vmatmul.mubr.f32.gmra.mrb[196].mxu0 %v2944_v4  ;;  %3877 = vmatmul.mubr.f32.gmra.mrb[144].mxu1 %v3521_v55  ;;  %v3533_v4 = vmax.f32 %v3433_v18, 0.0  ;;  %v8659_v55 = vld [vmem:[#allocation80_spill] sm:$0xff]  ;;  %v2775_v18 = vadd.f32 %v7291_v0, %v6842_v40  ;;  %v2779_v40 = vadd.f32 %v7291_v0, %v6860_v51  ;;  %v2778_v51 = vadd.f32 %v7543_v59, %v8655_v56 }
 0x44c   :  { %3134 = vmatprep.mubr.f32.mxu0 %v2949_v33  ;;  %3881 = vmatprep.mubr.f32.mxu1 %v3526_v34  ;;  %v3437_v44 = vadd.f32 %v7483_v52, %v8659_v55  ;;  %v2767_v33 = vadd.f32 %v7291_v0, %v6810_v58  ;;  %v2862_v34 = vmax.f32 %v2762_v50, 0.0  ;;  %v8662_v58 = vld [vmem:[#allocation85_spill] sm:$0xff] }
 0x44d   :  { %v3446_v32 = vadd.f32 %v7467_v38, %v8662_v58 }
 0x44e   :  { %v3537_v60 = vmax.f32 %v3437_v44, 0.0  ;;  %v2875_v44 = vmax.f32 %v2775_v18, 0.0 }
 0x44f   :  { %3135 = vmatmul.mubr.f32.gmra.mrb[198].mxu0 %v2948_v48  ;;  %3882 = vmatmul.mubr.f32.gmra.mrb[146].mxu1 %v3525_v17  ;;  %v3441_v48 = vadd.f32 %v7483_v52, %v8661_v42  ;;  %v2867_v17 = vmax.f32 %v2767_v33, 0.0  ;;  %v3546_v24 = vmax.f32 %v3446_v32, 0.0  ;;  %v2879_v32 = vmax.f32 %v2779_v40, 0.0 }
 0x450   :  { %3139 = vmatprep.mubr.f32.mxu0 %v2953_v12  ;;  %3886 = vmatprep.mubr.f32.mxu1 %v3530_v2  ;;  %v3542_v12 = vmax.f32 %v3442_v23, 0.0  ;;  %v8663_v2 = vld [vmem:[#allocation2_spill] sm:$0xff]  ;;  %v2874_v23 = vmax.f32 %v2774_v13, 0.0  ;;  %v8673_v13 = vld [vmem:[#allocation5_spill] sm:$0xff] }
 0x451   :  { %v3541_v10 = vmax.f32 %v3441_v48, 0.0  ;;  %v3453_v48 = vadd.f32 %v7483_v52, %v8670_v30 }
 0x453   :  { %3140 = vmatmul.mubr.f32.gmra.mrb[200].mxu0 %v2952_v25  ;;  %3887 = vmatmul.mubr.f32.gmra.mrb[148].mxu1 %v3529_v41  ;;  %v8664_v25 = vld [vmem:[#allocation84_spill] sm:$0xff]  ;;  %v2871_v41 = vmax.f32 %v2771_v19, 0.0 }
 0x454   :  { %3144 = vmatprep.mubr.f32.mxu0 %v2957_v28  ;;  %3891 = vmatprep.mubr.f32.mxu1 %v3534_v7  ;;  %v3445_v26 = vadd.f32 %v7483_v52, %v8664_v25  ;;  %v8665_v28 = vld [vmem:[#allocation87_spill] sm:$0xff] }
 0x455   :  { %v3450_v7 = vadd.f32 %v7467_v38, %v8665_v28 }
 0x456   :  { %v3545_v50 = vmax.f32 %v3445_v26, 0.0 }
 0x457   :  { %3145 = vmatmul.mubr.f32.gmra.mrb[202].mxu0 %v2956_v15  ;;  %3892 = vmatmul.mubr.f32.gmra.mrb[150].mxu1 %v3533_v4  ;;  %v8667_v15 = vld [vmem:[#allocation86_spill] sm:$0xff] }
 0x458   :  { %3214 = vmatprep.mubr.f32.mxu0 %v2863_v53  ;;  %3896 = vmatprep.mubr.f32.mxu1 %v3538_v43  ;;  %v3449_v4 = vadd.f32 %v7483_v52, %v8667_v15  ;;  %v3550_v53 = vmax.f32 %v3450_v7, 0.0  ;;  %v8668_v43 = vld [vmem:[#allocation89_spill] sm:$0xff] }
 0x459   :  { %v3454_v33 = vadd.f32 %v7467_v38, %v8668_v43 }
 0x45b   :  { %3215 = vmatmul.mubr.f32.vlgmr.msra.gmra.mrb[154].mxu0 %v2862_v34  ;;  %3897 = vmatmul.mubr.f32.gmra.mrb[102].mxu1 %v3537_v60  ;;  %v3549_v34 = vmax.f32 %v3449_v4, 0.0  ;;  %v8669_v60 = vld [vmem:[#allocation4_spill] sm:$0xff] }
 0x45c   :  { %3219 = vmatprep.mubr.f32.mxu0 %v2867_v17  ;;  %4591 = vmatpush1.bf16.msra.mxu0 %v8663_v2  ;;  %v2783_v2 = vadd.f32 %v7291_v0, %v6878_v14  ;;  %v8672_v14 = vld [vmem:[#allocation90_spill] sm:$0xff] }
 0x45d   :  { %3901 = vmatprep.mubr.f32.mxu1 %v3542_v12  ;;  %4592 = vmatprep.subr.bf16.mxu0 %v8527_v49  ;;  %v3554_v12 = vmax.f32 %v3454_v33, 0.0  ;;  %v3457_v18 = vadd.f32 %v7483_v52, %v8672_v14  ;;  %v2787_v33 = vadd.f32 %v7291_v0, %v6896_v1 }
 0x45f   :  { %3220 = vmatmul.mubr.f32.gmra.mrb[156].mxu0 %v2866_v5  ;;  %3902 = vmatmul.mubr.f32.gmra.mrb[104].mxu1 %v3541_v10  ;;  %v8671_v5 = vld [vmem:[#allocation91_spill] sm:$0xff] }
 0x460   :  { %3224 = vmatprep.mubr.f32.mxu0 %v2871_v41  ;;  %3906 = vmatprep.mubr.f32.mxu1 %v3546_v24  ;;  %v3458_v10 = vadd.f32 %v7467_v38, %v8671_v5  ;;  %v2782_v24 = vadd.f32 %v7543_v59, %v8656_v35 }
 0x461   :  { %4594 = vmatpush1.bf16.msra.mxu0 %v8666_v54  ;;  %v2878_v54 = vmax.f32 %v2778_v51, 0.0 }
 0x462   :  { %4595 = vmatprep.subr.bf16.mxu0 %v8527_v49  ;;  %v3558_v40 = vmax.f32 %v3458_v10, 0.0 }
 0x463   :  { %3225 = vmatmul.mubr.f32.gmra.mrb[158].mxu0 %v2870_v8  ;;  %3907 = vmatmul.mubr.f32.gmra.mrb[106].mxu1 %v3545_v50  ;;  %v3553_v50 = vmax.f32 %v3453_v48, 0.0  ;;  %v2882_v48 = vmax.f32 %v2782_v24, 0.0 }
 0x464   :  { %3229 = vmatprep.mubr.f32.mxu0 %v2875_v44  ;;  %3911 = vmatprep.mubr.f32.mxu1 %v3550_v53  ;;  %v2883_v53 = vmax.f32 %v2783_v2, 0.0  ;;  %v8675_v2 = vld [vmem:[#allocation92_spill] sm:$0xff] }
 0x465   :  { %4597 = vmatpush1.bf16.msra.mxu0 %v8669_v60  ;;  %v3461_v10 = vadd.f32 %v7483_v52, %v8675_v2 }
 0x466   :  { %v1921_v17 = vpop.f32.mrb[104].mxu0  ;;  %v2569_v19 = vpop.f32.mrb[52].mxu1  ;;  %4598 = vmatprep.subr.bf16.mxu0 %v8527_v49 }
 0x467   :  { %v4742_v27 = vadd.f32 %v7584_v16, %v1921_v17  ;;  %v4767_v26 = vadd.f32 %v7584_v16, %v2569_v19  ;;  %v1923_v56 = vpop.f32.mrb[105].mxu0  ;;  %v2571_v41 = vpop.f32.mrb[53].mxu1  ;;  %3230 = vmatmul.mubr.f32.gmra.mrb[160].mxu0 %v2874_v23  ;;  %3912 = vmatmul.mubr.f32.gmra.mrb[108].mxu1 %v3549_v34  ;;  %v8674_v23 = vld [vmem:[#allocation93_spill] sm:$0xff]  ;;  %v3557_v17 = vmax.f32 %v3457_v18, 0.0 }
 0x468   :  { %3234 = vmatprep.mubr.f32.mxu0 %v2879_v32  ;;  %3916 = vmatprep.mubr.f32.mxu1 %v3554_v12  ;;  %v3462_v34 = vadd.f32 %v7467_v38, %v8674_v23  ;;  %v2786_v12 = vadd.f32 %v7543_v59, %v8657_v57  ;;  %v2887_v41 = vmax.f32 %v2787_v33, 0.0 }
 0x469   :  { %v2045_v7 = vmax.f32 %v4742_v27, 0.0  ;;  %v2693_v8 = vmax.f32 %v4767_v26, 0.0  ;;  %4600 = vmatpush1.bf16.msra.mxu0 %v8673_v13  ;;  %v8676_v27 = vld [vmem:[#allocation6_spill] sm:$0xff]  ;;  %v2790_v13 = vadd.f32 %v7543_v59, %v8659_v55 }
 0x46a   :  { %v1926_v4 = vpop.f32.mrb[106].mxu0  ;;  %v2574_v44 = vpop.f32.mrb[54].mxu1  ;;  %4601 = vmatprep.subr.bf16.mxu0 %v8527_v49  ;;  %v2886_v33 = vmax.f32 %v2786_v12, 0.0 }
 0x46b   :  { %2071 = vst.msk [vmem:[%s8304_s11] sm:$0xff] %vm2070_vm7, %v2045_v7  ;;  %4103 = vst.msk [vmem:[%s8304_s11 + $0xc8] sm:$0xff] %vm2070_vm7, %v2693_v8  ;;  %v4743_v35 = vadd.f32 %v7584_v16, %v1926_v4  ;;  %v4768_v60 = vadd.f32 %v7584_v16, %v2574_v44  ;;  %v1928_v1 = vpop.f32.mrb[107].mxu0  ;;  %v2576_v51 = vpop.f32.mrb[55].mxu1  ;;  %3235 = vmatmul.mubr.f32.gmra.mrb[162].mxu0 %v2878_v54  ;;  %3917 = vmatmul.mubr.f32.gmra.mrb[110].mxu1 %v3553_v50  ;;  %v3562_v7 = vmax.f32 %v3462_v34, 0.0  ;;  %v8677_v54 = vld [vmem:[#allocation95_spill] sm:$0xff] }
 0x46c   :  { %3239 = vmatprep.mubr.f32.mxu0 %v2883_v53  ;;  %3921 = vmatprep.mubr.f32.mxu1 %v3558_v40  ;;  %v2791_v8 = vadd.f32 %v7291_v0, %v8658_v47  ;;  %v3466_v24 = vadd.f32 %v7467_v38, %v8677_v54  ;;  %v8678_v4 = vld [vmem:[#allocation94_spill] sm:$0xff]  ;;  %v3561_v34 = vmax.f32 %v3461_v10, 0.0 }
 0x46d   :  { %v2046_v19 = vmax.f32 %v4743_v35, 0.0  ;;  %v2694_v32 = vmax.f32 %v4768_v60, 0.0  ;;  %4603 = vmatpush1.bf16.msra.mxu0 %v8676_v27  ;;  %v3465_v44 = vadd.f32 %v7483_v52, %v8678_v4  ;;  %v8679_v35 = vld [vmem:[#allocation7_spill] sm:$0xff] }
 0x46e   :  { %v1931_v26 = vpop.f32.mrb[108].mxu0  ;;  %v2579_v56 = vpop.f32.mrb[56].mxu1  ;;  %4604 = vmatprep.subr.bf16.mxu0 %v8527_v49  ;;  %v2891_v51 = vmax.f32 %v2791_v8, 0.0  ;;  %v8681_v8 = vld [vmem:[#allocation8_spill] sm:$0xff] }
 0x46f   :  { %2072 = vst.msk [vmem:[%s8304_s11 + $0x8] sm:$0xff] %vm2070_vm7, %v2046_v19  ;;  %4104 = vst.msk [vmem:[%s8304_s11 + $0xd0] sm:$0xff] %vm2070_vm7, %v2694_v32  ;;  %v4744_v57 = vadd.f32 %v7584_v16, %v1931_v26  ;;  %v4769_v18 = vadd.f32 %v7584_v16, %v2579_v56  ;;  %v1933_v47 = vpop.f32.mrb[109].mxu0  ;;  %v2581_v50 = vpop.f32.mrb[57].mxu1  ;;  %3240 = vmatmul.mubr.f32.gmra.mrb[164].mxu0 %v2882_v48  ;;  %3922 = vmatmul.mubr.f32.gmra.mrb[112].mxu1 %v3557_v17  ;;  %v3566_v19 = vmax.f32 %v3466_v24, 0.0 }
 0x470   :  { %3244 = vmatprep.mubr.f32.mxu0 %v2887_v41  ;;  %3926 = vmatprep.mubr.f32.mxu1 %v3562_v7  ;;  %v2795_v48 = vadd.f32 %v7291_v0, %v8660_v11  ;;  %v3470_v17 = vadd.f32 %v7467_v38, %v7058_v9  ;;  %v2890_v9 = vmax.f32 %v2790_v13, 0.0  ;;  %v3565_v10 = vmax.f32 %v3465_v44, 0.0  ;;  %v8680_v41 = vld [vmem:[#allocation96_spill] sm:$0xff] }
 0x471   :  { %v2047_v53 = vmax.f32 %v4744_v57, 0.0  ;;  %v2695_v40 = vmax.f32 %v4769_v18, 0.0  ;;  %4606 = vmatpush1.bf16.msra.mxu0 %v8679_v35  ;;  %v2794_v56 = vadd.f32 %v7543_v59, %v8661_v42  ;;  %v3469_v7 = vadd.f32 %v7483_v52, %v8680_v41 }
 0x472   :  { %v1936_v60 = vpop.f32.mrb[110].mxu0  ;;  %v2584_v1 = vpop.f32.mrb[58].mxu1  ;;  %4607 = vmatprep.subr.bf16.mxu0 %v8527_v49  ;;  %v2895_v18 = vmax.f32 %v2795_v48, 0.0  ;;  %v3570_v47 = vmax.f32 %v3470_v17, 0.0  ;;  %v2799_v50 = vadd.f32 %v7291_v0, %v8662_v58  ;;  %v3474_v13 = vadd.f32 %v7467_v38, %v7076_v20 }
 0x473   :  { %2073 = vst.msk [vmem:[%s8304_s11 + $0x10] sm:$0xff] %vm2070_vm7, %v2047_v53  ;;  %4105 = vst.msk [vmem:[%s8304_s11 + $0xd8] sm:$0xff] %vm2070_vm7, %v2695_v40  ;;  %v4745_v55 = vadd.f32 %v7584_v16, %v1936_v60  ;;  %v4770_v32 = vadd.f32 %v7584_v16, %v2584_v1  ;;  %v1938_v11 = vpop.f32.mrb[111].mxu0  ;;  %v2586_v12 = vpop.f32.mrb[59].mxu1  ;;  %3245 = vmatmul.mubr.f32.gmra.mrb[166].mxu0 %v2886_v33  ;;  %3927 = vmatmul.mubr.f32.gmra.mrb[114].mxu1 %v3561_v34  ;;  %v8682_v40 = vld [vmem:[#allocation97_spill] sm:$0xff]  ;;  %v2894_v60 = vmax.f32 %v2794_v56, 0.0 }
 0x474   :  { %3249 = vmatprep.mubr.f32.mxu0 %v2891_v51  ;;  %3931 = vmatprep.mubr.f32.mxu1 %v3566_v19  ;;  %v2798_v20 = vadd.f32 %v7543_v59, %v8664_v25  ;;  %v3473_v33 = vadd.f32 %v7483_v52, %v8682_v40  ;;  %v3569_v1 = vmax.f32 %v3469_v7, 0.0  ;;  %v8683_v51 = vld [vmem:[#allocation9_spill] sm:$0xff]  ;;  %v2899_v17 = vmax.f32 %v2799_v50, 0.0  ;;  %v8684_v7 = vld [vmem:[#allocation98_spill] sm:$0xff] }
 0x475   :  { %v2048_v27 = vmax.f32 %v4745_v55, 0.0  ;;  %v2696_v26 = vmax.f32 %v4770_v32, 0.0  ;;  %4609 = vmatpush1.bf16.msra.mxu0 %v8681_v8  ;;  %v3574_v55 = vmax.f32 %v3474_v13, 0.0  ;;  %v2803_v32 = vadd.f32 %v7291_v0, %v8665_v28 }
 0x476   :  { %v1941_v24 = vpop.f32.mrb[112].mxu0  ;;  %v2589_v57 = vpop.f32.mrb[60].mxu1  ;;  %4610 = vmatprep.subr.bf16.mxu0 %v8527_v49  ;;  %v3478_v11 = vadd.f32 %v7467_v38, %v7094_v29  ;;  %v2898_v29 = vmax.f32 %v2798_v20, 0.0  ;;  %v2802_v56 = vadd.f32 %v7543_v59, %v8667_v15  ;;  %v3477_v8 = vadd.f32 %v7483_v52, %v8684_v7 }
 0x477   :  { %2074 = vst.msk [vmem:[%s8304_s11 + $0x18] sm:$0xff] %vm2070_vm7, %v2048_v27  ;;  %4106 = vst.msk [vmem:[%s8304_s11 + $0xe0] sm:$0xff] %vm2070_vm7, %v2696_v26  ;;  %v4746_v42 = vadd.f32 %v7584_v16, %v1941_v24  ;;  %v4771_v44 = vadd.f32 %v7584_v16, %v2589_v57  ;;  %v1943_v58 = vpop.f32.mrb[113].mxu0  ;;  %v2591_v53 = vpop.f32.mrb[61].mxu1  ;;  %3250 = vmatmul.mubr.f32.gmra.mrb[168].mxu0 %v2890_v9  ;;  %3932 = vmatmul.mubr.f32.gmra.mrb[116].mxu1 %v3565_v10  ;;  %v3573_v10 = vmax.f32 %v3473_v33, 0.0  ;;  %v8685_v24 = vld [vmem:[#allocation10_spill] sm:$0xff] }
 0x478   :  { %3254 = vmatprep.mubr.f32.mxu0 %v2895_v18  ;;  %3936 = vmatprep.mubr.f32.mxu1 %v3570_v47  ;;  %v2903_v47 = vmax.f32 %v2803_v32, 0.0  ;;  %v3578_v50 = vmax.f32 %v3478_v11, 0.0  ;;  %v2807_v13 = vadd.f32 %v7291_v0, %v8668_v43  ;;  %v8686_v53 = vld [vmem:[#allocation99_spill] sm:$0xff]  ;;  %v3486_v32 = vadd.f32 %v7467_v38, %v7126_v31 }
 0x479   :  { %v2049_v34 = vmax.f32 %v4746_v42, 0.0  ;;  %v2697_v35 = vmax.f32 %v4771_v44, 0.0  ;;  %4612 = vmatpush1.bf16.msra.mxu0 %v8683_v51  ;;  %v3482_v42 = vadd.f32 %v7467_v38, %v7112_v37  ;;  %v2806_v37 = vadd.f32 %v7543_v59, %v8670_v30 }
 0x47a   :  { %v1946_v19 = vpop.f32.mrb[114].mxu0  ;;  %v2594_v48 = vpop.f32.mrb[62].mxu1  ;;  %4613 = vmatprep.subr.bf16.mxu0 %v8527_v49  ;;  %v3481_v20 = vadd.f32 %v7483_v52, %v8686_v53 }
 0x47b   :  { %2075 = vst.msk [vmem:[%s8304_s11 + $0x20] sm:$0xff] %vm2070_vm7, %v2049_v34  ;;  %4107 = vst.msk [vmem:[%s8304_s11 + $0xe8] sm:$0xff] %vm2070_vm7, %v2697_v35  ;;  %v4747_v25 = vadd.f32 %v7584_v16, %v1946_v19  ;;  %v4772_v12 = vadd.f32 %v7584_v16, %v2594_v48  ;;  %v1948_v28 = vpop.f32.mrb[115].mxu0  ;;  %v2596_v9 = vpop.f32.mrb[63].mxu1  ;;  %3255 = vmatmul.mubr.f32.gmra.mrb[170].mxu0 %v2894_v60  ;;  %3937 = vmatmul.mubr.f32.gmra.mrb[118].mxu1 %v3569_v1  ;;  %v2902_v35 = vmax.f32 %v2802_v56, 0.0  ;;  %v8687_v1 = vld [vmem:[#allocation11_spill] sm:$0xff] }
 0x47c   :  { %3259 = vmatprep.mubr.f32.mxu0 %v2899_v17  ;;  %3941 = vmatprep.mubr.f32.mxu1 %v3574_v55  ;;  %v3577_v60 = vmax.f32 %v3477_v8, 0.0  ;;  %v2907_v48 = vmax.f32 %v2807_v13, 0.0  ;;  %v3582_v17 = vmax.f32 %v3482_v42, 0.0  ;;  %v2811_v55 = vadd.f32 %v7291_v0, %v8671_v5  ;;  %v8690_v42 = vld [vmem:[#allocation101_spill] sm:$0xff] }
 0x47d   :  { %v2050_v27 = vmax.f32 %v4747_v25, 0.0  ;;  %v2698_v26 = vmax.f32 %v4772_v12, 0.0  ;;  %4615 = vmatpush1.bf16.msra.mxu0 %v8685_v24  ;;  %v2906_v31 = vmax.f32 %v2806_v37, 0.0  ;;  %v3581_v12 = vmax.f32 %v3481_v20, 0.0  ;;  %v8691_v20 = vld [vmem:[#allocation13_spill] sm:$0xff] }
 0x47e   :  { %v1951_v57 = vpop.f32.mrb[116].mxu0  ;;  %v2599_v18 = vpop.f32.mrb[64].mxu1  ;;  %4616 = vmatprep.subr.bf16.mxu0 %v8527_v49  ;;  %v2911_v24 = vmax.f32 %v2811_v55, 0.0 }
 0x47f   :  { %2076 = vst.msk [vmem:[%s8304_s11 + $0x28] sm:$0xff] %vm2070_vm7, %v2050_v27  ;;  %4108 = vst.msk [vmem:[%s8304_s11 + $0xf0] sm:$0xff] %vm2070_vm7, %v2698_v26  ;;  %v4748_v15 = vadd.f32 %v7584_v16, %v1951_v57  ;;  %v4773_v44 = vadd.f32 %v7584_v16, %v2599_v18  ;;  %v1953_v43 = vpop.f32.mrb[117].mxu0  ;;  %v2601_v58 = vpop.f32.mrb[65].mxu1  ;;  %3260 = vmatmul.mubr.f32.gmra.mrb[172].mxu0 %v2898_v29  ;;  %3942 = vmatmul.mubr.f32.gmra.mrb[120].mxu1 %v3573_v10  ;;  %v8688_v10 = vld [vmem:[#allocation100_spill] sm:$0xff]  ;;  %v3586_v57 = vmax.f32 %v3486_v32, 0.0 }
 0x480   :  { %3264 = vmatprep.mubr.f32.mxu0 %v2903_v47  ;;  %3946 = vmatprep.mubr.f32.mxu1 %v3578_v50  ;;  %v2810_v29 = vadd.f32 %v7543_v59, %v8672_v14  ;;  %v3485_v27 = vadd.f32 %v7483_v52, %v8688_v10  ;;  %v8689_v26 = vld [vmem:[#allocation12_spill] sm:$0xff]  ;;  %v2815_v18 = vadd.f32 %v7291_v0, %v8674_v23 }
 0x481   :  { %v2051_v33 = vmax.f32 %v4748_v15, 0.0  ;;  %v2699_v34 = vmax.f32 %v4773_v44, 0.0  ;;  %4618 = vmatpush1.bf16.msra.mxu0 %v8687_v1  ;;  %v3490_v47 = vadd.f32 %v7467_v38, %v7140_v63  ;;  %v2814_v63 = vadd.f32 %v7543_v59, %v8675_v2 }
 0x482   :  { %v1956_v51 = vpop.f32.mrb[118].mxu0  ;;  %v2604_v19 = vpop.f32.mrb[66].mxu1  ;;  %4619 = vmatprep.subr.bf16.mxu0 %v8527_v49  ;;  %v3489_v15 = vadd.f32 %v7483_v52, %v8690_v42  ;;  %v2910_v58 = vmax.f32 %v2810_v29, 0.0  ;;  %v3585_v37 = vmax.f32 %v3485_v27, 0.0  ;;  %v2819_v1 = vadd.f32 %v7291_v0, %v8677_v54 }
 0x483   :  { %2077 = vst.msk [vmem:[%s8304_s11 + $0x30] sm:$0xff] %vm2070_vm7, %v2051_v33  ;;  %4109 = vst.msk [vmem:[%s8304_s11 + $0xf8] sm:$0xff] %vm2070_vm7, %v2699_v34  ;;  %v4749_v30 = vadd.f32 %v7584_v16, %v1956_v51  ;;  %v4774_v11 = vadd.f32 %v7584_v16, %v2604_v19  ;;  %v1958_v5 = vpop.f32.mrb[119].mxu0  ;;  %v2606_v25 = vpop.f32.mrb[67].mxu1  ;;  %3265 = vmatmul.mubr.f32.gmra.mrb[174].mxu0 %v2902_v35  ;;  %3947 = vmatmul.mubr.f32.gmra.mrb[122].mxu1 %v3577_v60  ;;  %v2915_v35 = vmax.f32 %v2815_v18, 0.0 }
 0x484   :  { %3269 = vmatprep.mubr.f32.mxu0 %v2907_v48  ;;  %3951 = vmatprep.mubr.f32.mxu1 %v3582_v17  ;;  %v3590_v60 = vmax.f32 %v3490_v47, 0.0  ;;  %v3494_v51 = vadd.f32 %v7467_v38, %v7154_v22  ;;  %v2914_v22 = vmax.f32 %v2814_v63, 0.0  ;;  %v3589_v48 = vmax.f32 %v3489_v15, 0.0  ;;  %v8693_v5 = vld [vmem:[#allocation14_spill] sm:$0xff] }
 0x485   :  { %v2052_v28 = vmax.f32 %v4749_v30, 0.0  ;;  %v2700_v9 = vmax.f32 %v4774_v11, 0.0  ;;  %4621 = vmatpush1.bf16.msra.mxu0 %v8689_v26  ;;  %v2818_v32 = vadd.f32 %v7543_v59, %v8678_v4  ;;  %v8692_v30 = vld [vmem:[#allocation102_spill] sm:$0xff]  ;;  %v3502_v15 = vadd.f32 %v7467_v38, %v7182_v21 }
 0x486   :  { %v1961_v56 = vpop.f32.mrb[120].mxu0  ;;  %v2609_v8 = vpop.f32.mrb[68].mxu1  ;;  %4622 = vmatprep.subr.bf16.mxu0 %v8527_v49  ;;  %v3493_v11 = vadd.f32 %v7483_v52, %v8692_v30 }
 0x487   :  { %2078 = vst.msk [vmem:[%s8304_s11 + $0x38] sm:$0xff] %vm2070_vm7, %v2052_v28  ;;  %4110 = vst.msk [vmem:[%s8304_s11 + $0x100] sm:$0xff] %vm2070_vm7, %v2700_v9  ;;  %v4750_v14 = vadd.f32 %v7584_v16, %v1961_v56  ;;  %v4775_v50 = vadd.f32 %v7584_v16, %v2609_v8  ;;  %v1963_v23 = vpop.f32.mrb[121].mxu0  ;;  %v2611_v13 = vpop.f32.mrb[69].mxu1  ;;  %3270 = vmatmul.mubr.f32.gmra.mrb[176].mxu0 %v2906_v31  ;;  %3952 = vmatmul.mubr.f32.gmra.mrb[124].mxu1 %v3581_v12  ;;  %v2919_v12 = vmax.f32 %v2819_v1, 0.0  ;;  %v8694_v56 = vld [vmem:[#allocation103_spill] sm:$0xff] }
 0x488   :  { %3274 = vmatprep.mubr.f32.mxu0 %v2911_v24  ;;  %3956 = vmatprep.mubr.f32.mxu1 %v3586_v57  ;;  %v3594_v28 = vmax.f32 %v3494_v51, 0.0  ;;  %v3498_v9 = vadd.f32 %v7467_v38, %v7168_v46  ;;  %v2822_v46 = vadd.f32 %v7543_v59, %v8680_v41  ;;  %v3497_v8 = vadd.f32 %v7483_v52, %v8694_v56 }
 0x489   :  { %v2053_v44 = vmax.f32 %v4750_v14, 0.0  ;;  %v2701_v43 = vmax.f32 %v4775_v50, 0.0  ;;  %4624 = vmatpush1.bf16.msra.mxu0 %v8691_v20  ;;  %v2918_v18 = vmax.f32 %v2818_v32, 0.0  ;;  %v3593_v47 = vmax.f32 %v3493_v11, 0.0  ;;  %v8695_v14 = vld [vmem:[#allocation15_spill] sm:$0xff]  ;;  %v8698_v32 = vld [vmem:[#allocation17_spill] sm:$0xff] }
 0x48a   :  { %v1966_v33 = vpop.f32.mrb[122].mxu0  ;;  %v2614_v34 = vpop.f32.mrb[70].mxu1  ;;  %4625 = vmatprep.subr.bf16.mxu0 %v8527_v49  ;;  %v2923_v13 = vmax.f32 %v7301_v62, 0.0  ;;  %v3598_v63 = vmax.f32 %v3498_v9, 0.0  ;;  %v2922_v21 = vmax.f32 %v2822_v46, 0.0 }
 0x48b   :  { %2079 = vst.msk [vmem:[%s8304_s11 + $0x40] sm:$0xff] %vm2070_vm7, %v2053_v44  ;;  %4111 = vst.msk [vmem:[%s8304_s11 + $0x108] sm:$0xff] %vm2070_vm7, %v2701_v43  ;;  %v4751_v2 = vadd.f32 %v7584_v16, %v1966_v33  ;;  %v4776_v19 = vadd.f32 %v7584_v16, %v2614_v34  ;;  %v1968_v0 = vpop.f32.mrb[123].mxu0  ;;  %v2616_v54 = vpop.f32.mrb[71].mxu1  ;;  %3275 = vmatmul.mubr.f32.gmra.mrb[178].mxu0 %v2910_v58  ;;  %3957 = vmatmul.mubr.f32.gmra.mrb[126].mxu1 %v3585_v37  ;;  %v3597_v58 = vmax.f32 %v3497_v8, 0.0  ;;  %v8696_v34 = vld [vmem:[#allocation104_spill] sm:$0xff] }
 0x48c   :  { %3279 = vmatprep.mubr.f32.mxu0 %v2915_v35  ;;  %3961 = vmatprep.mubr.f32.mxu1 %v3590_v60  ;;  %v2826_v33 = vadd.f32 %v7543_v59, %v8682_v40  ;;  %v3501_v35 = vadd.f32 %v7483_v52, %v8696_v34  ;;  %v8697_v60 = vld [vmem:[#allocation16_spill] sm:$0xff]  ;;  %v3506_v0 = vadd.f32 %v7467_v38, %v7204_v6  ;;  %v8699_v8 = vld [vmem:[#allocation41_spill] sm:$0xff] }
 0x48d   :  { %v2054_v17 = vmax.f32 %v4751_v2, 0.0  ;;  %v2702_v55 = vmax.f32 %v4776_v19, 0.0  ;;  %4627 = vmatpush1.bf16.msra.mxu0 %v8693_v5  ;;  %v2927_v2 = vmax.f32 %v7311_v45, 0.0  ;;  %v3602_v19 = vmax.f32 %v3502_v15, 0.0 }
 0x48e   :  { %v1971_v25 = vpop.f32.mrb[124].mxu0  ;;  %v2619_v31 = vpop.f32.mrb[72].mxu1  ;;  %4628 = vmatprep.subr.bf16.mxu0 %v8527_v49  ;;  %v3505_v6 = vadd.f32 %v7483_v52, %v7201_v3 }
 0x48f   :  { %2080 = vst.msk [vmem:[%s8304_s11 + $0x48] sm:$0xff] %vm2070_vm7, %v2054_v17  ;;  %4112 = vst.msk [vmem:[%s8304_s11 + $0x110] sm:$0xff] %vm2070_vm7, %v2702_v55  ;;  %v4752_v4 = vadd.f32 %v7584_v16, %v1971_v25  ;;  %v4777_v29 = vadd.f32 %v7584_v16, %v2619_v31  ;;  %v1973_v27 = vpop.f32.mrb[125].mxu0  ;;  %v2621_v26 = vpop.f32.mrb[73].mxu1  ;;  %3280 = vmatmul.mubr.f32.gmra.mrb[180].mxu0 %v2914_v22  ;;  %3962 = vmatmul.mubr.f32.gmra.mrb[128].mxu1 %v3589_v48  ;;  %v2926_v17 = vmax.f32 %v2826_v33, 0.0 }
 0x490   :  { %3284 = vmatprep.mubr.f32.mxu0 %v2919_v12  ;;  %3966 = vmatprep.mubr.f32.mxu1 %v3594_v28  ;;  %v3601_v55 = vmax.f32 %v3501_v35, 0.0  ;;  %v2931_v25 = vmax.f32 %v7323_v61, 0.0  ;;  %v3606_v31 = vmax.f32 %v3506_v0, 0.0  ;;  %v2834_v27 = vadd.f32 %v7543_v59, %v8686_v53 }
 0x491   :  { %v2055_v24 = vmax.f32 %v4752_v4, 0.0  ;;  %v2703_v57 = vmax.f32 %v4777_v29, 0.0  ;;  %4630 = vmatpush1.bf16.msra.mxu0 %v8695_v14  ;;  %v3605_v29 = vmax.f32 %v3505_v6, 0.0  ;;  %v2842_v33 = vadd.f32 %v7543_v59, %v8690_v42 }
 0x492   :  { %v1976_v50 = vpop.f32.mrb[126].mxu0  ;;  %v2624_v23 = vpop.f32.mrb[74].mxu1  ;;  %4631 = vmatprep.subr.bf16.mxu0 %v8527_v49 }
 0x493   :  { %2081 = vst.msk [vmem:[%s8304_s11 + $0x50] sm:$0xff] %vm2070_vm7, %v2055_v24  ;;  %4113 = vst.msk [vmem:[%s8304_s11 + $0x118] sm:$0xff] %vm2070_vm7, %v2703_v57  ;;  %v4753_v41 = vadd.f32 %v7584_v16, %v1976_v50  ;;  %v4778_v62 = vadd.f32 %v7584_v16, %v2624_v23  ;;  %v1978_v44 = vpop.f32.mrb[127].mxu0  ;;  %v2626_v43 = vpop.f32.mrb[75].mxu1  ;;  %3285 = vmatmul.mubr.f32.gmra.mrb[182].mxu0 %v2918_v18  ;;  %3967 = vmatmul.mubr.f32.gmra.mrb[130].mxu1 %v3593_v47  ;;  %v2935_v24 = vmax.f32 %v8699_v8, 0.0 }
 0x494   :  { %3289 = vmatprep.mubr.f32.mxu0 %v2923_v13  ;;  %3971 = vmatprep.mubr.f32.mxu1 %v3598_v63  ;;  %v2934_v23 = vmax.f32 %v2834_v27, 0.0  ;;  %v2838_v13 = vadd.f32 %v7543_v59, %v8688_v10 }
 0x495   :  { %v2056_v37 = vmax.f32 %v4753_v41, 0.0  ;;  %v2704_v20 = vmax.f32 %v4778_v62, 0.0  ;;  %4633 = vmatpush1.bf16.msra.mxu0 %v8697_v60  ;;  %v8700_v41 = vld [vmem:[#allocation24_spill] sm:$0xff] }
 0x496   :  { %v1981_v1 = vpop.f32.mrb[128].mxu0  ;;  %v2629_v51 = vpop.f32.mrb[76].mxu1  ;;  %4634 = vmatprep.subr.bf16.mxu0 %v8527_v49  ;;  %v2830_v49 = vadd.f32 %v7543_v59, %v8684_v7  ;;  %v2939_v62 = vmax.f32 %v8700_v41, 0.0 }
 0x497   :  { %2082 = vst.msk [vmem:[%s8304_s11 + $0x58] sm:$0xff] %vm2070_vm7, %v2056_v37  ;;  %4114 = vst.msk [vmem:[%s8304_s11 + $0x120] sm:$0xff] %vm2070_vm7, %v2704_v20  ;;  %v4754_v40 = vadd.f32 %v7584_v16, %v1981_v1  ;;  %v4779_v45 = vadd.f32 %v7584_v16, %v2629_v51  ;;  %v1983_v54 = vpop.f32.mrb[129].mxu0  ;;  %v2631_v22 = vpop.f32.mrb[77].mxu1  ;;  %3290 = vmatmul.mubr.f32.gmra.mrb[184].mxu0 %v2922_v21  ;;  %3972 = vmatmul.mubr.f32.gmra.mrb[132].mxu1 %v3597_v58  ;;  %v2938_v20 = vmax.f32 %v2838_v13, 0.0  ;;  %v8701_v1 = vld [vmem:[#allocation40_spill] sm:$0xff] }
 0x498   :  { %3294 = vmatprep.mubr.f32.mxu0 %v2927_v2  ;;  %3976 = vmatprep.mubr.f32.mxu1 %v3602_v19  ;;  %v2930_v61 = vmax.f32 %v2830_v49, 0.0  ;;  %v2943_v51 = vmax.f32 %v8701_v1, 0.0  ;;  %v2942_v54 = vmax.f32 %v2842_v33, 0.0  ;;  %v2846_v22 = vadd.f32 %v7543_v59, %v8692_v30 }
 0x499   :  { %v2057_v38 = vmax.f32 %v4754_v40, 0.0  ;;  %v2705_v48 = vmax.f32 %v4779_v45, 0.0  ;;  %4636 = vmatpush1.bf16.msra.mxu0 %v8698_v32 }
 0x49a   :  { %v1986_v11 = vpop.f32.mrb[130].mxu0  ;;  %v2634_v5 = vpop.f32.mrb[78].mxu1 }
 0x49b   :  { %2083 = vst.msk [vmem:[%s8304_s11 + $0x60] sm:$0xff] %vm2070_vm7, %v2057_v38  ;;  %4115 = vst.msk [vmem:[%s8304_s11 + $0x128] sm:$0xff] %vm2070_vm7, %v2705_v48  ;;  %v4755_v52 = vadd.f32 %v7584_v16, %v1986_v11  ;;  %v4780_v7 = vadd.f32 %v7584_v16, %v2634_v5  ;;  %v1988_v12 = vpop.f32.mrb[131].mxu0  ;;  %v2636_v28 = vpop.f32.mrb[79].mxu1  ;;  %3295 = vmatmul.mubr.f32.gmra.mrb[186].mxu0 %v2926_v17  ;;  %3977 = vmatmul.mubr.f32.gmra.mrb[134].mxu1 %v3601_v55  ;;  %v8702_v38 = vld [vmem:[#allocation44_spill] sm:$0xff] }
 0x49c   :  { %3299 = vmatprep.mubr.f32.mxu0 %v2931_v25  ;;  %3981 = vmatprep.mubr.f32.mxu1 %v3606_v31  ;;  %v2947_v48 = vmax.f32 %v8702_v38, 0.0  ;;  %v2946_v25 = vmax.f32 %v2846_v22, 0.0  ;;  %v2850_v31 = vadd.f32 %v7543_v59, %v8694_v56  ;;  %v8703_v12 = vld [vmem:[#allocation27_spill] sm:$0xff]  ;;  %v8709_v38 = vld [vmem:[#allocation20_spill] sm:$0xff] }
 0x49d   :  { %v2058_v9 = vmax.f32 %v4755_v52, 0.0  ;;  %v2706_v4 = vmax.f32 %v4780_v7, 0.0  ;;  %v2951_v28 = vmax.f32 %v8703_v12, 0.0 }
 0x49e   :  { %v1991_v26 = vpop.f32.mrb[132].mxu0  ;;  %v2639_v46 = vpop.f32.mrb[80].mxu1 }
 0x49f   :  { %2084 = vst.msk [vmem:[%s8304_s11 + $0x68] sm:$0xff] %vm2070_vm7, %v2058_v9  ;;  %4116 = vst.msk [vmem:[%s8304_s11 + $0x130] sm:$0xff] %vm2070_vm7, %v2706_v4  ;;  %v4756_v57 = vadd.f32 %v7584_v16, %v1991_v26  ;;  %v4781_v18 = vadd.f32 %v7584_v16, %v2639_v46  ;;  %v1993_v47 = vpop.f32.mrb[133].mxu0  ;;  %v2641_v53 = vpop.f32.mrb[81].mxu1  ;;  %3300 = vmatmul.mubr.f32.gmra.mrb[188].mxu0 %v2930_v61  ;;  %3982 = vmatmul.mubr.f32.gmra.mrb[136].mxu1 %v3605_v29  ;;  %v2950_v26 = vmax.f32 %v2850_v31, 0.0 }
 0x4a0   :  { %3304 = vmatprep.mubr.f32.mxu0 %v2935_v24  ;;  %v2854_v46 = vadd.f32 %v7543_v59, %v8696_v34 }
 0x4a1   :  { %v2059_v14 = vmax.f32 %v4756_v57, 0.0  ;;  %v2707_v50 = vmax.f32 %v4781_v18, 0.0  ;;  %v8704_v57 = vld [vmem:[#allocation43_spill] sm:$0xff] }
 0x4a2   :  { %v1996_v63 = vpop.f32.mrb[134].mxu0  ;;  %v2644_v15 = vpop.f32.mrb[82].mxu1  ;;  %v2955_v18 = vmax.f32 %v8704_v57, 0.0  ;;  %v2954_v13 = vmax.f32 %v2854_v46, 0.0 }
 0x4a3   :  { %2085 = vst.msk [vmem:[%s8304_s11 + $0x70] sm:$0xff] %vm2070_vm7, %v2059_v14  ;;  %4117 = vst.msk [vmem:[%s8304_s11 + $0x138] sm:$0xff] %vm2070_vm7, %v2707_v50  ;;  %v4757_v44 = vadd.f32 %v7584_v16, %v1996_v63  ;;  %v4782_v43 = vadd.f32 %v7584_v16, %v2644_v15  ;;  %v1998_v21 = vpop.f32.mrb[135].mxu0  ;;  %v2646_v10 = vpop.f32.mrb[83].mxu1  ;;  %3305 = vmatmul.mubr.f32.gmra.mrb[190].mxu0 %v2934_v23  ;;  %v2858_v63 = vadd.f32 %v7543_v59, %v7201_v3 }
 0x4a4   :  { %3309 = vmatprep.mubr.f32.mxu0 %v2939_v62  ;;  %v8705_v62 = vld [vmem:[#allocation47_spill] sm:$0xff] }
 0x4a5   :  { %v2060_v58 = vmax.f32 %v4757_v44, 0.0  ;;  %v2708_v37 = vmax.f32 %v4782_v43, 0.0  ;;  %v2959_v44 = vmax.f32 %v8705_v62, 0.0  ;;  %v8706_v43 = vld [vmem:[#allocation19_spill] sm:$0xff] }
 0x4a6   :  { %v2001_v35 = vpop.f32.mrb[136].mxu0  ;;  %v2649_v60 = vpop.f32.mrb[84].mxu1  ;;  %v3408_v21 = vadd.f32 %v7198_v36, %v8706_v43 }
 0x4a7   :  { %2086 = vst.msk [vmem:[%s8304_s11 + $0x78] sm:$0xff] %vm2070_vm7, %v2060_v58  ;;  %4118 = vst.msk [vmem:[%s8304_s11 + $0x140] sm:$0xff] %vm2070_vm7, %v2708_v37  ;;  %v4758_v2 = vadd.f32 %v7584_v16, %v2001_v35  ;;  %v4783_v19 = vadd.f32 %v7584_v16, %v2649_v60  ;;  %v2003_v0 = vpop.f32.mrb[137].mxu0  ;;  %v2651_v42 = vpop.f32.mrb[85].mxu1  ;;  %3310 = vmatmul.mubr.f32.gmra.mrb[192].mxu0 %v2938_v20  ;;  %v8707_v37 = vld [vmem:[#allocation18_spill] sm:$0xff]  ;;  %v2958_v60 = vmax.f32 %v2858_v63, 0.0 }
 0x4a8   :  { %3314 = vmatprep.mubr.f32.mxu0 %v2943_v51  ;;  %v3407_v20 = vadd.f32 %v7224_v39, %v8707_v37  ;;  %v8714_v63 = vld [vmem:[#allocation29_spill] sm:$0xff] }
 0x4a9   :  { %v2061_v40 = vmax.f32 %v4758_v2, 0.0  ;;  %v2709_v45 = vmax.f32 %v4783_v19, 0.0  ;;  %v3508_v2 = vmax.f32 %v3408_v21, 0.0  ;;  %v8708_v19 = vld [vmem:[#allocation21_spill] sm:$0xff] }
 0x4aa   :  { %v2006_v49 = vpop.f32.mrb[138].mxu0  ;;  %v2654_v6 = vpop.f32.mrb[86].mxu1  ;;  %v3412_v0 = vadd.f32 %v7198_v36, %v8708_v19  ;;  %v3507_v22 = vmax.f32 %v3407_v20, 0.0  ;;  %v8716_v20 = vld [vmem:[#allocation32_spill] sm:$0xff] }
 0x4ab   :  { %2087 = vst.msk [vmem:[%s8304_s11 + $0x80] sm:$0xff] %vm2070_vm7, %v2061_v40  ;;  %4119 = vst.msk [vmem:[%s8304_s11 + $0x148] sm:$0xff] %vm2070_vm7, %v2709_v45  ;;  %v4759_v17 = vadd.f32 %v7584_v16, %v2006_v49  ;;  %v4784_v55 = vadd.f32 %v7584_v16, %v2654_v6  ;;  %v2008_v32 = vpop.f32.mrb[139].mxu0  ;;  %v2656_v30 = vpop.f32.mrb[87].mxu1  ;;  %3315 = vmatmul.mubr.f32.gmra.mrb[194].mxu0 %v2942_v54 }
 0x4ac   :  { %3319 = vmatprep.mubr.f32.mxu0 %v2947_v48  ;;  %v3411_v48 = vadd.f32 %v7224_v39, %v8709_v38  ;;  %v3512_v32 = vmax.f32 %v3412_v0, 0.0  ;;  %v8710_v30 = vld [vmem:[#allocation23_spill] sm:$0xff]  ;;  %v8719_v0 = vld [vmem:[#allocation34_spill] sm:$0xff] }
 0x4ad   :  { %v2062_v11 = vmax.f32 %v4759_v17, 0.0  ;;  %v2710_v5 = vmax.f32 %v4784_v55, 0.0 }
 0x4ae   :  { %v2011_v52 = vpop.f32.mrb[140].mxu0  ;;  %v2659_v7 = vpop.f32.mrb[88].mxu1 }
 0x4af   :  { %2088 = vst.msk [vmem:[%s8304_s11 + $0x88] sm:$0xff] %vm2070_vm7, %v2062_v11  ;;  %4120 = vst.msk [vmem:[%s8304_s11 + $0x150] sm:$0xff] %vm2070_vm7, %v2710_v5  ;;  %v4760_v61 = vadd.f32 %v7584_v16, %v2011_v52  ;;  %v4785_v9 = vadd.f32 %v7584_v16, %v2659_v7  ;;  %v2013_v4 = vpop.f32.mrb[141].mxu0  ;;  %v2661_v56 = vpop.f32.mrb[89].mxu1  ;;  %3320 = vmatmul.mubr.f32.gmra.mrb[196].mxu0 %v2946_v25  ;;  %v3416_v11 = vadd.f32 %v7198_v36, %v8710_v30 }
 0x4b0   :  { %3324 = vmatprep.mubr.f32.mxu0 %v2951_v28  ;;  %v3511_v28 = vmax.f32 %v3411_v48, 0.0 }
 0x4b1   :  { %v2063_v29 = vmax.f32 %v4760_v61, 0.0  ;;  %v2711_v27 = vmax.f32 %v4785_v9, 0.0  ;;  %v8711_v61 = vld [vmem:[#allocation22_spill] sm:$0xff] }
 0x4b2   :  { %v2016_v8 = vpop.f32.mrb[142].mxu0  ;;  %v2664_v24 = vpop.f32.mrb[90].mxu1  ;;  %v3415_v9 = vadd.f32 %v7224_v39, %v8711_v61 }
 0x4b3   :  { %2089 = vst.msk [vmem:[%s8304_s11 + $0x90] sm:$0xff] %vm2070_vm7, %v2063_v29  ;;  %4121 = vst.msk [vmem:[%s8304_s11 + $0x158] sm:$0xff] %vm2070_vm7, %v2711_v27  ;;  %v4761_v47 = vadd.f32 %v7584_v16, %v2016_v8  ;;  %v4786_v53 = vadd.f32 %v7584_v16, %v2664_v24  ;;  %v2018_v14 = vpop.f32.mrb[143].mxu0  ;;  %v2666_v34 = vpop.f32.mrb[91].mxu1  ;;  %3325 = vmatmul.mubr.f32.gmra.mrb[198].mxu0 %v2950_v26  ;;  %v3516_v29 = vmax.f32 %v3416_v11, 0.0  ;;  %v8712_v27 = vld [vmem:[#allocation26_spill] sm:$0xff] }
 0x4b4   :  { %3329 = vmatprep.mubr.f32.mxu0 %v2955_v18  ;;  %v3420_v26 = vadd.f32 %v7198_v36, %v8712_v27  ;;  %v8713_v14 = vld [vmem:[#allocation25_spill] sm:$0xff] }
 0x4b5   :  { %v2064_v50 = vmax.f32 %v4761_v47, 0.0  ;;  %v2712_v23 = vmax.f32 %v4786_v53, 0.0  ;;  %v3515_v53 = vmax.f32 %v3415_v9, 0.0  ;;  %v3419_v34 = vadd.f32 %v7224_v39, %v8713_v14 }
 0x4b6   :  { %v2021_v15 = vpop.f32.mrb[144].mxu0  ;;  %v2669_v41 = vpop.f32.mrb[92].mxu1 }
 0x4b7   :  { %2090 = vst.msk [vmem:[%s8304_s11 + $0x98] sm:$0xff] %vm2070_vm7, %v2064_v50  ;;  %4122 = vst.msk [vmem:[%s8304_s11 + $0x160] sm:$0xff] %vm2070_vm7, %v2712_v23  ;;  %v4762_v10 = vadd.f32 %v7584_v16, %v2021_v15  ;;  %v4787_v3 = vadd.f32 %v7584_v16, %v2669_v41  ;;  %v2023_v59 = vpop.f32.mrb[145].mxu0  ;;  %v2671_v58 = vpop.f32.mrb[93].mxu1  ;;  %3330 = vmatmul.mubr.f32.gmra.mrb[200].mxu0 %v2954_v13  ;;  %v3520_v13 = vmax.f32 %v3420_v26, 0.0 }
 0x4b8   :  { %3334 = vmatprep.mubr.f32.mxu0 %v2959_v44  ;;  %v3424_v15 = vadd.f32 %v7198_v36, %v8714_v63  ;;  %v8715_v59 = vld [vmem:[#allocation28_spill] sm:$0xff] }
 0x4b9   :  { %v2065_v33 = vmax.f32 %v4762_v10, 0.0  ;;  %v2713_v35 = vmax.f32 %v4787_v3, 0.0  ;;  %v3519_v3 = vmax.f32 %v3419_v34, 0.0  ;;  %v3423_v58 = vadd.f32 %v7224_v39, %v8715_v59 }
 0x4ba   :  { %v2026_v1 = vpop.f32.mrb[146].mxu0  ;;  %v2674_v51 = vpop.f32.mrb[94].mxu1  ;;  %v3524_v37 = vmax.f32 %v3424_v15, 0.0 }
 0x4bb   :  { %2091 = vst.msk [vmem:[%s8304_s11 + $0xa0] sm:$0xff] %vm2070_vm7, %v2065_v33  ;;  %4123 = vst.msk [vmem:[%s8304_s11 + $0x168] sm:$0xff] %vm2070_vm7, %v2713_v35  ;;  %v4763_v42 = vadd.f32 %v7584_v16, %v2026_v1  ;;  %v4788_v40 = vadd.f32 %v7584_v16, %v2674_v51  ;;  %v2028_v45 = vpop.f32.mrb[147].mxu0  ;;  %v2676_v54 = vpop.f32.mrb[95].mxu1  ;;  %3335 = vmatmul.mubr.f32.gmra.mrb[202].mxu0 %v2958_v60  ;;  %v3428_v33 = vadd.f32 %v7198_v36, %v8716_v20  ;;  %v8717_v35 = vld [vmem:[#allocation31_spill] sm:$0xff] }
 0x4bc   :  { %3671 = vmatprep.mubr.f32.mxu0 %v3508_v2  ;;  %v3427_v60 = vadd.f32 %v7224_v39, %v8717_v35  ;;  %v8718_v51 = vld [vmem:[#allocation35_spill] sm:$0xff] }
 0x4bd   :  { %v2066_v49 = vmax.f32 %v4763_v42, 0.0  ;;  %v2714_v6 = vmax.f32 %v4788_v40, 0.0  ;;  %v3528_v1 = vmax.f32 %v3428_v33, 0.0  ;;  %v3432_v2 = vadd.f32 %v7198_v36, %v8718_v51 }
 0x4be   :  { %v2031_v17 = vpop.f32.mrb[148].mxu0  ;;  %v2679_v55 = vpop.f32.mrb[96].mxu1  ;;  %v3527_v19 = vmax.f32 %v3427_v60, 0.0  ;;  %v3431_v42 = vadd.f32 %v7224_v39, %v8719_v0 }
 0x4bf   :  { %2092 = vst.msk [vmem:[%s8304_s11 + $0xa8] sm:$0xff] %vm2070_vm7, %v2066_v49  ;;  %4124 = vst.msk [vmem:[%s8304_s11 + $0x170] sm:$0xff] %vm2070_vm7, %v2714_v6  ;;  %v4764_v5 = vadd.f32 %v7584_v16, %v2031_v17  ;;  %v4789_v25 = vadd.f32 %v7584_v16, %v2679_v55  ;;  %v2033_v31 = vpop.f32.mrb[149].mxu0  ;;  %v2681_v52 = vpop.f32.mrb[97].mxu1  ;;  %3672 = vmatmul.mubr.f32.vlgmr.msra.gmra.mrb[204].mxu0 %v3507_v22  ;;  %v3532_v40 = vmax.f32 %v3432_v2, 0.0 }
 0x4c0   :  { %3676 = vmatprep.mubr.f32.mxu0 %v3512_v32  ;;  %v3531_v45 = vmax.f32 %v3431_v42, 0.0  ;;  %v8034_v52 = vld [vmem:[%s8303_s10] ss:$0 sm:$0xff] }
 0x4c1   :  { %v2067_v7 = vmax.f32 %v4764_v5, 0.0  ;;  %v2715_v12 = vmax.f32 %v4789_v25, 0.0 }
 0x4c2   :  { %v2036_v4 = vpop.f32.mrb[150].mxu0  ;;  %v2684_v56 = vpop.f32.mrb[98].mxu1 }
 0x4c3   :  { %2093 = vst.msk [vmem:[%s8304_s11 + $0xb0] sm:$0xff] %vm2070_vm7, %v2067_v7  ;;  %4125 = vst.msk [vmem:[%s8304_s11 + $0x178] sm:$0xff] %vm2070_vm7, %v2715_v12  ;;  %v4765_v46 = vadd.f32 %v7584_v16, %v2036_v4  ;;  %v4790_v8 = vadd.f32 %v7584_v16, %v2684_v56  ;;  %v2038_v24 = vpop.f32.mrb[151].mxu0  ;;  %v2686_v57 = vpop.f32.mrb[99].mxu1  ;;  %3677 = vmatmul.mubr.f32.gmra.mrb[206].mxu0 %v3511_v28 }
 0x4c4   :  { %3681 = vmatprep.mubr.f32.mxu0 %v3516_v29 }
 0x4c5   :  { %v2068_v18 = vmax.f32 %v4765_v46, 0.0  ;;  %v2716_v47 = vmax.f32 %v4790_v8, 0.0 }
 0x4c6   :  { %v2041_v50 = vpop.f32.mrb[152].mxu0  ;;  %v2689_v23 = vpop.f32.mrb[100].mxu1 }
 0x4c7   :  { %2094 = vst.msk [vmem:[%s8304_s11 + $0xb8] sm:$0xff] %vm2070_vm7, %v2068_v18  ;;  %4126 = vst.msk [vmem:[%s8304_s11 + $0x180] sm:$0xff] %vm2070_vm7, %v2716_v47  ;;  %v4766_v41 = vadd.f32 %v7584_v16, %v2041_v50  ;;  %v4791_v62 = vadd.f32 %v7584_v16, %v2689_v23  ;;  %v2043_v44 = vpop.f32.mrb[153].mxu0  ;;  %v2691_v43 = vpop.f32.mrb[101].mxu1  ;;  %3682 = vmatmul.mubr.f32.gmra.mrb[208].mxu0 %v3515_v53  ;;  %v3523_v16 = vmax.f32 %v3423_v58, 0.0 }
 0x4c8   :  { %3686 = vmatprep.mubr.f32.mxu0 %v3520_v13 }
 0x4c9   :  { %v2069_v21 = vmax.f32 %v4766_v41, 0.0  ;;  %v2717_v10 = vmax.f32 %v4791_v62, 0.0 }
 0x4cb   :  { %2096 = vst.msk [vmem:[%s8304_s11 + $0xc0] sm:$0xf] %vm2095_vm8, %v2069_v21  ;;  %4127 = vst.msk [vmem:[%s8304_s11 + $0x188] sm:$0xf] %vm2095_vm8, %v2717_v10  ;;  %3687 = vmatmul.mubr.f32.gmra.mrb[210].mxu0 %v3519_v3 }
 0x4cc   :  { %3691 = vmatprep.mubr.f32.mxu0 %v3524_v37 }
 0x4cf   :  { %3692 = vmatmul.mubr.f32.gmra.mrb[212].mxu0 %v3523_v16 }
 0x4d0   :  { %3696 = vmatprep.mubr.f32.mxu0 %v3528_v1 }
 0x4d3   :  { %3697 = vmatmul.mubr.f32.gmra.mrb[214].mxu0 %v3527_v19 }
 0x4d4   :  { %3701 = vmatprep.mubr.f32.mxu0 %v3532_v40 }
 0x4d7   :  { %3702 = vmatmul.mubr.f32.gmra.mrb[216].mxu0 %v3531_v45 }
 0x512   :  { %v8017_v54 = vpop.f32.mrb[138].mxu1 }
 0x513   :  { %v3865_v22 = vpop.f32.mrb[139].mxu1 }
 0x516   :  { %v8019_v49 = vpop.f32.mrb[140].mxu1 }
 0x517   :  { %v3870_v6 = vpop.f32.mrb[141].mxu1 }
 0x51a   :  { %v8021_v38 = vpop.f32.mrb[142].mxu1 }
 0x51b   :  { %v3875_v36 = vpop.f32.mrb[143].mxu1 }
 0x51e   :  { %v8023_v48 = vpop.f32.mrb[144].mxu1 }
 0x51f   :  { %v3880_v17 = vpop.f32.mrb[145].mxu1 }
 0x522   :  { %v8025_v55 = vpop.f32.mrb[146].mxu1 }
 0x523   :  { %v3885_v39 = vpop.f32.mrb[147].mxu1 }
 0x526   :  { %v8027_v32 = vpop.f32.mrb[148].mxu1 }
 0x527   :  { %v3890_v30 = vpop.f32.mrb[149].mxu1 }
 0x52a   :  { %v8029_v11 = vpop.f32.mrb[150].mxu1 }
 0x52b   :  { %v3895_v5 = vpop.f32.mrb[151].mxu1 }
 0x52e   :  { %v3216_v25 = vpop.f32.mrb[154].mxu0  ;;  %v3898_v31 = vpop.f32.mrb[102].mxu1 }
 0x52f   :  { %v4792_v7 = vadd.f32 %v8034_v52, %v3216_v25  ;;  %v4831_v12 = vadd.f32 %v8034_v52, %v3898_v31  ;;  %v3218_v28 = vpop.f32.mrb[155].mxu0  ;;  %v3900_v61 = vpop.f32.mrb[103].mxu1 }
 0x531   :  { %v3340_v9 = vmax.f32 %v4792_v7, 0.0  ;;  %v3994_v4 = vmax.f32 %v4831_v12, 0.0 }
 0x532   :  { %v3221_v56 = vpop.f32.mrb[156].mxu0  ;;  %v3903_v29 = vpop.f32.mrb[104].mxu1 }
 0x533   :  { %4128 = vst.msk [vmem:[%s8304_s11 + $0x190] sm:$0xff] %vm2070_vm7, %v3340_v9  ;;  %4160 = vst.msk [vmem:[%s8304_s11 + $0x290] sm:$0xff] %vm2070_vm7, %v3994_v4  ;;  %v4793_v27 = vadd.f32 %v8034_v52, %v3221_v56  ;;  %v4832_v26 = vadd.f32 %v8034_v52, %v3903_v29  ;;  %v3223_v46 = vpop.f32.mrb[157].mxu0  ;;  %v3905_v8 = vpop.f32.mrb[105].mxu1 }
 0x535   :  { %v3341_v24 = vmax.f32 %v4793_v27, 0.0  ;;  %v3995_v57 = vmax.f32 %v4832_v26, 0.0 }
 0x536   :  { %v3226_v18 = vpop.f32.mrb[158].mxu0  ;;  %v3908_v47 = vpop.f32.mrb[106].mxu1 }
 0x537   :  { %4129 = vst.msk [vmem:[%s8304_s11 + $0x198] sm:$0xff] %vm2070_vm7, %v3341_v24  ;;  %4161 = vst.msk [vmem:[%s8304_s11 + $0x298] sm:$0xff] %vm2070_vm7, %v3995_v57  ;;  %v4794_v53 = vadd.f32 %v8034_v52, %v3226_v18  ;;  %v4833_v14 = vadd.f32 %v8034_v52, %v3908_v47  ;;  %v3228_v34 = vpop.f32.mrb[159].mxu0  ;;  %v3910_v50 = vpop.f32.mrb[107].mxu1 }
 0x539   :  { %v3342_v23 = vmax.f32 %v4794_v53, 0.0  ;;  %v3996_v13 = vmax.f32 %v4833_v14, 0.0 }
 0x53a   :  { %v3231_v63 = vpop.f32.mrb[160].mxu0  ;;  %v3913_v15 = vpop.f32.mrb[108].mxu1 }
 0x53b   :  { %4130 = vst.msk [vmem:[%s8304_s11 + $0x1a0] sm:$0xff] %vm2070_vm7, %v3342_v23  ;;  %4162 = vst.msk [vmem:[%s8304_s11 + $0x2a0] sm:$0xff] %vm2070_vm7, %v3996_v13  ;;  %v4795_v41 = vadd.f32 %v8034_v52, %v3231_v63  ;;  %v4834_v62 = vadd.f32 %v8034_v52, %v3913_v15  ;;  %v3233_v44 = vpop.f32.mrb[161].mxu0  ;;  %v3915_v43 = vpop.f32.mrb[109].mxu1 }
 0x53d   :  { %v3343_v21 = vmax.f32 %v4795_v41, 0.0  ;;  %v3997_v10 = vmax.f32 %v4834_v62, 0.0 }
 0x53e   :  { %v3236_v3 = vpop.f32.mrb[162].mxu0  ;;  %v3918_v59 = vpop.f32.mrb[110].mxu1 }
 0x53f   :  { %4131 = vst.msk [vmem:[%s8304_s11 + $0x1a8] sm:$0xff] %vm2070_vm7, %v3343_v21  ;;  %4163 = vst.msk [vmem:[%s8304_s11 + $0x2a8] sm:$0xff] %vm2070_vm7, %v3997_v10  ;;  %v4796_v58 = vadd.f32 %v8034_v52, %v3236_v3  ;;  %v4835_v37 = vadd.f32 %v8034_v52, %v3918_v59  ;;  %v3238_v20 = vpop.f32.mrb[163].mxu0  ;;  %v3920_v33 = vpop.f32.mrb[111].mxu1 }
 0x541   :  { %v3344_v16 = vmax.f32 %v4796_v58, 0.0  ;;  %v3998_v35 = vmax.f32 %v4835_v37, 0.0 }
 0x542   :  { %v3241_v60 = vpop.f32.mrb[164].mxu0  ;;  %v3923_v1 = vpop.f32.mrb[112].mxu1 }
 0x543   :  { %4132 = vst.msk [vmem:[%s8304_s11 + $0x1b0] sm:$0xff] %vm2070_vm7, %v3344_v16  ;;  %4164 = vst.msk [vmem:[%s8304_s11 + $0x2b0] sm:$0xff] %vm2070_vm7, %v3998_v35  ;;  %v4797_v51 = vadd.f32 %v8034_v52, %v3241_v60  ;;  %v4836_v2 = vadd.f32 %v8034_v52, %v3923_v1  ;;  %v3243_v19 = vpop.f32.mrb[165].mxu0  ;;  %v3925_v0 = vpop.f32.mrb[113].mxu1 }
 0x545   :  { %v3345_v42 = vmax.f32 %v4797_v51, 0.0  ;;  %v3999_v40 = vmax.f32 %v4836_v2, 0.0 }
 0x546   :  { %v3246_v45 = vpop.f32.mrb[166].mxu0  ;;  %v3928_v22 = vpop.f32.mrb[114].mxu1 }
 0x547   :  { %4133 = vst.msk [vmem:[%s8304_s11 + $0x1b8] sm:$0xff] %vm2070_vm7, %v3345_v42  ;;  %4165 = vst.msk [vmem:[%s8304_s11 + $0x2b8] sm:$0xff] %vm2070_vm7, %v3999_v40  ;;  %v4798_v6 = vadd.f32 %v8034_v52, %v3246_v45  ;;  %v4837_v36 = vadd.f32 %v8034_v52, %v3928_v22  ;;  %v3248_v17 = vpop.f32.mrb[167].mxu0  ;;  %v3930_v39 = vpop.f32.mrb[115].mxu1 }
 0x549   :  { %v3346_v30 = vmax.f32 %v4798_v6, 0.0  ;;  %v4000_v5 = vmax.f32 %v4837_v36, 0.0 }
 0x54a   :  { %v3251_v25 = vpop.f32.mrb[168].mxu0  ;;  %v3933_v31 = vpop.f32.mrb[116].mxu1 }
 0x54b   :  { %4134 = vst.msk [vmem:[%s8304_s11 + $0x1c0] sm:$0xff] %vm2070_vm7, %v3346_v30  ;;  %4166 = vst.msk [vmem:[%s8304_s11 + $0x2c0] sm:$0xff] %vm2070_vm7, %v4000_v5  ;;  %v4799_v7 = vadd.f32 %v8034_v52, %v3251_v25  ;;  %v4838_v12 = vadd.f32 %v8034_v52, %v3933_v31  ;;  %v3253_v28 = vpop.f32.mrb[169].mxu0  ;;  %v3935_v61 = vpop.f32.mrb[117].mxu1 }
 0x54d   :  { %v3347_v9 = vmax.f32 %v4799_v7, 0.0  ;;  %v4001_v4 = vmax.f32 %v4838_v12, 0.0 }
 0x54e   :  { %v3256_v56 = vpop.f32.mrb[170].mxu0  ;;  %v3938_v29 = vpop.f32.mrb[118].mxu1 }
 0x54f   :  { %4135 = vst.msk [vmem:[%s8304_s11 + $0x1c8] sm:$0xff] %vm2070_vm7, %v3347_v9  ;;  %4167 = vst.msk [vmem:[%s8304_s11 + $0x2c8] sm:$0xff] %vm2070_vm7, %v4001_v4  ;;  %v4800_v27 = vadd.f32 %v8034_v52, %v3256_v56  ;;  %v4839_v26 = vadd.f32 %v8034_v52, %v3938_v29  ;;  %v3258_v46 = vpop.f32.mrb[171].mxu0  ;;  %v3940_v8 = vpop.f32.mrb[119].mxu1 }
 0x551   :  { %v3348_v24 = vmax.f32 %v4800_v27, 0.0  ;;  %v4002_v57 = vmax.f32 %v4839_v26, 0.0 }
 0x552   :  { %v3261_v18 = vpop.f32.mrb[172].mxu0  ;;  %v3943_v47 = vpop.f32.mrb[120].mxu1 }
 0x553   :  { %4136 = vst.msk [vmem:[%s8304_s11 + $0x1d0] sm:$0xff] %vm2070_vm7, %v3348_v24  ;;  %4168 = vst.msk [vmem:[%s8304_s11 + $0x2d0] sm:$0xff] %vm2070_vm7, %v4002_v57  ;;  %v4801_v53 = vadd.f32 %v8034_v52, %v3261_v18  ;;  %v4840_v14 = vadd.f32 %v8034_v52, %v3943_v47  ;;  %v3263_v34 = vpop.f32.mrb[173].mxu0  ;;  %v3945_v50 = vpop.f32.mrb[121].mxu1 }
 0x555   :  { %v3349_v23 = vmax.f32 %v4801_v53, 0.0  ;;  %v4003_v13 = vmax.f32 %v4840_v14, 0.0 }
 0x556   :  { %v3266_v63 = vpop.f32.mrb[174].mxu0  ;;  %v3948_v15 = vpop.f32.mrb[122].mxu1 }
 0x557   :  { %4137 = vst.msk [vmem:[%s8304_s11 + $0x1d8] sm:$0xff] %vm2070_vm7, %v3349_v23  ;;  %4169 = vst.msk [vmem:[%s8304_s11 + $0x2d8] sm:$0xff] %vm2070_vm7, %v4003_v13  ;;  %v4802_v41 = vadd.f32 %v8034_v52, %v3266_v63  ;;  %v4841_v62 = vadd.f32 %v8034_v52, %v3948_v15  ;;  %v3268_v44 = vpop.f32.mrb[175].mxu0  ;;  %v3950_v43 = vpop.f32.mrb[123].mxu1 }
 0x559   :  { %v3350_v21 = vmax.f32 %v4802_v41, 0.0  ;;  %v4004_v10 = vmax.f32 %v4841_v62, 0.0 }
 0x55a   :  { %v3271_v3 = vpop.f32.mrb[176].mxu0  ;;  %v3953_v59 = vpop.f32.mrb[124].mxu1 }
 0x55b   :  { %4138 = vst.msk [vmem:[%s8304_s11 + $0x1e0] sm:$0xff] %vm2070_vm7, %v3350_v21  ;;  %4170 = vst.msk [vmem:[%s8304_s11 + $0x2e0] sm:$0xff] %vm2070_vm7, %v4004_v10  ;;  %v4803_v58 = vadd.f32 %v8034_v52, %v3271_v3  ;;  %v4842_v37 = vadd.f32 %v8034_v52, %v3953_v59  ;;  %v3273_v20 = vpop.f32.mrb[177].mxu0  ;;  %v3955_v33 = vpop.f32.mrb[125].mxu1 }
 0x55d   :  { %v3351_v16 = vmax.f32 %v4803_v58, 0.0  ;;  %v4005_v35 = vmax.f32 %v4842_v37, 0.0 }
 0x55e   :  { %v3276_v60 = vpop.f32.mrb[178].mxu0  ;;  %v3958_v1 = vpop.f32.mrb[126].mxu1 }
 0x55f   :  { %4139 = vst.msk [vmem:[%s8304_s11 + $0x1e8] sm:$0xff] %vm2070_vm7, %v3351_v16  ;;  %4171 = vst.msk [vmem:[%s8304_s11 + $0x2e8] sm:$0xff] %vm2070_vm7, %v4005_v35  ;;  %v4804_v51 = vadd.f32 %v8034_v52, %v3276_v60  ;;  %v4843_v2 = vadd.f32 %v8034_v52, %v3958_v1  ;;  %v3278_v19 = vpop.f32.mrb[179].mxu0  ;;  %v3960_v0 = vpop.f32.mrb[127].mxu1 }
 0x561   :  { %v3352_v42 = vmax.f32 %v4804_v51, 0.0  ;;  %v4006_v40 = vmax.f32 %v4843_v2, 0.0 }
 0x562   :  { %v3281_v45 = vpop.f32.mrb[180].mxu0  ;;  %v3963_v22 = vpop.f32.mrb[128].mxu1 }
 0x563   :  { %4140 = vst.msk [vmem:[%s8304_s11 + $0x1f0] sm:$0xff] %vm2070_vm7, %v3352_v42  ;;  %4172 = vst.msk [vmem:[%s8304_s11 + $0x2f0] sm:$0xff] %vm2070_vm7, %v4006_v40  ;;  %v4805_v6 = vadd.f32 %v8034_v52, %v3281_v45  ;;  %v4844_v36 = vadd.f32 %v8034_v52, %v3963_v22  ;;  %v3283_v17 = vpop.f32.mrb[181].mxu0  ;;  %v3965_v39 = vpop.f32.mrb[129].mxu1 }
 0x565   :  { %v3353_v30 = vmax.f32 %v4805_v6, 0.0  ;;  %v4007_v5 = vmax.f32 %v4844_v36, 0.0 }
 0x566   :  { %v3286_v25 = vpop.f32.mrb[182].mxu0  ;;  %v3968_v31 = vpop.f32.mrb[130].mxu1 }
 0x567   :  { %4141 = vst.msk [vmem:[%s8304_s11 + $0x1f8] sm:$0xff] %vm2070_vm7, %v3353_v30  ;;  %4173 = vst.msk [vmem:[%s8304_s11 + $0x2f8] sm:$0xff] %vm2070_vm7, %v4007_v5  ;;  %v4806_v7 = vadd.f32 %v8034_v52, %v3286_v25  ;;  %v4845_v12 = vadd.f32 %v8034_v52, %v3968_v31  ;;  %v3288_v28 = vpop.f32.mrb[183].mxu0  ;;  %v3970_v61 = vpop.f32.mrb[131].mxu1 }
 0x569   :  { %v3354_v9 = vmax.f32 %v4806_v7, 0.0  ;;  %v4008_v4 = vmax.f32 %v4845_v12, 0.0 }
 0x56a   :  { %v3291_v56 = vpop.f32.mrb[184].mxu0  ;;  %v3973_v29 = vpop.f32.mrb[132].mxu1 }
 0x56b   :  { %4142 = vst.msk [vmem:[%s8304_s11 + $0x200] sm:$0xff] %vm2070_vm7, %v3354_v9  ;;  %4174 = vst.msk [vmem:[%s8304_s11 + $0x300] sm:$0xff] %vm2070_vm7, %v4008_v4  ;;  %v4807_v27 = vadd.f32 %v8034_v52, %v3291_v56  ;;  %v4846_v26 = vadd.f32 %v8034_v52, %v3973_v29  ;;  %v3293_v46 = vpop.f32.mrb[185].mxu0  ;;  %v3975_v8 = vpop.f32.mrb[133].mxu1 }
 0x56d   :  { %v3355_v24 = vmax.f32 %v4807_v27, 0.0  ;;  %v4009_v57 = vmax.f32 %v4846_v26, 0.0 }
 0x56e   :  { %v3296_v18 = vpop.f32.mrb[186].mxu0  ;;  %v3978_v47 = vpop.f32.mrb[134].mxu1 }
 0x56f   :  { %4143 = vst.msk [vmem:[%s8304_s11 + $0x208] sm:$0xff] %vm2070_vm7, %v3355_v24  ;;  %4175 = vst.msk [vmem:[%s8304_s11 + $0x308] sm:$0xff] %vm2070_vm7, %v4009_v57  ;;  %v4808_v53 = vadd.f32 %v8034_v52, %v3296_v18  ;;  %v4847_v14 = vadd.f32 %v8034_v52, %v3978_v47  ;;  %v3298_v34 = vpop.f32.mrb[187].mxu0  ;;  %v3980_v50 = vpop.f32.mrb[135].mxu1 }
 0x571   :  { %v3356_v23 = vmax.f32 %v4808_v53, 0.0  ;;  %v4010_v13 = vmax.f32 %v4847_v14, 0.0 }
 0x572   :  { %v3301_v63 = vpop.f32.mrb[188].mxu0  ;;  %v3983_v15 = vpop.f32.mrb[136].mxu1 }
 0x573   :  { %4144 = vst.msk [vmem:[%s8304_s11 + $0x210] sm:$0xff] %vm2070_vm7, %v3356_v23  ;;  %4176 = vst.msk [vmem:[%s8304_s11 + $0x310] sm:$0xff] %vm2070_vm7, %v4010_v13  ;;  %v4809_v41 = vadd.f32 %v8034_v52, %v3301_v63  ;;  %v4848_v62 = vadd.f32 %v8034_v52, %v3983_v15  ;;  %v3303_v44 = vpop.f32.mrb[189].mxu0  ;;  %v3985_v43 = vpop.f32.mrb[137].mxu1 }
 0x575   :  { %v3357_v21 = vmax.f32 %v4809_v41, 0.0  ;;  %v4011_v10 = vmax.f32 %v4848_v62, 0.0 }
 0x576   :  { %v3306_v3 = vpop.f32.mrb[190].mxu0 }
 0x577   :  { %4145 = vst.msk [vmem:[%s8304_s11 + $0x218] sm:$0xff] %vm2070_vm7, %v3357_v21  ;;  %v4810_v59 = vadd.f32 %v8034_v52, %v3306_v3  ;;  %v3308_v58 = vpop.f32.mrb[191].mxu0 }
 0x578   :  { %4177 = vst.msk [vmem:[%s8304_s11 + $0x318] sm:$0xf] %vm2095_vm8, %v4011_v10 }
 0x579   :  { %v3358_v37 = vmax.f32 %v4810_v59, 0.0 }
 0x57a   :  { %v3311_v20 = vpop.f32.mrb[192].mxu0 }
 0x57b   :  { %4146 = vst.msk [vmem:[%s8304_s11 + $0x220] sm:$0xff] %vm2070_vm7, %v3358_v37  ;;  %v4811_v33 = vadd.f32 %v8034_v52, %v3311_v20  ;;  %v3313_v16 = vpop.f32.mrb[193].mxu0 }
 0x57d   :  { %v3359_v35 = vmax.f32 %v4811_v33, 0.0 }
 0x57e   :  { %v3316_v60 = vpop.f32.mrb[194].mxu0 }
 0x57f   :  { %4147 = vst.msk [vmem:[%s8304_s11 + $0x228] sm:$0xff] %vm2070_vm7, %v3359_v35  ;;  %v4812_v1 = vadd.f32 %v8034_v52, %v3316_v60  ;;  %v3318_v51 = vpop.f32.mrb[195].mxu0 }
 0x581   :  { %v3360_v2 = vmax.f32 %v4812_v1, 0.0 }
 0x582   :  { %v3321_v19 = vpop.f32.mrb[196].mxu0 }
 0x583   :  { %4148 = vst.msk [vmem:[%s8304_s11 + $0x230] sm:$0xff] %vm2070_vm7, %v3360_v2  ;;  %v4813_v0 = vadd.f32 %v8034_v52, %v3321_v19  ;;  %v3323_v42 = vpop.f32.mrb[197].mxu0 }
 0x585   :  { %v3361_v40 = vmax.f32 %v4813_v0, 0.0 }
 0x586   :  { %v3326_v45 = vpop.f32.mrb[198].mxu0 }
 0x587   :  { %4149 = vst.msk [vmem:[%s8304_s11 + $0x238] sm:$0xff] %vm2070_vm7, %v3361_v40  ;;  %v4814_v22 = vadd.f32 %v8034_v52, %v3326_v45  ;;  %v3328_v6 = vpop.f32.mrb[199].mxu0 }
 0x589   :  { %v3362_v36 = vmax.f32 %v4814_v22, 0.0 }
 0x58a   :  { %v3331_v17 = vpop.f32.mrb[200].mxu0 }
 0x58b   :  { %4150 = vst.msk [vmem:[%s8304_s11 + $0x240] sm:$0xff] %vm2070_vm7, %v3362_v36  ;;  %v4815_v39 = vadd.f32 %v8034_v52, %v3331_v17  ;;  %v3333_v30 = vpop.f32.mrb[201].mxu0 }
 0x58d   :  { %v3363_v5 = vmax.f32 %v4815_v39, 0.0 }
 0x58e   :  { %v3336_v25 = vpop.f32.mrb[202].mxu0 }
 0x58f   :  { %4151 = vst.msk [vmem:[%s8304_s11 + $0x248] sm:$0xff] %vm2070_vm7, %v3363_v5  ;;  %v4816_v31 = vadd.f32 %v8034_v52, %v3336_v25  ;;  %v3338_v7 = vpop.f32.mrb[203].mxu0 }
 0x591   :  { %v3364_v12 = vmax.f32 %v4816_v31, 0.0 }
 0x592   :  { %v3673_v28 = vpop.f32.mrb[204].mxu0 }
 0x593   :  { %4152 = vst.msk [vmem:[%s8304_s11 + $0x250] sm:$0xf] %vm2095_vm8, %v3364_v12  ;;  %v3674_v61 = vadd.f32 %v8034_v52, %v3673_v28  ;;  %v3675_v9 = vpop.f32.mrb[205].mxu0 }
 0x595   :  { %v3864_v4 = vadd.f32 %v8017_v54, %v3674_v61 }
 0x596   :  { %v3678_v56 = vpop.f32.mrb[206].mxu0 }
 0x597   :  { %v3987_v29 = vmax.f32 %v3864_v4, 0.0  ;;  %v3679_v27 = vadd.f32 %v8034_v52, %v3678_v56  ;;  %v3680_v26 = vpop.f32.mrb[207].mxu0 }
 0x599   :  { %4153 = vst.msk [vmem:[%s8304_s11 + $0x258] sm:$0xff] %vm2070_vm7, %v3987_v29  ;;  %v3869_v46 = vadd.f32 %v8019_v49, %v3679_v27 }
 0x59a   :  { %v3683_v8 = vpop.f32.mrb[208].mxu0 }
 0x59b   :  { %v3988_v24 = vmax.f32 %v3869_v46, 0.0  ;;  %v3684_v57 = vadd.f32 %v8034_v52, %v3683_v8  ;;  %v3685_v18 = vpop.f32.mrb[209].mxu0 }
 0x59d   :  { %4154 = vst.msk [vmem:[%s8304_s11 + $0x260] sm:$0xff] %vm2070_vm7, %v3988_v24  ;;  %v3874_v54 = vadd.f32 %v8021_v38, %v3684_v57 }
 0x59e   :  { %v3688_v47 = vpop.f32.mrb[210].mxu0 }
 0x59f   :  { %v3989_v53 = vmax.f32 %v3874_v54, 0.0  ;;  %v3689_v14 = vadd.f32 %v8034_v52, %v3688_v47  ;;  %v3690_v34 = vpop.f32.mrb[211].mxu0 }
 0x5a1   :  { %4155 = vst.msk [vmem:[%s8304_s11 + $0x268] sm:$0xff] %vm2070_vm7, %v3989_v53  ;;  %v3879_v49 = vadd.f32 %v8023_v48, %v3689_v14 }
 0x5a2   :  { %v3693_v50 = vpop.f32.mrb[212].mxu0 }
 0x5a3   :  { %v3990_v23 = vmax.f32 %v3879_v49, 0.0  ;;  %v3694_v13 = vadd.f32 %v8034_v52, %v3693_v50  ;;  %v3695_v63 = vpop.f32.mrb[213].mxu0 }
 0x5a5   :  { %4156 = vst.msk [vmem:[%s8304_s11 + $0x270] sm:$0xff] %vm2070_vm7, %v3990_v23  ;;  %v3884_v38 = vadd.f32 %v8025_v55, %v3694_v13 }
 0x5a6   :  { %v3698_v15 = vpop.f32.mrb[214].mxu0 }
 0x5a7   :  { %v3991_v41 = vmax.f32 %v3884_v38, 0.0  ;;  %v3699_v62 = vadd.f32 %v8034_v52, %v3698_v15  ;;  %v3700_v44 = vpop.f32.mrb[215].mxu0 }
 0x5a9   :  { %4157 = vst.msk [vmem:[%s8304_s11 + $0x278] sm:$0xff] %vm2070_vm7, %v3991_v41  ;;  %v3889_v48 = vadd.f32 %v8027_v32, %v3699_v62 }
 0x5aa   :  { %v3703_v43 = vpop.f32.mrb[216].mxu0 }
 0x5ab   :  { %v3992_v21 = vmax.f32 %v3889_v48, 0.0  ;;  %v3704_v10 = vadd.f32 %v8034_v52, %v3703_v43  ;;  %v3705_v3 = vpop.f32.mrb[217].mxu0 }
 0x5ad   :  { %4158 = vst.msk [vmem:[%s8304_s11 + $0x280] sm:$0xff] %vm2070_vm7, %v3992_v21  ;;  %v3894_v55 = vadd.f32 %v8029_v11, %v3704_v10 }
 0x5af   :  { %v3993_v59 = vmax.f32 %v3894_v55, 0.0 }
 0x5b1   :  { %4159 = vst.msk [vmem:[%s8304_s11 + $0x288] sm:$0xff] %vm2070_vm7, %v3993_v59 }

// kernel: sam_conv_forward.3
= control target key start
LH: loop header
LB: loop body
LE: loop exit
PB: predicated region body
PF: predicated region fallthrough
CT: control target
= control target key end

     0   :  { %s8796_s0 = inlined_call_operand.vmem [shape: f32[1568,4], index: 0, kind: input, shape index: {}]   ;;  %s8797_s1 = inlined_call_operand.vmem [shape: f32[4,196,8], index: 1, kind: input, shape index: {}]   ;;  %s8798_s2 = inlined_call_operand.vmem [shape: f32[196,1568], index: 2, kind: input, shape index: {}]   ;;  %s8799_s3 = inlined_call_operand.vmem [shape: f32[196,1], index: 3, kind: input, shape index: {}]   ;;  %s8800_s4 = inlined_call_operand.vmem [shape: f32[32,2], index: 4, kind: input, shape index: {}]   ;;  %s8801_s5 = inlined_call_operand.vmem [shape: f32[32,32], index: 5, kind: input, shape index: {}]   ;;  %s8802_s6 = inlined_call_operand.vmem [shape: f32[32,4], index: 6, kind: input, shape index: {}]   ;;  %s8803_s7 = inlined_call_operand.vmem [shape: f32[2,5], index: 7, kind: input, shape index: {}]   ;;  %s8804_s8 = inlined_call_operand.vmem [shape: f32[8,5], index: 8, kind: input, shape index: {}]   ;;  %s8805_s9 = inlined_call_operand.vmem [shape: f32[1,5], index: 9, kind: input, shape index: {}]   ;;  %s8806_s10 = inlined_call_operand.vmem [shape: f32[5,5], index: 10, kind: input, shape index: {}]   ;;  %s8807_s11 = inlined_call_operand.vmem [shape: f32[1,5], index: 11, kind: input, shape index: {}]   ;;  %s8808_s12 = inlined_call_operand.vmem [shape: f32[1,5], index: 12, kind: input, shape index: {}]   ;;  %s8809_s13 = inlined_call_operand.vmem [shape: f32[1,5], index: 13, kind: input, shape index: {}]   ;;  %s8810_s14 = inlined_call_operand.vmem [shape: f32[3,5,5], index: 14, kind: input, shape index: {}]   ;;  %s8811_s15 = inlined_call_operand.vmem [shape: f32[1,5], index: 15, kind: input, shape index: {}]   ;;  %s8812_s16 = inlined_call_operand.vmem [shape: f32[1,5], index: 16, kind: input, shape index: {}]   ;;  %s8813_s17 = inlined_call_operand.vmem [shape: f32[1,5], index: 17, kind: input, shape index: {}]   ;;  %s8814_s18 = inlined_call_operand.vmem [shape: f32[2,5], index: 18, kind: input, shape index: {}]   ;;  %s8815_s19 = inlined_call_operand.vmem [shape: f32[1,5], index: 19, kind: input, shape index: {}]   ;;  %s8816_s20 = inlined_call_operand.vmem [shape: f32[1,5], index: 20, kind: input, shape index: {}]   ;;  %s8817_s21 = inlined_call_operand.vmem [shape: f32[1,5], index: 21, kind: input, shape index: {}]   ;;  %s8818_s22 = inlined_call_operand.vmem [shape: f32[2], index: 22, kind: input, shape index: {}]   ;;  %s8819_s23 = inlined_call_operand.vmem [shape: f32[32,5], index: 23, kind: output, shape index: {}]  }
   0x1   :  { %8827 = sst [smem:[#allocation6_spill]] %s8796_s0 }
   0x2   :  { %8828 = sst [smem:[#allocation7_spill]] %s8797_s1 }
   0x3   :  { %8829 = sst [smem:[#allocation8_spill]] %s8798_s2 }
   0x4   :  { %8830 = sst [smem:[#allocation9_spill]] %s8799_s3 }
   0x5   :  { %8831 = sst [smem:[#allocation10_spill]] %s8800_s4 }
   0x6   :  { %8832 = sst [smem:[#allocation11_spill]] %s8801_s5 }
   0x7   :  { %8833 = sst [smem:[#allocation12_spill]] %s8802_s6 }
   0x8   :  { %8834 = sst [smem:[#allocation13_spill]] %s8803_s7 }
   0x9   :  { %28 = vsyncpa [#allocation4], 0  ;;  %s79_s24 = sshll.u32 %s8818_s22, 4  ;;  %s80_s24 = int_to_ptr.vmem [resolvable:$true] %s79_s24 }
   0xa   :  { %s5556_s25 = scalar_lea.vmem %s80_s24, 16  ;;  %p5561_p1 = scmp.lt.s32.totalorder %s80_s24, %s80_s24 }
   0xb   :  { %p5557_p0 = scmp.ne.s32.totalorder %s80_s24, %s5556_s25  ;;  %p5562_p2 = scmp.lt.s32.totalorder %s5556_s25, %s5556_s25 }
   0xd   :  { %p5563_p3 = por %p5562_p2, %p5561_p1 }
   0xf   :  { %p5564_p4 = pnand %p5563_p3, %p5557_p0 }
  0x11   :  { %5567 = shalt.err (!%p5564_p4)
}
  0x12   :  { %s5570_s5 = smov [#allocation3]  }
  0x13   :  { %82 = dma.vmem_to_smem %s80_s24, 16, %s5570_s5, [#allocation4]  }
  0x14   :  { %5568 = dma.done.wait [#allocation4], 16  }
  0x15   :  { %5569 = vsyncadd [#allocation4], 4294967280 }
  0x16   :  { %86 = sfence }
  0x17   :  { %s8835_s2 = sld [smem:[#allocation6_spill]]  ;;  %v5571_v3 = vmov 0.0|0.0   ;;  %s8836_s25 = sld [smem:[#allocation8_spill]]  ;;  %vm5573_vm0 = vmmov 0   ;;  %vm758_vm1 = vcmask 261120   ;;  %vm2164_vm2 = vcmask 31744  }
  0x18   :  { %4745 = vmatprep.subr.bf16.mxu1 %v5571_v3  ;;  %4889 = vmatprep.subr.bf16.mxu0 %v5571_v3  ;;  %s8837_s26 = sld [smem:[#allocation9_spill]]  ;;  %vm2209_vm3 = vcmask 27648   ;;  %s8838_s30 = sld [smem:[#allocation7_spill]]  ;;  %vm2627_vm4 = vcmask 64512   ;;  %vm2675_vm5 = vcmask 60416   ;;  %vm3224_vm6 = vcmask 1040384  }
  0x19   :  { %vm3226_vm7 = vcmask 1041408   ;;  %vm3228_vm8 = vcmask 1042432   ;;  %vm3250_vm9 = vcmask 1043456   ;;  %s8840_s27 = sld [smem:[#allocation13_spill]]  ;;  %s8841_s22 = sld [smem:[#allocation10_spill]]  ;;  %vm3438_vm10 = vcmask 15360  }
  0x1a   :  { %vm3571_vm11 = vcmask 1044480   ;;  %vm3558_vm12 = vcmask 39936   ;;  %s8842_s1 = sld [smem:[#allocation11_spill]]  ;;  %s3826_s0 = sld [smem:[#allocation3]] }
  0x1b   :  { %s4506_s6 = sld [smem:[#allocation3 + $0x1]] }
  0x1d   :  { %v412_v0 = vld [vmem:[%s8835_s2] sm:$0xff]  ;;  %v413_v1 = vld [vmem:[%s8835_s2 + $0x8] sm:$0xff]  ;;  %v414_v6 = vld [vmem:[%s8835_s2 + $0x10] sm:$0xff] }
  0x1e   :  { %v508_v2 = vld [vmem:[%s8835_s2 + $0x300] sm:$0xff]  ;;  %v4746_v4 = vpack.c.bf16 %v413_v1, %v412_v0  ;;  %v509_v5 = vld [vmem:[%s8835_s2 + $0x308] sm:$0xff]  ;;  %v415_v7 = vld [vmem:[%s8835_s2 + $0x18] sm:$0xff] }
  0x1f   :  { %v5721_v8 = vpack.c.bf16 %v509_v5, %v508_v2  ;;  %v510_v9 = vld [vmem:[%s8835_s2 + $0x310] sm:$0xff]  ;;  %v511_v10 = vld [vmem:[%s8835_s2 + $0x318] sm:$0xff]  ;;  %v4749_v11 = vpack.c.bf16 %v415_v7, %v414_v6  ;;  %v416_v13 = vld [vmem:[%s8835_s2 + $0x20] sm:$0xff] }
  0x20   :  { %4747 = vmatpush1.bf16.msra.mxu1 %v4746_v4  ;;  %v5731_v12 = vpack.c.bf16 %v511_v10, %v510_v9  ;;  %v417_v14 = vld [vmem:[%s8835_s2 + $0x28] sm:$0xff]  ;;  %v512_v15 = vld [vmem:[%s8835_s2 + $0x320] sm:$0xff]  ;;  %v418_v19 = vld [vmem:[%s8835_s2 + $0x30] sm:$0xff] }
  0x21   :  { %4891 = vmatpush1.bf16.msra.mxu0 %v5721_v8  ;;  %4748 = vmatprep.subr.bf16.mxu1 %v5571_v3  ;;  %v513_v16 = vld [vmem:[%s8835_s2 + $0x328] sm:$0xff]  ;;  %v4752_v17 = vpack.c.bf16 %v417_v14, %v416_v13  ;;  %v419_v20 = vld [vmem:[%s8835_s2 + $0x38] sm:$0xff]  ;;  %v514_v21 = vld [vmem:[%s8835_s2 + $0x330] sm:$0xff] }
  0x22   :  { %4892 = vmatprep.subr.bf16.mxu0 %v5571_v3  ;;  %v5748_v18 = vpack.c.bf16 %v513_v16, %v512_v15  ;;  %v515_v22 = vld [vmem:[%s8835_s2 + $0x338] sm:$0xff]  ;;  %v4755_v23 = vpack.c.bf16 %v419_v20, %v418_v19  ;;  %v420_v25 = vld [vmem:[%s8835_s2 + $0x40] sm:$0xff]  ;;  %v421_v26 = vld [vmem:[%s8835_s2 + $0x48] sm:$0xff] }
  0x23   :  { %v5765_v24 = vpack.c.bf16 %v515_v22, %v514_v21  ;;  %v516_v27 = vld [vmem:[%s8835_s2 + $0x340] sm:$0xff]  ;;  %v517_v28 = vld [vmem:[%s8835_s2 + $0x348] sm:$0xff]  ;;  %v4758_v29 = vpack.c.bf16 %v421_v26, %v420_v25  ;;  %v422_v31 = vld [vmem:[%s8835_s2 + $0x50] sm:$0xff] }
  0x24   :  { %4750 = vmatpush1.bf16.msra.mxu1 %v4749_v11  ;;  %v5782_v30 = vpack.c.bf16 %v517_v28, %v516_v27  ;;  %v423_v32 = vld [vmem:[%s8835_s2 + $0x58] sm:$0xff]  ;;  %v518_v33 = vld [vmem:[%s8835_s2 + $0x350] sm:$0xff]  ;;  %v424_v37 = vld [vmem:[%s8835_s2 + $0x60] sm:$0xff] }
  0x25   :  { %4894 = vmatpush1.bf16.msra.mxu0 %v5731_v12  ;;  %4751 = vmatprep.subr.bf16.mxu1 %v5571_v3  ;;  %v519_v34 = vld [vmem:[%s8835_s2 + $0x358] sm:$0xff]  ;;  %v4761_v35 = vpack.c.bf16 %v423_v32, %v422_v31  ;;  %v425_v38 = vld [vmem:[%s8835_s2 + $0x68] sm:$0xff]  ;;  %v520_v39 = vld [vmem:[%s8835_s2 + $0x360] sm:$0xff] }
  0x26   :  { %4895 = vmatprep.subr.bf16.mxu0 %v5571_v3  ;;  %v5799_v36 = vpack.c.bf16 %v519_v34, %v518_v33  ;;  %v521_v40 = vld [vmem:[%s8835_s2 + $0x368] sm:$0xff]  ;;  %v94_v42 = vld [vmem:[%s8836_s25 + $0x38] sm:$0xff]  ;;  %v4764_v43 = vpack.c.bf16 %v425_v38, %v424_v37  ;;  %v426_v45 = vld [vmem:[%s8835_s2 + $0x70] sm:$0xff] }
  0x27   :  { %v88_v41 = vld [vmem:[%s8836_s25 + $0x8] sm:$0xff]  ;;  %1468 = vmatprep.mubr.f32.mxu0 %v94_v42  ;;  %v5822_v44 = vpack.c.bf16 %v521_v40, %v520_v39  ;;  %v427_v46 = vld [vmem:[%s8835_s2 + $0x78] sm:$0xff]  ;;  %v522_v47 = vld [vmem:[%s8835_s2 + $0x370] sm:$0xff] }
  0x28   :  { %4753 = vmatpush1.bf16.msra.mxu1 %v4752_v17  ;;  %898 = vmatprep.mubr.f32.mxu1 %v88_v41  ;;  %v523_v48 = vld [vmem:[%s8835_s2 + $0x378] sm:$0xff]  ;;  %v4767_v49 = vpack.c.bf16 %v427_v46, %v426_v45  ;;  %v428_v51 = vld [vmem:[%s8835_s2 + $0x80] sm:$0xff]  ;;  %v429_v52 = vld [vmem:[%s8835_s2 + $0x88] sm:$0xff] }
  0x29   :  { %4897 = vmatpush1.bf16.msra.mxu0 %v5748_v18  ;;  %4754 = vmatprep.subr.bf16.mxu1 %v5571_v3  ;;  %v5839_v50 = vpack.c.bf16 %v523_v48, %v522_v47  ;;  %v524_v53 = vld [vmem:[%s8835_s2 + $0x380] sm:$0xff]  ;;  %v525_v54 = vld [vmem:[%s8835_s2 + $0x388] sm:$0xff]  ;;  %v4770_v55 = vpack.c.bf16 %v429_v52, %v428_v51  ;;  %v430_v57 = vld [vmem:[%s8835_s2 + $0x90] sm:$0xff] }
  0x2a   :  { %4898 = vmatprep.subr.bf16.mxu0 %v5571_v3  ;;  %v5856_v56 = vpack.c.bf16 %v525_v54, %v524_v53  ;;  %v431_v58 = vld [vmem:[%s8835_s2 + $0x98] sm:$0xff]  ;;  %v526_v59 = vld [vmem:[%s8835_s2 + $0x390] sm:$0xff]  ;;  %v432_v63 = vld [vmem:[%s8835_s2 + $0xa0] sm:$0xff] }
  0x2b   :  { %v527_v60 = vld [vmem:[%s8835_s2 + $0x398] sm:$0xff]  ;;  %v4773_v61 = vpack.c.bf16 %v431_v58, %v430_v57  ;;  %v433_v0 = vld [vmem:[%s8835_s2 + $0xa8] sm:$0xff]  ;;  %v528_v1 = vld [vmem:[%s8835_s2 + $0x3a0] sm:$0xff] }
  0x2c   :  { %4756 = vmatpush1.bf16.msra.mxu1 %v4755_v23  ;;  %v5873_v62 = vpack.c.bf16 %v527_v60, %v526_v59  ;;  %v529_v2 = vld [vmem:[%s8835_s2 + $0x3a8] sm:$0xff]  ;;  %v4776_v4 = vpack.c.bf16 %v433_v0, %v432_v63  ;;  %v434_v6 = vld [vmem:[%s8835_s2 + $0xb0] sm:$0xff]  ;;  %v435_v7 = vld [vmem:[%s8835_s2 + $0xb8] sm:$0xff] }
  0x2d   :  { %4900 = vmatpush1.bf16.msra.mxu0 %v5765_v24  ;;  %4757 = vmatprep.subr.bf16.mxu1 %v5571_v3  ;;  %v5890_v5 = vpack.c.bf16 %v529_v2, %v528_v1  ;;  %v530_v9 = vld [vmem:[%s8835_s2 + $0x3b0] sm:$0xff]  ;;  %v531_v10 = vld [vmem:[%s8835_s2 + $0x3b8] sm:$0xff]  ;;  %v4779_v11 = vpack.c.bf16 %v435_v7, %v434_v6  ;;  %v436_v14 = vld [vmem:[%s8835_s2 + $0xc0] sm:$0xff] }
  0x2e   :  { %4901 = vmatprep.subr.bf16.mxu0 %v5571_v3  ;;  %v5907_v13 = vpack.c.bf16 %v531_v10, %v530_v9  ;;  %v437_v15 = vld [vmem:[%s8835_s2 + $0xc8] sm:$0xff]  ;;  %v532_v16 = vld [vmem:[%s8835_s2 + $0x3c0] sm:$0xff]  ;;  %v438_v21 = vld [vmem:[%s8835_s2 + $0xd0] sm:$0xff] }
  0x2f   :  { %v533_v17 = vld [vmem:[%s8835_s2 + $0x3c8] sm:$0xff]  ;;  %v4782_v19 = vpack.c.bf16 %v437_v15, %v436_v14  ;;  %v439_v22 = vld [vmem:[%s8835_s2 + $0xd8] sm:$0xff]  ;;  %v534_v23 = vld [vmem:[%s8835_s2 + $0x3d0] sm:$0xff] }
  0x30   :  { %4759 = vmatpush1.bf16.msra.mxu1 %v4758_v29  ;;  %v5924_v20 = vpack.c.bf16 %v533_v17, %v532_v16  ;;  %v535_v25 = vld [vmem:[%s8835_s2 + $0x3d8] sm:$0xff]  ;;  %v4785_v26 = vpack.c.bf16 %v439_v22, %v438_v21  ;;  %v440_v28 = vld [vmem:[%s8835_s2 + $0xe0] sm:$0xff]  ;;  %v441_v29 = vld [vmem:[%s8835_s2 + $0xe8] sm:$0xff] }
  0x31   :  { %4903 = vmatpush1.bf16.msra.mxu0 %v5782_v30  ;;  %4760 = vmatprep.subr.bf16.mxu1 %v5571_v3  ;;  %v5941_v27 = vpack.c.bf16 %v535_v25, %v534_v23  ;;  %v536_v31 = vld [vmem:[%s8835_s2 + $0x3e0] sm:$0xff]  ;;  %v537_v32 = vld [vmem:[%s8835_s2 + $0x3e8] sm:$0xff]  ;;  %v4788_v33 = vpack.c.bf16 %v441_v29, %v440_v28  ;;  %v443_v37 = vld [vmem:[%s8835_s2 + $0xf8] sm:$0xff] }
  0x32   :  { %4904 = vmatprep.subr.bf16.mxu0 %v5571_v3  ;;  %v5958_v34 = vpack.c.bf16 %v537_v32, %v536_v31  ;;  %v538_v38 = vld [vmem:[%s8835_s2 + $0x3f0] sm:$0xff]  ;;  %v539_v39 = vld [vmem:[%s8835_s2 + $0x3f8] sm:$0xff]  ;;  %v540_v42 = vld [vmem:[%s8835_s2 + $0x400] sm:$0xff] }
  0x33   :  { %v5975_v41 = vpack.c.bf16 %v539_v39, %v538_v38  ;;  %v444_v45 = vld [vmem:[%s8835_s2 + $0x100] sm:$0xff]  ;;  %v445_v46 = vld [vmem:[%s8835_s2 + $0x108] sm:$0xff]  ;;  %v93_v48 = vld [vmem:[%s8836_s25 + $0x30] sm:$0xff] }
  0x34   :  { %4762 = vmatpush1.bf16.msra.mxu1 %v4761_v35  ;;  %v442_v35 = vld [vmem:[%s8835_s2 + $0xf0] sm:$0xff]  ;;  %v87_v47 = vld [vmem:[%s8836_s25] sm:$0xff]  ;;  %v543_v54 = vld [vmem:[%s8835_s2 + $0x418] sm:$0xff] }
  0x35   :  { %4906 = vmatpush1.bf16.msra.mxu0 %v5799_v36  ;;  %4763 = vmatprep.subr.bf16.mxu1 %v5571_v3  ;;  %v4791_v40 = vpack.c.bf16 %v443_v37, %v442_v35  ;;  %v107_v52 = vld [vmem:[%s8836_s25 + $0xa0] sm:$0xff]  ;;  %v542_v53 = vld [vmem:[%s8835_s2 + $0x410] sm:$0xff]  ;;  %v447_v58 = vld [vmem:[%s8835_s2 + $0x118] sm:$0xff] }
  0x36   :  { %4907 = vmatprep.subr.bf16.mxu0 %v5571_v3  ;;  %v446_v57 = vld [vmem:[%s8835_s2 + $0x110] sm:$0xff]  ;;  %v100_v59 = vld [vmem:[%s8836_s25 + $0x68] sm:$0xff]  ;;  %v106_v60 = vld [vmem:[%s8836_s25 + $0x98] sm:$0xff]  ;;  %v4941_v63 = vpack.c.bf16 %v543_v54, %v542_v53 }
  0x37   :  { %v120_v0 = vld [vmem:[%s8836_s25 + $0x108] sm:$0xff]  ;;  %v544_v1 = vld [vmem:[%s8835_s2 + $0x420] sm:$0xff]  ;;  %v113_v9 = vld [vmem:[%s8836_s25 + $0xd0] sm:$0xff] }
  0x38   :  { %4765 = vmatpush1.bf16.msra.mxu1 %v4764_v43  ;;  %v541_v43 = vld [vmem:[%s8835_s2 + $0x408] sm:$0xff]  ;;  %v448_v6 = vld [vmem:[%s8835_s2 + $0x120] sm:$0xff]  ;;  %v133_v15 = vld [vmem:[%s8836_s25 + $0x170] sm:$0xff] }
  0x39   :  { %4909 = vmatpush1.bf16.msra.mxu0 %v5822_v44  ;;  %4766 = vmatprep.subr.bf16.mxu1 %v5571_v3  ;;  %v4938_v51 = vpack.c.bf16 %v541_v43, %v540_v42  ;;  %v545_v2 = vld [vmem:[%s8835_s2 + $0x428] sm:$0xff]  ;;  %v119_v10 = vld [vmem:[%s8836_s25 + $0x100] sm:$0xff]  ;;  %v546_v16 = vld [vmem:[%s8835_s2 + $0x430] sm:$0xff] }
  0x3a   :  { %4910 = vmatprep.subr.bf16.mxu0 %v5571_v3  ;;  %v449_v7 = vld [vmem:[%s8835_s2 + $0x128] sm:$0xff]  ;;  %v4944_v14 = vpack.c.bf16 %v545_v2, %v544_v1  ;;  %v547_v17 = vld [vmem:[%s8835_s2 + $0x438] sm:$0xff]  ;;  %v450_v21 = vld [vmem:[%s8835_s2 + $0x130] sm:$0xff] }
  0x3b   :  { %v451_v22 = vld [vmem:[%s8835_s2 + $0x138] sm:$0xff]  ;;  %v132_v25 = vld [vmem:[%s8836_s25 + $0x168] sm:$0xff]  ;;  %v4947_v28 = vpack.c.bf16 %v547_v17, %v546_v16  ;;  %v548_v31 = vld [vmem:[%s8835_s2 + $0x440] sm:$0xff] }
  0x3c   :  { %4768 = vmatpush1.bf16.msra.mxu1 %v4767_v49  ;;  %v101_v49 = vld [vmem:[%s8836_s25 + $0x70] sm:$0xff]  ;;  %v126_v23 = vld [vmem:[%s8836_s25 + $0x138] sm:$0xff]  ;;  %v549_v32 = vld [vmem:[%s8835_s2 + $0x448] sm:$0xff] }
  0x3d   :  { %4912 = vmatpush1.bf16.msra.mxu0 %v5839_v50  ;;  %4769 = vmatprep.subr.bf16.mxu1 %v5571_v3  ;;  %v146_v29 = vld [vmem:[%s8836_s25 + $0x1d8] sm:$0xff]  ;;  %v452_v35 = vld [vmem:[%s8835_s2 + $0x140] sm:$0xff]  ;;  %v453_v37 = vld [vmem:[%s8835_s2 + $0x148] sm:$0xff]  ;;  %v4950_v42 = vpack.c.bf16 %v549_v32, %v548_v31 }
  0x3e   :  { %4913 = vmatprep.subr.bf16.mxu0 %v5571_v3  ;;  %v139_v38 = vld [vmem:[%s8836_s25 + $0x1a0] sm:$0xff]  ;;  %v145_v39 = vld [vmem:[%s8836_s25 + $0x1d0] sm:$0xff]  ;;  %v166_v53 = vld [vmem:[%s8836_s25 + $0x278] sm:$0xff] }
  0x3f   :  { %v159_v43 = vld [vmem:[%s8836_s25 + $0x240] sm:$0xff]  ;;  %v192_v16 = vld [vmem:[%s8836_s25 + $0x348] sm:$0xff]  ;;  %v205_v31 = vld [vmem:[%s8836_s25 + $0x3b0] sm:$0xff] }
  0x40   :  { %4771 = vmatpush1.bf16.msra.mxu1 %v4770_v55  ;;  %v4794_v55 = vpack.c.bf16 %v445_v46, %v444_v45  ;;  %v550_v45 = vld [vmem:[%s8835_s2 + $0x450] sm:$0xff]  ;;  %v551_v46 = vld [vmem:[%s8835_s2 + $0x458] sm:$0xff]  ;;  %v179_v1 = vld [vmem:[%s8836_s25 + $0x2e0] sm:$0xff] }
  0x41   :  { %4915 = vmatpush1.bf16.msra.mxu0 %v5856_v56  ;;  %4772 = vmatprep.subr.bf16.mxu1 %v5571_v3  ;;  %v4953_v54 = vpack.c.bf16 %v551_v46, %v550_v45  ;;  %v218_v45 = vld [vmem:[%s8836_s25 + $0x418] sm:$0xff] }
  0x42   :  { %4916 = vmatprep.subr.bf16.mxu0 %v5571_v3 }
  0x44   :  { %4774 = vmatpush1.bf16.msra.mxu1 %v4773_v61  ;;  %v114_v61 = vld [vmem:[%s8836_s25 + $0xd8] sm:$0xff] }
  0x45   :  { %4918 = vmatpush1.bf16.msra.mxu0 %v5873_v62  ;;  %4775 = vmatprep.subr.bf16.mxu1 %v5571_v3 }
  0x46   :  { %4919 = vmatprep.subr.bf16.mxu0 %v5571_v3 }
  0x48   :  { %4777 = vmatpush1.bf16.msra.mxu1 %v4776_v4  ;;  %v4797_v4 = vpack.c.bf16 %v447_v58, %v446_v57  ;;  %v552_v57 = vld [vmem:[%s8835_s2 + $0x460] sm:$0xff]  ;;  %v553_v58 = vld [vmem:[%s8835_s2 + $0x468] sm:$0xff] }
  0x49   :  { %4921 = vmatpush1.bf16.msra.mxu0 %v5890_v5  ;;  %4778 = vmatprep.subr.bf16.mxu1 %v5571_v3  ;;  %v4956_v2 = vpack.c.bf16 %v553_v58, %v552_v57  ;;  %v231_v57 = vld [vmem:[%s8836_s25 + $0x480] sm:$0xff] }
  0x4a   :  { %4922 = vmatprep.subr.bf16.mxu0 %v5571_v3 }
  0x4c   :  { %4780 = vmatpush1.bf16.msra.mxu1 %v4779_v11  ;;  %v127_v11 = vld [vmem:[%s8836_s25 + $0x140] sm:$0xff] }
  0x4d   :  { %4924 = vmatpush1.bf16.msra.mxu0 %v5907_v13  ;;  %4781 = vmatprep.subr.bf16.mxu1 %v5571_v3 }
  0x4e   :  { %4925 = vmatprep.subr.bf16.mxu0 %v5571_v3 }
  0x50   :  { %4783 = vmatpush1.bf16.msra.mxu1 %v4782_v19  ;;  %v4800_v19 = vpack.c.bf16 %v449_v7, %v448_v6  ;;  %v554_v6 = vld [vmem:[%s8835_s2 + $0x470] sm:$0xff]  ;;  %v555_v7 = vld [vmem:[%s8835_s2 + $0x478] sm:$0xff] }
  0x51   :  { %4927 = vmatpush1.bf16.msra.mxu0 %v5924_v20  ;;  %4784 = vmatprep.subr.bf16.mxu1 %v5571_v3  ;;  %v4959_v17 = vpack.c.bf16 %v555_v7, %v554_v6  ;;  %v244_v6 = vld [vmem:[%s8836_s25 + $0x4e8] sm:$0xff] }
  0x52   :  { %4928 = vmatprep.subr.bf16.mxu0 %v5571_v3 }
  0x54   :  { %4786 = vmatpush1.bf16.msra.mxu1 %v4785_v26  ;;  %v140_v26 = vld [vmem:[%s8836_s25 + $0x1a8] sm:$0xff] }
  0x55   :  { %4930 = vmatpush1.bf16.msra.mxu0 %v5941_v27  ;;  %4787 = vmatprep.subr.bf16.mxu1 %v5571_v3 }
  0x56   :  { %4931 = vmatprep.subr.bf16.mxu0 %v5571_v3 }
  0x58   :  { %4789 = vmatpush1.bf16.msra.mxu1 %v4788_v33  ;;  %v4803_v33 = vpack.c.bf16 %v451_v22, %v450_v21  ;;  %v556_v21 = vld [vmem:[%s8835_s2 + $0x480] sm:$0xff]  ;;  %v557_v22 = vld [vmem:[%s8835_s2 + $0x488] sm:$0xff] }
  0x59   :  { %4933 = vmatpush1.bf16.msra.mxu0 %v5958_v34  ;;  %4790 = vmatprep.subr.bf16.mxu1 %v5571_v3  ;;  %v4962_v32 = vpack.c.bf16 %v557_v22, %v556_v21  ;;  %v257_v21 = vld [vmem:[%s8836_s25 + $0x550] sm:$0xff] }
  0x5a   :  { %4934 = vmatprep.subr.bf16.mxu0 %v5571_v3 }
  0x5c   :  { %4792 = vmatpush1.bf16.msra.mxu1 %v4791_v40  ;;  %v153_v40 = vld [vmem:[%s8836_s25 + $0x210] sm:$0xff] }
  0x5d   :  { %4936 = vmatpush1.bf16.msra.mxu0 %v5975_v41  ;;  %4793 = vmatprep.subr.bf16.mxu1 %v5571_v3 }
  0x5e   :  { %4937 = vmatprep.subr.bf16.mxu0 %v5571_v3 }
  0x5f   :  { %899 = vmatmul.mubr.f32.vlgmr.msra.gmra.mrb[0].mxu1 %v87_v47  ;;  %v4806_v47 = vpack.c.bf16 %v453_v37, %v452_v35  ;;  %v558_v35 = vld [vmem:[%s8835_s2 + $0x490] sm:$0xff]  ;;  %v559_v37 = vld [vmem:[%s8835_s2 + $0x498] sm:$0xff] }
  0x60   :  { %1469 = vmatmul.mubr.f32.vlgmr.msra.gmra.mrb[0].mxu0 %v93_v48  ;;  %903 = vmatprep.mubr.f32.mxu1 %v101_v49  ;;  %v454_v48 = vld [vmem:[%s8835_s2 + $0x150] sm:$0xff]  ;;  %v455_v49 = vld [vmem:[%s8835_s2 + $0x158] sm:$0xff]  ;;  %v4965_v46 = vpack.c.bf16 %v559_v37, %v558_v35 }
  0x61   :  { %1473 = vmatprep.mubr.f32.mxu0 %v107_v52  ;;  %4939 = vmatpush1.bf16.msra.mxu0 %v4938_v51  ;;  %v152_v51 = vld [vmem:[%s8836_s25 + $0x208] sm:$0xff]  ;;  %v158_v52 = vld [vmem:[%s8836_s25 + $0x238] sm:$0xff] }
  0x62   :  { %4940 = vmatprep.subr.bf16.mxu0 %v5571_v3  ;;  %4795 = vmatpush1.bf16.msra.mxu1 %v4794_v55  ;;  %v172_v55 = vld [vmem:[%s8836_s25 + $0x2a8] sm:$0xff]  ;;  %v270_v35 = vld [vmem:[%s8836_s25 + $0x5b8] sm:$0xff] }
  0x63   :  { %904 = vmatmul.mubr.f32.gmra.mrb[2].mxu1 %v100_v59  ;;  %4796 = vmatprep.subr.bf16.mxu1 %v5571_v3  ;;  %v4809_v59 = vpack.c.bf16 %v455_v49, %v454_v48  ;;  %v560_v48 = vld [vmem:[%s8835_s2 + $0x4a0] sm:$0xff]  ;;  %v561_v49 = vld [vmem:[%s8835_s2 + $0x4a8] sm:$0xff] }
  0x64   :  { %1474 = vmatmul.mubr.f32.gmra.mrb[2].mxu0 %v106_v60  ;;  %908 = vmatprep.mubr.f32.mxu1 %v114_v61  ;;  %v456_v60 = vld [vmem:[%s8835_s2 + $0x160] sm:$0xff]  ;;  %v457_v61 = vld [vmem:[%s8835_s2 + $0x168] sm:$0xff]  ;;  %v4968_v58 = vpack.c.bf16 %v561_v49, %v560_v48 }
  0x65   :  { %1478 = vmatprep.mubr.f32.mxu0 %v120_v0  ;;  %4942 = vmatpush1.bf16.msra.mxu0 %v4941_v63  ;;  %v165_v63 = vld [vmem:[%s8836_s25 + $0x270] sm:$0xff]  ;;  %v171_v0 = vld [vmem:[%s8836_s25 + $0x2a0] sm:$0xff] }
  0x66   :  { %4943 = vmatprep.subr.bf16.mxu0 %v5571_v3  ;;  %4798 = vmatpush1.bf16.msra.mxu1 %v4797_v4  ;;  %v185_v4 = vld [vmem:[%s8836_s25 + $0x310] sm:$0xff]  ;;  %v283_v48 = vld [vmem:[%s8836_s25 + $0x620] sm:$0xff] }
  0x67   :  { %909 = vmatmul.mubr.f32.gmra.mrb[4].mxu1 %v113_v9  ;;  %4799 = vmatprep.subr.bf16.mxu1 %v5571_v3  ;;  %v4812_v9 = vpack.c.bf16 %v457_v61, %v456_v60  ;;  %v562_v60 = vld [vmem:[%s8835_s2 + $0x4b0] sm:$0xff]  ;;  %v563_v61 = vld [vmem:[%s8835_s2 + $0x4b8] sm:$0xff] }
  0x68   :  { %1479 = vmatmul.mubr.f32.gmra.mrb[4].mxu0 %v119_v10  ;;  %913 = vmatprep.mubr.f32.mxu1 %v127_v11  ;;  %v458_v10 = vld [vmem:[%s8835_s2 + $0x170] sm:$0xff]  ;;  %v459_v11 = vld [vmem:[%s8835_s2 + $0x178] sm:$0xff]  ;;  %v4971_v7 = vpack.c.bf16 %v563_v61, %v562_v60  ;;  %v296_v60 = vld [vmem:[%s8836_s25 + $0x688] sm:$0xff] }
  0x69   :  { %1483 = vmatprep.mubr.f32.mxu0 %v133_v15  ;;  %4945 = vmatpush1.bf16.msra.mxu0 %v4944_v14  ;;  %v178_v14 = vld [vmem:[%s8836_s25 + $0x2d8] sm:$0xff]  ;;  %v184_v15 = vld [vmem:[%s8836_s25 + $0x308] sm:$0xff] }
  0x6a   :  { %4946 = vmatprep.subr.bf16.mxu0 %v5571_v3  ;;  %4801 = vmatpush1.bf16.msra.mxu1 %v4800_v19  ;;  %v198_v19 = vld [vmem:[%s8836_s25 + $0x378] sm:$0xff] }
  0x6b   :  { %914 = vmatmul.mubr.f32.gmra.mrb[6].mxu1 %v126_v23  ;;  %4802 = vmatprep.subr.bf16.mxu1 %v5571_v3  ;;  %v4815_v23 = vpack.c.bf16 %v459_v11, %v458_v10  ;;  %v564_v10 = vld [vmem:[%s8835_s2 + $0x4c0] sm:$0xff]  ;;  %v565_v11 = vld [vmem:[%s8835_s2 + $0x4c8] sm:$0xff] }
  0x6c   :  { %1484 = vmatmul.mubr.f32.gmra.mrb[6].mxu0 %v132_v25  ;;  %918 = vmatprep.mubr.f32.mxu1 %v140_v26  ;;  %v460_v25 = vld [vmem:[%s8835_s2 + $0x180] sm:$0xff]  ;;  %v461_v26 = vld [vmem:[%s8835_s2 + $0x188] sm:$0xff]  ;;  %v4974_v22 = vpack.c.bf16 %v565_v11, %v564_v10  ;;  %v322_v10 = vld [vmem:[%s8836_s25 + $0x758] sm:$0xff] }
  0x6d   :  { %1488 = vmatprep.mubr.f32.mxu0 %v146_v29  ;;  %4948 = vmatpush1.bf16.msra.mxu0 %v4947_v28  ;;  %v191_v28 = vld [vmem:[%s8836_s25 + $0x340] sm:$0xff]  ;;  %v197_v29 = vld [vmem:[%s8836_s25 + $0x370] sm:$0xff]  ;;  %v328_v11 = vld [vmem:[%s8836_s25 + $0x788] sm:$0xff] }
  0x6e   :  { %4949 = vmatprep.subr.bf16.mxu0 %v5571_v3  ;;  %4804 = vmatpush1.bf16.msra.mxu1 %v4803_v33  ;;  %v211_v33 = vld [vmem:[%s8836_s25 + $0x3e0] sm:$0xff] }
  0x6f   :  { %919 = vmatmul.mubr.f32.gmra.mrb[8].mxu1 %v139_v38  ;;  %4805 = vmatprep.subr.bf16.mxu1 %v5571_v3  ;;  %v4818_v38 = vpack.c.bf16 %v461_v26, %v460_v25  ;;  %v566_v25 = vld [vmem:[%s8835_s2 + $0x4d0] sm:$0xff]  ;;  %v567_v26 = vld [vmem:[%s8835_s2 + $0x4d8] sm:$0xff] }
  0x70   :  { %1489 = vmatmul.mubr.f32.gmra.mrb[8].mxu0 %v145_v39  ;;  %923 = vmatprep.mubr.f32.mxu1 %v153_v40  ;;  %v462_v39 = vld [vmem:[%s8835_s2 + $0x190] sm:$0xff]  ;;  %v463_v40 = vld [vmem:[%s8835_s2 + $0x198] sm:$0xff]  ;;  %v4977_v37 = vpack.c.bf16 %v567_v26, %v566_v25  ;;  %v347_v25 = vld [vmem:[%s8836_s25 + $0x820] sm:$0xff] }
  0x71   :  { %1493 = vmatprep.mubr.f32.mxu0 %v159_v43  ;;  %4951 = vmatpush1.bf16.msra.mxu0 %v4950_v42  ;;  %v204_v42 = vld [vmem:[%s8836_s25 + $0x3a8] sm:$0xff]  ;;  %v210_v43 = vld [vmem:[%s8836_s25 + $0x3d8] sm:$0xff]  ;;  %v353_v26 = vld [vmem:[%s8836_s25 + $0x850] sm:$0xff] }
  0x72   :  { %4952 = vmatprep.subr.bf16.mxu0 %v5571_v3  ;;  %4807 = vmatpush1.bf16.msra.mxu1 %v4806_v47  ;;  %v224_v47 = vld [vmem:[%s8836_s25 + $0x448] sm:$0xff] }
  0x73   :  { %924 = vmatmul.mubr.f32.gmra.mrb[10].mxu1 %v152_v51  ;;  %4808 = vmatprep.subr.bf16.mxu1 %v5571_v3  ;;  %v4821_v51 = vpack.c.bf16 %v463_v40, %v462_v39  ;;  %v568_v39 = vld [vmem:[%s8835_s2 + $0x4e0] sm:$0xff]  ;;  %v569_v40 = vld [vmem:[%s8835_s2 + $0x4e8] sm:$0xff] }
  0x74   :  { %1494 = vmatmul.mubr.f32.gmra.mrb[10].mxu0 %v158_v52  ;;  %928 = vmatprep.mubr.f32.mxu1 %v166_v53  ;;  %v464_v52 = vld [vmem:[%s8835_s2 + $0x1a0] sm:$0xff]  ;;  %v465_v53 = vld [vmem:[%s8835_s2 + $0x1a8] sm:$0xff]  ;;  %v4980_v49 = vpack.c.bf16 %v569_v40, %v568_v39  ;;  %v373_v39 = vld [vmem:[%s8836_s25 + $0x8f0] sm:$0xff] }
  0x75   :  { %1498 = vmatprep.mubr.f32.mxu0 %v172_v55  ;;  %4954 = vmatpush1.bf16.msra.mxu0 %v4953_v54  ;;  %v217_v54 = vld [vmem:[%s8836_s25 + $0x410] sm:$0xff]  ;;  %v223_v55 = vld [vmem:[%s8836_s25 + $0x440] sm:$0xff] }
  0x76   :  { %4955 = vmatprep.subr.bf16.mxu0 %v5571_v3  ;;  %4810 = vmatpush1.bf16.msra.mxu1 %v4809_v59  ;;  %v237_v59 = vld [vmem:[%s8836_s25 + $0x4b0] sm:$0xff]  ;;  %v95_v40 = vld [vmem:[%s8836_s25 + $0x40] sm:$0xff] }
  0x77   :  { %929 = vmatmul.mubr.f32.gmra.mrb[12].mxu1 %v165_v63  ;;  %4811 = vmatprep.subr.bf16.mxu1 %v5571_v3  ;;  %v4824_v63 = vpack.c.bf16 %v465_v53, %v464_v52  ;;  %v570_v52 = vld [vmem:[%s8835_s2 + $0x4f0] sm:$0xff]  ;;  %v571_v53 = vld [vmem:[%s8835_s2 + $0x4f8] sm:$0xff] }
  0x78   :  { %1499 = vmatmul.mubr.f32.gmra.mrb[12].mxu0 %v171_v0  ;;  %933 = vmatprep.mubr.f32.mxu1 %v179_v1  ;;  %v466_v0 = vld [vmem:[%s8835_s2 + $0x1b0] sm:$0xff]  ;;  %v467_v1 = vld [vmem:[%s8835_s2 + $0x1b8] sm:$0xff]  ;;  %v4983_v61 = vpack.c.bf16 %v571_v53, %v570_v52 }
  0x79   :  { %1503 = vmatprep.mubr.f32.mxu0 %v185_v4  ;;  %4957 = vmatpush1.bf16.msra.mxu0 %v4956_v2  ;;  %v230_v2 = vld [vmem:[%s8836_s25 + $0x478] sm:$0xff]  ;;  %v236_v4 = vld [vmem:[%s8836_s25 + $0x4a8] sm:$0xff] }
  0x7a   :  { %4958 = vmatprep.subr.bf16.mxu0 %v5571_v3  ;;  %4813 = vmatpush1.bf16.msra.mxu1 %v4812_v9  ;;  %v250_v9 = vld [vmem:[%s8836_s25 + $0x518] sm:$0xff] }
  0x7b   :  { %934 = vmatmul.mubr.f32.gmra.mrb[14].mxu1 %v178_v14  ;;  %4814 = vmatprep.subr.bf16.mxu1 %v5571_v3  ;;  %v4827_v14 = vpack.c.bf16 %v467_v1, %v466_v0  ;;  %v295_v1 = vld [vmem:[%s8836_s25 + $0x680] sm:$0xff]  ;;  %v122_v53 = vld [vmem:[%s8836_s25 + $0x118] sm:$0xff] }
  0x7c   :  { %1504 = vmatmul.mubr.f32.gmra.mrb[14].mxu0 %v184_v15  ;;  %938 = vmatprep.mubr.f32.mxu1 %v192_v16  ;;  %v468_v15 = vld [vmem:[%s8835_s2 + $0x1c0] sm:$0xff]  ;;  %v469_v16 = vld [vmem:[%s8835_s2 + $0x1c8] sm:$0xff] }
  0x7d   :  { %1508 = vmatprep.mubr.f32.mxu0 %v198_v19  ;;  %4960 = vmatpush1.bf16.msra.mxu0 %v4959_v17  ;;  %v243_v17 = vld [vmem:[%s8836_s25 + $0x4e0] sm:$0xff]  ;;  %v249_v19 = vld [vmem:[%s8836_s25 + $0x510] sm:$0xff] }
  0x7e   :  { %4961 = vmatprep.subr.bf16.mxu0 %v5571_v3  ;;  %4816 = vmatpush1.bf16.msra.mxu1 %v4815_v23  ;;  %v263_v23 = vld [vmem:[%s8836_s25 + $0x580] sm:$0xff] }
  0x7f   :  { %939 = vmatmul.mubr.f32.gmra.mrb[16].mxu1 %v191_v28  ;;  %4817 = vmatprep.subr.bf16.mxu1 %v5571_v3  ;;  %v4830_v28 = vpack.c.bf16 %v469_v16, %v468_v15  ;;  %v327_v15 = vld [vmem:[%s8836_s25 + $0x780] sm:$0xff] }
  0x80   :  { %1509 = vmatmul.mubr.f32.gmra.mrb[16].mxu0 %v197_v29  ;;  %943 = vmatprep.mubr.f32.mxu1 %v205_v31  ;;  %v470_v29 = vld [vmem:[%s8835_s2 + $0x1d0] sm:$0xff]  ;;  %v471_v31 = vld [vmem:[%s8835_s2 + $0x1d8] sm:$0xff]  ;;  %v335_v16 = vld [vmem:[%s8836_s25 + $0x7c0] sm:$0xff] }
  0x81   :  { %1513 = vmatprep.mubr.f32.mxu0 %v211_v33  ;;  %4963 = vmatpush1.bf16.msra.mxu0 %v4962_v32  ;;  %v256_v32 = vld [vmem:[%s8836_s25 + $0x548] sm:$0xff]  ;;  %v262_v33 = vld [vmem:[%s8836_s25 + $0x578] sm:$0xff] }
  0x82   :  { %4964 = vmatprep.subr.bf16.mxu0 %v5571_v3  ;;  %4819 = vmatpush1.bf16.msra.mxu1 %v4818_v38  ;;  %v276_v38 = vld [vmem:[%s8836_s25 + $0x5e8] sm:$0xff] }
  0x83   :  { %944 = vmatmul.mubr.f32.gmra.mrb[18].mxu1 %v204_v42  ;;  %4820 = vmatprep.subr.bf16.mxu1 %v5571_v3  ;;  %v4833_v42 = vpack.c.bf16 %v471_v31, %v470_v29  ;;  %v367_v29 = vld [vmem:[%s8836_s25 + $0x8c0] sm:$0xff]  ;;  %v360_v31 = vld [vmem:[%s8836_s25 + $0x888] sm:$0xff] }
  0x84   :  { %1514 = vmatmul.mubr.f32.gmra.mrb[18].mxu0 %v210_v43  ;;  %948 = vmatprep.mubr.f32.mxu1 %v218_v45  ;;  %v472_v43 = vld [vmem:[%s8835_s2 + $0x1e0] sm:$0xff]  ;;  %v473_v45 = vld [vmem:[%s8835_s2 + $0x1e8] sm:$0xff] }
  0x85   :  { %1518 = vmatprep.mubr.f32.mxu0 %v224_v47  ;;  %4966 = vmatpush1.bf16.msra.mxu0 %v4965_v46  ;;  %v269_v46 = vld [vmem:[%s8836_s25 + $0x5b0] sm:$0xff]  ;;  %v275_v47 = vld [vmem:[%s8836_s25 + $0x5e0] sm:$0xff] }
  0x86   :  { %4967 = vmatprep.subr.bf16.mxu0 %v5571_v3  ;;  %4822 = vmatpush1.bf16.msra.mxu1 %v4821_v51  ;;  %v289_v51 = vld [vmem:[%s8836_s25 + $0x650] sm:$0xff] }
  0x87   :  { %949 = vmatmul.mubr.f32.gmra.mrb[20].mxu1 %v217_v54  ;;  %4823 = vmatprep.subr.bf16.mxu1 %v5571_v3  ;;  %v4836_v54 = vpack.c.bf16 %v473_v45, %v472_v43  ;;  %v109_v45 = vld [vmem:[%s8836_s25 + $0xb0] sm:$0xff] }
  0x88   :  { %1519 = vmatmul.mubr.f32.gmra.mrb[20].mxu0 %v223_v55  ;;  %953 = vmatprep.mubr.f32.mxu1 %v231_v57  ;;  %v474_v55 = vld [vmem:[%s8835_s2 + $0x1f0] sm:$0xff]  ;;  %v475_v57 = vld [vmem:[%s8835_s2 + $0x1f8] sm:$0xff] }
  0x89   :  { %1523 = vmatprep.mubr.f32.mxu0 %v237_v59  ;;  %4969 = vmatpush1.bf16.msra.mxu0 %v4968_v58  ;;  %v282_v58 = vld [vmem:[%s8836_s25 + $0x618] sm:$0xff]  ;;  %v288_v59 = vld [vmem:[%s8836_s25 + $0x648] sm:$0xff]  ;;  %v4839_v0 = vpack.c.bf16 %v475_v57, %v474_v55  ;;  %v399_v57 = vld [vmem:[%s8836_s25 + $0x9c0] sm:$0xf] }
  0x8a   :  { %4970 = vmatprep.subr.bf16.mxu0 %v5571_v3  ;;  %4825 = vmatpush1.bf16.msra.mxu1 %v4824_v63  ;;  %v302_v63 = vld [vmem:[%s8836_s25 + $0x6b8] sm:$0xff]  ;;  %v577_v55 = vld [vmem:[%s8835_s2 + $0x528] sm:$0xff] }
  0x8b   :  { %954 = vmatmul.mubr.f32.gmra.mrb[22].mxu1 %v230_v2  ;;  %4826 = vmatprep.subr.bf16.mxu1 %v5571_v3  ;;  %v301_v2 = vld [vmem:[%s8836_s25 + $0x6b0] sm:$0xff] }
  0x8c   :  { %1524 = vmatmul.mubr.f32.gmra.mrb[22].mxu0 %v236_v4  ;;  %958 = vmatprep.mubr.f32.mxu1 %v244_v6  ;;  %v309_v4 = vld [vmem:[%s8836_s25 + $0x6f0] sm:$0xff]  ;;  %v315_v6 = vld [vmem:[%s8836_s25 + $0x720] sm:$0xff] }
  0x8d   :  { %1528 = vmatprep.mubr.f32.mxu0 %v250_v9  ;;  %4972 = vmatpush1.bf16.msra.mxu0 %v4971_v7  ;;  %v308_v7 = vld [vmem:[%s8836_s25 + $0x6e8] sm:$0xff]  ;;  %v314_v9 = vld [vmem:[%s8836_s25 + $0x718] sm:$0xff] }
  0x8e   :  { %4973 = vmatprep.subr.bf16.mxu0 %v5571_v3  ;;  %4828 = vmatpush1.bf16.msra.mxu1 %v4827_v14  ;;  %v321_v14 = vld [vmem:[%s8836_s25 + $0x750] sm:$0xff] }
  0x8f   :  { %959 = vmatmul.mubr.f32.gmra.mrb[24].mxu1 %v243_v17  ;;  %4829 = vmatprep.subr.bf16.mxu1 %v5571_v3  ;;  %v341_v17 = vld [vmem:[%s8836_s25 + $0x7f0] sm:$0xff] }
  0x90   :  { %1529 = vmatmul.mubr.f32.gmra.mrb[24].mxu0 %v249_v19  ;;  %963 = vmatprep.mubr.f32.mxu1 %v257_v21  ;;  %v334_v19 = vld [vmem:[%s8836_s25 + $0x7b8] sm:$0xff]  ;;  %v340_v21 = vld [vmem:[%s8836_s25 + $0x7e8] sm:$0xff] }
  0x91   :  { %1533 = vmatprep.mubr.f32.mxu0 %v263_v23  ;;  %4975 = vmatpush1.bf16.msra.mxu0 %v4974_v22  ;;  %v348_v22 = vld [vmem:[%s8836_s25 + $0x828] sm:$0xff]  ;;  %v354_v23 = vld [vmem:[%s8836_s25 + $0x858] sm:$0xff] }
  0x92   :  { %4976 = vmatprep.subr.bf16.mxu0 %v5571_v3  ;;  %4831 = vmatpush1.bf16.msra.mxu1 %v4830_v28  ;;  %v361_v28 = vld [vmem:[%s8836_s25 + $0x890] sm:$0xff] }
  0x93   :  { %964 = vmatmul.mubr.f32.gmra.mrb[26].mxu1 %v256_v32  ;;  %4832 = vmatprep.subr.bf16.mxu1 %v5571_v3  ;;  %v366_v32 = vld [vmem:[%s8836_s25 + $0x8b8] sm:$0xff] }
  0x94   :  { %1534 = vmatmul.mubr.f32.gmra.mrb[26].mxu0 %v262_v33  ;;  %968 = vmatprep.mubr.f32.mxu1 %v270_v35  ;;  %v374_v33 = vld [vmem:[%s8836_s25 + $0x8f8] sm:$0xff]  ;;  %v96_v35 = vld [vmem:[%s8836_s25 + $0x48] sm:$0xff] }
  0x95   :  { %1538 = vmatprep.mubr.f32.mxu0 %v276_v38  ;;  %4978 = vmatpush1.bf16.msra.mxu0 %v4977_v37  ;;  %v572_v37 = vld [vmem:[%s8835_s2 + $0x500] sm:$0xff]  ;;  %v573_v38 = vld [vmem:[%s8835_s2 + $0x508] sm:$0xff] }
  0x96   :  { %4979 = vmatprep.subr.bf16.mxu0 %v5571_v3  ;;  %4834 = vmatpush1.bf16.msra.mxu1 %v4833_v42  ;;  %v387_v42 = vld [vmem:[%s8836_s25 + $0x960] sm:$0xff]  ;;  %v4986_v43 = vpack.c.bf16 %v573_v38, %v572_v37  ;;  %v129_v37 = vld [vmem:[%s8836_s25 + $0x150] sm:$0xff] }
  0x97   :  { %969 = vmatmul.mubr.f32.gmra.mrb[28].mxu1 %v269_v46  ;;  %4835 = vmatprep.subr.bf16.mxu1 %v5571_v3  ;;  %v574_v46 = vld [vmem:[%s8835_s2 + $0x510] sm:$0xff] }
  0x98   :  { %1539 = vmatmul.mubr.f32.gmra.mrb[28].mxu0 %v275_v47  ;;  %973 = vmatprep.mubr.f32.mxu1 %v283_v48  ;;  %v575_v47 = vld [vmem:[%s8835_s2 + $0x518] sm:$0xff] }
  0x99   :  { %1543 = vmatprep.mubr.f32.mxu0 %v289_v51  ;;  %4981 = vmatpush1.bf16.msra.mxu0 %v4980_v49  ;;  %v386_v48 = vld [vmem:[%s8836_s25 + $0x958] sm:$0xff]  ;;  %v108_v49 = vld [vmem:[%s8836_s25 + $0xa8] sm:$0xff]  ;;  %v4989_v52 = vpack.c.bf16 %v575_v47, %v574_v46 }
  0x9a   :  { %4982 = vmatprep.subr.bf16.mxu0 %v5571_v3  ;;  %4837 = vmatpush1.bf16.msra.mxu1 %v4836_v54  ;;  %v400_v51 = vld [vmem:[%s8836_s25 + $0x9c8] sm:$0xf]  ;;  %v576_v54 = vld [vmem:[%s8835_s2 + $0x520] sm:$0xff]  ;;  %v483_v46 = vld [vmem:[%s8835_s2 + $0x238] sm:$0xff] }
  0x9b   :  { %974 = vmatmul.mubr.f32.gmra.mrb[30].mxu1 %v282_v58  ;;  %4838 = vmatprep.subr.bf16.mxu1 %v5571_v3  ;;  %v121_v58 = vld [vmem:[%s8836_s25 + $0x110] sm:$0xff]  ;;  %v128_v47 = vld [vmem:[%s8836_s25 + $0x148] sm:$0xff] }
  0x9c   :  { %1544 = vmatmul.mubr.f32.gmra.mrb[30].mxu0 %v288_v59  ;;  %978 = vmatprep.mubr.f32.mxu1 %v296_v60  ;;  %v90_v59 = vld [vmem:[%s8836_s25 + $0x18] sm:$0xff]  ;;  %v4992_v60 = vpack.c.bf16 %v577_v55, %v576_v54 }
  0x9d   :  { %1548 = vmatprep.mubr.f32.mxu0 %v302_v63  ;;  %4984 = vmatpush1.bf16.msra.mxu0 %v4983_v61  ;;  %v135_v61 = vld [vmem:[%s8836_s25 + $0x180] sm:$0xff]  ;;  %v578_v63 = vld [vmem:[%s8835_s2 + $0x530] sm:$0xff]  ;;  %v587_v54 = vld [vmem:[%s8835_s2 + $0x578] sm:$0xff] }
  0x9e   :  { %4840 = vmatpush1.bf16.msra.mxu1 %v4839_v0  ;;  %4985 = vmatprep.subr.bf16.mxu0 %v5571_v3  ;;  %v579_v0 = vld [vmem:[%s8835_s2 + $0x538] sm:$0xff] }
  0x9f   :  { %979 = vmatmul.mubr.f32.gmra.mrb[32].mxu1 %v295_v1  ;;  %4841 = vmatprep.subr.bf16.mxu1 %v5571_v3  ;;  %v476_v1 = vld [vmem:[%s8835_s2 + $0x200] sm:$0xff] }
  0xa0   :  { %1549 = vmatmul.mubr.f32.gmra.mrb[32].mxu0 %v301_v2  ;;  %983 = vmatprep.mubr.f32.mxu1 %v309_v4  ;;  %v477_v2 = vld [vmem:[%s8835_s2 + $0x208] sm:$0xff]  ;;  %v89_v4 = vld [vmem:[%s8836_s25 + $0x10] sm:$0xff] }
  0xa1   :  { %1553 = vmatprep.mubr.f32.mxu0 %v315_v6  ;;  %v134_v6 = vld [vmem:[%s8836_s25 + $0x178] sm:$0xff] }
  0xa3   :  { %984 = vmatmul.mubr.f32.gmra.mrb[34].mxu1 %v308_v7  ;;  %v103_v7 = vld [vmem:[%s8836_s25 + $0x80] sm:$0xff] }
  0xa4   :  { %1554 = vmatmul.mubr.f32.gmra.mrb[34].mxu0 %v314_v9  ;;  %988 = vmatprep.mubr.f32.mxu1 %v322_v10  ;;  %v4995_v9 = vpack.c.bf16 %v579_v0, %v578_v63  ;;  %v148_v10 = vld [vmem:[%s8836_s25 + $0x1e8] sm:$0xff] }
  0xa5   :  { %1558 = vmatprep.mubr.f32.mxu0 %v328_v11  ;;  %v580_v11 = vld [vmem:[%s8835_s2 + $0x540] sm:$0xff]  ;;  %v200_v0 = vld [vmem:[%s8836_s25 + $0x388] sm:$0xff] }
  0xa7   :  { %989 = vmatmul.mubr.f32.gmra.mrb[36].mxu1 %v321_v14  ;;  %v581_v14 = vld [vmem:[%s8835_s2 + $0x548] sm:$0xff] }
  0xa8   :  { %1559 = vmatmul.mubr.f32.gmra.mrb[36].mxu0 %v327_v15  ;;  %993 = vmatprep.mubr.f32.mxu1 %v335_v16  ;;  %v4842_v15 = vpack.c.bf16 %v477_v2, %v476_v1  ;;  %v478_v16 = vld [vmem:[%s8835_s2 + $0x210] sm:$0xff]  ;;  %v588_v1 = vld [vmem:[%s8835_s2 + $0x580] sm:$0xff]  ;;  %v589_v2 = vld [vmem:[%s8835_s2 + $0x588] sm:$0xff] }
  0xa9   :  { %1563 = vmatprep.mubr.f32.mxu0 %v341_v17  ;;  %v479_v17 = vld [vmem:[%s8835_s2 + $0x218] sm:$0xff] }
  0xab   :  { %994 = vmatmul.mubr.f32.gmra.mrb[38].mxu1 %v334_v19  ;;  %v102_v19 = vld [vmem:[%s8836_s25 + $0x78] sm:$0xff] }
  0xac   :  { %1564 = vmatmul.mubr.f32.gmra.mrb[38].mxu0 %v340_v21  ;;  %998 = vmatprep.mubr.f32.mxu1 %v348_v22  ;;  %v147_v21 = vld [vmem:[%s8836_s25 + $0x1e0] sm:$0xff]  ;;  %v116_v22 = vld [vmem:[%s8836_s25 + $0xe8] sm:$0xff] }
  0xad   :  { %1568 = vmatprep.mubr.f32.mxu0 %v354_v23  ;;  %v4998_v23 = vpack.c.bf16 %v581_v14, %v580_v11  ;;  %v168_v11 = vld [vmem:[%s8836_s25 + $0x288] sm:$0xff]  ;;  %v5010_v14 = vpack.c.bf16 %v589_v2, %v588_v1 }
  0xae   :  { %v220_v1 = vld [vmem:[%s8836_s25 + $0x428] sm:$0xff] }
  0xaf   :  { %999 = vmatmul.mubr.f32.gmra.mrb[40].mxu1 %v347_v25  ;;  %v161_v25 = vld [vmem:[%s8836_s25 + $0x250] sm:$0xff] }
  0xb0   :  { %1569 = vmatmul.mubr.f32.gmra.mrb[40].mxu0 %v353_v26  ;;  %1003 = vmatprep.mubr.f32.mxu1 %v361_v28  ;;  %v582_v26 = vld [vmem:[%s8835_s2 + $0x550] sm:$0xff]  ;;  %v583_v28 = vld [vmem:[%s8835_s2 + $0x558] sm:$0xff] }
  0xb1   :  { %1573 = vmatprep.mubr.f32.mxu0 %v367_v29  ;;  %v4845_v29 = vpack.c.bf16 %v479_v17, %v478_v16  ;;  %v5001_v38 = vpack.c.bf16 %v583_v28, %v582_v26  ;;  %v590_v16 = vld [vmem:[%s8835_s2 + $0x590] sm:$0xff]  ;;  %v591_v17 = vld [vmem:[%s8835_s2 + $0x598] sm:$0xff] }
  0xb2   :  { %v181_v26 = vld [vmem:[%s8836_s25 + $0x2f0] sm:$0xff]  ;;  %v5013_v28 = vpack.c.bf16 %v591_v17, %v590_v16 }
  0xb3   :  { %1004 = vmatmul.mubr.f32.gmra.mrb[42].mxu1 %v360_v31  ;;  %v480_v31 = vld [vmem:[%s8835_s2 + $0x220] sm:$0xff]  ;;  %v233_v16 = vld [vmem:[%s8836_s25 + $0x490] sm:$0xff] }
  0xb4   :  { %1574 = vmatmul.mubr.f32.gmra.mrb[42].mxu0 %v366_v32  ;;  %1008 = vmatprep.mubr.f32.mxu1 %v374_v33  ;;  %v481_v32 = vld [vmem:[%s8835_s2 + $0x228] sm:$0xff]  ;;  %v115_v33 = vld [vmem:[%s8836_s25 + $0xe0] sm:$0xff] }
  0xb5   :  { %1658 = vmatprep.mubr.f32.mxu0 %v96_v35  ;;  %v160_v35 = vld [vmem:[%s8836_s25 + $0x248] sm:$0xff] }
  0xb7   :  { %1009 = vmatmul.mubr.f32.gmra.mrb[44].mxu1 %v373_v39  ;;  %v174_v39 = vld [vmem:[%s8836_s25 + $0x2b8] sm:$0xff] }
  0xb8   :  { %1659 = vmatmul.mubr.f32.vlgmr.msra.gmra.mrb[0].mxu0 %v95_v40  ;;  %1013 = vmatprep.mubr.f32.mxu1 %v387_v42  ;;  %v584_v40 = vld [vmem:[%s8835_s2 + $0x560] sm:$0xff]  ;;  %v585_v42 = vld [vmem:[%s8835_s2 + $0x568] sm:$0xff] }
  0xb9   :  { %1663 = vmatprep.mubr.f32.mxu0 %v109_v45  ;;  %4987 = vmatpush1.bf16.msra.mxu0 %v4986_v43  ;;  %v4848_v43 = vpack.c.bf16 %v481_v32, %v480_v31  ;;  %v482_v45 = vld [vmem:[%s8835_s2 + $0x230] sm:$0xff]  ;;  %v592_v32 = vld [vmem:[%s8835_s2 + $0x5a0] sm:$0xff] }
  0xba   :  { %4988 = vmatprep.subr.bf16.mxu0 %v5571_v3  ;;  %v4851_v55 = vpack.c.bf16 %v483_v46, %v482_v45  ;;  %v594_v46 = vld [vmem:[%s8835_s2 + $0x5b0] sm:$0xff] }
  0xbb   :  { %1014 = vmatmul.mubr.f32.gmra.mrb[46].mxu1 %v386_v48  ;;  %v173_v48 = vld [vmem:[%s8836_s25 + $0x2b0] sm:$0xff] }
  0xbc   :  { %1664 = vmatmul.mubr.f32.gmra.mrb[2].mxu0 %v108_v49  ;;  %1018 = vmatprep.mubr.f32.mxu1 %v400_v51  ;;  %v142_v49 = vld [vmem:[%s8836_s25 + $0x1b8] sm:$0xff]  ;;  %v5004_v51 = vpack.c.bf16 %v585_v42, %v584_v40 }
  0xbd   :  { %1668 = vmatprep.mubr.f32.mxu0 %v122_v53  ;;  %4990 = vmatpush1.bf16.msra.mxu0 %v4989_v52  ;;  %v187_v52 = vld [vmem:[%s8836_s25 + $0x320] sm:$0xff]  ;;  %v586_v53 = vld [vmem:[%s8835_s2 + $0x570] sm:$0xff]  ;;  %v194_v40 = vld [vmem:[%s8836_s25 + $0x358] sm:$0xff] }
  0xbe   :  { %4991 = vmatprep.subr.bf16.mxu0 %v5571_v3  ;;  %v5007_v63 = vpack.c.bf16 %v587_v54, %v586_v53  ;;  %v207_v53 = vld [vmem:[%s8836_s25 + $0x3c0] sm:$0xff] }
  0xbf   :  { %1019 = vmatmul.mubr.f32.gmra.mrb[48].mxu1 %v399_v57  ;;  %v484_v57 = vld [vmem:[%s8835_s2 + $0x240] sm:$0xff] }
  0xc0   :  { %1669 = vmatmul.mubr.f32.gmra.mrb[4].mxu0 %v121_v58  ;;  %1088 = vmatprep.mubr.f32.mxu1 %v90_v59  ;;  %v485_v58 = vld [vmem:[%s8835_s2 + $0x248] sm:$0xff]  ;;  %v141_v59 = vld [vmem:[%s8836_s25 + $0x1b0] sm:$0xff] }
  0xc1   :  { %1673 = vmatprep.mubr.f32.mxu0 %v135_v61  ;;  %4993 = vmatpush1.bf16.msra.mxu0 %v4992_v60  ;;  %v186_v60 = vld [vmem:[%s8836_s25 + $0x318] sm:$0xff]  ;;  %v155_v61 = vld [vmem:[%s8836_s25 + $0x220] sm:$0xff] }
  0xc2   :  { %4994 = vmatprep.subr.bf16.mxu0 %v5571_v3 }
  0xc3   :  { %1089 = vmatmul.mubr.f32.vlgmr.msra.gmra.mrb[0].mxu1 %v89_v4  ;;  %v4854_v4 = vpack.c.bf16 %v485_v58, %v484_v57  ;;  %v596_v58 = vld [vmem:[%s8835_s2 + $0x5c0] sm:$0xff] }
  0xc4   :  { %1674 = vmatmul.mubr.f32.gmra.mrb[6].mxu0 %v134_v6  ;;  %1093 = vmatprep.mubr.f32.mxu1 %v103_v7  ;;  %v486_v6 = vld [vmem:[%s8835_s2 + $0x250] sm:$0xff]  ;;  %v487_v7 = vld [vmem:[%s8835_s2 + $0x258] sm:$0xff] }
  0xc5   :  { %1678 = vmatprep.mubr.f32.mxu0 %v148_v10  ;;  %4996 = vmatpush1.bf16.msra.mxu0 %v4995_v9  ;;  %v154_v9 = vld [vmem:[%s8836_s25 + $0x218] sm:$0xff]  ;;  %v199_v10 = vld [vmem:[%s8836_s25 + $0x380] sm:$0xff] }
  0xc6   :  { %4997 = vmatprep.subr.bf16.mxu0 %v5571_v3  ;;  %4843 = vmatpush1.bf16.msra.mxu1 %v4842_v15  ;;  %v213_v15 = vld [vmem:[%s8836_s25 + $0x3f0] sm:$0xff] }
  0xc7   :  { %1094 = vmatmul.mubr.f32.gmra.mrb[2].mxu1 %v102_v19  ;;  %4844 = vmatprep.subr.bf16.mxu1 %v5571_v3  ;;  %v4857_v19 = vpack.c.bf16 %v487_v7, %v486_v6  ;;  %v598_v7 = vld [vmem:[%s8835_s2 + $0x5d0] sm:$0xff] }
  0xc8   :  { %1679 = vmatmul.mubr.f32.gmra.mrb[8].mxu0 %v147_v21  ;;  %1098 = vmatprep.mubr.f32.mxu1 %v116_v22  ;;  %v488_v21 = vld [vmem:[%s8835_s2 + $0x260] sm:$0xff]  ;;  %v489_v22 = vld [vmem:[%s8835_s2 + $0x268] sm:$0xff] }
  0xc9   :  { %1683 = vmatprep.mubr.f32.mxu0 %v161_v25  ;;  %4999 = vmatpush1.bf16.msra.mxu0 %v4998_v23  ;;  %v167_v23 = vld [vmem:[%s8836_s25 + $0x280] sm:$0xff]  ;;  %v212_v25 = vld [vmem:[%s8836_s25 + $0x3e8] sm:$0xff]  ;;  %v4860_v31 = vpack.c.bf16 %v489_v22, %v488_v21 }
  0xca   :  { %5000 = vmatprep.subr.bf16.mxu0 %v5571_v3  ;;  %4846 = vmatpush1.bf16.msra.mxu1 %v4845_v29  ;;  %v226_v29 = vld [vmem:[%s8836_s25 + $0x458] sm:$0xff]  ;;  %v600_v22 = vld [vmem:[%s8835_s2 + $0x5e0] sm:$0xff] }
  0xcb   :  { %1099 = vmatmul.mubr.f32.gmra.mrb[4].mxu1 %v115_v33  ;;  %4847 = vmatprep.subr.bf16.mxu1 %v5571_v3  ;;  %v593_v33 = vld [vmem:[%s8835_s2 + $0x5a8] sm:$0xff] }
  0xcc   :  { %1684 = vmatmul.mubr.f32.gmra.mrb[10].mxu0 %v160_v35  ;;  %1103 = vmatprep.mubr.f32.mxu1 %v129_v37  ;;  %v490_v35 = vld [vmem:[%s8835_s2 + $0x270] sm:$0xff]  ;;  %v491_v37 = vld [vmem:[%s8835_s2 + $0x278] sm:$0xff]  ;;  %v5016_v42 = vpack.c.bf16 %v593_v33, %v592_v32  ;;  %v291_v33 = vld [vmem:[%s8836_s25 + $0x660] sm:$0xff] }
  0xcd   :  { %1688 = vmatprep.mubr.f32.mxu0 %v174_v39  ;;  %5002 = vmatpush1.bf16.msra.mxu0 %v5001_v38  ;;  %v180_v38 = vld [vmem:[%s8836_s25 + $0x2e8] sm:$0xff]  ;;  %v225_v39 = vld [vmem:[%s8836_s25 + $0x450] sm:$0xff]  ;;  %v4863_v45 = vpack.c.bf16 %v491_v37, %v490_v35 }
  0xce   :  { %5003 = vmatprep.subr.bf16.mxu0 %v5571_v3  ;;  %4849 = vmatpush1.bf16.msra.mxu1 %v4848_v43  ;;  %v239_v43 = vld [vmem:[%s8836_s25 + $0x4c0] sm:$0xff]  ;;  %v602_v37 = vld [vmem:[%s8835_s2 + $0x5f0] sm:$0xff] }
  0xcf   :  { %1104 = vmatmul.mubr.f32.gmra.mrb[6].mxu1 %v128_v47  ;;  %4850 = vmatprep.subr.bf16.mxu1 %v5571_v3  ;;  %v595_v47 = vld [vmem:[%s8835_s2 + $0x5b8] sm:$0xff] }
  0xd0   :  { %1689 = vmatmul.mubr.f32.gmra.mrb[12].mxu0 %v173_v48  ;;  %1108 = vmatprep.mubr.f32.mxu1 %v142_v49  ;;  %v492_v48 = vld [vmem:[%s8835_s2 + $0x280] sm:$0xff]  ;;  %v493_v49 = vld [vmem:[%s8835_s2 + $0x288] sm:$0xff]  ;;  %v5019_v54 = vpack.c.bf16 %v595_v47, %v594_v46 }
  0xd1   :  { %1693 = vmatprep.mubr.f32.mxu0 %v187_v52  ;;  %5005 = vmatpush1.bf16.msra.mxu0 %v5004_v51  ;;  %v193_v51 = vld [vmem:[%s8836_s25 + $0x350] sm:$0xff]  ;;  %v238_v52 = vld [vmem:[%s8836_s25 + $0x4b8] sm:$0xff]  ;;  %v4866_v57 = vpack.c.bf16 %v493_v49, %v492_v48  ;;  %v304_v47 = vld [vmem:[%s8836_s25 + $0x6c8] sm:$0xff] }
  0xd2   :  { %5006 = vmatprep.subr.bf16.mxu0 %v5571_v3  ;;  %4852 = vmatpush1.bf16.msra.mxu1 %v4851_v55  ;;  %v252_v55 = vld [vmem:[%s8836_s25 + $0x528] sm:$0xff]  ;;  %v502_v49 = vld [vmem:[%s8835_s2 + $0x2d0] sm:$0xff] }
  0xd3   :  { %1109 = vmatmul.mubr.f32.gmra.mrb[8].mxu1 %v141_v59  ;;  %4853 = vmatprep.subr.bf16.mxu1 %v5571_v3  ;;  %v597_v59 = vld [vmem:[%s8835_s2 + $0x5c8] sm:$0xff] }
  0xd4   :  { %1694 = vmatmul.mubr.f32.gmra.mrb[14].mxu0 %v186_v60  ;;  %1113 = vmatprep.mubr.f32.mxu1 %v155_v61  ;;  %v494_v60 = vld [vmem:[%s8835_s2 + $0x290] sm:$0xff]  ;;  %v495_v61 = vld [vmem:[%s8835_s2 + $0x298] sm:$0xff]  ;;  %v5022_v2 = vpack.c.bf16 %v597_v59, %v596_v58  ;;  %v504_v58 = vld [vmem:[%s8835_s2 + $0x2e0] sm:$0xff] }
  0xd5   :  { %1698 = vmatprep.mubr.f32.mxu0 %v200_v0  ;;  %5008 = vmatpush1.bf16.msra.mxu0 %v5007_v63  ;;  %v206_v63 = vld [vmem:[%s8836_s25 + $0x3b8] sm:$0xff]  ;;  %v251_v0 = vld [vmem:[%s8836_s25 + $0x520] sm:$0xff]  ;;  %v4869_v6 = vpack.c.bf16 %v495_v61, %v494_v60  ;;  %v505_v59 = vld [vmem:[%s8835_s2 + $0x2e8] sm:$0xff] }
  0xd6   :  { %5009 = vmatprep.subr.bf16.mxu0 %v5571_v3  ;;  %4855 = vmatpush1.bf16.msra.mxu1 %v4854_v4  ;;  %v265_v4 = vld [vmem:[%s8836_s25 + $0x590] sm:$0xff]  ;;  %v271_v60 = vld [vmem:[%s8836_s25 + $0x5c0] sm:$0xff]  ;;  %v316_v61 = vld [vmem:[%s8836_s25 + $0x728] sm:$0xff] }
  0xd7   :  { %1114 = vmatmul.mubr.f32.gmra.mrb[10].mxu1 %v154_v9  ;;  %4856 = vmatprep.subr.bf16.mxu1 %v5571_v3  ;;  %v599_v9 = vld [vmem:[%s8835_s2 + $0x5d8] sm:$0xff] }
  0xd8   :  { %1699 = vmatmul.mubr.f32.gmra.mrb[16].mxu0 %v199_v10  ;;  %1118 = vmatprep.mubr.f32.mxu1 %v168_v11  ;;  %v496_v10 = vld [vmem:[%s8835_s2 + $0x2a0] sm:$0xff]  ;;  %v497_v11 = vld [vmem:[%s8835_s2 + $0x2a8] sm:$0xff]  ;;  %v5025_v17 = vpack.c.bf16 %v599_v9, %v598_v7  ;;  %v507_v7 = vld [vmem:[%s8835_s2 + $0x2f8] sm:$0xff] }
  0xd9   :  { %1703 = vmatprep.mubr.f32.mxu0 %v213_v15  ;;  %5011 = vmatpush1.bf16.msra.mxu0 %v5010_v14  ;;  %v219_v14 = vld [vmem:[%s8836_s25 + $0x420] sm:$0xff]  ;;  %v264_v15 = vld [vmem:[%s8836_s25 + $0x588] sm:$0xff]  ;;  %v4872_v21 = vpack.c.bf16 %v497_v11, %v496_v10  ;;  %v329_v10 = vld [vmem:[%s8836_s25 + $0x790] sm:$0xff] }
  0xda   :  { %5012 = vmatprep.subr.bf16.mxu0 %v5571_v3  ;;  %4858 = vmatpush1.bf16.msra.mxu1 %v4857_v19  ;;  %v278_v19 = vld [vmem:[%s8836_s25 + $0x5f8] sm:$0xff]  ;;  %v284_v9 = vld [vmem:[%s8836_s25 + $0x628] sm:$0xff] }
  0xdb   :  { %1119 = vmatmul.mubr.f32.gmra.mrb[12].mxu1 %v167_v23  ;;  %4859 = vmatprep.subr.bf16.mxu1 %v5571_v3  ;;  %v601_v23 = vld [vmem:[%s8835_s2 + $0x5e8] sm:$0xff]  ;;  %v298_v11 = vld [vmem:[%s8836_s25 + $0x698] sm:$0xff] }
  0xdc   :  { %1704 = vmatmul.mubr.f32.gmra.mrb[18].mxu0 %v212_v25  ;;  %1123 = vmatprep.mubr.f32.mxu1 %v181_v26  ;;  %v498_v25 = vld [vmem:[%s8835_s2 + $0x2b0] sm:$0xff]  ;;  %v499_v26 = vld [vmem:[%s8835_s2 + $0x2b8] sm:$0xff]  ;;  %v5028_v32 = vpack.c.bf16 %v601_v23, %v600_v22  ;;  %v356_v23 = vld [vmem:[%s8836_s25 + $0x868] sm:$0xff] }
  0xdd   :  { %1708 = vmatprep.mubr.f32.mxu0 %v226_v29  ;;  %5014 = vmatpush1.bf16.msra.mxu0 %v5013_v28  ;;  %v232_v28 = vld [vmem:[%s8836_s25 + $0x488] sm:$0xff]  ;;  %v277_v29 = vld [vmem:[%s8836_s25 + $0x5f0] sm:$0xff]  ;;  %v4875_v35 = vpack.c.bf16 %v499_v26, %v498_v25  ;;  %v612_v25 = vld [vmem:[%s8837_s26 + $0x20] sm:$0xff] }
  0xde   :  { %4861 = vmatpush1.bf16.msra.mxu1 %v4860_v31  ;;  %5015 = vmatprep.subr.bf16.mxu0 %v5571_v3  ;;  %v246_v31 = vld [vmem:[%s8836_s25 + $0x4f8] sm:$0xff]  ;;  %v610_v22 = vld [vmem:[%s8837_s26 + $0x10] sm:$0xff] }
  0xdf   :  { %1124 = vmatmul.mubr.f32.gmra.mrb[14].mxu1 %v180_v38  ;;  %4862 = vmatprep.subr.bf16.mxu1 %v5571_v3  ;;  %v603_v38 = vld [vmem:[%s8835_s2 + $0x5f8] sm:$0xff] }
  0xe0   :  { %1709 = vmatmul.mubr.f32.gmra.mrb[20].mxu0 %v225_v39  ;;  %1128 = vmatprep.mubr.f32.mxu1 %v194_v40  ;;  %v500_v39 = vld [vmem:[%s8835_s2 + $0x2c0] sm:$0xff]  ;;  %v501_v40 = vld [vmem:[%s8835_s2 + $0x2c8] sm:$0xff]  ;;  %v5031_v46 = vpack.c.bf16 %v603_v38, %v602_v37  ;;  %v310_v26 = vld [vmem:[%s8836_s25 + $0x6f8] sm:$0xff] }
  0xe1   :  { %1713 = vmatprep.mubr.f32.mxu0 %v239_v43  ;;  %5017 = vmatpush1.bf16.msra.mxu0 %v5016_v42  ;;  %v245_v42 = vld [vmem:[%s8836_s25 + $0x4f0] sm:$0xff]  ;;  %v290_v43 = vld [vmem:[%s8836_s25 + $0x658] sm:$0xff]  ;;  %v4878_v48 = vpack.c.bf16 %v501_v40, %v500_v39  ;;  %v336_v39 = vld [vmem:[%s8836_s25 + $0x7c8] sm:$0xff] }
  0xe2   :  { %4864 = vmatpush1.bf16.msra.mxu1 %v4863_v45  ;;  %5018 = vmatprep.subr.bf16.mxu0 %v5571_v3  ;;  %v259_v45 = vld [vmem:[%s8836_s25 + $0x560] sm:$0xff]  ;;  %v337_v37 = vld [vmem:[%s8836_s25 + $0x7d0] sm:$0xff]  ;;  %v382_v38 = vld [vmem:[%s8836_s25 + $0x938] sm:$0xff] }
  0xe3   :  { %1129 = vmatmul.mubr.f32.gmra.mrb[16].mxu1 %v193_v51  ;;  %4865 = vmatprep.subr.bf16.mxu1 %v5571_v3  ;;  %v503_v51 = vld [vmem:[%s8835_s2 + $0x2d8] sm:$0xff]  ;;  %v381_v40 = vld [vmem:[%s8836_s25 + $0x930] sm:$0xff] }
  0xe4   :  { %1714 = vmatmul.mubr.f32.gmra.mrb[22].mxu0 %v238_v52  ;;  %1133 = vmatprep.mubr.f32.mxu1 %v207_v53  ;;  %v258_v52 = vld [vmem:[%s8836_s25 + $0x558] sm:$0xff]  ;;  %v303_v53 = vld [vmem:[%s8836_s25 + $0x6c0] sm:$0xff] }
  0xe5   :  { %1718 = vmatprep.mubr.f32.mxu0 %v252_v55  ;;  %5020 = vmatpush1.bf16.msra.mxu0 %v5019_v54  ;;  %v272_v54 = vld [vmem:[%s8836_s25 + $0x5c8] sm:$0xff]  ;;  %v317_v55 = vld [vmem:[%s8836_s25 + $0x730] sm:$0xff] }
  0xe6   :  { %4867 = vmatpush1.bf16.msra.mxu1 %v4866_v57  ;;  %5021 = vmatprep.subr.bf16.mxu0 %v5571_v3  ;;  %v4881_v57 = vpack.c.bf16 %v503_v51, %v502_v49  ;;  %v614_v49 = vld [vmem:[%s8837_s26 + $0x30] sm:$0xff]  ;;  %v408_v51 = vld [vmem:[%s8836_s25 + $0xa08] sm:$0xf] }
  0xe7   :  { %1134 = vmatmul.mubr.f32.gmra.mrb[18].mxu1 %v206_v63  ;;  %4868 = vmatprep.subr.bf16.mxu1 %v5571_v3  ;;  %v285_v63 = vld [vmem:[%s8836_s25 + $0x630] sm:$0xff] }
  0xe8   :  { %1719 = vmatmul.mubr.f32.gmra.mrb[24].mxu0 %v251_v0  ;;  %1138 = vmatprep.mubr.f32.mxu1 %v220_v1  ;;  %v5572_v0 = vmov 0   ;;  %v608_v1 = vld [vmem:[%s8837_s26] sm:$0xff] }
  0xe9   :  { %1723 = vmatprep.mubr.f32.mxu0 %v265_v4  ;;  %5023 = vmatpush1.bf16.msra.mxu0 %v5022_v2  ;;  %v330_v2 = vld [vmem:[%s8836_s25 + $0x798] sm:$0xff]  ;;  %v4884_v4 = vpack.c.bf16 %v505_v59, %v504_v58  ;;  %v604_v58 = vld [vmem:[%s8835_s2 + $0x600] sm:$0xff]  ;;  %v605_v59 = vld [vmem:[%s8835_s2 + $0x608] sm:$0xff] }
  0xea   :  { %4870 = vmatpush1.bf16.msra.mxu1 %v4869_v6  ;;  %5024 = vmatprep.subr.bf16.mxu0 %v5571_v3  ;;  %v506_v6 = vld [vmem:[%s8835_s2 + $0x2f0] sm:$0xff] }
  0xeb   :  { %1139 = vmatmul.mubr.f32.gmra.mrb[20].mxu1 %v219_v14  ;;  %4871 = vmatprep.subr.bf16.mxu1 %v5571_v3  ;;  %v609_v14 = vld [vmem:[%s8837_s26 + $0x8] sm:$0xff] }
  0xec   :  { %1724 = vmatmul.mubr.f32.gmra.mrb[26].mxu0 %v264_v15  ;;  %1143 = vmatprep.mubr.f32.mxu1 %v233_v16  ;;  %v343_v15 = vld [vmem:[%s8836_s25 + $0x800] sm:$0xff]  ;;  %v4887_v16 = vpack.c.bf16 %v507_v7, %v506_v6  ;;  %v606_v6 = vld [vmem:[%s8835_s2 + $0x610] sm:$0xff]  ;;  %v607_v7 = vld [vmem:[%s8835_s2 + $0x618] sm:$0xff]  ;;  %s8839_s2 = sld [smem:[#allocation12_spill]] }
  0xed   :  { %1728 = vmatprep.mubr.f32.mxu0 %v278_v19  ;;  %5026 = vmatpush1.bf16.msra.mxu0 %v5025_v17  ;;  %v297_v17 = vld [vmem:[%s8836_s25 + $0x690] sm:$0xff]  ;;  %v342_v19 = vld [vmem:[%s8836_s25 + $0x7f8] sm:$0xff] }
  0xee   :  { %4873 = vmatpush1.bf16.msra.mxu1 %v4872_v21  ;;  %5027 = vmatprep.subr.bf16.mxu0 %v5571_v3  ;;  %v311_v21 = vld [vmem:[%s8836_s25 + $0x700] sm:$0xff] }
  0xef   :  { %1144 = vmatmul.mubr.f32.gmra.mrb[22].mxu1 %v232_v28  ;;  %4874 = vmatprep.subr.bf16.mxu1 %v5571_v3  ;;  %v355_v28 = vld [vmem:[%s8836_s25 + $0x860] sm:$0xff] }
  0xf0   :  { %1729 = vmatmul.mubr.f32.gmra.mrb[28].mxu0 %v277_v29  ;;  %1148 = vmatprep.mubr.f32.mxu1 %v246_v31  ;;  %v324_v29 = vld [vmem:[%s8836_s25 + $0x768] sm:$0xff]  ;;  %v369_v31 = vld [vmem:[%s8836_s25 + $0x8d0] sm:$0xff] }
  0xf1   :  { %1733 = vmatprep.mubr.f32.mxu0 %v291_v33  ;;  %5029 = vmatpush1.bf16.msra.mxu0 %v5028_v32  ;;  %v611_v32 = vld [vmem:[%s8837_s26 + $0x18] sm:$0xff]  ;;  %v323_v33 = vld [vmem:[%s8836_s25 + $0x760] sm:$0xff] }
  0xf2   :  { %4876 = vmatpush1.bf16.msra.mxu1 %v4875_v35  ;;  %5030 = vmatprep.subr.bf16.mxu0 %v5571_v3  ;;  %v368_v35 = vld [vmem:[%s8836_s25 + $0x8c8] sm:$0xff] }
  0xf3   :  { %1149 = vmatmul.mubr.f32.gmra.mrb[24].mxu1 %v245_v42  ;;  %4877 = vmatprep.subr.bf16.mxu1 %v5571_v3  ;;  %v350_v42 = vld [vmem:[%s8836_s25 + $0x838] sm:$0xff] }
  0xf4   :  { %1734 = vmatmul.mubr.f32.gmra.mrb[30].mxu0 %v290_v43  ;;  %1153 = vmatprep.mubr.f32.mxu1 %v259_v45  ;;  %v613_v43 = vld [vmem:[%s8837_s26 + $0x28] sm:$0xff]  ;;  %v395_v45 = vld [vmem:[%s8836_s25 + $0x9a0] sm:$0xff] }
  0xf5   :  { %1738 = vmatprep.mubr.f32.mxu0 %v304_v47  ;;  %5032 = vmatpush1.bf16.msra.mxu0 %v5031_v46  ;;  %v349_v46 = vld [vmem:[%s8836_s25 + $0x830] sm:$0xff]  ;;  %v394_v47 = vld [vmem:[%s8836_s25 + $0x998] sm:$0xff] }
  0xf6   :  { %4879 = vmatpush1.bf16.msra.mxu1 %v4878_v48  ;;  %5033 = vmatprep.subr.bf16.mxu0 %v5571_v3  ;;  %v363_v48 = vld [vmem:[%s8836_s25 + $0x8a0] sm:$0xff] }
  0xf7   :  { %1154 = vmatmul.mubr.f32.gmra.mrb[26].mxu1 %v258_v52  ;;  %4880 = vmatprep.subr.bf16.mxu1 %v5571_v3  ;;  %v362_v52 = vld [vmem:[%s8836_s25 + $0x898] sm:$0xff] }
  0xf8   :  { %1739 = vmatmul.mubr.f32.gmra.mrb[32].mxu0 %v303_v53  ;;  %1158 = vmatprep.mubr.f32.mxu1 %v272_v54  ;;  %v407_v53 = vld [vmem:[%s8836_s25 + $0xa00] sm:$0xf]  ;;  %v376_v54 = vld [vmem:[%s8836_s25 + $0x908] sm:$0xff] }
  0xf9   :  { %1743 = vmatprep.mubr.f32.mxu0 %v317_v55  ;;  %5399 = vset.pattern.permute.xlu0 %v5572_v0  ;;  %v615_v55 = vld [vmem:[%s8837_s26 + $0x38] sm:$0xff] }
  0xfa   :  { %4882 = vmatpush1.bf16.msra.mxu1 %v4881_v57  ;;  %635 = vperm.xlu0 %5399, %v608_v1   ;;  %v98_v57 = vld [vmem:[%s8836_s25 + $0x58] sm:$0xff]  ;;  %v5034_v1 = vpack.c.bf16 %v605_v59, %v604_v58  ;;  %v215_v58 = vld [vmem:[%s8836_s25 + $0x400] sm:$0xff]  ;;  %v169_v59 = vld [vmem:[%s8836_s25 + $0x290] sm:$0xff] }
  0xfb   :  { %1159 = vmatmul.mubr.f32.gmra.mrb[28].mxu1 %v271_v60  ;;  %4883 = vmatprep.subr.bf16.mxu1 %v5571_v3  ;;  %v375_v60 = vld [vmem:[%s8836_s25 + $0x900] sm:$0xff] }
  0xfc   :  { %1744 = vmatmul.mubr.f32.gmra.mrb[34].mxu0 %v316_v61  ;;  %1163 = vmatprep.mubr.f32.mxu1 %v285_v63  ;;  %v97_v61 = vld [vmem:[%s8836_s25 + $0x50] sm:$0xff] }
  0xfd   :  { %1748 = vmatprep.mubr.f32.mxu0 %v330_v2  ;;  %5400 = vset.pattern.permute.xlu1 %v5572_v0  ;;  %v389_v63 = vld [vmem:[%s8836_s25 + $0x970] sm:$0xff]  ;;  %v616_v2 = vld [vmem:[%s8837_s26 + $0x40] sm:$0xff] }
  0xfe   :  { %4885 = vmatpush1.bf16.msra.mxu1 %v4884_v4  ;;  %640 = vperm.xlu1 %5400, %v609_v14   ;;  %v111_v4 = vld [vmem:[%s8836_s25 + $0xc0] sm:$0xff]  ;;  %v5037_v14 = vpack.c.bf16 %v607_v7, %v606_v6  ;;  %v241_v6 = vld [vmem:[%s8836_s25 + $0x4d0] sm:$0xff] }
  0xff   :  { %1164 = vmatmul.mubr.f32.gmra.mrb[30].mxu1 %v284_v9  ;;  %4886 = vmatprep.subr.bf16.mxu1 %v5571_v3  ;;  %v388_v9 = vld [vmem:[%s8836_s25 + $0x968] sm:$0xff]  ;;  %v195_v7 = vld [vmem:[%s8836_s25 + $0x360] sm:$0xff] }
 0x100   :  { %1749 = vmatmul.mubr.f32.gmra.mrb[36].mxu0 %v329_v10  ;;  %1168 = vmatprep.mubr.f32.mxu1 %v298_v11  ;;  %v110_v10 = vld [vmem:[%s8836_s25 + $0xb8] sm:$0xff] }
 0x101   :  { %1753 = vmatprep.mubr.f32.mxu0 %v343_v15  ;;  %655 = vperm.xlu0 %5399, %v612_v25   ;;  %v402_v11 = vld [vmem:[%s8836_s25 + $0x9d8] sm:$0xf]  ;;  %v617_v15 = vld [vmem:[%s8837_s26 + $0x48] sm:$0xff]  ;;  %v91_v25 = vld [vmem:[%s8836_s25 + $0x20] sm:$0xff] }
 0x102   :  { %4888 = vmatpush1.bf16.msra.mxu1 %v4887_v16  ;;  %645 = vperm.xlu1 %5400, %v610_v22   ;;  %v124_v16 = vld [vmem:[%s8836_s25 + $0x128] sm:$0xff]  ;;  %v618_v22 = vld [vmem:[%s8837_s26 + $0x50] sm:$0xff] }
 0x103   :  { %1169 = vmatmul.mubr.f32.gmra.mrb[32].mxu1 %v297_v17  ;;  %5047 = vmatprep.subr.bf16.mxu1 %v5571_v3  ;;  %v401_v17 = vld [vmem:[%s8836_s25 + $0x9d0] sm:$0xf] }
 0x104   :  { %1754 = vmatmul.mubr.f32.gmra.mrb[38].mxu0 %v342_v19  ;;  %1173 = vmatprep.mubr.f32.mxu1 %v311_v21  ;;  %v123_v19 = vld [vmem:[%s8836_s25 + $0x120] sm:$0xff]  ;;  %v92_v21 = vld [vmem:[%s8836_s25 + $0x28] sm:$0xff] }
 0x105   :  { %1758 = vmatprep.mubr.f32.mxu0 %v356_v23  ;;  %650 = vperm.xlu0 %5399, %v611_v32   ;;  %v137_v23 = vld [vmem:[%s8836_s25 + $0x190] sm:$0xff]  ;;  %v104_v32 = vld [vmem:[%s8836_s25 + $0x88] sm:$0xff] }
 0x106   :  { %660 = vperm.xlu1 %5400, %v613_v43   ;;  %v176_v43 = vld [vmem:[%s8836_s25 + $0x2c8] sm:$0xff] }
 0x107   :  { %1174 = vmatmul.mubr.f32.gmra.mrb[34].mxu1 %v310_v26  ;;  %v136_v26 = vld [vmem:[%s8836_s25 + $0x188] sm:$0xff] }
 0x108   :  { %1759 = vmatmul.mubr.f32.gmra.mrb[40].mxu0 %v355_v28  ;;  %1178 = vmatprep.mubr.f32.mxu1 %v324_v29  ;;  %v105_v28 = vld [vmem:[%s8836_s25 + $0x90] sm:$0xff]  ;;  %v619_v29 = vld [vmem:[%s8837_s26 + $0x58] sm:$0xff] }
 0x109   :  { %1763 = vmatprep.mubr.f32.mxu0 %v369_v31  ;;  %665 = vperm.xlu0 %5399, %v614_v49   ;;  %v150_v31 = vld [vmem:[%s8836_s25 + $0x1f8] sm:$0xff]  ;;  %v143_v49 = vld [vmem:[%s8836_s25 + $0x1c0] sm:$0xff] }
 0x10a   :  { %670 = vperm.xlu1 %5400, %v615_v55   ;;  %v170_v55 = vld [vmem:[%s8836_s25 + $0x298] sm:$0xff] }
 0x10b   :  { %1179 = vmatmul.mubr.f32.gmra.mrb[36].mxu1 %v323_v33  ;;  %v149_v33 = vld [vmem:[%s8836_s25 + $0x1f0] sm:$0xff] }
 0x10c   :  { %1764 = vmatmul.mubr.f32.gmra.mrb[42].mxu0 %v368_v35  ;;  %1183 = vmatprep.mubr.f32.mxu1 %v337_v37  ;;  %v118_v35 = vld [vmem:[%s8836_s25 + $0xf8] sm:$0xff]  ;;  %v620_v37 = vld [vmem:[%s8837_s26 + $0x60] sm:$0xff] }
 0x10d   :  { %1768 = vmatprep.mubr.f32.mxu0 %v382_v38  ;;  %675 = vperm.xlu0 %5399, %v616_v2   ;;  %v163_v38 = vld [vmem:[%s8836_s25 + $0x260] sm:$0xff]  ;;  %v196_v2 = vld [vmem:[%s8836_s25 + $0x368] sm:$0xff] }
 0x10e   :  { %680 = vperm.xlu1 %5400, %v617_v15   ;;  %v222_v15 = vld [vmem:[%s8836_s25 + $0x438] sm:$0xff] }
 0x10f   :  { %1184 = vmatmul.mubr.f32.gmra.mrb[38].mxu1 %v336_v39  ;;  %v117_v39 = vld [vmem:[%s8836_s25 + $0xf0] sm:$0xff] }
 0x110   :  { %1769 = vmatmul.mubr.f32.gmra.mrb[44].mxu0 %v381_v40  ;;  %1188 = vmatprep.mubr.f32.mxu1 %v350_v42  ;;  %v131_v40 = vld [vmem:[%s8836_s25 + $0x160] sm:$0xff]  ;;  %v621_v42 = vld [vmem:[%s8837_s26 + $0x68] sm:$0xff] }
 0x111   :  { %1773 = vmatprep.mubr.f32.mxu0 %v395_v45  ;;  %685 = vperm.xlu0 %5399, %v618_v22   ;;  %v130_v45 = vld [vmem:[%s8836_s25 + $0x158] sm:$0xff]  ;;  %v629_v22 = vld [vmem:[%s8837_s26 + $0xa8] sm:$0xff] }
 0x112   :  { %690 = vperm.xlu1 %5400, %v619_v29   ;;  %v247_v29 = vld [vmem:[%s8836_s25 + $0x500] sm:$0xff] }
 0x113   :  { %1189 = vmatmul.mubr.f32.gmra.mrb[40].mxu1 %v349_v46  ;;  %v144_v46 = vld [vmem:[%s8836_s25 + $0x1c8] sm:$0xff] }
 0x114   :  { %1774 = vmatmul.mubr.f32.gmra.mrb[46].mxu0 %v394_v47  ;;  %1193 = vmatprep.mubr.f32.mxu1 %v363_v48  ;;  %v622_v47 = vld [vmem:[%s8837_s26 + $0x70] sm:$0xff] }
 0x115   :  { %1778 = vmatprep.mubr.f32.mxu0 %v408_v51  ;;  %695 = vperm.xlu0 %5399, %v620_v37   ;;  %v189_v48 = vld [vmem:[%s8836_s25 + $0x330] sm:$0xff]  ;;  %v319_v37 = vld [vmem:[%s8836_s25 + $0x740] sm:$0xff] }
 0x116   :  { %700 = vperm.xlu1 %5400, %v621_v42   ;;  %v157_v51 = vld [vmem:[%s8836_s25 + $0x230] sm:$0xff]  ;;  %v286_v42 = vld [vmem:[%s8836_s25 + $0x638] sm:$0xff] }
 0x117   :  { %1194 = vmatmul.mubr.f32.gmra.mrb[42].mxu1 %v362_v52  ;;  %v623_v52 = vld [vmem:[%s8837_s26 + $0x78] sm:$0xff] }
 0x118   :  { %1779 = vmatmul.mubr.f32.gmra.mrb[48].mxu0 %v407_v53  ;;  %1198 = vmatprep.mubr.f32.mxu1 %v376_v54  ;;  %v202_v53 = vld [vmem:[%s8836_s25 + $0x398] sm:$0xff]  ;;  %v156_v54 = vld [vmem:[%s8836_s25 + $0x228] sm:$0xff] }
 0x119   :  { %1848 = vmatprep.mubr.f32.mxu0 %v98_v57  ;;  %705 = vperm.xlu0 %5399, %v622_v47   ;;  %v624_v57 = vld [vmem:[%s8837_s26 + $0x80] sm:$0xff] }
 0x11a   :  { %710 = vperm.xlu1 %5400, %v623_v52   ;;  %v299_v47 = vld [vmem:[%s8836_s25 + $0x6a0] sm:$0xff]  ;;  %v325_v52 = vld [vmem:[%s8836_s25 + $0x770] sm:$0xff] }
 0x11b   :  { %1199 = vmatmul.mubr.f32.gmra.mrb[44].mxu1 %v375_v60  ;;  %v183_v60 = vld [vmem:[%s8836_s25 + $0x300] sm:$0xff] }
 0x11c   :  { %1849 = vmatmul.mubr.f32.vlgmr.msra.gmra.mrb[0].mxu0 %v97_v61  ;;  %1203 = vmatprep.mubr.f32.mxu1 %v389_v63  ;;  %v625_v61 = vld [vmem:[%s8837_s26 + $0x88] sm:$0xff] }
 0x11d   :  { %1853 = vmatprep.mubr.f32.mxu0 %v111_v4  ;;  %5035 = vmatpush3.bf16.msra.mxu0 %v5034_v1  ;;  %v228_v63 = vld [vmem:[%s8836_s25 + $0x468] sm:$0xff]  ;;  %v182_v1 = vld [vmem:[%s8836_s25 + $0x2f8] sm:$0xff]  ;;  %v626_v4 = vld [vmem:[%s8837_s26 + $0x90] sm:$0xff] }
 0x11e   :  { %5036 = vmatprep.subr.bf16.mxu0 %v5571_v3  ;;  %715 = vperm.xlu0 %5399, %v624_v57   ;;  %v383_v57 = vld [vmem:[%s8836_s25 + $0x940] sm:$0xff] }
 0x11f   :  { %1204 = vmatmul.mubr.f32.gmra.mrb[46].mxu1 %v388_v9  ;;  %720 = vperm.xlu1 %5400, %v625_v61   ;;  %v209_v9 = vld [vmem:[%s8836_s25 + $0x3d0] sm:$0xff] }
 0x120   :  { %1854 = vmatmul.mubr.f32.gmra.mrb[2].mxu0 %v110_v10  ;;  %1208 = vmatprep.mubr.f32.mxu1 %v402_v11  ;;  %v627_v10 = vld [vmem:[%s8837_s26 + $0x98] sm:$0xff]  ;;  %v365_v61 = vld [vmem:[%s8836_s25 + $0x8b0] sm:$0xff] }
 0x121   :  { %1858 = vmatprep.mubr.f32.mxu0 %v124_v16  ;;  %5038 = vmatpush3.bf16.msra.mxu0 %v5037_v14  ;;  %v254_v11 = vld [vmem:[%s8836_s25 + $0x538] sm:$0xff]  ;;  %v208_v14 = vld [vmem:[%s8836_s25 + $0x3c8] sm:$0xff]  ;;  %v628_v16 = vld [vmem:[%s8837_s26 + $0xa0] sm:$0xff] }
 0x122   :  { %725 = vperm.xlu0 %5399, %v626_v4   ;;  %v377_v4 = vld [vmem:[%s8836_s25 + $0x910] sm:$0xff] }
 0x123   :  { %1209 = vmatmul.mubr.f32.gmra.mrb[48].mxu1 %v401_v17  ;;  %730 = vperm.xlu1 %5400, %v627_v10   ;;  %v267_v17 = vld [vmem:[%s8836_s25 + $0x5a0] sm:$0xff]  ;;  %v112_v10 = vld [vmem:[%s8836_s25 + $0xc8] sm:$0xff] }
 0x124   :  { %1859 = vmatmul.mubr.f32.gmra.mrb[4].mxu0 %v123_v19  ;;  %1278 = vmatprep.mubr.f32.mxu1 %v92_v21  ;;  %v221_v19 = vld [vmem:[%s8836_s25 + $0x430] sm:$0xff]  ;;  %v235_v21 = vld [vmem:[%s8836_s25 + $0x4a0] sm:$0xff] }
 0x125   :  { %1863 = vmatprep.mubr.f32.mxu0 %v137_v23  ;;  %v280_v23 = vld [vmem:[%s8836_s25 + $0x608] sm:$0xff] }
 0x126   :  { %735 = vperm.xlu0 %5399, %v628_v16   ;;  %v379_v16 = vld [vmem:[%s8836_s25 + $0x920] sm:$0xff] }
 0x127   :  { %1279 = vmatmul.mubr.f32.vlgmr.msra.gmra.mrb[0].mxu1 %v91_v25  ;;  %740 = vperm.xlu1 %5400, %v629_v22   ;;  %v234_v25 = vld [vmem:[%s8836_s25 + $0x498] sm:$0xff] }
 0x128   :  { %1864 = vmatmul.mubr.f32.gmra.mrb[6].mxu0 %v136_v26  ;;  %1283 = vmatprep.mubr.f32.mxu1 %v105_v28  ;;  %v248_v26 = vld [vmem:[%s8836_s25 + $0x508] sm:$0xff]  ;;  %v293_v28 = vld [vmem:[%s8836_s25 + $0x670] sm:$0xff]  ;;  %v406_v22 = vld [vmem:[%s8836_s25 + $0x9f8] sm:$0xf] }
 0x129   :  { %1868 = vmatprep.mubr.f32.mxu0 %v150_v31  ;;  %5063 = vmatpush1.bf16.msra.mxu1 %v5721_v8  ;;  %v162_v8 = vld [vmem:[%s8836_s25 + $0x258] sm:$0xff]  ;;  %v292_v31 = vld [vmem:[%s8836_s25 + $0x668] sm:$0xff] }
 0x12a   :  { %5048 = vmatprep.subr.bf16.mxu1 %v5571_v3 }
 0x12b   :  { %1284 = vmatmul.mubr.f32.gmra.mrb[2].mxu1 %v104_v32  ;;  %v306_v32 = vld [vmem:[%s8836_s25 + $0x6d8] sm:$0xff] }
 0x12c   :  { %1869 = vmatmul.mubr.f32.gmra.mrb[8].mxu0 %v149_v33  ;;  %1288 = vmatprep.mubr.f32.mxu1 %v118_v35  ;;  %v260_v33 = vld [vmem:[%s8836_s25 + $0x568] sm:$0xff]  ;;  %v305_v35 = vld [vmem:[%s8836_s25 + $0x6d0] sm:$0xff] }
 0x12d   :  { %1873 = vmatprep.mubr.f32.mxu0 %v163_v38  ;;  %5064 = vmatpush1.bf16.msra.mxu1 %v5731_v12  ;;  %v175_v12 = vld [vmem:[%s8836_s25 + $0x2c0] sm:$0xff]  ;;  %v273_v38 = vld [vmem:[%s8836_s25 + $0x5d0] sm:$0xff] }
 0x12e   :  { %5049 = vmatprep.subr.bf16.mxu1 %v5571_v3 }
 0x12f   :  { %1289 = vmatmul.mubr.f32.gmra.mrb[4].mxu1 %v117_v39  ;;  %v318_v39 = vld [vmem:[%s8836_s25 + $0x738] sm:$0xff] }
 0x130   :  { %1874 = vmatmul.mubr.f32.gmra.mrb[10].mxu0 %v162_v8  ;;  %1293 = vmatprep.mubr.f32.mxu1 %v131_v40  ;;  %v630_v8 = vld [vmem:[%s8837_s26 + $0xb0] sm:$0xff]  ;;  %v332_v40 = vld [vmem:[%s8836_s25 + $0x7a8] sm:$0xff] }
 0x131   :  { %1878 = vmatprep.mubr.f32.mxu0 %v176_v43  ;;  %5065 = vmatpush1.bf16.msra.mxu1 %v5748_v18  ;;  %v188_v18 = vld [vmem:[%s8836_s25 + $0x328] sm:$0xff]  ;;  %v632_v43 = vld [vmem:[%s8837_s26 + $0xc0] sm:$0xf] }
 0x132   :  { %5050 = vmatprep.subr.bf16.mxu1 %v5571_v3  ;;  %745 = vperm.xlu0 %5399, %v630_v8   ;;  %v359_v8 = vld [vmem:[%s8836_s25 + $0x880] sm:$0xff] }
 0x133   :  { %1294 = vmatmul.mubr.f32.gmra.mrb[6].mxu1 %v130_v45  ;;  %v331_v45 = vld [vmem:[%s8836_s25 + $0x7a0] sm:$0xff] }
 0x134   :  { %1879 = vmatmul.mubr.f32.gmra.mrb[12].mxu0 %v175_v12  ;;  %1298 = vmatprep.mubr.f32.mxu1 %v144_v46  ;;  %v300_v12 = vld [vmem:[%s8836_s25 + $0x6a8] sm:$0xff]  ;;  %v345_v46 = vld [vmem:[%s8836_s25 + $0x810] sm:$0xff] }
 0x135   :  { %1883 = vmatprep.mubr.f32.mxu0 %v189_v48  ;;  %5066 = vmatpush1.bf16.msra.mxu1 %v5765_v24  ;;  %v201_v24 = vld [vmem:[%s8836_s25 + $0x390] sm:$0xff] }
 0x136   :  { %5051 = vmatprep.subr.bf16.mxu1 %v5571_v3  ;;  %755 = vperm.xlu0 %5399, %v632_v43   ;;  %v313_v48 = vld [vmem:[%s8836_s25 + $0x710] sm:$0xff]  ;;  %v411_v43 = vld [vmem:[%s8836_s25 + $0xa20] sm:$0xf] }
 0x137   :  { %1299 = vmatmul.mubr.f32.gmra.mrb[8].mxu1 %v143_v49  ;;  %v312_v49 = vld [vmem:[%s8836_s25 + $0x708] sm:$0xff] }
 0x138   :  { %1884 = vmatmul.mubr.f32.gmra.mrb[14].mxu0 %v188_v18  ;;  %1303 = vmatprep.mubr.f32.mxu1 %v157_v51  ;;  %v357_v18 = vld [vmem:[%s8836_s25 + $0x870] sm:$0xff]  ;;  %v371_v51 = vld [vmem:[%s8836_s25 + $0x8e0] sm:$0xff] }
 0x139   :  { %1888 = vmatprep.mubr.f32.mxu0 %v202_v53  ;;  %5067 = vmatpush1.bf16.msra.mxu1 %v5782_v30  ;;  %v214_v30 = vld [vmem:[%s8836_s25 + $0x3f8] sm:$0xff] }
 0x13a   :  { %5052 = vmatprep.subr.bf16.mxu1 %v5571_v3  ;;  %v370_v53 = vld [vmem:[%s8836_s25 + $0x8d8] sm:$0xff] }
 0x13b   :  { %1304 = vmatmul.mubr.f32.gmra.mrb[10].mxu1 %v156_v54  ;;  %v339_v54 = vld [vmem:[%s8836_s25 + $0x7e0] sm:$0xff] }
 0x13c   :  { %1889 = vmatmul.mubr.f32.gmra.mrb[16].mxu0 %v201_v24  ;;  %1308 = vmatprep.mubr.f32.mxu1 %v170_v55  ;;  %v384_v24 = vld [vmem:[%s8836_s25 + $0x948] sm:$0xff]  ;;  %v338_v55 = vld [vmem:[%s8836_s25 + $0x7d8] sm:$0xff] }
 0x13d   :  { %1893 = vmatprep.mubr.f32.mxu0 %v215_v58  ;;  %5068 = vmatpush1.bf16.msra.mxu1 %v5799_v36  ;;  %v227_v36 = vld [vmem:[%s8836_s25 + $0x460] sm:$0xff]  ;;  %v352_v58 = vld [vmem:[%s8836_s25 + $0x848] sm:$0xff] }
 0x13e   :  { %5053 = vmatprep.subr.bf16.mxu1 %v5571_v3 }
 0x13f   :  { %1309 = vmatmul.mubr.f32.gmra.mrb[12].mxu1 %v169_v59  ;;  %v397_v59 = vld [vmem:[%s8836_s25 + $0x9b0] sm:$0xff] }
 0x140   :  { %1894 = vmatmul.mubr.f32.gmra.mrb[18].mxu0 %v214_v30  ;;  %1313 = vmatprep.mubr.f32.mxu1 %v183_v60  ;;  %v351_v30 = vld [vmem:[%s8836_s25 + $0x840] sm:$0xff]  ;;  %v396_v60 = vld [vmem:[%s8836_s25 + $0x9a8] sm:$0xff] }
 0x141   :  { %1898 = vmatprep.mubr.f32.mxu0 %v228_v63  ;;  %5069 = vmatpush1.bf16.msra.mxu1 %v5822_v44  ;;  %v240_v44 = vld [vmem:[%s8836_s25 + $0x4c8] sm:$0xff]  ;;  %v410_v63 = vld [vmem:[%s8836_s25 + $0xa18] sm:$0xf] }
 0x142   :  { %5054 = vmatprep.subr.bf16.mxu1 %v5571_v3 }
 0x143   :  { %1314 = vmatmul.mubr.f32.gmra.mrb[14].mxu1 %v182_v1  ;;  %v364_v1 = vld [vmem:[%s8836_s25 + $0x8a8] sm:$0xff] }
 0x144   :  { %1899 = vmatmul.mubr.f32.gmra.mrb[20].mxu0 %v227_v36  ;;  %1318 = vmatprep.mubr.f32.mxu1 %v196_v2  ;;  %v409_v36 = vld [vmem:[%s8836_s25 + $0xa10] sm:$0xf]  ;;  %v378_v2 = vld [vmem:[%s8836_s25 + $0x918] sm:$0xff] }
 0x145   :  { %1903 = vmatprep.mubr.f32.mxu0 %v241_v6  ;;  %5070 = vmatpush1.bf16.msra.mxu1 %v5839_v50  ;;  %v253_v50 = vld [vmem:[%s8836_s25 + $0x530] sm:$0xff]  ;;  %v5574_v6 = vmov 0.0  }
 0x146   :  { %5055 = vmatprep.subr.bf16.mxu1 %v5571_v3  ;;  %3840 = vst.msk [vmem:[#allocation2] sm:$0xff] %vm3558_vm12, %v5574_v6  ;;  %3841 = vst.msk [vmem:[#allocation2 + $0x8] sm:$0xff] %vm3558_vm12, %v5574_v6 }
 0x147   :  { %1319 = vmatmul.mubr.f32.gmra.mrb[16].mxu1 %v195_v7  ;;  %v99_v7 = vld [vmem:[%s8836_s25 + $0x60] sm:$0xff]  ;;  %3842 = vst.msk [vmem:[#allocation2 + $0x10] sm:$0xff] %vm3558_vm12, %v5574_v6  ;;  %3843 = vst.msk [vmem:[#allocation2 + $0x18] sm:$0xff] %vm3558_vm12, %v5574_v6 }
 0x148   :  { %1904 = vmatmul.mubr.f32.gmra.mrb[22].mxu0 %v240_v44  ;;  %1323 = vmatprep.mubr.f32.mxu1 %v209_v9  ;;  %v391_v44 = vld [vmem:[%s8836_s25 + $0x980] sm:$0xff]  ;;  %v390_v9 = vld [vmem:[%s8836_s25 + $0x978] sm:$0xff]  ;;  %3844 = vst.msk [vmem:[#allocation2 + $0x20] sm:$0xff] %vm3558_vm12, %v5574_v6  ;;  %3845 = vst.msk [vmem:[#allocation2 + $0x28] sm:$0xff] %vm3558_vm12, %v5574_v6 }
 0x149   :  { %1908 = vmatprep.mubr.f32.mxu0 %v254_v11  ;;  %5071 = vmatpush1.bf16.msra.mxu1 %v5856_v56  ;;  %v266_v56 = vld [vmem:[%s8836_s25 + $0x598] sm:$0xff]  ;;  %v404_v11 = vld [vmem:[%s8836_s25 + $0x9e8] sm:$0xf] }
 0x14a   :  { %5056 = vmatprep.subr.bf16.mxu1 %v5571_v3 }
 0x14b   :  { %1324 = vmatmul.mubr.f32.gmra.mrb[18].mxu1 %v208_v14  ;;  %v403_v14 = vld [vmem:[%s8836_s25 + $0x9e0] sm:$0xf] }
 0x14c   :  { %1909 = vmatmul.mubr.f32.gmra.mrb[24].mxu0 %v253_v50  ;;  %1328 = vmatprep.mubr.f32.mxu1 %v222_v15  ;;  %v125_v50 = vld [vmem:[%s8836_s25 + $0x130] sm:$0xff]  ;;  %v380_v15 = vld [vmem:[%s8836_s25 + $0x928] sm:$0xff] }
 0x14d   :  { %1913 = vmatprep.mubr.f32.mxu0 %v267_v17  ;;  %5072 = vmatpush1.bf16.msra.mxu1 %v5873_v62  ;;  %v279_v62 = vld [vmem:[%s8836_s25 + $0x600] sm:$0xff]  ;;  %v138_v17 = vld [vmem:[%s8836_s25 + $0x198] sm:$0xff] }
 0x14e   :  { %5057 = vmatprep.subr.bf16.mxu1 %v5571_v3 }
 0x14f   :  { %1329 = vmatmul.mubr.f32.gmra.mrb[20].mxu1 %v221_v19  ;;  %v393_v19 = vld [vmem:[%s8836_s25 + $0x990] sm:$0xff] }
 0x150   :  { %1914 = vmatmul.mubr.f32.gmra.mrb[26].mxu0 %v266_v56  ;;  %1333 = vmatprep.mubr.f32.mxu1 %v235_v21  ;;  %v392_v56 = vld [vmem:[%s8836_s25 + $0x988] sm:$0xff]  ;;  %v151_v21 = vld [vmem:[%s8836_s25 + $0x200] sm:$0xff] }
 0x151   :  { %1918 = vmatprep.mubr.f32.mxu0 %v280_v23  ;;  %5073 = vmatpush1.bf16.msra.mxu1 %v5890_v5  ;;  %v261_v5 = vld [vmem:[%s8836_s25 + $0x570] sm:$0xff] }
 0x152   :  { %5058 = vmatprep.subr.bf16.mxu1 %v5571_v3  ;;  %v405_v23 = vld [vmem:[%s8836_s25 + $0x9f0] sm:$0xf] }
 0x153   :  { %1334 = vmatmul.mubr.f32.gmra.mrb[22].mxu1 %v234_v25  ;;  %v164_v25 = vld [vmem:[%s8836_s25 + $0x268] sm:$0xff] }
 0x154   :  { %1919 = vmatmul.mubr.f32.gmra.mrb[28].mxu0 %v279_v62  ;;  %1338 = vmatprep.mubr.f32.mxu1 %v248_v26  ;;  %v177_v62 = vld [vmem:[%s8836_s25 + $0x2d0] sm:$0xff]  ;;  %v190_v26 = vld [vmem:[%s8836_s25 + $0x338] sm:$0xff] }
 0x155   :  { %1923 = vmatprep.mubr.f32.mxu0 %v293_v28  ;;  %5074 = vmatpush1.bf16.msra.mxu1 %v5907_v13  ;;  %v274_v13 = vld [vmem:[%s8836_s25 + $0x5d8] sm:$0xff]  ;;  %v203_v28 = vld [vmem:[%s8836_s25 + $0x3a0] sm:$0xff] }
 0x156   :  { %5059 = vmatprep.subr.bf16.mxu1 %v5571_v3 }
 0x157   :  { %1339 = vmatmul.mubr.f32.gmra.mrb[24].mxu1 %v247_v29  ;;  %v216_v29 = vld [vmem:[%s8836_s25 + $0x408] sm:$0xff] }
 0x158   :  { %1924 = vmatmul.mubr.f32.gmra.mrb[30].mxu0 %v292_v31  ;;  %1343 = vmatprep.mubr.f32.mxu1 %v261_v5  ;;  %v229_v31 = vld [vmem:[%s8836_s25 + $0x470] sm:$0xff]  ;;  %v242_v5 = vld [vmem:[%s8836_s25 + $0x4d8] sm:$0xff] }
 0x159   :  { %1928 = vmatprep.mubr.f32.mxu0 %v306_v32  ;;  %5075 = vmatpush1.bf16.msra.mxu1 %v5924_v20  ;;  %v287_v20 = vld [vmem:[%s8836_s25 + $0x640] sm:$0xff] }
 0x15a   :  { %5060 = vmatprep.subr.bf16.mxu1 %v5571_v3  ;;  %v255_v32 = vld [vmem:[%s8836_s25 + $0x540] sm:$0xff] }
 0x15b   :  { %1344 = vmatmul.mubr.f32.gmra.mrb[26].mxu1 %v260_v33  ;;  %v268_v33 = vld [vmem:[%s8836_s25 + $0x5a8] sm:$0xff] }
 0x15c   :  { %1929 = vmatmul.mubr.f32.gmra.mrb[32].mxu0 %v305_v35  ;;  %1348 = vmatprep.mubr.f32.mxu1 %v274_v13  ;;  %v281_v35 = vld [vmem:[%s8836_s25 + $0x610] sm:$0xff]  ;;  %v294_v13 = vld [vmem:[%s8836_s25 + $0x678] sm:$0xff] }
 0x15d   :  { %1933 = vmatprep.mubr.f32.mxu0 %v319_v37  ;;  %5076 = vmatpush1.bf16.msra.mxu1 %v5941_v27  ;;  %v631_v27 = vld [vmem:[%s8837_s26 + $0xb8] sm:$0xff]  ;;  %v307_v37 = vld [vmem:[%s8836_s25 + $0x6e0] sm:$0xff] }
 0x15e   :  { %5061 = vmatprep.subr.bf16.mxu1 %v5571_v3  ;;  %750 = vperm.xlu1 %5400, %v631_v27   ;;  %v398_v27 = vld [vmem:[%s8836_s25 + $0x9b8] sm:$0xff] }
 0x15f   :  { %1349 = vmatmul.mubr.f32.gmra.mrb[28].mxu1 %v273_v38  ;;  %v320_v38 = vld [vmem:[%s8836_s25 + $0x748] sm:$0xff] }
 0x160   :  { %1934 = vmatmul.mubr.f32.gmra.mrb[34].mxu0 %v318_v39  ;;  %1353 = vmatprep.mubr.f32.mxu1 %v287_v20  ;;  %v333_v39 = vld [vmem:[%s8836_s25 + $0x7b0] sm:$0xff]  ;;  %v346_v20 = vld [vmem:[%s8836_s25 + $0x818] sm:$0xff] }
 0x161   :  { %1938 = vmatprep.mubr.f32.mxu0 %v332_v40  ;;  %5077 = vmatpush1.bf16.msra.mxu1 %v5958_v34  ;;  %v344_v34 = vld [vmem:[%s8836_s25 + $0x808] sm:$0xff] }
 0x162   :  { %5062 = vmatprep.subr.bf16.mxu1 %v5571_v3  ;;  %v358_v3 = vld [vmem:[%s8836_s25 + $0x878] sm:$0xff]  ;;  %v372_v40 = vld [vmem:[%s8836_s25 + $0x8e8] sm:$0xff] }
 0x163   :  { %1354 = vmatmul.mubr.f32.gmra.mrb[30].mxu1 %v286_v42  ;;  %v385_v42 = vld [vmem:[%s8836_s25 + $0x950] sm:$0xff] }
 0x164   :  { %1939 = vmatmul.mubr.f32.gmra.mrb[36].mxu0 %v331_v45  ;;  %1358 = vmatprep.mubr.f32.mxu1 %v300_v12 }
 0x165   :  { %1943 = vmatprep.mubr.f32.mxu0 %v345_v46  ;;  %5078 = vmatpush1.bf16.msra.mxu1 %v5975_v41  ;;  %v326_v41 = vld [vmem:[%s8836_s25 + $0x778] sm:$0xff] }
 0x167   :  { %1359 = vmatmul.mubr.f32.gmra.mrb[32].mxu1 %v299_v47 }
 0x168   :  { %1944 = vmatmul.mubr.f32.gmra.mrb[38].mxu0 %v344_v34  ;;  %1363 = vmatprep.mubr.f32.mxu1 %v313_v48 }
 0x169   :  { %1948 = vmatprep.mubr.f32.mxu0 %v358_v3 }
 0x16b   :  { %1364 = vmatmul.mubr.f32.gmra.mrb[34].mxu1 %v312_v49 }
 0x16c   :  { %1949 = vmatmul.mubr.f32.gmra.mrb[40].mxu0 %v357_v18  ;;  %1368 = vmatprep.mubr.f32.mxu1 %v326_v41 }
 0x16d   :  { %1953 = vmatprep.mubr.f32.mxu0 %v371_v51 }
 0x16f   :  { %1369 = vmatmul.mubr.f32.gmra.mrb[36].mxu1 %v325_v52 }
 0x170   :  { %1954 = vmatmul.mubr.f32.gmra.mrb[42].mxu0 %v370_v53  ;;  %1373 = vmatprep.mubr.f32.mxu1 %v339_v54 }
 0x171   :  { %1958 = vmatprep.mubr.f32.mxu0 %v384_v24 }
 0x173   :  { %1374 = vmatmul.mubr.f32.gmra.mrb[38].mxu1 %v338_v55 }
 0x174   :  { %1959 = vmatmul.mubr.f32.gmra.mrb[44].mxu0 %v383_v57  ;;  %1378 = vmatprep.mubr.f32.mxu1 %v352_v58 }
 0x175   :  { %1963 = vmatprep.mubr.f32.mxu0 %v397_v59 }
 0x177   :  { %1379 = vmatmul.mubr.f32.gmra.mrb[40].mxu1 %v351_v30 }
 0x178   :  { %1964 = vmatmul.mubr.f32.gmra.mrb[46].mxu0 %v396_v60  ;;  %1383 = vmatprep.mubr.f32.mxu1 %v365_v61 }
 0x179   :  { %1968 = vmatprep.mubr.f32.mxu0 %v410_v63 }
 0x17b   :  { %1384 = vmatmul.mubr.f32.gmra.mrb[42].mxu1 %v364_v1 }
 0x17c   :  { %1969 = vmatmul.mubr.f32.gmra.mrb[48].mxu0 %v409_v36  ;;  %1388 = vmatprep.mubr.f32.mxu1 %v378_v2 }
 0x17d   :  { %4592 = vmatprep.mubr.msk.f32.mxu0 %vm5573_vm0, %v5574_v6 }
 0x17f   :  { %1389 = vmatmul.mubr.f32.gmra.mrb[44].mxu1 %v377_v4 }
 0x180   :  { %4593 = vmatmul.mubr.msk.f32.vlgmr.msra.gmra.mrb[0].mxu0 %vm758_vm1, %v99_v7  ;;  %1393 = vmatprep.mubr.f32.mxu1 %v391_v44 }
 0x181   :  { %4595 = vmatprep.mubr.msk.f32.mxu0 %vm5573_vm0, %v5574_v6 }
 0x183   :  { %1394 = vmatmul.mubr.f32.gmra.mrb[46].mxu1 %v390_v9 }
 0x184   :  { %4596 = vmatmul.mubr.msk.f32.gmra.mrb[2].mxu0 %vm758_vm1, %v112_v10  ;;  %1398 = vmatprep.mubr.f32.mxu1 %v404_v11 }
 0x185   :  { %4598 = vmatprep.mubr.msk.f32.mxu0 %vm5573_vm0, %v5574_v6 }
 0x187   :  { %1399 = vmatmul.mubr.f32.gmra.mrb[48].mxu1 %v403_v14 }
 0x188   :  { %4599 = vmatmul.mubr.msk.f32.gmra.mrb[4].mxu0 %vm758_vm1, %v125_v50  ;;  %1578 = vmatprep.mubr.f32.mxu1 %v380_v15 }
 0x189   :  { %4601 = vmatprep.mubr.msk.f32.mxu0 %vm5573_vm0, %v5574_v6 }
 0x18b   :  { %1579 = vmatmul.mubr.f32.vlgmr.msra.gmra.mrb[44].mxu1 %v379_v16 }
 0x18c   :  { %4602 = vmatmul.mubr.msk.f32.gmra.mrb[6].mxu0 %vm758_vm1, %v138_v17  ;;  %1583 = vmatprep.mubr.f32.mxu1 %v393_v19 }
 0x18d   :  { %4604 = vmatprep.mubr.msk.f32.mxu0 %vm5573_vm0, %v5574_v6 }
 0x18f   :  { %1584 = vmatmul.mubr.f32.gmra.mrb[46].mxu1 %v392_v56 }
 0x190   :  { %4605 = vmatmul.mubr.msk.f32.gmra.mrb[8].mxu0 %vm758_vm1, %v151_v21  ;;  %1588 = vmatprep.mubr.f32.mxu1 %v406_v22 }
 0x191   :  { %4607 = vmatprep.mubr.msk.f32.mxu0 %vm5573_vm0, %v5574_v6 }
 0x193   :  { %1589 = vmatmul.mubr.f32.gmra.mrb[48].mxu1 %v405_v23 }
 0x194   :  { %4608 = vmatmul.mubr.msk.f32.gmra.mrb[10].mxu0 %vm758_vm1, %v164_v25 }
 0x195   :  { %4610 = vmatprep.mubr.msk.f32.mxu0 %vm5573_vm0, %v5574_v6 }
 0x198   :  { %4611 = vmatmul.mubr.msk.f32.gmra.mrb[12].mxu0 %vm758_vm1, %v177_v62  ;;  %v636_v62 = vpop.permute.xlu0 %635 }
 0x199   :  { %4613 = vmatprep.mubr.msk.f32.mxu0 %vm5573_vm0, %v5574_v6 }
 0x19c   :  { %4614 = vmatmul.mubr.msk.f32.gmra.mrb[14].mxu0 %vm758_vm1, %v190_v26 }
 0x19d   :  { %4616 = vmatprep.mubr.msk.f32.mxu0 %vm5573_vm0, %v5574_v6 }
 0x1a0   :  { %4617 = vmatmul.mubr.msk.f32.gmra.mrb[16].mxu0 %vm758_vm1, %v203_v28  ;;  %v641_v28 = vpop.permute.xlu1 %640 }
 0x1a1   :  { %4619 = vmatprep.mubr.msk.f32.mxu0 %vm5573_vm0, %v5574_v6 }
 0x1a4   :  { %4620 = vmatmul.mubr.msk.f32.gmra.mrb[18].mxu0 %vm758_vm1, %v216_v29 }
 0x1a5   :  { %4622 = vmatprep.mubr.msk.f32.mxu0 %vm5573_vm0, %v5574_v6 }
 0x1a8   :  { %4623 = vmatmul.mubr.msk.f32.gmra.mrb[20].mxu0 %vm758_vm1, %v229_v31 }
 0x1a9   :  { %4625 = vmatprep.mubr.msk.f32.mxu0 %vm5573_vm0, %v5574_v6 }
 0x1ac   :  { %4626 = vmatmul.mubr.msk.f32.gmra.mrb[22].mxu0 %vm758_vm1, %v242_v5 }
 0x1ad   :  { %4628 = vmatprep.mubr.msk.f32.mxu0 %vm5573_vm0, %v5574_v6 }
 0x1b0   :  { %4629 = vmatmul.mubr.msk.f32.gmra.mrb[24].mxu0 %vm758_vm1, %v255_v32 }
 0x1b1   :  { %4631 = vmatprep.mubr.msk.f32.mxu0 %vm5573_vm0, %v5574_v6 }
 0x1b4   :  { %4632 = vmatmul.mubr.msk.f32.gmra.mrb[26].mxu0 %vm758_vm1, %v268_v33  ;;  %v656_v33 = vpop.permute.xlu0 %655 }
 0x1b5   :  { %4634 = vmatprep.mubr.msk.f32.mxu0 %vm5573_vm0, %v5574_v6 }
 0x1b8   :  { %4635 = vmatmul.mubr.msk.f32.gmra.mrb[28].mxu0 %vm758_vm1, %v281_v35 }
 0x1b9   :  { %4637 = vmatprep.mubr.msk.f32.mxu0 %vm5573_vm0, %v5574_v6 }
 0x1bc   :  { %4638 = vmatmul.mubr.msk.f32.gmra.mrb[30].mxu0 %vm758_vm1, %v294_v13  ;;  %v646_v13 = vpop.permute.xlu1 %645 }
 0x1bd   :  { %4640 = vmatprep.mubr.msk.f32.mxu0 %vm5573_vm0, %v5574_v6 }
 0x1c0   :  { %4641 = vmatmul.mubr.msk.f32.gmra.mrb[32].mxu0 %vm758_vm1, %v307_v37 }
 0x1c1   :  { %4643 = vmatprep.mubr.msk.f32.mxu0 %vm5573_vm0, %v5574_v6 }
 0x1c4   :  { %4644 = vmatmul.mubr.msk.f32.gmra.mrb[34].mxu0 %vm758_vm1, %v320_v38 }
 0x1c5   :  { %4646 = vmatprep.mubr.msk.f32.mxu0 %vm5573_vm0, %v5574_v6 }
 0x1c8   :  { %4647 = vmatmul.mubr.msk.f32.gmra.mrb[36].mxu0 %vm758_vm1, %v333_v39 }
 0x1c9   :  { %4649 = vmatprep.mubr.msk.f32.mxu0 %vm5573_vm0, %v5574_v6 }
 0x1cc   :  { %4650 = vmatmul.mubr.msk.f32.gmra.mrb[38].mxu0 %vm758_vm1, %v346_v20 }
 0x1cd   :  { %4652 = vmatprep.mubr.msk.f32.mxu0 %vm5573_vm0, %v5574_v6 }
 0x1d0   :  { %4653 = vmatmul.mubr.msk.f32.gmra.mrb[40].mxu0 %vm758_vm1, %v359_v8  ;;  %v651_v8 = vpop.permute.xlu0 %650 }
 0x1d1   :  { %4655 = vmatprep.mubr.msk.f32.mxu0 %vm5573_vm0, %v5574_v6 }
 0x1d4   :  { %4656 = vmatmul.mubr.msk.f32.gmra.mrb[42].mxu0 %vm758_vm1, %v372_v40 }
 0x1d5   :  { %4658 = vmatprep.mubr.msk.f32.mxu0 %vm5573_vm0, %v5574_v6 }
 0x1d8   :  { %4659 = vmatmul.mubr.msk.f32.gmra.mrb[44].mxu0 %vm758_vm1, %v385_v42 }
 0x1d9   :  { %4661 = vmatprep.mubr.msk.f32.mxu0 %vm5573_vm0, %v5574_v6 }
 0x1dc   :  { %4662 = vmatmul.mubr.msk.f32.gmra.mrb[46].mxu0 %vm758_vm1, %v398_v27 }
 0x1dd   :  { %4664 = vmatprep.mubr.msk.f32.mxu0 %vm5573_vm0, %v5574_v6  ;;  %v3660_v6 = vld [vmem:[%s8842_s1] sm:$0xff] }
 0x1e0   :  { %4665 = vmatmul.mubr.msk.f32.gmra.mrb[48].mxu0 %vm758_vm1, %v411_v43 }
 0x1fa   :  { %v1280_v45 = vpop.f32.mrb[0].mxu1 }
 0x1fb   :  { %v1282_v12 = vpop.f32.mrb[1].mxu1  ;;  %v5079_v29 = vadd.f32 %v1280_v45, %v636_v62 }
 0x1fe   :  { %v1285_v46 = vpop.f32.mrb[2].mxu1 }
 0x1ff   :  { %v1287_v47 = vpop.f32.mrb[3].mxu1  ;;  %v5081_v35 = vadd.f32 %v1285_v46, %v641_v28 }
 0x202   :  { %v1290_v34 = vpop.f32.mrb[4].mxu1 }
 0x203   :  { %v1292_v48 = vpop.f32.mrb[5].mxu1  ;;  %v5083_v20 = vadd.f32 %v1290_v34, %v646_v13 }
 0x206   :  { %v1295_v3 = vpop.f32.mrb[6].mxu1 }
 0x207   :  { %v1297_v49 = vpop.f32.mrb[7].mxu1  ;;  %v5085_v43 = vadd.f32 %v1295_v3, %v651_v8  ;;  %v666_v3 = vpop.permute.xlu0 %665 }
 0x20a   :  { %v1300_v18 = vpop.f32.mrb[8].mxu1 }
 0x20b   :  { %v1302_v41 = vpop.f32.mrb[9].mxu1  ;;  %v5087_v46 = vadd.f32 %v1300_v18, %v656_v33 }
 0x20c   :  { %v661_v41 = vpop.permute.xlu1 %660 }
 0x20e   :  { %v7594_v51 = vpop.f32.mrb[10].mxu1 }
 0x20f   :  { %v1307_v52 = vpop.f32.mrb[11].mxu1 }
 0x212   :  { %v7596_v53 = vpop.f32.mrb[12].mxu1 }
 0x213   :  { %v1312_v54 = vpop.f32.mrb[13].mxu1 }
 0x216   :  { %v7598_v24 = vpop.f32.mrb[14].mxu1 }
 0x217   :  { %v1317_v55 = vpop.f32.mrb[15].mxu1 }
 0x21a   :  { %v7600_v57 = vpop.f32.mrb[16].mxu1 }
 0x21b   :  { %v1322_v58 = vpop.f32.mrb[17].mxu1 }
 0x21e   :  { %v7602_v59 = vpop.f32.mrb[18].mxu1 }
 0x21f   :  { %v1327_v30 = vpop.f32.mrb[19].mxu1 }
 0x220   :  { %v5089_v30 = vadd.f32 %v7594_v51, %v661_v41 }
 0x222   :  { %v7604_v60 = vpop.f32.mrb[20].mxu1 }
 0x223   :  { %v1332_v61 = vpop.f32.mrb[21].mxu1 }
 0x226   :  { %v7606_v63 = vpop.f32.mrb[22].mxu1 }
 0x227   :  { %v1337_v1 = vpop.f32.mrb[23].mxu1 }
 0x22a   :  { %v7608_v36 = vpop.f32.mrb[24].mxu1 }
 0x22b   :  { %v1342_v2 = vpop.f32.mrb[25].mxu1 }
 0x22e   :  { %v7610_v4 = vpop.f32.mrb[26].mxu1 }
 0x22f   :  { %v1347_v7 = vpop.f32.mrb[27].mxu1 }
 0x232   :  { %v7612_v44 = vpop.f32.mrb[28].mxu1 }
 0x233   :  { %v1352_v9 = vpop.f32.mrb[29].mxu1 }
 0x236   :  { %v7614_v10 = vpop.f32.mrb[30].mxu1 }
 0x237   :  { %v1357_v11 = vpop.f32.mrb[31].mxu1 }
 0x23a   :  { %v7616_v14 = vpop.f32.mrb[32].mxu1 }
 0x23b   :  { %v1362_v50 = vpop.f32.mrb[33].mxu1 }
 0x23e   :  { %v7618_v15 = vpop.f32.mrb[34].mxu1 }
 0x23f   :  { %v1367_v16 = vpop.f32.mrb[35].mxu1 }
 0x240   :  { %v5091_v16 = vadd.f32 %v7596_v53, %v666_v3 }
 0x242   :  { %v7620_v17 = vpop.f32.mrb[36].mxu1 }
 0x243   :  { %v1372_v19 = vpop.f32.mrb[37].mxu1 }
 0x246   :  { %v7622_v56 = vpop.f32.mrb[38].mxu1 }
 0x247   :  { %v1377_v21 = vpop.f32.mrb[39].mxu1 }
 0x248   :  { %v671_v21 = vpop.permute.xlu1 %670 }
 0x24a   :  { %v7624_v22 = vpop.f32.mrb[40].mxu1 }
 0x24b   :  { %v1382_v23 = vpop.f32.mrb[41].mxu1 }
 0x24c   :  { %v681_v8 = vpop.permute.xlu1 %680 }
 0x24e   :  { %v7626_v25 = vpop.f32.mrb[42].mxu1 }
 0x24f   :  { %v1387_v26 = vpop.f32.mrb[43].mxu1 }
 0x250   :  { %v691_v3 = vpop.permute.xlu1 %690 }
 0x253   :  { %v2040_v31 = vpop.f32.mrb[0].mxu0 }
 0x254   :  { %v7628_v5 = vadd.f32 %v5079_v29, %v2040_v31  ;;  %v4594_v32 = vpop.f32.mrb[1].mxu0  ;;  %v5093_v29 = vadd.f32 %v7598_v24, %v671_v21 }
 0x255   :  { %v676_v32 = vpop.permute.xlu0 %675 }
 0x256   :  { %v2165_v61 = vsel %vm2164_vm2, %v7628_v5, -inf }
 0x257   :  { %v2045_v37 = vpop.f32.mrb[2].mxu0 }
 0x258   :  { %v7630_v38 = vadd.f32 %v5081_v35, %v2045_v37  ;;  %v4597_v39 = vpop.f32.mrb[3].mxu0 }
 0x259   :  { %v5095_v39 = vadd.f32 %v7600_v57, %v676_v32 }
 0x25a   :  { %v2166_v51 = vsel %vm2164_vm2, %v7630_v38, -inf }
 0x25b   :  { %v2050_v40 = vpop.f32.mrb[4].mxu0 }
 0x25c   :  { %v7632_v42 = vadd.f32 %v5083_v20, %v2050_v40  ;;  %v4600_v27 = vpop.f32.mrb[5].mxu0 }
 0x25e   :  { %v7634_v12 = vpop.f32.mrb[44].mxu1  ;;  %v2167_v31 = vsel %vm2164_vm2, %v7632_v42, -inf }
 0x25f   :  { %v2055_v45 = vpop.f32.mrb[6].mxu0  ;;  %v1582_v47 = vpop.f32.mrb[45].mxu1 }
 0x260   :  { %v7636_v48 = vadd.f32 %v5085_v43, %v2055_v45  ;;  %v4603_v49 = vpop.f32.mrb[7].mxu0  ;;  %v5097_v47 = vadd.f32 %v7602_v59, %v681_v8 }
 0x262   :  { %v7638_v52 = vpop.f32.mrb[46].mxu1  ;;  %v2168_v20 = vsel %vm2164_vm2, %v7636_v48, -inf }
 0x263   :  { %v2060_v54 = vpop.f32.mrb[8].mxu0  ;;  %v1587_v34 = vpop.f32.mrb[47].mxu1 }
 0x264   :  { %v7640_v55 = vadd.f32 %v5087_v46, %v2060_v54  ;;  %v4606_v58 = vpop.f32.mrb[9].mxu0  ;;  %v686_v46 = vpop.permute.xlu0 %685 }
 0x265   :  { %v5099_v58 = vadd.f32 %v7604_v60, %v686_v46 }
 0x266   :  { %v2169_v1 = vsel %vm2164_vm2, %v7640_v55, -inf  ;;  %v7647_v2 = vpop.f32.mrb[48].mxu1 }
 0x267   :  { %v2170_v18 = vmax.f32 %v2165_v61, %v2169_v1  ;;  %v2065_v7 = vpop.f32.mrb[10].mxu0  ;;  %v1592_v9 = vpop.f32.mrb[49].mxu1 }
 0x268   :  { %v7649_v11 = vadd.f32 %v5089_v30, %v2065_v7  ;;  %v4609_v50 = vpop.f32.mrb[11].mxu0  ;;  %v5101_v9 = vadd.f32 %v7606_v63, %v691_v3 }
 0x269   :  { %v696_v50 = vpop.permute.xlu0 %695 }
 0x26a   :  { %v2171_v19 = vsel %vm2164_vm2, %v7649_v11, -inf  ;;  %v5103_v21 = vadd.f32 %v7608_v36, %v696_v50 }
 0x26b   :  { %v2172_v23 = vmax.f32 %v2166_v51, %v2171_v19  ;;  %v2070_v62 = vpop.f32.mrb[12].mxu0 }
 0x26c   :  { %v7656_v26 = vadd.f32 %v5091_v16, %v2070_v62  ;;  %v4612_v28 = vpop.f32.mrb[13].mxu0  ;;  %v701_v62 = vpop.permute.xlu1 %700 }
 0x26e   :  { %v2173_v53 = vsel %vm2164_vm2, %v7656_v26, -inf }
 0x26f   :  { %v2174_v33 = vmax.f32 %v2167_v31, %v2173_v53  ;;  %v2075_v35 = vpop.f32.mrb[14].mxu0  ;;  %v5105_v53 = vadd.f32 %v7610_v4, %v701_v62 }
 0x270   :  { %v7663_v13 = vadd.f32 %v5093_v29, %v2075_v35  ;;  %v4615_v37 = vpop.f32.mrb[15].mxu0  ;;  %v711_v8 = vpop.permute.xlu1 %710 }
 0x272   :  { %v2175_v24 = vsel %vm2164_vm2, %v7663_v13, -inf }
 0x273   :  { %v2176_v40 = vmax.f32 %v2168_v20, %v2175_v24  ;;  %v2080_v27 = vpop.f32.mrb[16].mxu0 }
 0x274   :  { %v7670_v43 = vadd.f32 %v5095_v39, %v2080_v27  ;;  %v4618_v45 = vpop.f32.mrb[17].mxu0  ;;  %v721_v3 = vpop.permute.xlu1 %720 }
 0x276   :  { %v2177_v49 = vsel %vm2164_vm2, %v7670_v43, -inf }
 0x277   :  { %v2178_v41 = vmax.f32 %v2170_v18, %v2177_v49  ;;  %v2085_v57 = vpop.f32.mrb[18].mxu0 }
 0x278   :  { %v7675_v54 = vadd.f32 %v5097_v47, %v2085_v57  ;;  %v4621_v34 = vpop.f32.mrb[19].mxu0  ;;  %v5109_v47 = vadd.f32 %v7614_v10, %v711_v8  ;;  %v731_v62 = vpop.permute.xlu1 %730 }
 0x27a   :  { %v2179_v30 = vsel %vm2164_vm2, %v7675_v54, -inf }
 0x27b   :  { %v2180_v61 = vmax.f32 %v2172_v23, %v2179_v30  ;;  %v2090_v1 = vpop.f32.mrb[20].mxu0 }
 0x27c   :  { %v7680_v7 = vadd.f32 %v5099_v58, %v2090_v1  ;;  %v4624_v59 = vpop.f32.mrb[21].mxu0  ;;  %v741_v8 = vpop.permute.xlu1 %740 }
 0x27e   :  { %v2181_v18 = vsel %vm2164_vm2, %v7680_v7, -inf }
 0x27f   :  { %v2182_v16 = vmax.f32 %v2174_v33, %v2181_v18  ;;  %v2095_v51 = vpop.f32.mrb[22].mxu0  ;;  %v706_v33 = vpop.permute.xlu0 %705 }
 0x280   :  { %v7685_v19 = vadd.f32 %v5101_v9, %v2095_v51  ;;  %v4627_v60 = vpop.f32.mrb[23].mxu0  ;;  %v5107_v20 = vadd.f32 %v7612_v44, %v706_v33  ;;  %v5113_v9 = vadd.f32 %v7618_v15, %v721_v3  ;;  %v751_v3 = vpop.permute.xlu1 %750 }
 0x282   :  { %v2183_v23 = vsel %vm2164_vm2, %v7685_v19, -inf }
 0x283   :  { %v2184_v28 = vmax.f32 %v2176_v40, %v2183_v23  ;;  %v2100_v29 = vpop.f32.mrb[24].mxu0  ;;  %v716_v46 = vpop.permute.xlu0 %715 }
 0x284   :  { %v7690_v31 = vadd.f32 %v5103_v21, %v2100_v29  ;;  %v4630_v63 = vpop.f32.mrb[25].mxu0  ;;  %v5111_v58 = vadd.f32 %v7616_v14, %v716_v46 }
 0x286   :  { %v2185_v32 = vsel %vm2164_vm2, %v7690_v31, -inf }
 0x287   :  { %v2186_v35 = vmax.f32 %v2178_v41, %v2185_v32  ;;  %v2105_v37 = vpop.f32.mrb[26].mxu0  ;;  %v726_v50 = vpop.permute.xlu0 %725 }
 0x288   :  { %v7695_v39 = vadd.f32 %v5105_v53, %v2105_v37  ;;  %v4633_v36 = vpop.f32.mrb[27].mxu0  ;;  %v5115_v21 = vadd.f32 %v7620_v17, %v726_v50  ;;  %v5117_v53 = vadd.f32 %v7622_v56, %v731_v62 }
 0x28a   :  { %v2187_v24 = vsel %vm2164_vm2, %v7695_v39, -inf }
 0x28b   :  { %v2188_v40 = vmax.f32 %v2180_v61, %v2187_v24  ;;  %v2110_v27 = vpop.f32.mrb[28].mxu0  ;;  %v736_v33 = vpop.permute.xlu0 %735 }
 0x28c   :  { %v7700_v45 = vadd.f32 %v5107_v20, %v2110_v27  ;;  %v4636_v4 = vpop.f32.mrb[29].mxu0  ;;  %v5119_v20 = vadd.f32 %v7624_v22, %v736_v33 }
 0x28e   :  { %v2189_v49 = vsel %vm2164_vm2, %v7700_v45, -inf }
 0x28f   :  { %v2190_v41 = vmax.f32 %v2182_v16, %v2189_v49  ;;  %v2115_v57 = vpop.f32.mrb[30].mxu0  ;;  %v746_v46 = vpop.permute.xlu0 %745 }
 0x290   :  { %v7705_v34 = vadd.f32 %v5109_v47, %v2115_v57  ;;  %v4639_v44 = vpop.f32.mrb[31].mxu0  ;;  %v5121_v47 = vadd.f32 %v7626_v25, %v741_v8 }
 0x292   :  { %v2191_v30 = vsel %vm2164_vm2, %v7705_v34, -inf }
 0x293   :  { %v2192_v61 = vmax.f32 %v2184_v28, %v2191_v30  ;;  %v2120_v1 = vpop.f32.mrb[32].mxu0  ;;  %v756_v50 = vpop.permute.xlu0 %755 }
 0x294   :  { %v7710_v59 = vadd.f32 %v5111_v58, %v2120_v1  ;;  %v4642_v10 = vpop.f32.mrb[33].mxu0  ;;  %v5123_v58 = vadd.f32 %v7634_v12, %v746_v46 }
 0x296   :  { %v2193_v18 = vsel %vm2164_vm2, %v7710_v59, -inf }
 0x297   :  { %v2194_v16 = vmax.f32 %v2186_v35, %v2193_v18  ;;  %v2125_v51 = vpop.f32.mrb[34].mxu0 }
 0x298   :  { %v7715_v60 = vadd.f32 %v5113_v9, %v2125_v51  ;;  %v4645_v14 = vpop.f32.mrb[35].mxu0  ;;  %v5125_v9 = vadd.f32 %v7638_v52, %v751_v3 }
 0x29a   :  { %v2195_v23 = vsel %vm2164_vm2, %v7715_v60, -inf }
 0x29b   :  { %v2196_v28 = vmax.f32 %v2188_v40, %v2195_v23  ;;  %v2130_v29 = vpop.f32.mrb[36].mxu0 }
 0x29c   :  { %v7720_v63 = vadd.f32 %v5115_v21, %v2130_v29  ;;  %v4648_v15 = vpop.f32.mrb[37].mxu0  ;;  %v5127_v21 = vadd.f32 %v7647_v2, %v756_v50 }
 0x29e   :  { %v2197_v32 = vsel %vm2164_vm2, %v7720_v63, -inf }
 0x29f   :  { %v2198_v35 = vmax.f32 %v2190_v41, %v2197_v32  ;;  %v2135_v37 = vpop.f32.mrb[38].mxu0 }
 0x2a0   :  { %v7725_v36 = vadd.f32 %v5117_v53, %v2135_v37  ;;  %v4651_v17 = vpop.f32.mrb[39].mxu0 }
 0x2a2   :  { %v2199_v24 = vsel %vm2164_vm2, %v7725_v36, -inf }
 0x2a3   :  { %v2200_v40 = vmax.f32 %v2192_v61, %v2199_v24  ;;  %v2140_v27 = vpop.f32.mrb[40].mxu0 }
 0x2a4   :  { %v7730_v4 = vadd.f32 %v5119_v20, %v2140_v27  ;;  %v4654_v56 = vpop.f32.mrb[41].mxu0 }
 0x2a6   :  { %v2201_v49 = vsel %vm2164_vm2, %v7730_v4, -inf }
 0x2a7   :  { %v2202_v41 = vmax.f32 %v2194_v16, %v2201_v49  ;;  %v2145_v57 = vpop.f32.mrb[42].mxu0 }
 0x2a8   :  { %v7735_v44 = vadd.f32 %v5121_v47, %v2145_v57  ;;  %v4657_v22 = vpop.f32.mrb[43].mxu0 }
 0x2aa   :  { %v2203_v30 = vsel %vm2164_vm2, %v7735_v44, -inf }
 0x2ab   :  { %v2204_v61 = vmax.f32 %v2196_v28, %v2203_v30  ;;  %v2150_v1 = vpop.f32.mrb[44].mxu0 }
 0x2ac   :  { %v7740_v10 = vadd.f32 %v5123_v58, %v2150_v1  ;;  %v4660_v25 = vpop.f32.mrb[45].mxu0 }
 0x2ae   :  { %v2205_v18 = vsel %vm2164_vm2, %v7740_v10, -inf }
 0x2af   :  { %v2206_v16 = vmax.f32 %v2198_v35, %v2205_v18  ;;  %v2155_v51 = vpop.f32.mrb[46].mxu0 }
 0x2b0   :  { %v7745_v14 = vadd.f32 %v5125_v9, %v2155_v51  ;;  %v4663_v12 = vpop.f32.mrb[47].mxu0 }
 0x2b2   :  { %v2207_v23 = vsel %vm2164_vm2, %v7745_v14, -inf }
 0x2b3   :  { %v2208_v62 = vmax.f32 %v2200_v40, %v2207_v23  ;;  %v2160_v28 = vpop.f32.mrb[48].mxu0 }
 0x2b4   :  { %v7750_v29 = vadd.f32 %v5127_v21, %v2160_v28  ;;  %v4666_v52 = vpop.f32.mrb[49].mxu0 }
 0x2b5   :  { %v2213_v15 = vmax.f32 %v2206_v16, %v2208_v62 }
 0x2b6   :  { %v2210_v53 = vsel %vm2209_vm3, %v7750_v29, -inf }
 0x2b7   :  { %v2211_v32 = vmax.f32 %v2202_v41, %v2210_v53 }
 0x2b9   :  { %v2212_v33 = vmax.f32 %v2211_v32, %v2204_v61 }
 0x2bb   :  { %v2214_v35 = vmax.f32 %v2212_v33, %v2213_v15 }
 0x2bd   :  { %v2215_v37 = vrot.slane %v2214_v35, 4 }
 0x2bf   :  { %v2216_v17 = vmax.f32 %v2214_v35, %v2215_v37 }
 0x2c1   :  { %v2217_v20 = vrot.slane %v2216_v17, 2 }
 0x2c3   :  { %v2218_v2 = vmax.f32 %v2216_v17, %v2217_v20 }
 0x2c5   :  { %v2219_v24 = vrot.slane %v2218_v2, 1 }
 0x2c7   :  { %v7754_v8 = vmax.f32 %v2218_v2, %v2219_v24 }
 0x2c9   :  { %v2221_v40 = vsub.f32 %v7628_v5, %v7754_v8  ;;  %v2222_v27 = vsub.f32 %v7630_v38, %v7754_v8  ;;  %v2223_v56 = vsub.f32 %v7632_v42, %v7754_v8  ;;  %v2224_v47 = vsub.f32 %v7636_v48, %v7754_v8 }
 0x2ca   :  { %v2225_v49 = vsub.f32 %v7640_v55, %v7754_v8  ;;  %v2226_v46 = vsub.f32 %v7649_v11, %v7754_v8  ;;  %v2227_v41 = vsub.f32 %v7656_v26, %v7754_v8  ;;  %v2228_v5 = vsub.f32 %v7663_v13, %v7754_v8 }
 0x2cb   :  { %v2229_v38 = vsub.f32 %v7670_v43, %v7754_v8  ;;  %v2230_v42 = vsub.f32 %v7675_v54, %v7754_v8  ;;  %v2231_v48 = vsub.f32 %v7680_v7, %v7754_v8  ;;  %v2232_v55 = vsub.f32 %v7685_v19, %v7754_v8 }
 0x2cc   :  { %v2233_v11 = vsub.f32 %v7690_v31, %v7754_v8  ;;  %v2234_v26 = vsub.f32 %v7695_v39, %v7754_v8  ;;  %v2235_v13 = vsub.f32 %v7700_v45, %v7754_v8  ;;  %v2236_v43 = vsub.f32 %v7705_v34, %v7754_v8 }
 0x2cd   :  { %v2237_v54 = vsub.f32 %v7710_v59, %v7754_v8  ;;  %v2238_v7 = vsub.f32 %v7715_v60, %v7754_v8  ;;  %v2239_v19 = vsub.f32 %v7720_v63, %v7754_v8  ;;  %v2240_v31 = vsub.f32 %v7725_v36, %v7754_v8 }
 0x2ce   :  { %v2241_v39 = vsub.f32 %v7730_v4, %v7754_v8  ;;  %v2242_v45 = vsub.f32 %v7735_v44, %v7754_v8  ;;  %v2243_v34 = vsub.f32 %v7740_v10, %v7754_v8  ;;  %v2244_v57 = vsub.f32 %v7745_v14, %v7754_v8 }
 0x2cf   :  { %v2245_v22 = vsub.f32 %v7750_v29, %v7754_v8  ;;  %v2246_v58 = vmul.f32 1.442695, %v2221_v40  ;;  %v2248_v30 = vmul.f32 1.442695, %v2222_v27  ;;  %v2250_v3 = vmul.f32 1.442695, %v2223_v56 }
 0x2d0   :  { %v2252_v61 = vmul.f32 1.442695, %v2224_v47  ;;  %v2254_v1 = vmul.f32 1.442695, %v2225_v49  ;;  %v2256_v25 = vmul.f32 1.442695, %v2226_v46 }
 0x2d1   :  { %5498 = vpow2.f32 %v2246_v58  ;;  %v2258_v9 = vmul.f32 1.442695, %v2227_v41  ;;  %v2260_v18 = vmul.f32 1.442695, %v2228_v5  ;;  %v2262_v50 = vmul.f32 1.442695, %v2229_v38 }
 0x2d2   :  { %5500 = vpow2.f32 %v2248_v30  ;;  %v2264_v12 = vmul.f32 1.442695, %v2230_v42  ;;  %v2266_v29 = vmul.f32 1.442695, %v2231_v48  ;;  %v2268_v32 = vmul.f32 1.442695, %v2232_v55 }
 0x2d3   :  { %5502 = vpow2.f32 %v2250_v3  ;;  %v2270_v17 = vmul.f32 1.442695, %v2233_v11  ;;  %v2272_v40 = vmul.f32 1.442695, %v2234_v26  ;;  %v2294_v56 = vmul.f32 1.442695, %v2245_v22 }
 0x2d4   :  { %5504 = vpow2.f32 %v2252_v61  ;;  %v2274_v46 = vmul.f32 1.442695, %v2235_v13  ;;  %v2276_v42 = vmul.f32 1.442695, %v2236_v43  ;;  %v2278_v26 = vmul.f32 1.442695, %v2237_v54 }
 0x2d5   :  { %5506 = vpow2.f32 %v2254_v1  ;;  %v2280_v43 = vmul.f32 1.442695, %v2238_v7  ;;  %v2282_v59 = vmul.f32 1.442695, %v2239_v19  ;;  %v2284_v60 = vmul.f32 1.442695, %v2240_v31 }
 0x2d6   :  { %5508 = vpow2.f32 %v2256_v25  ;;  %v2286_v63 = vmul.f32 1.442695, %v2241_v39  ;;  %v2288_v36 = vmul.f32 1.442695, %v2242_v45  ;;  %v2292_v44 = vmul.f32 1.442695, %v2244_v57 }
 0x2d7   :  { %5510 = vpow2.f32 %v2258_v9 }
 0x2d8   :  { %5512 = vpow2.f32 %v2260_v18 }
 0x2d9   :  { %5514 = vpow2.f32 %v2262_v50 }
 0x2da   :  { %5516 = vpow2.f32 %v2264_v12 }
 0x2db   :  { %v7806_v16 = vpop.eup %5498  ;;  %5518 = vpow2.f32 %v2266_v29  ;;  %v2290_v29 = vmul.f32 1.442695, %v2243_v34 }
 0x2dc   :  { %v7808_v51 = vpop.eup %5500  ;;  %v2296_v21 = vsel %vm2164_vm2, %v7806_v16, 0.0  ;;  %5520 = vpow2.f32 %v2268_v32 }
 0x2dd   :  { %v7812_v23 = vpop.eup %5502  ;;  %v2297_v62 = vsel %vm2164_vm2, %v7808_v51, 0.0  ;;  %5522 = vpow2.f32 %v2270_v17 }
 0x2de   :  { %v7816_v28 = vpop.eup %5504  ;;  %v2298_v52 = vadd.f32 %v2297_v62, %v2296_v21  ;;  %v2299_v15 = vsel %vm2164_vm2, %v7812_v23, 0.0  ;;  %5524 = vpow2.f32 %v2272_v40 }
 0x2df   :  { %v7820_v53 = vpop.eup %5506  ;;  %v2301_v35 = vsel %vm2164_vm2, %v7816_v28, 0.0  ;;  %5526 = vpow2.f32 %v2294_v56 }
 0x2e0   :  { %v2300_v33 = vadd.f32 %v2299_v15, %v2298_v52  ;;  %v7824_v37 = vpop.eup %5508  ;;  %v2303_v2 = vsel %vm2164_vm2, %v7820_v53, 0.0  ;;  %5528 = vpow2.f32 %v2274_v46 }
 0x2e1   :  { %v7828_v24 = vpop.eup %5510  ;;  %v2305_v47 = vsel %vm2164_vm2, %v7824_v37, 0.0  ;;  %5530 = vpow2.f32 %v2276_v42 }
 0x2e2   :  { %v2302_v20 = vadd.f32 %v2301_v35, %v2300_v33  ;;  %v7832_v49 = vpop.eup %5512  ;;  %v2307_v5 = vsel %vm2164_vm2, %v7828_v24, 0.0  ;;  %5532 = vpow2.f32 %v2278_v26 }
 0x2e3   :  { %v7836_v38 = vpop.eup %5514  ;;  %v2309_v55 = vsel %vm2164_vm2, %v7832_v49, 0.0  ;;  %5534 = vpow2.f32 %v2280_v43 }
 0x2e4   :  { %v2304_v27 = vadd.f32 %v2303_v2, %v2302_v20  ;;  %v7840_v11 = vpop.eup %5516  ;;  %v2311_v22 = vsel %vm2164_vm2, %v7836_v38, 0.0  ;;  %5536 = vpow2.f32 %v2282_v59 }
 0x2e5   :  { %v7847_v58 = vpop.eup %5518  ;;  %v2313_v3 = vsel %vm2164_vm2, %v7840_v11, 0.0  ;;  %5538 = vpow2.f32 %v2284_v60 }
 0x2e6   :  { %v2306_v41 = vadd.f32 %v2305_v47, %v2304_v27  ;;  %v7854_v61 = vpop.eup %5520  ;;  %v2315_v1 = vsel %vm2164_vm2, %v7847_v58, 0.0  ;;  %5540 = vpow2.f32 %v2286_v63 }
 0x2e7   :  { %v7861_v25 = vpop.eup %5522  ;;  %v2317_v9 = vsel %vm2164_vm2, %v7854_v61, 0.0  ;;  %5542 = vpow2.f32 %v2288_v36 }
 0x2e8   :  { %v2308_v48 = vadd.f32 %v2307_v5, %v2306_v41  ;;  %v5525_v18 = vpop.eup %5524  ;;  %v2319_v12 = vsel %vm2164_vm2, %v7861_v25, 0.0  ;;  %5544 = vpow2.f32 %v2290_v29 }
 0x2e9   :  { %v7871_v50 = vpop.eup %5526  ;;  %v2321_v4 = vsel %vm2164_vm2, %v5525_v18, 0.0  ;;  %5546 = vpow2.f32 %v2292_v44 }
 0x2ea   :  { %v2310_v13 = vadd.f32 %v2309_v55, %v2308_v48  ;;  %v7875_v21 = vpop.eup %5528  ;;  %v2343_v62 = vsel %vm2209_vm3, %v7871_v50, 0.0 }
 0x2eb   :  { %v5531_v39 = vpop.eup %5530  ;;  %v2323_v15 = vsel %vm2164_vm2, %v7875_v21, 0.0 }
 0x2ec   :  { %v2312_v30 = vadd.f32 %v2311_v22, %v2310_v13  ;;  %v5533_v32 = vpop.eup %5532  ;;  %v2325_v33 = vsel %vm2164_vm2, %v5531_v39, 0.0 }
 0x2ed   :  { %v5535_v35 = vpop.eup %5534  ;;  %v2327_v20 = vsel %vm2164_vm2, %v5533_v32, 0.0 }
 0x2ee   :  { %v2314_v54 = vadd.f32 %v2313_v3, %v2312_v30  ;;  %v5537_v10 = vpop.eup %5536  ;;  %v2329_v2 = vsel %vm2164_vm2, %v5535_v35, 0.0 }
 0x2ef   :  { %v5539_v40 = vpop.eup %5538  ;;  %v2331_v56 = vsel %vm2164_vm2, %v5537_v10, 0.0 }
 0x2f0   :  { %v2316_v7 = vadd.f32 %v2315_v1, %v2314_v54  ;;  %v5541_v47 = vpop.eup %5540  ;;  %v2333_v8 = vsel %vm2164_vm2, %v5539_v40, 0.0 }
 0x2f1   :  { %v5543_v57 = vpop.eup %5542  ;;  %v2335_v41 = vsel %vm2164_vm2, %v5541_v47, 0.0 }
 0x2f2   :  { %v2318_v19 = vadd.f32 %v2317_v9, %v2316_v7  ;;  %v5545_v5 = vpop.eup %5544  ;;  %v2337_v48 = vsel %vm2164_vm2, %v5543_v57, 0.0 }
 0x2f3   :  { %v5547_v55 = vpop.eup %5546  ;;  %v2339_v13 = vsel %vm2164_vm2, %v5545_v5, 0.0 }
 0x2f4   :  { %v2320_v31 = vadd.f32 %v2319_v12, %v2318_v19  ;;  %v2341_v43 = vsel %vm2164_vm2, %v5547_v55, 0.0 }
 0x2f6   :  { %v2322_v52 = vadd.f32 %v2321_v4, %v2320_v31 }
 0x2f8   :  { %v2324_v45 = vadd.f32 %v2323_v15, %v2322_v52  ;;  %v5575_v15 = vmov 1  }
 0x2fa   :  { %v2326_v17 = vadd.f32 %v2325_v33, %v2324_v45  ;;  %v5577_v45 = vmov 3  }
 0x2fc   :  { %v2328_v34 = vadd.f32 %v2327_v20, %v2326_v17  ;;  %v2377_v17 = vld [vmem:[%s8838_s30] sm:$0xff] }
 0x2fe   :  { %v2330_v27 = vadd.f32 %v2329_v2, %v2328_v34 }
 0x300   :  { %v2332_v14 = vadd.f32 %v2331_v56, %v2330_v27 }
 0x302   :  { %v2334_v46 = vadd.f32 %v2333_v8, %v2332_v14 }
 0x304   :  { %v2336_v42 = vadd.f32 %v2335_v41, %v2334_v46  ;;  %v2402_v46 = vld [vmem:[%s8838_s30 + $0xc8] sm:$0xff] }
 0x306   :  { %v2338_v26 = vadd.f32 %v2337_v48, %v2336_v42 }
 0x308   :  { %v2340_v22 = vadd.f32 %v2339_v13, %v2338_v26 }
 0x30a   :  { %v2342_v30 = vadd.f32 %v2341_v43, %v2340_v22  ;;  %v2404_v22 = vld [vmem:[%s8838_s30 + $0xd8] sm:$0xff] }
 0x30c   :  { %v2344_v3 = vadd.f32 %v2343_v62, %v2342_v30 }
 0x30e   :  { %v2345_v59 = vrot.slane %v2344_v3, 4 }
 0x310   :  { %v2346_v54 = vadd.f32 %v2345_v59, %v2344_v3  ;;  %v2405_v3 = vld [vmem:[%s8838_s30 + $0xe0] sm:$0xff] }
 0x312   :  { %v2347_v1 = vrot.slane %v2346_v54, 2 }
 0x314   :  { %v2348_v60 = vadd.f32 %v2347_v1, %v2346_v54 }
 0x316   :  { %v2349_v7 = vrot.slane %v2348_v60, 1 }
 0x318   :  { %v2350_v9 = vadd.f32 %v2349_v7, %v2348_v60 }
 0x31a   :  { %5548 = vrcp.f32 %v2350_v9 }
 0x324   :  { %v7900_v63 = vpop.eup %5548 }
 0x325   :  { %v2353_v19 = vmul.f32 %v7900_v63, %v7808_v51  ;;  %v2352_v12 = vmul.f32 %v7900_v63, %v7806_v16  ;;  %v7908_v36 = vmul.f32 %v7900_v63, %v7861_v25  ;;  %v7911_v31 = vmul.f32 %v7900_v63, %v5525_v18 }
 0x326   :  { %v7914_v62 = vmul.f32 %v7900_v63, %v5531_v39  ;;  %v7917_v4 = vmul.f32 %v7900_v63, %v5533_v32  ;;  %v7920_v51 = vmul.f32 %v7900_v63, %v5537_v10  ;;  %v7923_v16 = vmul.f32 %v7900_v63, %v5539_v40  ;;  %v2379_v40 = vld [vmem:[%s8838_s30 + $0x10] sm:$0xff] }
 0x327   :  { %2484 = vperm.xlu0 %5399, %v2353_v19   ;;  %2479 = vperm.xlu1 %5400, %v2352_v12   ;;  %v7926_v29 = vmul.f32 %v7900_v63, %v5543_v57  ;;  %v7929_v25 = vmul.f32 %v7900_v63, %v5545_v5  ;;  %v7933_v18 = vmul.f32 %v7900_v63, %v7871_v50  ;;  %v2403_v57 = vld [vmem:[%s8838_s30 + $0xd0] sm:$0xff] }
 0x328   :  { %v7937_v39 = vmul.f32 %v7900_v63, %v7875_v21  ;;  %v7940_v52 = vmul.f32 %v7900_v63, %v5535_v35  ;;  %v7945_v32 = vmul.f32 %v7900_v63, %v5541_v47  ;;  %v7948_v44 = vmul.f32 %v7900_v63, %v5547_v55 }
 0x329   :  { %v2354_v50 = vmul.f32 %v7900_v63, %v7812_v23  ;;  %v5576_v21 = vmov 2   ;;  %v2355_v33 = vmul.f32 %v7900_v63, %v7816_v28  ;;  %v2356_v23 = vmul.f32 %v7900_v63, %v7820_v53 }
 0x32a   :  { %v2358_v28 = vmul.f32 %v7900_v63, %v7828_v24  ;;  %v2359_v53 = vmul.f32 %v7900_v63, %v7832_v49  ;;  %v2357_v24 = vmul.f32 %v7900_v63, %v7824_v37  ;;  %v7984_v49 = vmul.f32 %v7900_v63, %v7840_v11 }
 0x32b   :  { %5402 = vset.pattern.permute.xlu0 %v5575_v15  ;;  %5401 = vset.pattern.permute.xlu1 %v5575_v15  ;;  %v2362_v35 = vmul.f32 %v7900_v63, %v7847_v58  ;;  %v2360_v37 = vmul.f32 %v7900_v63, %v7836_v38  ;;  %v2378_v58 = vld [vmem:[%s8838_s30 + $0x8] sm:$0xff]  ;;  %v2363_v8 = vmul.f32 %v7900_v63, %v7854_v61 }
 0x32c   :  { %2689 = vperm.xlu0 %5402, %v2353_v19   ;;  %2685 = vperm.xlu1 %5401, %v2352_v12  }
 0x330   :  { %5404 = vset.pattern.permute.xlu0 %v5572_v0  ;;  %5403 = vset.pattern.permute.xlu1 %v5576_v21 }
 0x331   :  { %2489 = vperm.xlu0 %5404, %v2354_v50   ;;  %2865 = vperm.xlu1 %5403, %v2352_v12  }
 0x335   :  { %5407 = vset.pattern.permute.xlu0 %v5577_v45  ;;  %2869 = vperm.xlu1 %5403, %v2353_v19  }
 0x336   :  { %3049 = vperm.xlu0 %5407, %v2353_v19  }
 0x339   :  { %5405 = vset.pattern.permute.xlu1 %v5575_v15 }
 0x33a   :  { %5410 = vset.pattern.permute.xlu0 %v5575_v15  ;;  %2693 = vperm.xlu1 %5405, %v2354_v50  }
 0x33b   :  { %2697 = vperm.xlu0 %5410, %v2355_v33  }
 0x33e   :  { %5406 = vset.pattern.permute.xlu1 %v5577_v45 }
 0x33f   :  { %5413 = vset.pattern.permute.xlu0 %v5572_v0  ;;  %3045 = vperm.xlu1 %5406, %v2352_v12  }
 0x340   :  { %2499 = vperm.xlu0 %5413, %v2356_v23  }
 0x343   :  { %5408 = vset.pattern.permute.xlu1 %v5576_v21 }
 0x344   :  { %5416 = vset.pattern.permute.xlu0 %v5576_v21  ;;  %2873 = vperm.xlu1 %5408, %v2354_v50  }
 0x345   :  { %2881 = vperm.xlu0 %5416, %v2356_v23  }
 0x348   :  { %5409 = vset.pattern.permute.xlu1 %v5572_v0 }
 0x349   :  { %5419 = vset.pattern.permute.xlu0 %v5577_v45  ;;  %2494 = vperm.xlu1 %5409, %v2355_v33  }
 0x34a   :  { %3061 = vperm.xlu0 %5419, %v2356_v23  }
 0x34d   :  { %5411 = vset.pattern.permute.xlu1 %v5577_v45 }
 0x34e   :  { %5422 = vset.pattern.permute.xlu0 %v5575_v15  ;;  %3053 = vperm.xlu1 %5411, %v2354_v50  }
 0x34f   :  { %2709 = vperm.xlu0 %5422, %v2358_v28  }
 0x352   :  { %5412 = vset.pattern.permute.xlu1 %v5576_v21 }
 0x353   :  { %5425 = vset.pattern.permute.xlu0 %v5572_v0  ;;  %2877 = vperm.xlu1 %5412, %v2355_v33  }
 0x354   :  { %2514 = vperm.xlu0 %5425, %v2359_v53  }
 0x357   :  { %5414 = vset.pattern.permute.xlu1 %v5575_v15 }
 0x358   :  { %5428 = vset.pattern.permute.xlu0 %v5576_v21  ;;  %2701 = vperm.xlu1 %5414, %v2356_v23   ;;  %v2381_v23 = vld [vmem:[%s8838_s30 + $0x20] sm:$0xff] }
 0x359   :  { %2893 = vperm.xlu0 %5428, %v2359_v53  }
 0x35c   :  { %5415 = vset.pattern.permute.xlu1 %v5577_v45 }
 0x35d   :  { %5431 = vset.pattern.permute.xlu0 %v5577_v45  ;;  %3057 = vperm.xlu1 %5415, %v2355_v33  }
 0x35e   :  { %3073 = vperm.xlu0 %5431, %v2359_v53  }
 0x361   :  { %5417 = vset.pattern.permute.xlu1 %v5572_v0 }
 0x362   :  { %5434 = vset.pattern.permute.xlu0 %v5575_v15  ;;  %2504 = vperm.xlu1 %5417, %v2357_v24  }
 0x363   :  { %2721 = vperm.xlu0 %5434, %v7984_v49  }
 0x366   :  { %5418 = vset.pattern.permute.xlu1 %v5575_v15 }
 0x367   :  { %5437 = vset.pattern.permute.xlu0 %v5572_v0  ;;  %2705 = vperm.xlu1 %5418, %v2357_v24  }
 0x368   :  { %2529 = vperm.xlu0 %5437, %v2362_v35  }
 0x36b   :  { %5420 = vset.pattern.permute.xlu1 %v5576_v21 }
 0x36c   :  { %5440 = vset.pattern.permute.xlu0 %v5576_v21  ;;  %2885 = vperm.xlu1 %5420, %v2357_v24  }
 0x36d   :  { %2905 = vperm.xlu0 %5440, %v2362_v35  }
 0x370   :  { %5421 = vset.pattern.permute.xlu1 %v5572_v0 }
 0x371   :  { %5443 = vset.pattern.permute.xlu0 %v5577_v45  ;;  %2509 = vperm.xlu1 %5421, %v2358_v28  }
 0x372   :  { %3085 = vperm.xlu0 %5443, %v2362_v35  }
 0x375   :  { %5423 = vset.pattern.permute.xlu1 %v5577_v45 }
 0x376   :  { %5446 = vset.pattern.permute.xlu0 %v5575_v15  ;;  %3065 = vperm.xlu1 %5423, %v2357_v24  }
 0x377   :  { %2733 = vperm.xlu0 %5446, %v7908_v36  }
 0x37a   :  { %5424 = vset.pattern.permute.xlu1 %v5576_v21 }
 0x37b   :  { %5449 = vset.pattern.permute.xlu0 %v5572_v0  ;;  %2889 = vperm.xlu1 %5424, %v2358_v28  }
 0x37c   :  { %2544 = vperm.xlu0 %5449, %v7911_v31  }
 0x37f   :  { %5426 = vset.pattern.permute.xlu1 %v5575_v15 }
 0x380   :  { %5452 = vset.pattern.permute.xlu0 %v5576_v21  ;;  %2713 = vperm.xlu1 %5426, %v2359_v53   ;;  %v2380_v53 = vld [vmem:[%s8838_s30 + $0x18] sm:$0xff] }
 0x381   :  { %2917 = vperm.xlu0 %5452, %v7911_v31  }
 0x384   :  { %5427 = vset.pattern.permute.xlu1 %v5577_v45 }
 0x385   :  { %5455 = vset.pattern.permute.xlu0 %v5577_v45  ;;  %3069 = vperm.xlu1 %5427, %v2358_v28  }
 0x386   :  { %3097 = vperm.xlu0 %5455, %v7911_v31  }
 0x389   :  { %5429 = vset.pattern.permute.xlu1 %v5572_v0 }
 0x38a   :  { %5458 = vset.pattern.permute.xlu0 %v5575_v15  ;;  %2519 = vperm.xlu1 %5429, %v2360_v37  }
 0x38b   :  { %2745 = vperm.xlu0 %5458, %v7914_v62  }
 0x38e   :  { %5430 = vset.pattern.permute.xlu1 %v5575_v15 }
 0x38f   :  { %5461 = vset.pattern.permute.xlu0 %v5572_v0  ;;  %2717 = vperm.xlu1 %5430, %v2360_v37  }
 0x390   :  { %2559 = vperm.xlu0 %5461, %v7917_v4  }
 0x393   :  { %5432 = vset.pattern.permute.xlu1 %v5576_v21 }
 0x394   :  { %5464 = vset.pattern.permute.xlu0 %v5576_v21  ;;  %2897 = vperm.xlu1 %5432, %v2360_v37  }
 0x395   :  { %2929 = vperm.xlu0 %5464, %v7917_v4  }
 0x398   :  { %5433 = vset.pattern.permute.xlu1 %v5572_v0 }
 0x399   :  { %5467 = vset.pattern.permute.xlu0 %v5577_v45  ;;  %2524 = vperm.xlu1 %5433, %v7984_v49  }
 0x39a   :  { %3109 = vperm.xlu0 %5467, %v7917_v4  }
 0x39d   :  { %5435 = vset.pattern.permute.xlu1 %v5577_v45 }
 0x39e   :  { %5470 = vset.pattern.permute.xlu0 %v5575_v15  ;;  %3077 = vperm.xlu1 %5435, %v2360_v37  }
 0x39f   :  { %2757 = vperm.xlu0 %5470, %v7920_v51  }
 0x3a2   :  { %5436 = vset.pattern.permute.xlu1 %v5576_v21 }
 0x3a3   :  { %5473 = vset.pattern.permute.xlu0 %v5572_v0  ;;  %2901 = vperm.xlu1 %5436, %v7984_v49  }
 0x3a4   :  { %2574 = vperm.xlu0 %5473, %v7923_v16  }
 0x3a6   :  { %v2485_v38 = vpop.permute.xlu0 %2484  ;;  %v2480_v11 = vpop.permute.xlu1 %2479 }
 0x3a7   :  { %5438 = vset.pattern.permute.xlu1 %v5575_v15  ;;  %v2603_v20 = vmul.f32 %v2485_v38, %v2378_v58  ;;  %v2602_v10 = vmul.f32 %v2480_v11, %v2377_v17 }
 0x3a8   :  { %5476 = vset.pattern.permute.xlu0 %v5576_v21  ;;  %2725 = vperm.xlu1 %5438, %v2362_v35  }
 0x3a9   :  { %2941 = vperm.xlu0 %5476, %v7923_v16   ;;  %v2629_v27 = vsel %vm2627_vm4, %v2603_v20, 0.0  ;;  %v2628_v56 = vsel %vm2627_vm4, %v2602_v10, 0.0  ;;  %v2452_v20 = vld [vmem:[%s8838_s30 + $0x258] sm:$0xff] }
 0x3aa   :  { %v2630_v5 = vadd.f32 %v2629_v27, %v2628_v56 }
 0x3ab   :  { %v2690_v34 = vpop.permute.xlu0 %2689  ;;  %v2686_v2 = vpop.permute.xlu1 %2685 }
 0x3ac   :  { %5439 = vset.pattern.permute.xlu1 %v5577_v45  ;;  %v2785_v61 = vmul.f32 %v2690_v34, %v2403_v57  ;;  %v2784_v48 = vmul.f32 %v2686_v2, %v2402_v46  ;;  %v2453_v34 = vld [vmem:[%s8838_s30 + $0x260] sm:$0xff]  ;;  %v2456_v57 = vld [vmem:[%s8838_s30 + $0x278] sm:$0xff] }
 0x3ad   :  { %5479 = vset.pattern.permute.xlu0 %v5577_v45  ;;  %3081 = vperm.xlu1 %5439, %v7984_v49  }
 0x3ae   :  { %3121 = vperm.xlu0 %5479, %v7923_v16   ;;  %v2810_v43 = vsel %vm2627_vm4, %v2785_v61, 0.0  ;;  %v2809_v30 = vsel %vm2627_vm4, %v2784_v48, 0.0 }
 0x3af   :  { %v2811_v60 = vadd.f32 %v2810_v43, %v2809_v30 }
 0x3b0   :  { %v2490_v47 = vpop.permute.xlu0 %2489  ;;  %v8048_v14 = vpop.permute.xlu1 %2865 }
 0x3b1   :  { %v2604_v41 = vmul.f32 %v2490_v47, %v2379_v40  ;;  %5441 = vset.pattern.permute.xlu1 %v5572_v0  ;;  %v2454_v40 = vld [vmem:[%s8838_s30 + $0x268] sm:$0xff] }
 0x3b2   :  { %5482 = vset.pattern.permute.xlu0 %v5575_v15  ;;  %2534 = vperm.xlu1 %5441, %v2363_v8  }
 0x3b3   :  { %v2631_v42 = vsel %vm2627_vm4, %v2604_v41, 0.0  ;;  %2769 = vperm.xlu0 %5482, %v7926_v29   ;;  %v2455_v41 = vld [vmem:[%s8838_s30 + $0x270] sm:$0xff] }
 0x3b4   :  { %v2632_v55 = vadd.f32 %v2631_v42, %v2630_v5  ;;  %v8062_v26 = vpop.permute.xlu1 %2869 }
 0x3b5   :  { %v3050_v13 = vpop.permute.xlu0 %3049 }
 0x3b6   :  { %5442 = vset.pattern.permute.xlu1 %v5575_v15 }
 0x3b7   :  { %5485 = vset.pattern.permute.xlu0 %v5572_v0  ;;  %2729 = vperm.xlu1 %5442, %v2363_v8  }
 0x3b8   :  { %2589 = vperm.xlu0 %5485, %v7929_v25  }
 0x3b9   :  { %v2694_v59 = vpop.permute.xlu1 %2693 }
 0x3ba   :  { %v2786_v54 = vmul.f32 %v2694_v59, %v2404_v22  ;;  %v2698_v1 = vpop.permute.xlu0 %2697 }
 0x3bb   :  { %v2787_v7 = vmul.f32 %v2698_v1, %v2405_v3  ;;  %5444 = vset.pattern.permute.xlu1 %v5576_v21  ;;  %v2428_v1 = vld [vmem:[%s8838_s30 + $0x198] sm:$0xff] }
 0x3bc   :  { %v2812_v9 = vsel %vm2627_vm4, %v2786_v54, 0.0  ;;  %5488 = vset.pattern.permute.xlu0 %v5576_v21  ;;  %2909 = vperm.xlu1 %5444, %v2363_v8  }
 0x3bd   :  { %v2813_v63 = vadd.f32 %v2812_v9, %v2811_v60  ;;  %v2814_v19 = vsel %vm2627_vm4, %v2787_v7, 0.0  ;;  %2953 = vperm.xlu0 %5488, %v7929_v25   ;;  %v2427_v60 = vld [vmem:[%s8838_s30 + $0x190] sm:$0xff]  ;;  %v2429_v7 = vld [vmem:[%s8838_s30 + $0x1a0] sm:$0xff]  ;;  %v2965_v9 = vmul.f32 %v8062_v26, %v2428_v1 }
 0x3be   :  { %v3046_v12 = vpop.permute.xlu1 %3045 }
 0x3bf   :  { %v8080_v50 = vadd.f32 %v2814_v19, %v2813_v63  ;;  %v2500_v28 = vpop.permute.xlu0 %2499  ;;  %v3144_v27 = vmul.f32 %v3046_v12, %v2452_v20  ;;  %v2430_v19 = vld [vmem:[%s8838_s30 + $0x1a8] sm:$0xff]  ;;  %v2964_v12 = vmul.f32 %v8048_v14, %v2427_v60  ;;  %v2431_v14 = vld [vmem:[%s8838_s30 + $0x1b0] sm:$0xff] }
 0x3c0   :  { %5445 = vset.pattern.permute.xlu1 %v5572_v0  ;;  %v2606_v49 = vmul.f32 %v2500_v28, %v2381_v23  ;;  %v2990_v28 = vsel %vm2627_vm4, %v2965_v9, 0.0 }
 0x3c1   :  { %5491 = vset.pattern.permute.xlu0 %v5577_v45  ;;  %2539 = vperm.xlu1 %5445, %v7908_v36  }
 0x3c2   :  { %3133 = vperm.xlu0 %5491, %v7929_v25   ;;  %v2635_v11 = vsel %vm2627_vm4, %v2606_v49, 0.0  ;;  %v2989_v49 = vsel %vm2627_vm4, %v2964_v12, 0.0 }
 0x3c3   :  { %v8086_v33 = vpop.permute.xlu1 %2873 }
 0x3c4   :  { %v2882_v2 = vpop.permute.xlu0 %2881  ;;  %v2966_v23 = vmul.f32 %v8086_v33, %v2429_v7 }
 0x3c5   :  { %5447 = vset.pattern.permute.xlu1 %v5577_v45  ;;  %v2968_v20 = vmul.f32 %v2882_v2, %v2431_v14  ;;  %v2408_v2 = vld [vmem:[%s8838_s30 + $0xf8] sm:$0xff] }
 0x3c6   :  { %5494 = vset.pattern.permute.xlu0 %v5575_v15  ;;  %3089 = vperm.xlu1 %5447, %v2363_v8   ;;  %v3169_v8 = vsel %vm2627_vm4, %v3144_v27, 0.0  ;;  %v2992_v26 = vsel %vm2627_vm4, %v2966_v23, 0.0 }
 0x3c7   :  { %2781 = vperm.xlu0 %5494, %v7933_v18  }
 0x3c8   :  { %v2495_v24 = vpop.permute.xlu1 %2494 }
 0x3c9   :  { %v2605_v35 = vmul.f32 %v2495_v24, %v2380_v53  ;;  %v3062_v46 = vpop.permute.xlu0 %3061 }
 0x3ca   :  { %5448 = vset.pattern.permute.xlu1 %v5576_v21  ;;  %v3148_v48 = vmul.f32 %v3062_v46, %v2456_v57 }
 0x3cb   :  { %v2633_v37 = vsel %vm2627_vm4, %v2605_v35, 0.0  ;;  %5497 = vset.pattern.permute.xlu0 %v5577_v45  ;;  %2913 = vperm.xlu1 %5448, %v7908_v36   ;;  %v2406_v35 = vld [vmem:[%s8838_s30 + $0xe8] sm:$0xff] }
 0x3cc   :  { %v2634_v38 = vadd.f32 %v2633_v37, %v2632_v55  ;;  %3141 = vperm.xlu0 %5497, %v7933_v18   ;;  %v3176_v30 = vsel %vm2627_vm4, %v3148_v48, 0.0  ;;  %v2991_v37 = vadd.f32 %v2990_v28, %v2989_v49 }
 0x3cd   :  { %v3054_v58 = vpop.permute.xlu1 %3053 }
 0x3ce   :  { %v8103_v17 = vadd.f32 %v2635_v11, %v2634_v38  ;;  %v3146_v56 = vmul.f32 %v3054_v58, %v2454_v40  ;;  %v2407_v38 = vld [vmem:[%s8838_s30 + $0xf0] sm:$0xff]  ;;  %v2993_v11 = vadd.f32 %v2992_v26, %v2991_v37 }
 0x3cf   :  { %5450 = vset.pattern.permute.xlu1 %v5575_v15 }
 0x3d0   :  { %2737 = vperm.xlu1 %5450, %v7911_v31   ;;  %v3145_v31 = vmul.f32 %v3050_v13, %v2453_v34  ;;  %v3172_v5 = vsel %vm2627_vm4, %v3146_v56, 0.0  ;;  %v2433_v56 = vld [vmem:[%s8838_s30 + $0x1c0] sm:$0xff] }
 0x3d2   :  { %v2878_v10 = vpop.permute.xlu1 %2877 }
 0x3d3   :  { %v2967_v53 = vmul.f32 %v2878_v10, %v2430_v19 }
 0x3d4   :  { %5451 = vset.pattern.permute.xlu1 %v5577_v45 }
 0x3d5   :  { %3093 = vperm.xlu1 %5451, %v7908_v36   ;;  %v3170_v36 = vsel %vm2627_vm4, %v3145_v31, 0.0  ;;  %v2994_v33 = vsel %vm2627_vm4, %v2967_v53, 0.0 }
 0x3d6   :  { %v3171_v42 = vadd.f32 %v3170_v36, %v3169_v8  ;;  %v2995_v40 = vadd.f32 %v2994_v33, %v2993_v11  ;;  %v2996_v8 = vsel %vm2627_vm4, %v2968_v20, 0.0  ;;  %v2385_v11 = vld [vmem:[%s8838_s30 + $0x40] sm:$0xff] }
 0x3d7   :  { %v2702_v47 = vpop.permute.xlu1 %2701 }
 0x3d8   :  { %v3173_v13 = vadd.f32 %v3172_v5, %v3171_v42  ;;  %v2788_v58 = vmul.f32 %v2702_v47, %v2406_v35  ;;  %v2710_v47 = vpop.permute.xlu0 %2709 }
 0x3d9   :  { %5453 = vset.pattern.permute.xlu1 %v5572_v0 }
 0x3da   :  { %2549 = vperm.xlu1 %5453, %v7937_v39   ;;  %v2816_v31 = vsel %vm2627_vm4, %v2788_v58, 0.0 }
 0x3db   :  { %v2817_v5 = vadd.f32 %v2816_v31, %v8080_v50 }
 0x3dc   :  { %v3058_v61 = vpop.permute.xlu1 %3057  ;;  %v2515_v28 = vpop.permute.xlu0 %2514 }
 0x3dd   :  { %v3147_v55 = vmul.f32 %v3058_v61, %v2455_v41  ;;  %v2997_v41 = vadd.f32 %v2996_v8, %v2995_v40  ;;  %v2790_v61 = vmul.f32 %v2710_v47, %v2408_v2  ;;  %v2410_v40 = vld [vmem:[%s8838_s30 + $0x108] sm:$0xff] }
 0x3de   :  { %5454 = vset.pattern.permute.xlu1 %v5575_v15 }
 0x3df   :  { %v3174_v22 = vsel %vm2627_vm4, %v3147_v55, 0.0  ;;  %2741 = vperm.xlu1 %5454, %v7937_v39   ;;  %v2457_v55 = vld [vmem:[%s8838_s30 + $0x280] sm:$0xff]  ;;  %v2820_v7 = vsel %vm2627_vm4, %v2790_v61, 0.0 }
 0x3e0   :  { %v3175_v43 = vadd.f32 %v3174_v22, %v3173_v13  ;;  %v2383_v22 = vld [vmem:[%s8838_s30 + $0x30] sm:$0xff]  ;;  %v2894_v31 = vpop.permute.xlu0 %2893 }
 0x3e1   :  { %v2505_v3 = vpop.permute.xlu1 %2504 }
 0x3e2   :  { %v8133_v59 = vadd.f32 %v3176_v30, %v3175_v43  ;;  %v2409_v43 = vld [vmem:[%s8838_s30 + $0x100] sm:$0xff] }
 0x3e3   :  { %5456 = vset.pattern.permute.xlu1 %v5576_v21 }
 0x3e4   :  { %2921 = vperm.xlu1 %5456, %v7937_v39  }
 0x3e6   :  { %v2706_v54 = vpop.permute.xlu1 %2705 }
 0x3e7   :  { %v2789_v27 = vmul.f32 %v2706_v54, %v2407_v38 }
 0x3e8   :  { %5457 = vset.pattern.permute.xlu1 %v5572_v0 }
 0x3e9   :  { %2554 = vperm.xlu1 %5457, %v7914_v62   ;;  %v2818_v46 = vsel %vm2627_vm4, %v2789_v27, 0.0  ;;  %v2434_v27 = vld [vmem:[%s8838_s30 + $0x1c8] sm:$0xff] }
 0x3ea   :  { %v2819_v13 = vadd.f32 %v2818_v46, %v2817_v5  ;;  %v2971_v47 = vmul.f32 %v2894_v31, %v2434_v27  ;;  %v2435_v46 = vld [vmem:[%s8838_s30 + $0x1d0] sm:$0xff] }
 0x3eb   :  { %v2886_v63 = vpop.permute.xlu1 %2885 }
 0x3ec   :  { %v2821_v19 = vadd.f32 %v2820_v7, %v2819_v13  ;;  %v3002_v5 = vsel %vm2627_vm4, %v2971_v47, 0.0  ;;  %v3074_v13 = vpop.permute.xlu0 %3073  ;;  %v2413_v47 = vld [vmem:[%s8838_s30 + $0x120] sm:$0xff] }
 0x3ed   :  { %5459 = vset.pattern.permute.xlu1 %v5577_v45 }
 0x3ee   :  { %3101 = vperm.xlu1 %5459, %v7937_v39   ;;  %v2432_v39 = vld [vmem:[%s8838_s30 + $0x1b8] sm:$0xff] }
 0x3ef   :  { %v2969_v10 = vmul.f32 %v2886_v63, %v2432_v39 }
 0x3f0   :  { %v2510_v24 = vpop.permute.xlu1 %2509 }
 0x3f1   :  { %v2998_v57 = vsel %vm2627_vm4, %v2969_v10, 0.0  ;;  %v2608_v9 = vmul.f32 %v2510_v24, %v2383_v22 }
 0x3f2   :  { %5460 = vset.pattern.permute.xlu1 %v5576_v21  ;;  %v2999_v48 = vadd.f32 %v2998_v57, %v2997_v41 }
 0x3f3   :  { %2925 = vperm.xlu1 %5460, %v7914_v62   ;;  %v2639_v49 = vsel %vm2627_vm4, %v2608_v9, 0.0 }
 0x3f5   :  { %v3066_v34 = vpop.permute.xlu1 %3065 }
 0x3f6   :  { %v3149_v1 = vmul.f32 %v3066_v34, %v2457_v55  ;;  %v2459_v55 = vld [vmem:[%s8838_s30 + $0x290] sm:$0xff] }
 0x3f7   :  { %5462 = vset.pattern.permute.xlu1 %v5575_v15 }
 0x3f8   :  { %2749 = vperm.xlu1 %5462, %v7917_v4   ;;  %v2382_v4 = vld [vmem:[%s8838_s30 + $0x28] sm:$0xff]  ;;  %v3178_v53 = vsel %vm2627_vm4, %v3149_v1, 0.0 }
 0x3f9   :  { %v2607_v30 = vmul.f32 %v2505_v3, %v2382_v4  ;;  %v2384_v3 = vld [vmem:[%s8838_s30 + $0x38] sm:$0xff]  ;;  %v3179_v39 = vadd.f32 %v3178_v53, %v8133_v59 }
 0x3fa   :  { %v2890_v36 = vpop.permute.xlu1 %2889  ;;  %v2609_v14 = vmul.f32 %v2515_v28, %v2384_v3 }
 0x3fb   :  { %v2970_v42 = vmul.f32 %v2890_v36, %v2433_v56  ;;  %v2637_v12 = vsel %vm2627_vm4, %v2607_v30, 0.0  ;;  %v3151_v30 = vmul.f32 %v3074_v13, %v2459_v55 }
 0x3fc   :  { %5463 = vset.pattern.permute.xlu1 %v5577_v45  ;;  %v2638_v35 = vadd.f32 %v2637_v12, %v8103_v17  ;;  %v2641_v10 = vsel %vm2627_vm4, %v2609_v14, 0.0  ;;  %v2436_v12 = vld [vmem:[%s8838_s30 + $0x1d8] sm:$0xff] }
 0x3fd   :  { %v3000_v50 = vsel %vm2627_vm4, %v2970_v42, 0.0  ;;  %3105 = vperm.xlu1 %5463, %v7914_v62   ;;  %v2458_v62 = vld [vmem:[%s8838_s30 + $0x288] sm:$0xff]  ;;  %v3182_v7 = vsel %vm2627_vm4, %v3151_v30, 0.0  ;;  %v2389_v30 = vld [vmem:[%s8838_s30 + $0x60] sm:$0xff] }
 0x3fe   :  { %v3001_v54 = vadd.f32 %v3000_v50, %v2999_v48  ;;  %v2640_v33 = vadd.f32 %v2639_v49, %v2638_v35  ;;  %v2386_v48 = vld [vmem:[%s8838_s30 + $0x48] sm:$0xff] }
 0x3ff   :  { %v2714_v60 = vpop.permute.xlu1 %2713 }
 0x400   :  { %v2791_v63 = vmul.f32 %v2714_v60, %v2409_v43  ;;  %v2642_v34 = vadd.f32 %v2641_v10, %v2640_v33  ;;  %v3003_v42 = vadd.f32 %v3002_v5, %v3001_v54 }
 0x401   :  { %5465 = vset.pattern.permute.xlu1 %v5572_v0 }
 0x402   :  { %v2822_v23 = vsel %vm2627_vm4, %v2791_v63, 0.0  ;;  %2564 = vperm.xlu1 %5465, %v7940_v52  }
 0x403   :  { %v2823_v24 = vadd.f32 %v2822_v23, %v2821_v19  ;;  %v2411_v23 = vld [vmem:[%s8838_s30 + $0x110] sm:$0xff] }
 0x404   :  { %v3070_v26 = vpop.permute.xlu1 %3069 }
 0x405   :  { %v3150_v37 = vmul.f32 %v3070_v26, %v2458_v62  ;;  %v2722_v62 = vpop.permute.xlu0 %2721 }
 0x406   :  { %5466 = vset.pattern.permute.xlu1 %v5575_v15 }
 0x407   :  { %v3180_v38 = vsel %vm2627_vm4, %v3150_v37, 0.0  ;;  %2753 = vperm.xlu1 %5466, %v7940_v52  }
 0x408   :  { %v3181_v58 = vadd.f32 %v3180_v38, %v3179_v39  ;;  %v2387_v38 = vld [vmem:[%s8838_s30 + $0x50] sm:$0xff] }
 0x409   :  { %v2520_v20 = vpop.permute.xlu1 %2519 }
 0x40a   :  { %v2610_v17 = vmul.f32 %v2520_v20, %v2385_v11  ;;  %v3183_v63 = vadd.f32 %v3182_v7, %v3181_v58  ;;  %v2530_v11 = vpop.permute.xlu0 %2529 }
 0x40b   :  { %5468 = vset.pattern.permute.xlu1 %v5576_v21 }
 0x40c   :  { %v2643_v59 = vsel %vm2627_vm4, %v2610_v17, 0.0  ;;  %2933 = vperm.xlu1 %5468, %v7940_v52   ;;  %v2612_v17 = vmul.f32 %v2530_v11, %v2387_v38 }
 0x40d   :  { %v2644_v56 = vadd.f32 %v2643_v59, %v2642_v34  ;;  %v2388_v59 = vld [vmem:[%s8838_s30 + $0x58] sm:$0xff] }
 0x40e   :  { %v2718_v8 = vpop.permute.xlu1 %2717  ;;  %v2647_v31 = vsel %vm2627_vm4, %v2612_v17, 0.0 }
 0x40f   :  { %v2792_v2 = vmul.f32 %v2718_v8, %v2410_v40 }
 0x410   :  { %5469 = vset.pattern.permute.xlu1 %v5572_v0 }
 0x411   :  { %v2824_v57 = vsel %vm2627_vm4, %v2792_v2, 0.0  ;;  %2569 = vperm.xlu1 %5469, %v7920_v51  }
 0x412   :  { %v2825_v41 = vadd.f32 %v2824_v57, %v2823_v24  ;;  %v2793_v24 = vmul.f32 %v2722_v62, %v2411_v23  ;;  %v2437_v57 = vld [vmem:[%s8838_s30 + $0x1e0] sm:$0xff] }
 0x413   :  { %v2898_v36 = vpop.permute.xlu1 %2897 }
 0x414   :  { %v2972_v4 = vmul.f32 %v2898_v36, %v2435_v46  ;;  %v2826_v37 = vsel %vm2627_vm4, %v2793_v24, 0.0  ;;  %v2906_v46 = vpop.permute.xlu0 %2905  ;;  %v2414_v24 = vld [vmem:[%s8838_s30 + $0x128] sm:$0xff] }
 0x415   :  { %5471 = vset.pattern.permute.xlu1 %v5577_v45  ;;  %v2827_v39 = vadd.f32 %v2826_v37, %v2825_v41 }
 0x416   :  { %v3004_v61 = vsel %vm2627_vm4, %v2972_v4, 0.0  ;;  %3113 = vperm.xlu1 %5471, %v7940_v52   ;;  %v2460_v52 = vld [vmem:[%s8838_s30 + $0x298] sm:$0xff]  ;;  %v2974_v4 = vmul.f32 %v2906_v46, %v2437_v57 }
 0x417   :  { %v3005_v22 = vadd.f32 %v3004_v61, %v3003_v42  ;;  %v2438_v61 = vld [vmem:[%s8838_s30 + $0x1e8] sm:$0xff] }
 0x418   :  { %v2525_v50 = vpop.permute.xlu1 %2524  ;;  %v3008_v13 = vsel %vm2627_vm4, %v2974_v4, 0.0 }
 0x419   :  { %v2611_v43 = vmul.f32 %v2525_v50, %v2386_v48 }
 0x41a   :  { %5472 = vset.pattern.permute.xlu1 %v5576_v21 }
 0x41b   :  { %v2645_v54 = vsel %vm2627_vm4, %v2611_v43, 0.0  ;;  %2937 = vperm.xlu1 %5472, %v7920_v51  }
 0x41c   :  { %v2646_v1 = vadd.f32 %v2645_v54, %v2644_v56  ;;  %v2462_v54 = vld [vmem:[%s8838_s30 + $0x2a8] sm:$0xff] }
 0x41d   :  { %v3078_v60 = vpop.permute.xlu1 %3077 }
 0x41e   :  { %v3152_v9 = vmul.f32 %v3078_v60, %v2460_v52  ;;  %v2648_v8 = vadd.f32 %v2647_v31, %v2646_v1  ;;  %v3086_v52 = vpop.permute.xlu0 %3085  ;;  %v2391_v31 = vld [vmem:[%s8838_s30 + $0x70] sm:$0xff] }
 0x41f   :  { %5474 = vset.pattern.permute.xlu1 %v5575_v15 }
 0x420   :  { %v3184_v19 = vsel %vm2627_vm4, %v3152_v9, 0.0  ;;  %2761 = vperm.xlu1 %5474, %v7923_v16   ;;  %v2412_v16 = vld [vmem:[%s8838_s30 + $0x118] sm:$0xff]  ;;  %v3154_v9 = vmul.f32 %v3086_v52, %v2462_v54  ;;  %v2465_v52 = vld [vmem:[%s8838_s30 + $0x2c0] sm:$0xff] }
 0x421   :  { %v3185_v3 = vadd.f32 %v3184_v19, %v3183_v63 }
 0x422   :  { %v2902_v28 = vpop.permute.xlu1 %2901  ;;  %v3188_v23 = vsel %vm2627_vm4, %v3154_v9, 0.0 }
 0x423   :  { %v2973_v53 = vmul.f32 %v2902_v28, %v2436_v12 }
 0x424   :  { %5475 = vset.pattern.permute.xlu1 %v5577_v45 }
 0x425   :  { %v3006_v49 = vsel %vm2627_vm4, %v2973_v53, 0.0  ;;  %3117 = vperm.xlu1 %5475, %v7920_v51   ;;  %v2461_v51 = vld [vmem:[%s8838_s30 + $0x2a0] sm:$0xff]  ;;  %v2439_v53 = vld [vmem:[%s8838_s30 + $0x1f0] sm:$0xff] }
 0x426   :  { %v3007_v26 = vadd.f32 %v3006_v49, %v3005_v22  ;;  %v2734_v49 = vpop.permute.xlu0 %2733 }
 0x427   :  { %v2726_v35 = vpop.permute.xlu1 %2725  ;;  %v2796_v37 = vmul.f32 %v2734_v49, %v2414_v24 }
 0x428   :  { %v2794_v14 = vmul.f32 %v2726_v35, %v2412_v16  ;;  %v3009_v50 = vadd.f32 %v3008_v13, %v3007_v26 }
 0x429   :  { %5477 = vset.pattern.permute.xlu1 %v5572_v0 }
 0x42a   :  { %v2828_v33 = vsel %vm2627_vm4, %v2794_v14, 0.0  ;;  %2579 = vperm.xlu1 %5477, %v7945_v32  }
 0x42b   :  { %v2829_v58 = vadd.f32 %v2828_v33, %v2827_v39 }
 0x42c   :  { %v3082_v20 = vpop.permute.xlu1 %3081 }
 0x42d   :  { %v3153_v10 = vmul.f32 %v3082_v20, %v2461_v51  ;;  %v2832_v51 = vsel %vm2627_vm4, %v2796_v37, 0.0  ;;  %v2390_v20 = vld [vmem:[%s8838_s30 + $0x68] sm:$0xff] }
 0x42e   :  { %5478 = vset.pattern.permute.xlu1 %v5575_v15 }
 0x42f   :  { %v3186_v34 = vsel %vm2627_vm4, %v3153_v10, 0.0  ;;  %2765 = vperm.xlu1 %5478, %v7945_v32   ;;  %v2545_v10 = vpop.permute.xlu0 %2544 }
 0x430   :  { %v3187_v40 = vadd.f32 %v3186_v34, %v3185_v3 }
 0x431   :  { %v2535_v27 = vpop.permute.xlu1 %2534 }
 0x432   :  { %v2613_v56 = vmul.f32 %v2535_v27, %v2388_v59  ;;  %v3189_v3 = vadd.f32 %v3188_v23, %v3187_v40  ;;  %v2615_v40 = vmul.f32 %v2545_v10, %v2390_v20 }
 0x433   :  { %5480 = vset.pattern.permute.xlu1 %v5576_v21 }
 0x434   :  { %v2649_v2 = vsel %vm2627_vm4, %v2613_v56, 0.0  ;;  %2945 = vperm.xlu1 %5480, %v7945_v32  }
 0x435   :  { %v2650_v41 = vadd.f32 %v2649_v2, %v2648_v8  ;;  %v2653_v2 = vsel %vm2627_vm4, %v2615_v40, 0.0  ;;  %v3234_v40 = vld [vmem:[%s8839_s2] sm:$0xff] }
 0x436   :  { %v2730_v36 = vpop.permute.xlu1 %2729  ;;  %4669 = vmatprep.mubr.msk.f32.mxu1 %vm2164_vm2, %v3234_v40 }
 0x437   :  { %v2795_v5 = vmul.f32 %v2730_v36, %v2413_v47  ;;  %v2918_v36 = vpop.permute.xlu0 %2917 }
 0x438   :  { %5481 = vset.pattern.permute.xlu1 %v5572_v0 }
 0x439   :  { %v2830_v42 = vsel %vm2627_vm4, %v2795_v5, 0.0  ;;  %2584 = vperm.xlu1 %5481, %v7926_v29  }
 0x43a   :  { %v2831_v48 = vadd.f32 %v2830_v42, %v2829_v58 }
 0x43b   :  { %v2910_v55 = vpop.permute.xlu1 %2909 }
 0x43c   :  { %v2975_v22 = vmul.f32 %v2910_v55, %v2438_v61  ;;  %v2833_v11 = vadd.f32 %v2832_v51, %v2831_v48  ;;  %v2441_v55 = vld [vmem:[%s8838_s30 + $0x200] sm:$0xff] }
 0x43d   :  { %5483 = vset.pattern.permute.xlu1 %v5577_v45 }
 0x43e   :  { %v3010_v43 = vsel %vm2627_vm4, %v2975_v22, 0.0  ;;  %3125 = vperm.xlu1 %5483, %v7945_v32   ;;  %v2463_v32 = vld [vmem:[%s8838_s30 + $0x2b0] sm:$0xff] }
 0x43f   :  { %v3011_v1 = vadd.f32 %v3010_v43, %v3009_v50 }
 0x440   :  { %v2540_v60 = vpop.permute.xlu1 %2539 }
 0x441   :  { %v2614_v7 = vmul.f32 %v2540_v60, %v2389_v30 }
 0x442   :  { %5484 = vset.pattern.permute.xlu1 %v5576_v21 }
 0x443   :  { %v2651_v63 = vsel %vm2627_vm4, %v2614_v7, 0.0  ;;  %2949 = vperm.xlu1 %5484, %v7926_v29  }
 0x444   :  { %v2652_v19 = vadd.f32 %v2651_v63, %v2650_v41  ;;  %v2440_v41 = vld [vmem:[%s8838_s30 + $0x1f8] sm:$0xff] }
 0x445   :  { %v3090_v12 = vpop.permute.xlu1 %3089  ;;  %v2977_v61 = vmul.f32 %v2918_v36, %v2440_v41 }
 0x446   :  { %v3155_v62 = vmul.f32 %v3090_v12, %v2463_v32  ;;  %v2654_v57 = vadd.f32 %v2653_v2, %v2652_v19 }
 0x447   :  { %5486 = vset.pattern.permute.xlu1 %v5575_v15  ;;  %v3014_v50 = vsel %vm2627_vm4, %v2977_v61, 0.0 }
 0x448   :  { %v3190_v28 = vsel %vm2627_vm4, %v3155_v62, 0.0  ;;  %2773 = vperm.xlu1 %5486, %v7929_v25   ;;  %v2415_v25 = vld [vmem:[%s8838_s30 + $0x130] sm:$0xff] }
 0x449   :  { %v3191_v16 = vadd.f32 %v3190_v28, %v3189_v3 }
 0x44a   :  { %v2914_v26 = vpop.permute.xlu1 %2913 }
 0x44b   :  { %v2976_v35 = vmul.f32 %v2914_v26, %v2439_v53 }
 0x44c   :  { %5487 = vset.pattern.permute.xlu1 %v5577_v45 }
 0x44d   :  { %v3012_v14 = vsel %vm2627_vm4, %v2976_v35, 0.0  ;;  %3129 = vperm.xlu1 %5487, %v7926_v29   ;;  %v2464_v29 = vld [vmem:[%s8838_s30 + $0x2b8] sm:$0xff]  ;;  %v2418_v35 = vld [vmem:[%s8838_s30 + $0x148] sm:$0xff] }
 0x44e   :  { %v3013_v39 = vadd.f32 %v3012_v14, %v3011_v1  ;;  %v3098_v1 = vpop.permute.xlu0 %3097 }
 0x44f   :  { %v2738_v33 = vpop.permute.xlu1 %2737  ;;  %v3157_v63 = vmul.f32 %v3098_v1, %v2465_v52 }
 0x450   :  { %v2797_v38 = vmul.f32 %v2738_v33, %v2415_v25  ;;  %v3015_v30 = vadd.f32 %v3014_v50, %v3013_v39 }
 0x451   :  { %5489 = vset.pattern.permute.xlu1 %v5572_v0  ;;  %v3194_v12 = vsel %vm2627_vm4, %v3157_v63, 0.0 }
 0x452   :  { %v2834_v58 = vsel %vm2627_vm4, %v2797_v38, 0.0  ;;  %2594 = vperm.xlu1 %5489, %v7948_v44   ;;  %v2746_v28 = vpop.permute.xlu0 %2745  ;;  %v2467_v38 = vld [vmem:[%s8838_s30 + $0x2d0] sm:$0xff] }
 0x453   :  { %v2835_v17 = vadd.f32 %v2834_v58, %v2833_v11  ;;  %v2393_v11 = vld [vmem:[%s8838_s30 + $0x80] sm:$0xff] }
 0x454   :  { %v3094_v34 = vpop.permute.xlu1 %3093 }
 0x455   :  { %v3156_v59 = vmul.f32 %v3094_v34, %v2464_v29 }
 0x456   :  { %5490 = vset.pattern.permute.xlu1 %v5575_v15  ;;  %v2416_v15 = vld [vmem:[%s8838_s30 + $0x138] sm:$0xff]  ;;  %v2560_v58 = vpop.permute.xlu0 %2559 }
 0x457   :  { %v3192_v27 = vsel %vm2627_vm4, %v3156_v59, 0.0  ;;  %2777 = vperm.xlu1 %5490, %v7948_v44   ;;  %v2394_v59 = vld [vmem:[%s8838_s30 + $0x88] sm:$0xff] }
 0x458   :  { %v3193_v56 = vadd.f32 %v3192_v27, %v3191_v16 }
 0x459   :  { %v2550_v8 = vpop.permute.xlu1 %2549 }
 0x45a   :  { %v2616_v47 = vmul.f32 %v2550_v8, %v2391_v31  ;;  %v3195_v62 = vadd.f32 %v3194_v12, %v3193_v56 }
 0x45b   :  { %5492 = vset.pattern.permute.xlu1 %v5576_v21 }
 0x45c   :  { %v2655_v46 = vsel %vm2627_vm4, %v2616_v47, 0.0  ;;  %2957 = vperm.xlu1 %5492, %v7948_v44  }
 0x45d   :  { %v2656_v5 = vadd.f32 %v2655_v46, %v2654_v57  ;;  %v2419_v57 = vld [vmem:[%s8838_s30 + $0x150] sm:$0xff] }
 0x45e   :  { %v2742_v4 = vpop.permute.xlu1 %2741 }
 0x45f   :  { %v2798_v42 = vmul.f32 %v2742_v4, %v2416_v15 }
 0x460   :  { %5493 = vset.pattern.permute.xlu1 %v5572_v0  ;;  %v2392_v0 = vld [vmem:[%s8838_s30 + $0x78] sm:$0xff] }
 0x461   :  { %v2836_v48 = vsel %vm2627_vm4, %v2798_v42, 0.0  ;;  %2599 = vperm.xlu1 %5493, %v7933_v18  }
 0x462   :  { %v2837_v13 = vadd.f32 %v2836_v48, %v2835_v17  ;;  %v2618_v17 = vmul.f32 %v2560_v58, %v2393_v11  ;;  %v2930_v48 = vpop.permute.xlu0 %2929  ;;  %v2469_v58 = vld [vmem:[%s8838_s30 + $0x2e0] sm:$0xff] }
 0x463   :  { %v2922_v22 = vpop.permute.xlu1 %2921 }
 0x464   :  { %v2978_v43 = vmul.f32 %v2922_v22, %v2441_v55  ;;  %v2659_v56 = vsel %vm2627_vm4, %v2618_v17, 0.0  ;;  %v2397_v17 = vld [vmem:[%s8838_s30 + $0xa0] sm:$0xff] }
 0x465   :  { %5495 = vset.pattern.permute.xlu1 %v5577_v45 }
 0x466   :  { %v3016_v54 = vsel %vm2627_vm4, %v2978_v43, 0.0  ;;  %3137 = vperm.xlu1 %5495, %v7948_v44   ;;  %v2466_v44 = vld [vmem:[%s8838_s30 + $0x2c8] sm:$0xff] }
 0x467   :  { %v3017_v60 = vadd.f32 %v3016_v54, %v3015_v30 }
 0x468   :  { %v2555_v7 = vpop.permute.xlu1 %2554 }
 0x469   :  { %v2617_v9 = vmul.f32 %v2555_v7, %v2392_v0 }
 0x46a   :  { %5496 = vset.pattern.permute.xlu1 %v5576_v21  ;;  %v2442_v21 = vld [vmem:[%s8838_s30 + $0x208] sm:$0xff] }
 0x46b   :  { %v2657_v45 = vsel %vm2627_vm4, %v2617_v9, 0.0  ;;  %2961 = vperm.xlu1 %5496, %v7933_v18   ;;  %v2417_v18 = vld [vmem:[%s8838_s30 + $0x140] sm:$0xff] }
 0x46c   :  { %v2658_v32 = vadd.f32 %v2657_v45, %v2656_v5  ;;  %v2799_v16 = vmul.f32 %v2746_v28, %v2417_v18  ;;  %v2395_v18 = vld [vmem:[%s8838_s30 + $0x90] sm:$0xff] }
 0x46d   :  { %v3102_v19 = vpop.permute.xlu1 %3101 }
 0x46e   :  { %v3158_v23 = vmul.f32 %v3102_v19, %v2466_v44  ;;  %v2838_v25 = vsel %vm2627_vm4, %v2799_v16, 0.0  ;;  %v2660_v2 = vadd.f32 %v2659_v56, %v2658_v32  ;;  %v2420_v32 = vld [vmem:[%s8838_s30 + $0x158] sm:$0xff]  ;;  %v2421_v19 = vld [vmem:[%s8838_s30 + $0x160] sm:$0xff] }
 0x46f   :  { %v2839_v33 = vadd.f32 %v2838_v25, %v2837_v13  ;;  %v3110_v13 = vpop.permute.xlu0 %3109 }
 0x470   :  { %v3196_v3 = vsel %vm2627_vm4, %v3158_v23, 0.0 }
 0x471   :  { %v3197_v53 = vadd.f32 %v3196_v3, %v3195_v62  ;;  %v2422_v62 = vld [vmem:[%s8838_s30 + $0x168] sm:$0xff] }
 0x472   :  { %v2926_v24 = vpop.permute.xlu1 %2925 }
 0x473   :  { %v2979_v49 = vmul.f32 %v2926_v24, %v2442_v21  ;;  %v2758_v50 = vpop.permute.xlu0 %2757  ;;  %v2468_v24 = vld [vmem:[%s8838_s30 + $0x2d8] sm:$0xff] }
 0x474   :  { %v2802_v3 = vmul.f32 %v2758_v50, %v2420_v32  ;;  %v3160_v11 = vmul.f32 %v3110_v13, %v2468_v24  ;;  %v2472_v24 = vld [vmem:[%s8838_s30 + $0x2f8] sm:$0xff] }
 0x475   :  { %v3018_v26 = vsel %vm2627_vm4, %v2979_v49, 0.0 }
 0x476   :  { %v8395_v37 = vadd.f32 %v3018_v26, %v3017_v60  ;;  %v2844_v16 = vsel %vm2627_vm4, %v2802_v3, 0.0  ;;  %v2396_v26 = vld [vmem:[%s8838_s30 + $0x98] sm:$0xff] }
 0x477   :  { %v2750_v14 = vpop.permute.xlu1 %2749  ;;  %v2575_v30 = vpop.permute.xlu0 %2574 }
 0x478   :  { %v2800_v39 = vmul.f32 %v2750_v14, %v2418_v35 }
 0x47a   :  { %v2840_v51 = vsel %vm2627_vm4, %v2800_v39, 0.0  ;;  %v2423_v39 = vld [vmem:[%s8838_s30 + $0x170] sm:$0xff] }
 0x47b   :  { %v2841_v29 = vadd.f32 %v2840_v51, %v2839_v33  ;;  %v2942_v52 = vpop.permute.xlu0 %2941  ;;  %v2424_v51 = vld [vmem:[%s8838_s30 + $0x178] sm:$0xff] }
 0x47c   :  { %v3106_v20 = vpop.permute.xlu1 %3105 }
 0x47d   :  { %v3159_v10 = vmul.f32 %v3106_v20, %v2467_v38  ;;  %v2621_v20 = vmul.f32 %v2575_v30, %v2396_v26  ;;  %v2445_v30 = vld [vmem:[%s8838_s30 + $0x220] sm:$0xff] }
 0x47f   :  { %v3198_v34 = vsel %vm2627_vm4, %v3159_v10, 0.0  ;;  %v3122_v60 = vpop.permute.xlu0 %3121  ;;  %v2665_v13 = vsel %vm2627_vm4, %v2621_v20, 0.0 }
 0x480   :  { %v8412_v27 = vadd.f32 %v3198_v34, %v3197_v53  ;;  %v2443_v53 = vld [vmem:[%s8838_s30 + $0x210] sm:$0xff]  ;;  %v2446_v34 = vld [vmem:[%s8838_s30 + $0x228] sm:$0xff] }
 0x481   :  { %v2565_v31 = vpop.permute.xlu1 %2564  ;;  %v2980_v38 = vmul.f32 %v2930_v48, %v2443_v53 }
 0x482   :  { %v2619_v8 = vmul.f32 %v2565_v31, %v2394_v59  ;;  %v2470_v31 = vld [vmem:[%s8838_s30 + $0x2e8] sm:$0xff] }
 0x483   :  { %v2770_v9 = vpop.permute.xlu0 %2769 }
 0x484   :  { %v2661_v47 = vsel %vm2627_vm4, %v2619_v8, 0.0  ;;  %v2805_v59 = vmul.f32 %v2770_v9, %v2423_v39  ;;  %v2425_v9 = vld [vmem:[%s8838_s30 + $0x180] sm:$0xff] }
 0x485   :  { %v8420_v46 = vadd.f32 %v2661_v47, %v2660_v2  ;;  %v2444_v2 = vld [vmem:[%s8838_s30 + $0x218] sm:$0xff]  ;;  %v2473_v39 = vld [vmem:[%s8838_s30 + $0x300] sm:$0xff] }
 0x486   :  { %v2754_v15 = vpop.permute.xlu1 %2753  ;;  %v2850_v32 = vsel %vm2627_vm4, %v2805_v59, 0.0 }
 0x487   :  { %v2801_v41 = vmul.f32 %v2754_v15, %v2419_v57  ;;  %v8431_v45 = vpop.permute.xlu0 %2589  ;;  %v2398_v15 = vld [vmem:[%s8838_s30 + $0xa8] sm:$0xff] }
 0x489   :  { %v2842_v36 = vsel %vm2627_vm4, %v2801_v41, 0.0  ;;  %v3020_v41 = vsel %vm2627_vm4, %v2980_v38, 0.0  ;;  %v2447_v38 = vld [vmem:[%s8838_s30 + $0x230] sm:$0xff] }
 0x48a   :  { %v2843_v5 = vadd.f32 %v2842_v36, %v2841_v29  ;;  %v3200_v36 = vsel %vm2627_vm4, %v3160_v11, 0.0 }
 0x48b   :  { %v8423_v4 = vpop.permute.xlu1 %2933  ;;  %v8441_v12 = vpop.permute.xlu0 %2953 }
 0x48c   :  { %v2845_v33 = vadd.f32 %v2844_v16, %v2843_v5  ;;  %v2471_v5 = vld [vmem:[%s8838_s30 + $0x2f0] sm:$0xff] }
 0x48f   :  { %v8461_v35 = vpop.permute.xlu0 %3133 }
 0x490   :  { %v2570_v42 = vpop.permute.xlu1 %2569 }
 0x491   :  { %v2620_v14 = vmul.f32 %v2570_v42, %v2395_v18  ;;  %v2426_v42 = vld [vmem:[%s8838_s30 + $0x188] sm:$0xf]  ;;  %v3201_v18 = vadd.f32 %v3200_v36, %v8412_v27 }
 0x493   :  { %v2663_v40 = vsel %vm2627_vm4, %v2620_v14, 0.0  ;;  %v2782_v48 = vpop.permute.xlu0 %2781  ;;  %v2400_v14 = vld [vmem:[%s8838_s30 + $0xb8] sm:$0xff] }
 0x494   :  { %v2664_v50 = vadd.f32 %v2663_v40, %v8420_v46 }
 0x495   :  { %v3114_v61 = vpop.permute.xlu1 %3113 }
 0x496   :  { %v3161_v47 = vmul.f32 %v3114_v61, %v2469_v58  ;;  %v2666_v16 = vadd.f32 %v2665_v13, %v2664_v50 }
 0x498   :  { %v3202_v3 = vsel %vm2627_vm4, %v3161_v47, 0.0  ;;  %v2474_v47 = vld [vmem:[%s8838_s30 + $0x308] sm:$0xff] }
 0x49a   :  { %v8425_v55 = vpop.permute.xlu1 %2937 }
 0x49f   :  { %v2762_v22 = vpop.permute.xlu1 %2761 }
 0x4a0   :  { %v2803_v21 = vmul.f32 %v2762_v22, %v2421_v19  ;;  %v2983_v22 = vmul.f32 %v2942_v52, %v2446_v34  ;;  %v2981_v19 = vmul.f32 %v8423_v4, %v2444_v2 }
 0x4a2   :  { %v2846_v25 = vsel %vm2627_vm4, %v2803_v21, 0.0  ;;  %v3022_v27 = vsel %vm2627_vm4, %v2981_v19, 0.0 }
 0x4a3   :  { %v2847_v10 = vadd.f32 %v2846_v25, %v2845_v33 }
 0x4a4   :  { %v3118_v43 = vpop.permute.xlu1 %3117 }
 0x4a9   :  { %v2580_v54 = vpop.permute.xlu1 %2579 }
 0x4aa   :  { %v2622_v61 = vmul.f32 %v2580_v54, %v2397_v17  ;;  %v2399_v54 = vld [vmem:[%s8838_s30 + $0xb0] sm:$0xff] }
 0x4ac   :  { %v2667_v53 = vsel %vm2627_vm4, %v2622_v61, 0.0 }
 0x4ae   :  { %v2766_v0 = vpop.permute.xlu1 %2765 }
 0x4af   :  { %v2804_v28 = vmul.f32 %v2766_v0, %v2422_v62  ;;  %v3162_v0 = vmul.f32 %v3118_v43, %v2470_v31  ;;  %v2808_v62 = vmul.f32 %v2782_v48, %v2426_v42  ;;  %v3026_v42 = vsel %vm2627_vm4, %v2983_v22, 0.0  ;;  %v2450_v22 = vld [vmem:[%s8838_s30 + $0x248] sm:$0xff] }
 0x4b1   :  { %v2848_v29 = vsel %vm2627_vm4, %v2804_v28, 0.0  ;;  %v2982_v28 = vmul.f32 %v8425_v55, %v2445_v30  ;;  %v3203_v55 = vadd.f32 %v3202_v3, %v3201_v18  ;;  %v3166_v30 = vmul.f32 %v8461_v35, %v2474_v47  ;;  %v2475_v3 = vld [vmem:[%s8838_s30 + $0x310] sm:$0xff] }
 0x4b2   :  { %v2849_v57 = vadd.f32 %v2848_v29, %v2847_v10  ;;  %v2856_v29 = vsel %vm2675_vm5, %v2808_v62, 0.0 }
 0x4b3   :  { %v8427_v1 = vpop.permute.xlu1 %2945  ;;  %v3024_v20 = vsel %vm2627_vm4, %v2982_v28, 0.0 }
 0x4b4   :  { %v2851_v43 = vadd.f32 %v2850_v32, %v2849_v57  ;;  %v2984_v2 = vmul.f32 %v8427_v1, %v2447_v38 }
 0x4b8   :  { %v2585_v7 = vpop.permute.xlu1 %2584 }
 0x4b9   :  { %v2623_v52 = vmul.f32 %v2585_v7, %v2398_v15  ;;  %v2624_v7 = vmul.f32 %v8431_v45, %v2399_v54  ;;  %v3021_v45 = vadd.f32 %v3020_v41, %v8395_v37  ;;  %v2448_v37 = vld [vmem:[%s8838_s30 + $0x238] sm:$0xff]  ;;  %v2401_v41 = vld [vmem:[%s8838_s30 + $0xc0] sm:$0xf] }
 0x4ba   :  { %v2449_v54 = vld [vmem:[%s8838_s30 + $0x240] sm:$0xff] }
 0x4bb   :  { %v2669_v25 = vsel %vm2627_vm4, %v2623_v52, 0.0  ;;  %v3023_v59 = vadd.f32 %v3022_v27, %v3021_v45  ;;  %v2671_v36 = vsel %vm2627_vm4, %v2624_v7, 0.0  ;;  %v2476_v52 = vld [vmem:[%s8838_s30 + $0x318] sm:$0xf]  ;;  %v2986_v28 = vmul.f32 %v8441_v12, %v2449_v54 }
 0x4bd   :  { %v8429_v63 = vpop.permute.xlu1 %3125  ;;  %v3025_v57 = vadd.f32 %v3024_v20, %v3023_v59 }
 0x4be   :  { %v3164_v11 = vmul.f32 %v8429_v63, %v2472_v24 }
 0x4c2   :  { %v8433_v44 = vpop.permute.xlu1 %2949 }
 0x4c7   :  { %v2774_v23 = vpop.permute.xlu1 %2773 }
 0x4c8   :  { %v2806_v56 = vmul.f32 %v2774_v23, %v2424_v51  ;;  %v3163_v23 = vmul.f32 %v3122_v60, %v2471_v5  ;;  %v3204_v60 = vsel %vm2627_vm4, %v3162_v0, 0.0  ;;  %v2668_v51 = vadd.f32 %v2667_v53, %v2666_v16 }
 0x4c9   :  { %v3205_v10 = vadd.f32 %v3204_v60, %v3203_v55  ;;  %v2985_v5 = vmul.f32 %v8433_v44, %v2448_v37  ;;  %v3028_v0 = vsel %vm2627_vm4, %v2984_v2, 0.0  ;;  %v3027_v44 = vadd.f32 %v3026_v42, %v3025_v57 }
 0x4ca   :  { %v2852_v46 = vsel %vm2627_vm4, %v2806_v56, 0.0  ;;  %v2670_v40 = vadd.f32 %v2669_v25, %v2668_v51  ;;  %v3206_v63 = vsel %vm2627_vm4, %v3163_v23, 0.0  ;;  %v3212_v53 = vsel %vm2627_vm4, %v3166_v30, 0.0  ;;  %v3236_v30 = vld [vmem:[%s8839_s2 + $0x10] sm:$0xff] }
 0x4cb   :  { %v2853_v26 = vadd.f32 %v2852_v46, %v2851_v43  ;;  %v3142_v46 = vpop.permute.xlu0 %3141  ;;  %v3030_v35 = vsel %vm2627_vm4, %v2985_v5, 0.0  ;;  %v3029_v43 = vadd.f32 %v3028_v0, %v3027_v44  ;;  %v3237_v0 = vld [vmem:[%s8839_s2 + $0x18] sm:$0xff] }
 0x4cc   :  { %v8455_v49 = vpop.permute.xlu1 %3129  ;;  %v2672_v61 = vadd.f32 %v2671_v36, %v2670_v40  ;;  %v3168_v7 = vmul.f32 %v3142_v46, %v2476_v52  ;;  %v8609_v52 = vld [vmem:[%s8841_s22] sm:$0xff]  ;;  %v8618_v46 = vld [vmem:[%s8841_s22 + $0x8] sm:$0xff] }
 0x4cd   :  { %v3165_v31 = vmul.f32 %v8455_v49, %v2473_v39  ;;  %v3207_v49 = vadd.f32 %v3206_v63, %v3205_v10  ;;  %v3031_v60 = vadd.f32 %v3030_v35, %v3029_v43  ;;  %v2451_v39 = vld [vmem:[%s8838_s30 + $0x250] sm:$0xf] }
 0x4ce   :  { %v3216_v51 = vsel %vm2675_vm5, %v3168_v7, 0.0  ;;  %v8623_v35 = vld [vmem:[%s8841_s22 + $0x10] sm:$0xff] }
 0x4cf   :  { %v3210_v48 = vsel %vm2627_vm4, %v3165_v31, 0.0 }
 0x4d1   :  { %v2595_v8 = vpop.permute.xlu1 %2594 }
 0x4d2   :  { %v2625_v17 = vmul.f32 %v2595_v8, %v2400_v14  ;;  %v3208_v8 = vsel %vm2627_vm4, %v3164_v11, 0.0 }
 0x4d4   :  { %v2673_v1 = vsel %vm2627_vm4, %v2625_v17, 0.0 }
 0x4d5   :  { %v2674_v19 = vadd.f32 %v2673_v1, %v2672_v61 }
 0x4d6   :  { %v2778_v21 = vpop.permute.xlu1 %2777 }
 0x4d7   :  { %v2807_v4 = vmul.f32 %v2778_v21, %v2425_v9  ;;  %v3209_v9 = vadd.f32 %v3208_v8, %v3207_v49 }
 0x4d9   :  { %v2854_v33 = vsel %vm2627_vm4, %v2807_v4, 0.0  ;;  %v3211_v23 = vadd.f32 %v3210_v48, %v3209_v9  ;;  %v3340_v9 = vld [vmem:[%s8804_s8] sm:$0xff] }
 0x4da   :  { %v2855_v58 = vadd.f32 %v2854_v33, %v2853_v26  ;;  %v3032_v33 = vsel %vm2627_vm4, %v2986_v28, 0.0 }
 0x4db   :  { %v2958_v34 = vpop.permute.xlu1 %2957  ;;  %v3213_v14 = vadd.f32 %v3212_v53, %v3211_v23  ;;  %v3033_v38 = vadd.f32 %v3032_v33, %v3031_v60  ;;  %v8632_v23 = vld [vmem:[%s8841_s22 + $0x18] sm:$0xff]  ;;  %v4466_v60 = vld [vmem:[%s8807_s11] ss:$0 sm:$0xff] }
 0x4dc   :  { %v2857_v56 = vadd.f32 %v2856_v29, %v2855_v58  ;;  %v2987_v24 = vmul.f32 %v2958_v34, %v2450_v22 }
 0x4de   :  { %v2858_v15 = vrot.slane %v2857_v56, 4  ;;  %v3034_v12 = vsel %vm2627_vm4, %v2987_v24, 0.0 }
 0x4df   :  { %v3035_v17 = vadd.f32 %v3034_v12, %v3033_v38  ;;  %v3662_v38 = vld [vmem:[%s8842_s1 + $0x10] sm:$0xff] }
 0x4e0   :  { %v2859_v13 = vadd.f32 %v2858_v15, %v2857_v56  ;;  %v2600_v50 = vpop.permute.xlu1 %2599 }
 0x4e1   :  { %v2626_v32 = vmul.f32 %v2600_v50, %v2401_v41  ;;  %v3235_v50 = vld [vmem:[%s8839_s2 + $0x8] sm:$0xff] }
 0x4e2   :  { %v2860_v21 = vrot.slane %v2859_v13, 2 }
 0x4e3   :  { %v2676_v62 = vsel %vm2675_vm5, %v2626_v32, 0.0  ;;  %v3339_v32 = vld [vmem:[%s8840_s27] sm:$0x3] }
 0x4e4   :  { %v2677_v18 = vadd.f32 %v2676_v62, %v2674_v19  ;;  %v2861_v27 = vadd.f32 %v2860_v21, %v2859_v13  ;;  %v3550_v62 = vld [vmem:[%s8806_s10] sm:$0x1f] }
 0x4e5   :  { %v3138_v4 = vpop.permute.xlu1 %3137 }
 0x4e6   :  { %v2678_v16 = vrot.slane %v2677_v18, 4  ;;  %v3167_v26 = vmul.f32 %v3138_v4, %v2475_v3  ;;  %v2862_v10 = vrot.slane %v2861_v27, 1  ;;  %v4465_v3 = vld [vmem:[%s8805_s9] ss:$0 sm:$0xff] }
 0x4e8   :  { %v2679_v55 = vadd.f32 %v2678_v16, %v2677_v18  ;;  %v3214_v25 = vsel %vm2627_vm4, %v3167_v26, 0.0  ;;  %v2863_v2 = vadd.f32 %v2862_v10, %v2861_v27 }
 0x4e9   :  { %v3215_v45 = vadd.f32 %v3214_v25, %v3213_v14 }
 0x4ea   :  { %v2680_v11 = vrot.slane %v2679_v55, 2  ;;  %v2962_v58 = vpop.permute.xlu1 %2961 }
 0x4eb   :  { %v3217_v29 = vadd.f32 %v3216_v51, %v3215_v45  ;;  %v2988_v20 = vmul.f32 %v2962_v58, %v2451_v39  ;;  %v3661_v51 = vld [vmem:[%s8842_s1 + $0x8] sm:$0xff] }
 0x4ec   :  { %v2681_v34 = vadd.f32 %v2680_v11, %v2679_v55  ;;  %v3663_v11 = vld [vmem:[%s8842_s1 + $0x18] sm:$0xff]  ;;  %v4478_v58 = vld [vmem:[%s8810_s14 + $0x8] sm:$0x1f] }
 0x4ed   :  { %v3218_v59 = vrot.slane %v3217_v29, 4  ;;  %v3036_v40 = vsel %vm2675_vm5, %v2988_v20, 0.0 }
 0x4ee   :  { %v2682_v37 = vrot.slane %v2681_v34, 1  ;;  %v3037_v31 = vadd.f32 %v3036_v40, %v3035_v17 }
 0x4ef   :  { %v3219_v56 = vadd.f32 %v3218_v59, %v3217_v29  ;;  %v8687_v29 = vld [vmem:[%s8810_s14] sm:$0x1f] }
 0x4f0   :  { %v2683_v63 = vadd.f32 %v2682_v37, %v2681_v34  ;;  %v3038_v47 = vrot.slane %v3037_v31, 4 }
 0x4f1   :  { %v3220_v57 = vrot.slane %v3219_v56, 2 }
 0x4f2   :  { %v3039_v8 = vadd.f32 %v3038_v47, %v3037_v31  ;;  %v3225_v15 = vsel %vm3224_vm6, %v2683_v63, %v2863_v2 }
 0x4f3   :  { %v3221_v41 = vadd.f32 %v3220_v57, %v3219_v56 }
 0x4f4   :  { %v3040_v36 = vrot.slane %v3039_v8, 2 }
 0x4f5   :  { %v3222_v5 = vrot.slane %v3221_v41, 1 }
 0x4f6   :  { %v3041_v49 = vadd.f32 %v3040_v36, %v3039_v8 }
 0x4f7   :  { %v3223_v48 = vadd.f32 %v3222_v5, %v3221_v41 }
 0x4f8   :  { %v3042_v1 = vrot.slane %v3041_v49, 1 }
 0x4fa   :  { %v3043_v42 = vadd.f32 %v3042_v1, %v3041_v49 }
 0x4fc   :  { %v3227_v61 = vsel %vm3226_vm7, %v3225_v15, %v3043_v42 }
 0x4fd   :  { %v3229_v13 = vsel %vm3228_vm8, %v3227_v61, %v3223_v48 }
 0x4fe   :  { %4667 = vmatprep.subr.msk.mxu1 %vm3250_vm9, %v3229_v13 }
 0x4ff   :  { %4668 = vmatpush3.msk.msra.mxu1 %vm3250_vm9, %v3229_v13 }
 0x500   :  { %4670 = vmatmul.mubr.msk.f32.vlgmr.msra.gmra.mrb[50].mxu1 %vm2164_vm2, %v3235_v50  ;;  %4675 = vmatprep.subr.mxu1 %v3340_v9 }
 0x501   :  { %4672 = vmatprep.mubr.msk.f32.mxu1 %vm2164_vm2, %v3236_v30  ;;  %4676 = vmatpush3.msra.mxu1 %v3340_v9 }
 0x502   :  { %4683 = vmatprep.subr.msk.mxu1 %vm3226_vm7, %v3339_v32 }
 0x504   :  { %4673 = vmatmul.mubr.msk.f32.gmra.mrb[52].mxu1 %vm2164_vm2, %v3237_v0 }
 0x5d3   :  { %v4671_v54 = vpop.f32.mrb[50].mxu1 }
 0x5d4   :  { %v3320_v44 = vpop.f32.mrb[51].mxu1 }
 0x5d5   :  { %4677 = vmatprep.mubr.msk.f32.mxu1 %vm2627_vm4, %v3320_v44 }
 0x5d6   :  { %4678 = vmatmul.mubr.msk.f32.vlgmr.msra.gmra.mrb[54].mxu1 %vm2627_vm4, %v4671_v54 }
 0x5d7   :  { %v4674_v19 = vpop.f32.mrb[52].mxu1  ;;  %4684 = vmatpush3.msk.msra.mxu1 %vm3226_vm7, %v3339_v32 }
 0x5d8   :  { %v3330_v22 = vpop.f32.mrb[53].mxu1  ;;  %4691 = vmatprep.subr.msk.mxu1 %vm3571_vm11, %v3550_v62 }
 0x5d9   :  { %4680 = vmatprep.mubr.msk.f32.mxu1 %vm2627_vm4, %v3330_v22 }
 0x5da   :  { %4681 = vmatmul.mubr.msk.f32.gmra.mrb[56].mxu1 %vm2627_vm4, %v4674_v19 }
 0x5db   :  { %4685 = vmatprep.mubr.msk.f32.mxu1 %vm3438_vm10, %v8609_v52 }
 0x5de   :  { %4686 = vmatmul.mubr.msk.f32.vlgmr.msra.gmra.mrb[54].mxu1 %vm3438_vm10, %v8618_v46 }
 0x5df   :  { %4688 = vmatprep.mubr.msk.f32.mxu1 %vm3438_vm10, %v8623_v35  ;;  %4692 = vmatpush3.msk.msra.mxu1 %vm3571_vm11, %v3550_v62 }
 0x5e2   :  { %4689 = vmatmul.mubr.msk.f32.gmra.mrb[56].mxu1 %vm3438_vm10, %v8632_v23 }
 0x6b1   :  { %v4687_v43 = vpop.f32.mrb[54].mxu1 }
 0x6b2   :  { %v3520_v21 = vpop.f32.mrb[55].mxu1  ;;  %v3547_v28 = vadd.f32 %v4687_v43, %v4465_v3 }
 0x6b3   :  { %v3546_v18 = vadd.f32 %v4465_v3, %v3520_v21 }
 0x6b5   :  { %v4690_v53 = vpop.f32.mrb[56].mxu1  ;;  %4693 = vmatprep.mubr.msk.f32.mxu1 %vm3558_vm12, %v3546_v18 }
 0x6b6   :  { %v3530_v24 = vpop.f32.mrb[57].mxu1  ;;  %4694 = vmatmul.mubr.msk.f32.vlgmr.msra.gmra.mrb[58].mxu1 %vm3558_vm12, %v3547_v28  ;;  %v3549_v7 = vadd.f32 %v4690_v53, %v4465_v3 }
 0x6b7   :  { %v3548_v4 = vadd.f32 %v4465_v3, %v3530_v24 }
 0x6b9   :  { %4696 = vmatprep.mubr.msk.f32.mxu1 %vm3558_vm12, %v3548_v4 }
 0x6ba   :  { %4697 = vmatmul.mubr.msk.f32.gmra.mrb[60].mxu1 %vm3558_vm12, %v3549_v7  ;;  %v4476_v7 = vld [vmem:[%s8808_s12] ss:$0 sm:$0xff] }
 0x6bb   :  { %4707 = vmatprep.mubr.msk.f32.mxu1 %vm758_vm1, %v3660_v6 }
 0x789   :  { %v4695_v16 = vpop.f32.mrb[58].mxu1 }
 0x78a   :  { %v3647_v26 = vadd.f32 %v4695_v16, %v4466_v60  ;;  %v3641_v14 = vpop.f32.mrb[59].mxu1 }
 0x78b   :  { %v3642_v27 = vadd.f32 %v4466_v60, %v3641_v14  ;;  %v4477_v14 = vld [vmem:[%s8809_s13] ss:$0 sm:$0xff] }
 0x78d   :  { %v5039_v55 = vpack.c.bf16 %v3647_v26, %v3642_v27  ;;  %v4698_v25 = vpop.f32.mrb[60].mxu1 }
 0x78e   :  { %v3657_v39 = vadd.f32 %v4698_v25, %v4466_v60  ;;  %v3651_v33 = vpop.f32.mrb[61].mxu1 }
 0x78f   :  { %v3652_v12 = vadd.f32 %v4466_v60, %v3651_v33  ;;  %5040 = vmatprep.subr.bf16.mxu1 %v5039_v55  ;;  %v3831_v33 = vstv %s3826_s0 }
 0x790   :  { %5042 = vmatpush3.bf16.msra.mxu1 %v5039_v55 }
 0x791   :  { %v5043_v45 = vpack.c.bf16 %v3657_v39, %v3652_v12 }
 0x793   :  { %5044 = vmatprep.subr.bf16.mxu1 %v5043_v45 }
 0x794   :  { %5046 = vmatpush3.bf16.msra.mxu1 %v5043_v45 }
 0x795   :  { %4713 = vmatprep.subr.msk.mxu1 %vm3571_vm11, %v4478_v58 }
 0x797   :  { %4708 = vmatmul.mubr.msk.f32.vlgmr.msra.gmra.mrb[62].mxu1 %vm758_vm1, %v3661_v51 }
 0x798   :  { %4710 = vmatprep.mubr.msk.f32.mxu1 %vm758_vm1, %v3662_v38  ;;  %4714 = vmatpush3.msk.msra.mxu1 %vm3571_vm11, %v4478_v58 }
 0x799   :  { %4721 = vmatprep.subr.msk.mxu1 %vm3571_vm11, %v8687_v29 }
 0x79b   :  { %4711 = vmatmul.mubr.msk.f32.gmra.mrb[64].mxu1 %vm758_vm1, %v3663_v11 }
 0x86a   :  { %v4709_v20 = vpop.f32.mrb[62].mxu1 }
 0x86b   :  { %v3764_v10 = vsel %vm3558_vm12, %v4709_v20, 0.0  ;;  %v3742_v17 = vpop.f32.mrb[63].mxu1 }
 0x86c   :  { %v3763_v34 = vsel %vm3558_vm12, %v3742_v17, 0.0 }
 0x86d   :  { %v3765_v59 = vadd.f32 %v3764_v10, %v3763_v34 }
 0x86e   :  { %v4712_v40 = vpop.f32.mrb[64].mxu1 }
 0x86f   :  { %v3752_v37 = vpop.f32.mrb[65].mxu1  ;;  %v3768_v2 = vsel %vm3558_vm12, %v4712_v40, 0.0 }
 0x870   :  { %v3766_v31 = vsel %vm3558_vm12, %v3752_v37, 0.0 }
 0x871   :  { %v3767_v56 = vadd.f32 %v3766_v31, %v3765_v59 }
 0x873   :  { %v3769_v63 = vadd.f32 %v3768_v2, %v3767_v56  ;;  %v4489_v2 = vld [vmem:[%s8810_s14 + $0x10] sm:$0x1f] }
 0x875   :  { %v3770_v47 = vrot.slane %v3769_v63, 4 }
 0x877   :  { %v3771_v57 = vadd.f32 %v3770_v47, %v3769_v63 }
 0x879   :  { %v3772_v8 = vrot.slane %v3771_v57, 2 }
 0x87b   :  { %v3773_v15 = vadd.f32 %v3772_v8, %v3771_v57 }
 0x87d   :  { %v3774_v41 = vrot.slane %v3773_v15, 1 }
 0x87f   :  { %v3775_v36 = vadd.f32 %v3774_v41, %v3773_v15 }
 0x881   :  { %v3777_v49 = vmul.f32 0.03125, %v3775_v36 }
 0x883   :  { %v3778_v5 = vsub.f32 %v3742_v17, %v3777_v49  ;;  %v3779_v1 = vsub.f32 %v4709_v20, %v3777_v49  ;;  %v3780_v42 = vsub.f32 %v3752_v37, %v3777_v49  ;;  %v3781_v48 = vsub.f32 %v4712_v40, %v3777_v49  ;;  %v3850_v37 = vld [vmem:[#allocation2] sm:$0xff] }
 0x884   :  { %v3960_v57 = vrot.slane %v3850_v37, 4 }
 0x885   :  { %v3782_v61 = vmul.f32 %v3778_v5, %v3778_v5  ;;  %v3783_v13 = vmul.f32 %v3779_v1, %v3779_v1  ;;  %v3784_v50 = vmul.f32 %v3780_v42, %v3780_v42  ;;  %v3785_v30 = vmul.f32 %v3781_v48, %v3781_v48 }
 0x887   :  { %v3786_v0 = vsel %vm3558_vm12, %v3782_v61, 0.0  ;;  %v3787_v9 = vsel %vm3558_vm12, %v3783_v13, 0.0  ;;  %v3789_v54 = vsel %vm3558_vm12, %v3784_v50, 0.0  ;;  %v3791_v19 = vsel %vm3558_vm12, %v3785_v30, 0.0  ;;  %v4495_v50 = vld [vmem:[%s8811_s15] ss:$0 sm:$0xff] }
 0x888   :  { %v3788_v32 = vadd.f32 %v3787_v9, %v3786_v0 }
 0x88a   :  { %v3790_v44 = vadd.f32 %v3789_v54, %v3788_v32 }
 0x88c   :  { %v3792_v22 = vadd.f32 %v3791_v19, %v3790_v44 }
 0x88e   :  { %v3793_v62 = vrot.slane %v3792_v22, 4 }
 0x890   :  { %v3794_v3 = vadd.f32 %v3793_v62, %v3792_v22 }
 0x892   :  { %v3795_v43 = vrot.slane %v3794_v3, 2 }
 0x894   :  { %v3796_v21 = vadd.f32 %v3795_v43, %v3794_v3 }
 0x896   :  { %v3797_v18 = vrot.slane %v3796_v21, 1 }
 0x898   :  { %v3798_v28 = vadd.f32 %v3797_v18, %v3796_v21 }
 0x89a   :  { %v3799_v53 = vmul.f32 0.03125, %v3798_v28 }
 0x89c   :  { %v3800_v24 = vadd.f32 1e-05, %v3799_v53 }
 0x89e   :  { %5550 = vrsqrt.f32 %v3800_v24 }
 0x8a8   :  { %v5551_v4 = vpop.eup %5550 }
 0x8a9   :  { %v3802_v6 = vmul.f32 %v5551_v4, %v3778_v5  ;;  %v3803_v60 = vmul.f32 %v5551_v4, %v3779_v1  ;;  %v3804_v16 = vmul.f32 %v5551_v4, %v3780_v42  ;;  %v3805_v26 = vmul.f32 %v5551_v4, %v3781_v48  ;;  %v4239_v1 = vld [vmem:[%s8814_s18] sm:$0x3]  ;;  %v3855_v48 = vld [vmem:[#allocation2 + $0x28] sm:$0xff] }
 0x8aa   :  { %v4068_v61 = vrot.slane %v3855_v48, 4 }
 0x8ab   :  { %v3812_v27 = vmul.f32 %v4476_v7, %v3802_v6  ;;  %v3813_v55 = vmul.f32 %v4476_v7, %v3803_v60  ;;  %v3814_v25 = vmul.f32 %v4476_v7, %v3804_v16  ;;  %v3815_v39 = vmul.f32 %v4476_v7, %v3805_v26 }
 0x8ad   :  { %v3822_v12 = vadd.f32 %v4477_v14, %v3812_v27  ;;  %v3823_v45 = vadd.f32 %v4477_v14, %v3813_v55  ;;  %v3824_v51 = vadd.f32 %v4477_v14, %v3814_v25  ;;  %v3825_v38 = vadd.f32 %v4477_v14, %v3815_v39 }
 0x8af   :  { %vm3827_vm13 = vcmp.ge.f32.partialorder %v3822_v12, 0.0  ;;  %vm3828_vm14 = vcmp.ge.f32.partialorder %v3823_v45, 0.0  ;;  %vm3829_vm15 = vcmp.ge.f32.partialorder %v3824_v51, 0.0  ;;  %vm3830_vm0 = vcmp.ge.f32.partialorder %v3825_v38, 0.0 }
 0x8b0   :  { %v3832_v11 = vmul.f32 %v3831_v33, %v3822_v12  ;;  %v3833_v58 = vmul.f32 %v3831_v33, %v3823_v45  ;;  %v3834_v20 = vmul.f32 %v3831_v33, %v3824_v51  ;;  %v3835_v10 = vmul.f32 %v3831_v33, %v3825_v38 }
 0x8b2   :  { %v3836_v17 = vsel %vm3827_vm13, %v3822_v12, %v3832_v11  ;;  %v3837_v34 = vsel %vm3828_vm14, %v3823_v45, %v3833_v58  ;;  %v3838_v59 = vsel %vm3829_vm15, %v3824_v51, %v3834_v20  ;;  %v3839_v40 = vsel %vm3830_vm0, %v3825_v38, %v3835_v10 }
 0x8b3   :  { %3846 = vst.msk [vmem:[#allocation2 + $0x8] sm:$0xff] %vm3558_vm12, %v3836_v17  ;;  %3847 = vst.msk [vmem:[#allocation2 + $0x10] sm:$0xff] %vm3558_vm12, %v3837_v34 }
 0x8b4   :  { %3848 = vst.msk [vmem:[#allocation2 + $0x18] sm:$0xff] %vm3558_vm12, %v3838_v59  ;;  %3849 = vst.msk [vmem:[#allocation2 + $0x20] sm:$0xff] %vm3558_vm12, %v3839_v40 }
 0x8ba   :  { %v3851_v31 = vld [vmem:[#allocation2 + $0x8] sm:$0xff]  ;;  %v3852_v56 = vld [vmem:[#allocation2 + $0x10] sm:$0xff] }
 0x8bb   :  { %4715 = vmatprep.mubr.msk.f32.mxu1 %vm3558_vm12, %v3851_v31  ;;  %v3961_v63 = vrot.slane %v3851_v31, 4  ;;  %v3853_v47 = vld [vmem:[#allocation2 + $0x18] sm:$0xff]  ;;  %v3963_v8 = vrot.slane %v3852_v56, 4  ;;  %v3854_v15 = vld [vmem:[#allocation2 + $0x20] sm:$0xff] }
 0x8bc   :  { %4716 = vmatmul.mubr.msk.f32.vlgmr.msra.gmra.mrb[66].mxu1 %vm3558_vm12, %v3852_v56  ;;  %v3965_v41 = vrot.slane %v3853_v47, 4  ;;  %v3967_v49 = vrot.slane %v3854_v15, 4 }
 0x8bd   :  { %4718 = vmatprep.mubr.msk.f32.mxu1 %vm3558_vm12, %v3853_v47  ;;  %4722 = vmatpush3.msk.msra.mxu1 %vm3571_vm11, %v8687_v29  ;;  %v3962_v36 = vsel %vm3250_vm9, %v3960_v57, %v3961_v63  ;;  %v3964_v5 = vsel %vm3250_vm9, %v3961_v63, %v3963_v8 }
 0x8be   :  { %4729 = vmatprep.subr.msk.mxu1 %vm3571_vm11, %v4489_v2  ;;  %v3966_v29 = vsel %vm3250_vm9, %v3963_v8, %v3965_v41  ;;  %v3968_v42 = vsel %vm3250_vm9, %v3965_v41, %v3967_v49  ;;  %v4069_v13 = vsel %vm3250_vm9, %v3967_v49, %v4068_v61 }
 0x8c0   :  { %4719 = vmatmul.mubr.msk.f32.gmra.mrb[68].mxu1 %vm3558_vm12, %v3854_v15 }
 0x8c1   :  { %4723 = vmatprep.mubr.msk.f32.mxu1 %vm3558_vm12, %v3962_v36 }
 0x8c4   :  { %4724 = vmatmul.mubr.msk.f32.vlgmr.msra.gmra.mrb[66].mxu1 %vm3558_vm12, %v3964_v5 }
 0x8c5   :  { %4726 = vmatprep.mubr.msk.f32.mxu1 %vm3558_vm12, %v3966_v29  ;;  %4730 = vmatpush3.msk.msra.mxu1 %vm3571_vm11, %v4489_v2 }
 0x8c6   :  { %4737 = vmatprep.subr.msk.mxu1 %vm3226_vm7, %v4239_v1 }
 0x8c8   :  { %4727 = vmatmul.mubr.msk.f32.gmra.mrb[68].mxu1 %vm3558_vm12, %v3968_v42 }
 0x8c9   :  { %4731 = vmatprep.mubr.msk.f32.mxu1 %vm3558_vm12, %v3964_v5 }
 0x8cc   :  { %4732 = vmatmul.mubr.msk.f32.vlgmr.msra.gmra.mrb[66].mxu1 %vm3558_vm12, %v3966_v29 }
 0x8cd   :  { %4734 = vmatprep.mubr.msk.f32.mxu1 %vm3558_vm12, %v3968_v42  ;;  %4738 = vmatpush3.msk.msra.mxu1 %vm3226_vm7, %v4239_v1 }
 0x8d0   :  { %4735 = vmatmul.mubr.msk.f32.gmra.mrb[68].mxu1 %vm3558_vm12, %v4069_v13 }
 0x8d1   :  { %4739 = vmatprep.mubr.msk.f32.mxu1 %vm3438_vm10, %v8609_v52 }
 0x8d4   :  { %4740 = vmatmul.mubr.msk.f32.vlgmr.msra.gmra.mrb[70].mxu1 %vm3438_vm10, %v8618_v46 }
 0x8d5   :  { %4742 = vmatprep.mubr.msk.f32.mxu1 %vm3438_vm10, %v8623_v35 }
 0x8d8   :  { %4743 = vmatmul.mubr.msk.f32.gmra.mrb[72].mxu1 %vm3438_vm10, %v8632_v23  ;;  %v4498_v23 = vld [vmem:[%s8815_s19] ss:$0 sm:$0xff] }
 0x99f   :  { %v4733_v30 = vpop.f32.mrb[66].mxu1 }
 0x9a0   :  { %v4172_v0 = vadd.f32 %v4733_v30, %v4495_v50  ;;  %v4141_v9 = vpop.f32.mrb[67].mxu1 }
 0x9a1   :  { %v4171_v32 = vadd.f32 %v4495_v50, %v4141_v9 }
 0x9a2   :  { %v4178_v54 = vsel %vm3558_vm12, %v4172_v0, 0.0 }
 0x9a3   :  { %v4177_v52 = vsel %vm3558_vm12, %v4171_v32, 0.0  ;;  %v4736_v44 = vpop.f32.mrb[68].mxu1 }
 0x9a4   :  { %v4179_v46 = vadd.f32 %v4178_v54, %v4177_v52  ;;  %v4151_v19 = vpop.f32.mrb[69].mxu1  ;;  %v4174_v22 = vadd.f32 %v4736_v44, %v4495_v50 }
 0x9a5   :  { %v4173_v35 = vadd.f32 %v4495_v50, %v4151_v19 }
 0x9a6   :  { %v4182_v28 = vsel %vm3558_vm12, %v4174_v22, 0.0 }
 0x9a7   :  { %v4180_v62 = vsel %vm3558_vm12, %v4173_v35, 0.0  ;;  %v4741_v3 = vpop.f32.mrb[70].mxu1 }
 0x9a8   :  { %v4181_v43 = vadd.f32 %v4180_v62, %v4179_v46  ;;  %v4322_v21 = vadd.f32 %v4741_v3, %v4498_v23  ;;  %v4316_v18 = vpop.f32.mrb[71].mxu1 }
 0x9a9   :  { %v4317_v53 = vadd.f32 %v4498_v23, %v4316_v18 }
 0x9aa   :  { %v4183_v24 = vadd.f32 %v4182_v28, %v4181_v43  ;;  %v4338_v4 = vsel %vm3558_vm12, %v4322_v21, 0.0 }
 0x9ab   :  { %v4337_v7 = vsel %vm3558_vm12, %v4317_v53, 0.0  ;;  %v4744_v6 = vpop.f32.mrb[72].mxu1 }
 0x9ac   :  { %v4184_v60 = vrot.slane %v4183_v24, 4  ;;  %v4339_v16 = vadd.f32 %v4338_v4, %v4337_v7  ;;  %v4326_v26 = vpop.f32.mrb[73].mxu1  ;;  %v4332_v14 = vadd.f32 %v4744_v6, %v4498_v23 }
 0x9ad   :  { %v4327_v27 = vadd.f32 %v4498_v23, %v4326_v26 }
 0x9ae   :  { %v4185_v55 = vadd.f32 %v4184_v60, %v4183_v24  ;;  %v4342_v12 = vsel %vm3558_vm12, %v4332_v14, 0.0 }
 0x9af   :  { %v4340_v25 = vsel %vm3558_vm12, %v4327_v27, 0.0 }
 0x9b0   :  { %v4186_v39 = vrot.slane %v4185_v55, 2  ;;  %v4341_v33 = vadd.f32 %v4340_v25, %v4339_v16 }
 0x9b2   :  { %v4187_v45 = vadd.f32 %v4186_v39, %v4185_v55  ;;  %v4343_v51 = vadd.f32 %v4342_v12, %v4341_v33  ;;  %v4496_v12 = vld [vmem:[%s8812_s16] ss:$0 sm:$0xff] }
 0x9b4   :  { %v4188_v38 = vrot.slane %v4187_v45, 1  ;;  %v4344_v11 = vrot.slane %v4343_v51, 4 }
 0x9b6   :  { %v4189_v58 = vadd.f32 %v4188_v38, %v4187_v45  ;;  %v4345_v20 = vadd.f32 %v4344_v11, %v4343_v51 }
 0x9b8   :  { %v4190_v10 = vmul.f32 0.03125, %v4189_v58  ;;  %v4346_v17 = vrot.slane %v4345_v20, 2 }
 0x9ba   :  { %v4191_v34 = vsub.f32 %v4171_v32, %v4190_v10  ;;  %v4192_v59 = vsub.f32 %v4172_v0, %v4190_v10  ;;  %v4193_v40 = vsub.f32 %v4173_v35, %v4190_v10  ;;  %v4194_v37 = vsub.f32 %v4174_v22, %v4190_v10  ;;  %v4497_v10 = vld [vmem:[%s8813_s17] ss:$0 sm:$0xff] }
 0x9bb   :  { %v4347_v31 = vadd.f32 %v4346_v17, %v4345_v20  ;;  %v4504_v20 = vld [vmem:[%s8816_s20] ss:$0 sm:$0xff] }
 0x9bc   :  { %v4195_v56 = vmul.f32 %v4191_v34, %v4191_v34  ;;  %v4196_v2 = vmul.f32 %v4192_v59, %v4192_v59  ;;  %v4197_v63 = vmul.f32 %v4193_v40, %v4193_v40  ;;  %v4198_v57 = vmul.f32 %v4194_v37, %v4194_v37 }
 0x9bd   :  { %v4348_v47 = vrot.slane %v4347_v31, 1 }
 0x9be   :  { %v4199_v8 = vsel %vm3558_vm12, %v4195_v56, 0.0  ;;  %v4200_v15 = vsel %vm3558_vm12, %v4196_v2, 0.0  ;;  %v4202_v49 = vsel %vm3558_vm12, %v4197_v63, 0.0  ;;  %v4204_v29 = vsel %vm3558_vm12, %v4198_v57, 0.0 }
 0x9bf   :  { %v4201_v41 = vadd.f32 %v4200_v15, %v4199_v8  ;;  %v4349_v36 = vadd.f32 %v4348_v47, %v4347_v31 }
 0x9c1   :  { %v4203_v5 = vadd.f32 %v4202_v49, %v4201_v41  ;;  %v4350_v1 = vmul.f32 0.03125, %v4349_v36 }
 0x9c3   :  { %v4205_v42 = vadd.f32 %v4204_v29, %v4203_v5  ;;  %v4351_v48 = vsub.f32 %v4317_v53, %v4350_v1  ;;  %v4352_v61 = vsub.f32 %v4322_v21, %v4350_v1  ;;  %v4353_v13 = vsub.f32 %v4327_v27, %v4350_v1 }
 0x9c4   :  { %v4354_v50 = vsub.f32 %v4332_v14, %v4350_v1  ;;  %v4408_v1 = vstv %s4506_s6 }
 0x9c5   :  { %v4206_v30 = vrot.slane %v4205_v42, 4  ;;  %v4355_v0 = vmul.f32 %v4351_v48, %v4351_v48  ;;  %v4356_v9 = vmul.f32 %v4352_v61, %v4352_v61  ;;  %v4357_v32 = vmul.f32 %v4353_v13, %v4353_v13 }
 0x9c6   :  { %v4358_v52 = vmul.f32 %v4354_v50, %v4354_v50 }
 0x9c7   :  { %v4207_v54 = vadd.f32 %v4206_v30, %v4205_v42  ;;  %v4359_v44 = vsel %vm3558_vm12, %v4355_v0, 0.0  ;;  %v4360_v46 = vsel %vm3558_vm12, %v4356_v9, 0.0  ;;  %v4362_v35 = vsel %vm3558_vm12, %v4357_v32, 0.0 }
 0x9c8   :  { %v4361_v19 = vadd.f32 %v4360_v46, %v4359_v44  ;;  %v4364_v3 = vsel %vm3558_vm12, %v4358_v52, 0.0 }
 0x9c9   :  { %v4208_v22 = vrot.slane %v4207_v54, 2 }
 0x9ca   :  { %v4363_v23 = vadd.f32 %v4362_v35, %v4361_v19 }
 0x9cb   :  { %v4209_v62 = vadd.f32 %v4208_v22, %v4207_v54 }
 0x9cc   :  { %v4365_v43 = vadd.f32 %v4364_v3, %v4363_v23 }
 0x9cd   :  { %v4210_v21 = vrot.slane %v4209_v62, 1 }
 0x9ce   :  { %v4366_v18 = vrot.slane %v4365_v43, 4 }
 0x9cf   :  { %v4211_v28 = vadd.f32 %v4210_v21, %v4209_v62 }
 0x9d0   :  { %v4367_v53 = vadd.f32 %v4366_v18, %v4365_v43 }
 0x9d1   :  { %v4212_v24 = vmul.f32 0.03125, %v4211_v28 }
 0x9d2   :  { %v4368_v4 = vrot.slane %v4367_v53, 2 }
 0x9d3   :  { %v4213_v7 = vadd.f32 1e-05, %v4212_v24 }
 0x9d4   :  { %v4369_v6 = vadd.f32 %v4368_v4, %v4367_v53 }
 0x9d5   :  { %5552 = vrsqrt.f32 %v4213_v7 }
 0x9d6   :  { %v4370_v60 = vrot.slane %v4369_v6, 1 }
 0x9d8   :  { %v4371_v16 = vadd.f32 %v4370_v60, %v4369_v6 }
 0x9da   :  { %v4372_v26 = vmul.f32 0.03125, %v4371_v16 }
 0x9dc   :  { %v4373_v14 = vadd.f32 1e-05, %v4372_v26 }
 0x9de   :  { %5554 = vrsqrt.f32 %v4373_v14 }
 0x9df   :  { %v5553_v27 = vpop.eup %5552 }
 0x9e0   :  { %v4215_v55 = vmul.f32 %v5553_v27, %v4191_v34  ;;  %v4216_v25 = vmul.f32 %v5553_v27, %v4192_v59  ;;  %v4217_v39 = vmul.f32 %v5553_v27, %v4193_v40  ;;  %v4218_v33 = vmul.f32 %v5553_v27, %v4194_v37  ;;  %v4505_v37 = vld [vmem:[%s8817_s21] ss:$0 sm:$0xff] }
 0x9e2   :  { %v4225_v51 = vmul.f32 %v4496_v12, %v4215_v55  ;;  %v4226_v38 = vmul.f32 %v4496_v12, %v4216_v25  ;;  %v4227_v11 = vmul.f32 %v4496_v12, %v4217_v39  ;;  %v4228_v58 = vmul.f32 %v4496_v12, %v4218_v33 }
 0x9e4   :  { %v4235_v47 = vadd.f32 %v4497_v10, %v4225_v51  ;;  %v4236_v57 = vadd.f32 %v4497_v10, %v4226_v38  ;;  %v4237_v8 = vadd.f32 %v4497_v10, %v4227_v11  ;;  %v4238_v15 = vadd.f32 %v4497_v10, %v4228_v58 }
 0x9e8   :  { %v5555_v45 = vpop.eup %5554 }
 0x9e9   :  { %v4375_v17 = vmul.f32 %v5555_v45, %v4351_v48  ;;  %v4376_v34 = vmul.f32 %v5555_v45, %v4352_v61  ;;  %v4377_v59 = vmul.f32 %v5555_v45, %v4353_v13  ;;  %v4378_v40 = vmul.f32 %v5555_v45, %v4354_v50 }
 0x9eb   :  { %v4385_v31 = vmul.f32 %v4504_v20, %v4375_v17  ;;  %v4386_v56 = vmul.f32 %v4504_v20, %v4376_v34  ;;  %v4387_v2 = vmul.f32 %v4504_v20, %v4377_v59  ;;  %v4388_v63 = vmul.f32 %v4504_v20, %v4378_v40 }
 0x9ed   :  { %v4395_v41 = vadd.f32 %v4505_v37, %v4385_v31  ;;  %v4396_v36 = vadd.f32 %v4505_v37, %v4386_v56  ;;  %v4397_v49 = vadd.f32 %v4505_v37, %v4387_v2  ;;  %v4398_v5 = vadd.f32 %v4505_v37, %v4388_v63 }
 0x9ef   :  { %v4399_v29 = vadd.f32 %v4395_v41, %v4235_v47  ;;  %v4400_v42 = vadd.f32 %v4396_v36, %v4236_v57  ;;  %v4401_v48 = vadd.f32 %v4397_v49, %v4237_v8  ;;  %v4402_v61 = vadd.f32 %v4398_v5, %v4238_v15 }
 0x9f1   :  { %vm4404_vm1 = vcmp.ge.f32.partialorder %v4399_v29, 0.0  ;;  %vm4405_vm2 = vcmp.ge.f32.partialorder %v4400_v42, 0.0  ;;  %vm4406_vm3 = vcmp.ge.f32.partialorder %v4401_v48, 0.0  ;;  %vm4407_vm4 = vcmp.ge.f32.partialorder %v4402_v61, 0.0 }
 0x9f2   :  { %v4409_v13 = vmul.f32 %v4408_v1, %v4399_v29  ;;  %v4410_v50 = vmul.f32 %v4408_v1, %v4400_v42  ;;  %v4411_v30 = vmul.f32 %v4408_v1, %v4401_v48  ;;  %v4412_v0 = vmul.f32 %v4408_v1, %v4402_v61 }
 0x9f4   :  { %v4413_v9 = vsel %vm4404_vm1, %v4399_v29, %v4409_v13  ;;  %v4414_v32 = vsel %vm4405_vm2, %v4400_v42, %v4410_v50  ;;  %v4415_v54 = vsel %vm4406_vm3, %v4401_v48, %v4411_v30  ;;  %v4416_v52 = vsel %vm4407_vm4, %v4402_v61, %v4412_v0 }
 0x9f5   :  { %4417 = vst.msk [vmem:[%s8819_s23] sm:$0xff] %vm3558_vm12, %v4413_v9  ;;  %4418 = vst.msk [vmem:[%s8819_s23 + $0x8] sm:$0xff] %vm3558_vm12, %v4414_v32 }
 0x9f6   :  { %4419 = vst.msk [vmem:[%s8819_s23 + $0x10] sm:$0xff] %vm3558_vm12, %v4415_v54  ;;  %4420 = vst.msk [vmem:[%s8819_s23 + $0x18] sm:$0xff] %vm3558_vm12, %v4416_v52 }
 0x9f7   :  { %4425 = vsyncpa [#allocation4], 1 }

</bundles_post_ra>
